<compile_context>
chip_gen: v6e
topology: v6e:2x2x1
jax: 0.10.0
libtpu: 0.0.40
codegen_flags: <defaults>
</compile_context>

<pallas_src>
import jax
import jax.numpy as jnp
from jax import lax
from jax.experimental import pallas as pl
from jax.experimental.pallas import tpu as pltpu


# ----------------------------------------------------------------------------
# Pallas kernels
# ----------------------------------------------------------------------------

def _classifier_kernel(x_ref, wc_ref, bc_ref, o_ref):
    """category_probs = softmax(Linear(mean_{H,W}(x))) for one batch element.

    x_ref : (1, H, W, C)  NHWC input tile
    wc_ref: (C, NCAT)     linear weight (pre-transposed)
    bc_ref: (1, NCAT)     linear bias
    o_ref : (1, 1, NCAT)  per-batch category probabilities
    """
    _, H, W, C = x_ref.shape
    xm = jnp.mean(x_ref[0].reshape(H * W, C), axis=0, keepdims=True)       # (1, C)
    logits = jnp.dot(xm, wc_ref[...], preferred_element_type=jnp.float32)
    logits = logits + bc_ref[...]
    # Dropout(p=0.5) between Linear and Softmax is identity at inference.
    m = jnp.max(logits, axis=-1, keepdims=True)
    e = jnp.exp(logits - m)
    probs = e / jnp.sum(e, axis=-1, keepdims=True)
    o_ref[0] = probs.astype(o_ref.dtype)


def _adapter_kernel(probs_ref, xpad_ref,
                    dw3w_ref, dw3b_ref, dw5w_ref, dw5b_ref,
                    wbd_ref, bbd_ref, wf_ref, bf_ref,
                    wse1_ref, bse1_ref, wse2_ref, bse2_ref,
                    o_ref):
    """One (batch, category) step of the gated multi-scale adapter mixture.

    probs_ref: (B, NCAT) in SMEM          xpad_ref: (1, H+4, W+4, C)
    dw3w_ref : (1, 9,  C)  dw3b_ref: (1, 1, C)     (depthwise 3x3, pad=1)
    dw5w_ref : (1, 25, C)  dw5b_ref: (1, 1, C)     (depthwise 5x5, pad=2)
    wbd_ref  : (1, 3C, 12C) bbd_ref: (1, 1, 12C)   (block-diag fused branch 1x1 + BN)
    wf_ref   : (1, 12C, C)  bf_ref : (1, 1, C)     (fusion 1x1 + BN)
    wse1_ref : (1, C, Cr)   bse1_ref: (1, 1, Cr)   (SE squeeze)
    wse2_ref : (1, Cr, C)   bse2_ref: (1, 1, C)    (SE excite)
    o_ref    : (1, H*W, C)  accumulated over the category grid axis
    """
    b_idx = pl.program_id(0)
    c_idx = pl.program_id(1)

    _, HP, WP, C = xpad_ref.shape
    H, W = HP - 4, WP - 4
    HW = H * W

    # Unpadded input recovered from the padded tile (no second input DMA).
    x = xpad_ref[0, 2:2 + H, 2:2 + W, :].reshape(HW, C)

    # --- depthwise 3x3 conv, padding=1 (VPU broadcast multiply-adds) ---------
    w3 = dw3w_ref[0]                                             # (9, C)
    acc3 = jnp.zeros((HW, C), jnp.float32)
    for kh in range(3):
        for kw in range(3):
            t = kh * 3 + kw
            patch = xpad_ref[0, 1 + kh:1 + kh + H, 1 + kw:1 + kw + W, :]
            acc3 = acc3 + patch.reshape(HW, C) * w3[t:t + 1]
    acc3 = acc3 + dw3b_ref[0]

    # --- depthwise 5x5 conv, padding=2 ---------------------------------------
    w5 = dw5w_ref[0]                                             # (25, C)
    acc5 = jnp.zeros((HW, C), jnp.float32)
    for kh in range(5):
        for kw in range(5):
            t = kh * 5 + kw
            patch = xpad_ref[0, kh:kh + H, kw:kw + W, :]
            acc5 = acc5 + patch.reshape(HW, C) * w5[t:t + 1]
    acc5 = acc5 + dw5b_ref[0]

    # --- all three branch 1x1 convs (+ folded BN) as ONE block-diag matmul ---
    xcat = jnp.concatenate([x, acc3, acc5], axis=1)              # (HW, 3C)
    branches = jnp.dot(xcat, wbd_ref[0], preferred_element_type=jnp.float32)
    branches = jax.nn.silu(branches + bbd_ref[0])                # (HW, 12C)

    # --- fusion 1x1 conv (+ folded BN) + SiLU --------------------------------
    fused = jnp.dot(branches, wf_ref[0], preferred_element_type=jnp.float32)
    fused = jax.nn.silu(fused + bf_ref[0])                       # (HW, C)
    # Dropout(p=0.1) is identity at inference.

    # --- squeeze-excite -------------------------------------------------------
    pooled = jnp.mean(fused, axis=0, keepdims=True)              # (1, C)
    h = jax.nn.silu(jnp.dot(pooled, wse1_ref[0],
                            preferred_element_type=jnp.float32) + bse1_ref[0])
    se = jax.nn.sigmoid(jnp.dot(h, wse2_ref[0],
                                preferred_element_type=jnp.float32) + bse2_ref[0])

    adapted = fused * se + x                                     # residual add
    contrib = adapted * probs_ref[b_idx, c_idx]                  # SMEM scalar gate

    # Accumulate over the category axis; output block stays VMEM-resident.
    @pl.when(c_idx == 0)
    def _():
        o_ref[0] = contrib.astype(o_ref.dtype)

    @pl.when(c_idx > 0)
    def _():
        o_ref[0] = o_ref[0] + contrib.astype(o_ref.dtype)


# ----------------------------------------------------------------------------
# Wrapper: weight folding + pallas_call plumbing
# ----------------------------------------------------------------------------

def _fold_bn_into_matmul(w_mat, b_vec, gamma, beta, mean, var, eps=1e-5):
    """Fold an eval-mode BatchNorm into the preceding 1x1-conv matmul (Cin,Cout)."""
    s = gamma / jnp.sqrt(var + eps)
    return w_mat * s[None, :], (b_vec - mean) * s + beta


@jax.jit
def category_specific_adapter_multi(x_nchw, params):
    """Inference forward of CategorySpecificAdapter_multi.

    x_nchw: (B, C, H, W) float32; params: see __main__ for layout.
    """
    B, C, H, W = x_nchw.shape
    NCAT = len(params["adapters"])
    C4, C12 = 4 * C, 12 * C
    Cr = max(C // 16, 1)
    HW = H * W

    x_nhwc = jnp.transpose(x_nchw, (0, 2, 3, 1))                       # (B,H,W,C)
    x_pad = jnp.pad(x_nhwc, ((0, 0), (2, 2), (2, 2), (0, 0)))          # pad=2 (3x3 & 5x5)

    # ---- kernel 1: category classifier --------------------------------------
    wc = jnp.transpose(params["cls_w"])                                # (C, NCAT)
    bc = params["cls_b"].reshape(1, NCAT)
    probs = pl.pallas_call(
        _classifier_kernel,
        out_shape=jax.ShapeDtypeStruct((B, 1, NCAT), jnp.float32),
        grid_spec=pltpu.PrefetchScalarGridSpec(
            num_scalar_prefetch=0,
            grid=(B,),
            in_specs=[
                pl.BlockSpec((1, H, W, C), lambda b: (b, 0, 0, 0)),
                pl.BlockSpec((C, NCAT), lambda b: (0, 0)),
                pl.BlockSpec((1, NCAT), lambda b: (0, 0)),
            ],
            out_specs=pl.BlockSpec((1, 1, NCAT), lambda b: (b, 0, 0)),
        ),
        compiler_params=pltpu.CompilerParams(dimension_semantics=("parallel",)),
    )(x_nhwc, wc, bc).reshape(B, NCAT)

    # ---- fold BN, build block-diagonal branch weights, stack per category ----
    def fold(p):
        w1, b1 = _fold_bn_into_matmul(p["b1_w"][:, :, 0, 0].T, p["b1_b"], *p["bn1"])
        w2, b2 = _fold_bn_into_matmul(p["b2_w"][:, :, 0, 0].T, p["b2_b"], *p["bn2"])
        w3, b3 = _fold_bn_into_matmul(p["b3_w"][:, :, 0, 0].T, p["b3_b"], *p["bn3"])
        wbd = jnp.zeros((3 * C, C12), jnp.float32)
        wbd = wbd.at[0:C, 0:C4].set(w1)
        wbd = wbd.at[C:2 * C, C4:2 * C4].set(w2)
        wbd = wbd.at[2 * C:3 * C, 2 * C4:3 * C4].set(w3)
        bbd = jnp.concatenate([b1, b2, b3]).reshape(1, C12)
        wf, bf = _fold_bn_into_matmul(p["fus_w"][:, :, 0, 0].T, p["fus_b"], *p["bnf"])
        return dict(
            dw3w=jnp.transpose(p["dw3_w"][:, 0], (1, 2, 0)).reshape(9, C),
            dw3b=p["dw3_b"].reshape(1, C),
            dw5w=jnp.transpose(p["dw5_w"][:, 0], (1, 2, 0)).reshape(25, C),
            dw5b=p["dw5_b"].reshape(1, C),
            wbd=wbd, bbd=bbd,
            wf=wf, bf=bf.reshape(1, C),
            wse1=p["se1_w"][:, :, 0, 0].T, bse1=p["se1_b"].reshape(1, Cr),
            wse2=p["se2_w"][:, :, 0, 0].T, bse2=p["se2_b"].reshape(1, C),
        )

    folded = [fold(p) for p in params["adapters"]]
    stk = lambda k: jnp.stack([f[k] for f in folded], axis=0)
    dw3w, dw3b = stk("dw3w"), stk("dw3b")
    dw5w, dw5b = stk("dw5w"), stk("dw5b")
    wbd, bbd = stk("wbd"), stk("bbd")
    wf, bf = stk("wf"), stk("bf")
    wse1, bse1 = stk("wse1"), stk("bse1")
    wse2, bse2 = stk("wse2"), stk("bse2")

    def per_cat(*tail):
        nz = len(tail)
        return pl.BlockSpec((1,) + tail, lambda b, c, _n=nz: (c,) + (0,) * _n)

    out = pl.pallas_call(
        _adapter_kernel,
        out_shape=jax.ShapeDtypeStruct((B, HW, C), jnp.float32),
        grid_spec=pltpu.PrefetchScalarGridSpec(
            num_scalar_prefetch=0,
            grid=(B, NCAT),
            in_specs=[
                # tiny probability table -> SMEM, read as scalars in the kernel
                pl.BlockSpec((B, NCAT), lambda b, c: (0, 0),
                             memory_space=pltpu.MemorySpace.SMEM),
                # shared padded input; block index independent of c -> fetched
                # once per batch element and reused across all categories
                pl.BlockSpec((1, H + 4, W + 4, C), lambda b, c: (b, 0, 0, 0)),
                per_cat(9, C), per_cat(1, C),          # depthwise 3x3 w / b
                per_cat(25, C), per_cat(1, C),         # depthwise 5x5 w / b
                per_cat(3 * C, C12), per_cat(1, C12),  # fused branch 1x1 (+BN)
                per_cat(C12, C), per_cat(1, C),        # fusion 1x1 (+BN)
                per_cat(C, Cr), per_cat(1, Cr),        # SE squeeze
                per_cat(Cr, C), per_cat(1, C),         # SE excite
            ],
            out_specs=pl.BlockSpec((1, HW, C), lambda b, c: (b, 0, 0)),
        ),
        compiler_params=pltpu.CompilerParams(
            dimension_semantics=("parallel", "arbitrary")),
    )(probs, x_pad, dw3w, dw3b, dw5w, dw5b, wbd, bbd, wf, bf,
      wse1, bse1, wse2, bse2)

    return jnp.transpose(out.reshape(B, H, W, C), (0, 3, 1, 2))        # NCHW


# ----------------------------------------------------------------------------
# Pure-JAX reference (eval-mode PyTorch semantics, raw parameters)
# ----------------------------------------------------------------------------

def _silu(x):
    return x * jax.nn.sigmoid(x)


def _bn_eval(y, gamma, beta, mean, var, eps=1e-5):
    s = (gamma / jnp.sqrt(var + eps))[None, :, None, None]
    return (y - mean[None, :, None, None]) * s + beta[None, :, None, None]


def _conv1x1(x, w, b):            # w: (O, I, 1, 1)
    y = jnp.einsum("bchw,oc->bohw", x, w[:, :, 0, 0])
    return y + b[None, :, None, None]


def _dwconv(x, w, b, pad):        # w: (C, 1, k, k), groups = C
    dn = lax.conv_dimension_numbers(x.shape, w.shape, ("NCHW", "OIHW", "NCHW"))
    y = lax.conv_general_dilated(x, w, (1, 1), [(pad, pad), (pad, pad)],
                                 dimension_numbers=dn,
                                 feature_group_count=x.shape[1])
    return y + b[None, :, None, None]


def _multi_scale_module_ref(x, p):
    b1 = _silu(_bn_eval(_conv1x1(x, p["b1_w"], p["b1_b"]), *p["bn1"]))
    b2 = _silu(_bn_eval(_conv1x1(_dwconv(x, p["dw3_w"], p["dw3_b"], 1),
                                 p["b2_w"], p["b2_b"]), *p["bn2"]))
    b3 = _silu(_bn_eval(_conv1x1(_dwconv(x, p["dw5_w"], p["dw5_b"], 2),
                                 p["b3_w"], p["b3_b"]), *p["bn3"]))
    cat = jnp.concatenate([b1, b2, b3], axis=1)
    fused = _silu(_bn_eval(_conv1x1(cat, p["fus_w"], p["fus_b"]), *p["bnf"]))
    pooled = fused.mean(axis=(2, 3), keepdims=True)
    h = _silu(_conv1x1(pooled, p["se1_w"], p["se1_b"]))
    se = jax.nn.sigmoid(_conv1x1(h, p["se2_w"], p["se2_b"]))
    return fused * se + x


def _reference(x, params):
    xm = x.mean(axis=(2, 3))
    probs = jax.nn.softmax(xm @ params["cls_w"].T + params["cls_b"], axis=1)
    out = jnp.zeros_like(x)
    for i, p in enumerate(params["adapters"]):
        out = out + probs[:, i][:, None, None, None] * _multi_scale_module_ref(x, p)
    return out


# ----------------------------------------------------------------------------
# Self-test
# ----------------------------------------------------------------------------

if __name__ == "__main__":
    # input_dim must be >= 16 so the SE bottleneck C // 16 is non-degenerate.
    B, C, H, W = 2, 16, 16, 16
    NCAT = 3
    C4, Cr = 4 * C, max(C // 16, 1)

    key = jax.random.PRNGKey(0)

    def uniform(k, shape, fan_in):
        bound = 1.0 / (fan_in ** 0.5)
        return jax.random.uniform(k, shape, jnp.float32, -bound, bound)

    def make_bn(k, n):
        k1, k2, k3, k4 = jax.random.split(k, 4)
        gamma = jax.random.uniform(k1, (n,), jnp.float32, 0.5, 1.5)
        beta = 0.1 * jax.random.normal(k2, (n,), jnp.float32)
        mean = 0.1 * jax.random.normal(k3, (n,), jnp.float32)
        var = jax.random.uniform(k4, (n,), jnp.float32, 0.5, 1.5)
        return (gamma, beta, mean, var)

    def make_adapter(k):
        ks = iter(jax.random.split(k, 20))
        return dict(
            b1_w=uniform(next(ks), (C4, C, 1, 1), C), b1_b=uniform(next(ks), (C4,), C),
            bn1=make_bn(next(ks), C4),
            dw3_w=uniform(next(ks), (C, 1, 3, 3), 9), dw3_b=uniform(next(ks), (C,), 9),
            b2_w=uniform(next(ks), (C4, C, 1, 1), C), b2_b=uniform(next(ks), (C4,), C),
            bn2=make_bn(next(ks), C4),
            dw5_w=uniform(next(ks), (C, 1, 5, 5), 25), dw5_b=uniform(next(ks), (C,), 25),
            b3_w=uniform(next(ks), (C4, C, 1, 1), C), b3_b=uniform(next(ks), (C4,), C),
            bn3=make_bn(next(ks), C4),
            fus_w=uniform(next(ks), (C, 12 * C, 1, 1), 12 * C),
            fus_b=uniform(next(ks), (C,), 12 * C),
            bnf=make_bn(next(ks), C),
            se1_w=uniform(next(ks), (Cr, C, 1, 1), C), se1_b=uniform(next(ks), (Cr,), C),
            se2_w=uniform(next(ks), (C, Cr, 1, 1), Cr), se2_b=uniform(next(ks), (C,), Cr),
        )

    kx, kcw, kcb, *kad = jax.random.split(key, 3 + NCAT)
    x = jax.random.normal(kx, (B, C, H, W), dtype=jnp.float32)
    params = dict(
        cls_w=uniform(kcw, (NCAT, C), C),
        cls_b=uniform(kcb, (NCAT,), C),
        adapters=[make_adapter(k) for k in kad],
    )

    out = jax.block_until_ready(category_specific_adapter_multi(x, params))
    ref = jax.block_until_ready(_reference(x, params))

    assert out.shape == (B, C, H, W)
    max_err = float(jnp.max(jnp.abs(out - ref)))
    assert jnp.allclose(out, ref, atol=1e-2, rtol=1e-2), f"mismatch vs reference: {max_err}"

    print("KERNEL_OK")
</pallas_src>

<mosaic_0001>
module attributes {stable_mosaic.version = 11 : i64} {
  func.func @_classifier_kernel(%arg0: i32, %arg1: memref<1x16x16x16xf32, #tpu.memory_space<vmem>>, %arg2: memref<16x3xf32, #tpu.memory_space<vmem>>, %arg3: memref<1x3xf32, #tpu.memory_space<vmem>>, %arg4: memref<1x1x3xf32, #tpu.memory_space<vmem>>) attributes {dimension_semantics = [#tpu.dimension_semantics<parallel>], iteration_bounds = array<i64: 2>, scalar_prefetch = 0 : i64, scratch_operands = 0 : i64, tpu.core_type = #tpu.core_type<tc>, window_params = [{transform_indices = @transform_0, window_bounds = array<i64: 1, 16, 16, 16>}, {pipeline_mode = #tpu.pipeline_mode<synchronous>, transform_indices = @transform_1, window_bounds = array<i64: 16, 3>}, {pipeline_mode = #tpu.pipeline_mode<synchronous>, transform_indices = @transform_2, window_bounds = array<i64: 1, 3>}, {transform_indices = @transform_3, window_bounds = array<i64: 1, 1, 3>}]} {
    %c0 = arith.constant 0 : index
    %c0_0 = arith.constant 0 : index
    %c0_1 = arith.constant 0 : index
    %c0_2 = arith.constant 0 : index
    %0 = vector.load %arg1[%c0, %c0_0, %c0_1, %c0_2] : memref<1x16x16x16xf32, #tpu.memory_space<vmem>>, vector<1x16x16x16xf32>
    %1 = vector.shape_cast %0 : vector<1x16x16x16xf32> to vector<16x16x16xf32>
    %2 = vector.shape_cast %1 : vector<16x16x16xf32> to vector<256x16xf32>
    %cst = arith.constant dense<0.000000e+00> : vector<16xf32>
    %3 = vector.multi_reduction <add>, %2, %cst [0] : vector<256x16xf32> to vector<16xf32>
    %4 = vector.shape_cast %3 : vector<16xf32> to vector<1x16xf32>
    %cst_3 = arith.constant 2.560000e+02 : f32
    %5 = vector.broadcast %cst_3 : f32 to vector<1x16xf32>
    %6 = arith.divf %4, %5 : vector<1x16xf32>
    %c0_4 = arith.constant 0 : index
    %c0_5 = arith.constant 0 : index
    %7 = vector.load %arg2[%c0_4, %c0_5] : memref<16x3xf32, #tpu.memory_space<vmem>>, vector<16x3xf32>
    %cst_6 = arith.constant dense<0.000000e+00> : vector<1x3xf32>
    %8 = tpu.matmul %6, %7, %cst_6 {dimension_numbers = #tpu.dot_dimension_numbers<[1], [0], [0], [1], [0, 0, 1, 1], [], []>} : vector<1x16xf32>, vector<16x3xf32>, vector<1x3xf32> -> vector<1x3xf32>
    %c0_7 = arith.constant 0 : index
    %c0_8 = arith.constant 0 : index
    %9 = vector.load %arg3[%c0_7, %c0_8] : memref<1x3xf32, #tpu.memory_space<vmem>>, vector<1x3xf32>
    %10 = arith.addf %8, %9 : vector<1x3xf32>
    %cst_9 = arith.constant dense<0xFF800000> : vector<1xf32>
    %11 = vector.multi_reduction <maximumf>, %10, %cst_9 [1] : vector<1x3xf32> to vector<1xf32>
    %12 = vector.shape_cast %11 : vector<1xf32> to vector<1x1xf32>
    %13 = vector.broadcast %12 : vector<1x1xf32> to vector<1x3xf32>
    %14 = arith.subf %10, %13 : vector<1x3xf32>
    %15 = math.exp %14 : vector<1x3xf32>
    %cst_10 = arith.constant dense<0.000000e+00> : vector<1xf32>
    %16 = vector.multi_reduction <add>, %15, %cst_10 [1] : vector<1x3xf32> to vector<1xf32>
    %17 = vector.shape_cast %16 : vector<1xf32> to vector<1x1xf32>
    %18 = vector.broadcast %17 : vector<1x1xf32> to vector<1x3xf32>
    %19 = arith.divf %15, %18 : vector<1x3xf32>
    %c0_11 = arith.constant 0 : index
    %c0_12 = arith.constant 0 : index
    %c0_13 = arith.constant 0 : index
    %20 = vector.load %arg4[%c0_11, %c0_12, %c0_13] : memref<1x1x3xf32, #tpu.memory_space<vmem>>, vector<1x1x3xf32>
    %21 = vector.shape_cast %20 : vector<1x1x3xf32> to vector<1x3xf32>
    %22 = vector.shape_cast %19 : vector<1x3xf32> to vector<1x1x3xf32>
    tpu.vector_store %arg4[%c0_11, %c0_12, %c0_13], %22 {strides = array<i32>} : memref<1x1x3xf32, #tpu.memory_space<vmem>>, vector<1x1x3xf32>,
    return
  }
  func.func @transform_0(%arg0: i32) -> (i32, i32, i32, i32) {
    %c0_i32 = arith.constant 0 : i32
    %c0_i32_0 = arith.constant 0 : i32
    %c0_i32_1 = arith.constant 0 : i32
    %c0_i32_2 = arith.constant 0 : i32
    return %arg0, %c0_i32, %c0_i32_0, %c0_i32_1 : i32, i32, i32, i32
  }
  func.func @transform_1(%arg0: i32) -> (i32, i32) {
    %c0_i32 = arith.constant 0 : i32
    %c0_i32_0 = arith.constant 0 : i32
    %c0_i32_1 = arith.constant 0 : i32
    return %c0_i32, %c0_i32_0 : i32, i32
  }
  func.func @transform_2(%arg0: i32) -> (i32, i32) {
    %c0_i32 = arith.constant 0 : i32
    %c0_i32_0 = arith.constant 0 : i32
    %c0_i32_1 = arith.constant 0 : i32
    return %c0_i32, %c0_i32_0 : i32, i32
  }
  func.func @transform_3(%arg0: i32) -> (i32, i32, i32) {
    %c0_i32 = arith.constant 0 : i32
    %c0_i32_0 = arith.constant 0 : i32
    %c0_i32_1 = arith.constant 0 : i32
    return %arg0, %c0_i32, %c0_i32_0 : i32, i32, i32
  }
}

module attributes {stable_mosaic.version = 11 : i64} {
  func.func @_adapter_kernel(%arg0: i32, %arg1: i32, %arg2: memref<2x3xf32, #tpu.memory_space<smem>>, %arg3: memref<1x20x20x16xf32, #tpu.memory_space<vmem>>, %arg4: memref<1x9x16xf32, #tpu.memory_space<vmem>>, %arg5: memref<1x1x16xf32, #tpu.memory_space<vmem>>, %arg6: memref<1x25x16xf32, #tpu.memory_space<vmem>>, %arg7: memref<1x1x16xf32, #tpu.memory_space<vmem>>, %arg8: memref<1x48x192xf32, #tpu.memory_space<vmem>>, %arg9: memref<1x1x192xf32, #tpu.memory_space<vmem>>, %arg10: memref<1x192x16xf32, #tpu.memory_space<vmem>>, %arg11: memref<1x1x16xf32, #tpu.memory_space<vmem>>, %arg12: memref<1x16x1xf32, #tpu.memory_space<vmem>>, %arg13: memref<1x1x1xf32, #tpu.memory_space<vmem>>, %arg14: memref<1x1x16xf32, #tpu.memory_space<vmem>>, %arg15: memref<1x1x16xf32, #tpu.memory_space<vmem>>, %arg16: memref<1x256x16xf32, #tpu.memory_space<vmem>>) attributes {dimension_semantics = [#tpu.dimension_semantics<parallel>, #tpu.dimension_semantics<arbitrary>], iteration_bounds = array<i64: 2, 3>, scalar_prefetch = 0 : i64, scratch_operands = 0 : i64, tpu.core_type = #tpu.core_type<tc>, window_params = [{transform_indices = @transform_0, window_bounds = array<i64: 2, 3>}, {transform_indices = @transform_1, window_bounds = array<i64: 1, 20, 20, 16>}, {transform_indices = @transform_2, window_bounds = array<i64: 1, 9, 16>}, {transform_indices = @transform_3, window_bounds = array<i64: 1, 1, 16>}, {transform_indices = @transform_4, window_bounds = array<i64: 1, 25, 16>}, {transform_indices = @transform_5, window_bounds = array<i64: 1, 1, 16>}, {transform_indices = @transform_6, window_bounds = array<i64: 1, 48, 192>}, {transform_indices = @transform_7, window_bounds = array<i64: 1, 1, 192>}, {transform_indices = @transform_8, window_bounds = array<i64: 1, 192, 16>}, {transform_indices = @transform_9, window_bounds = array<i64: 1, 1, 16>}, {transform_indices = @transform_10, window_bounds = array<i64: 1, 16, 1>}, {transform_indices = @transform_11, window_bounds = array<i64: 1, 1, 1>}, {transform_indices = @transform_12, window_bounds = array<i64: 1, 1, 16>}, {transform_indices = @transform_13, window_bounds = array<i64: 1, 1, 16>}, {transform_indices = @transform_14, window_bounds = array<i64: 1, 256, 16>}]} {
    %c0 = arith.constant 0 : index
    %c2 = arith.constant 2 : index
    %c2_0 = arith.constant 2 : index
    %c0_1 = arith.constant 0 : index
    %0 = vector.load %arg3[%c0, %c2, %c2_0, %c0_1] : memref<1x20x20x16xf32, #tpu.memory_space<vmem>>, vector<1x16x16x16xf32>
    %1 = vector.shape_cast %0 : vector<1x16x16x16xf32> to vector<16x16x16xf32>
    %2 = vector.shape_cast %1 : vector<16x16x16xf32> to vector<256x16xf32>
    %c0_2 = arith.constant 0 : index
    %c0_3 = arith.constant 0 : index
    %c0_4 = arith.constant 0 : index
    %3 = vector.load %arg4[%c0_2, %c0_3, %c0_4] : memref<1x9x16xf32, #tpu.memory_space<vmem>>, vector<1x9x16xf32>
    %4 = vector.shape_cast %3 : vector<1x9x16xf32> to vector<9x16xf32>
    %cst = arith.constant 0.000000e+00 : f32
    %5 = vector.broadcast %cst : f32 to vector<256x16xf32>
    %c0_5 = arith.constant 0 : index
    %c1 = arith.constant 1 : index
    %c1_6 = arith.constant 1 : index
    %c0_7 = arith.constant 0 : index
    %6 = vector.load %arg3[%c0_5, %c1, %c1_6, %c0_7] : memref<1x20x20x16xf32, #tpu.memory_space<vmem>>, vector<1x16x16x16xf32>
    %7 = vector.shape_cast %6 : vector<1x16x16x16xf32> to vector<16x16x16xf32>
    %8 = vector.shape_cast %7 : vector<16x16x16xf32> to vector<256x16xf32>
    %9 = vector.extract_strided_slice %4 {offsets = [0, 0], sizes = [1, 16], strides = [1, 1]} : vector<9x16xf32> to vector<1x16xf32>
    %10 = vector.broadcast %9 : vector<1x16xf32> to vector<256x16xf32>
    %11 = arith.mulf %8, %10 : vector<256x16xf32>
    %12 = arith.addf %5, %11 : vector<256x16xf32>
    %c0_8 = arith.constant 0 : index
    %c1_9 = arith.constant 1 : index
    %c2_10 = arith.constant 2 : index
    %c0_11 = arith.constant 0 : index
    %13 = vector.load %arg3[%c0_8, %c1_9, %c2_10, %c0_11] : memref<1x20x20x16xf32, #tpu.memory_space<vmem>>, vector<1x16x16x16xf32>
    %14 = vector.shape_cast %13 : vector<1x16x16x16xf32> to vector<16x16x16xf32>
    %15 = vector.shape_cast %14 : vector<16x16x16xf32> to vector<256x16xf32>
    %16 = vector.extract_strided_slice %4 {offsets = [1, 0], sizes = [1, 16], strides = [1, 1]} : vector<9x16xf32> to vector<1x16xf32>
    %17 = vector.broadcast %16 : vector<1x16xf32> to vector<256x16xf32>
    %18 = arith.mulf %15, %17 : vector<256x16xf32>
    %19 = arith.addf %12, %18 : vector<256x16xf32>
    %c0_12 = arith.constant 0 : index
    %c1_13 = arith.constant 1 : index
    %c3 = arith.constant 3 : index
    %c0_14 = arith.constant 0 : index
    %20 = vector.load %arg3[%c0_12, %c1_13, %c3, %c0_14] : memref<1x20x20x16xf32, #tpu.memory_space<vmem>>, vector<1x16x16x16xf32>
    %21 = vector.shape_cast %20 : vector<1x16x16x16xf32> to vector<16x16x16xf32>
    %22 = vector.shape_cast %21 : vector<16x16x16xf32> to vector<256x16xf32>
    %23 = vector.extract_strided_slice %4 {offsets = [2, 0], sizes = [1, 16], strides = [1, 1]} : vector<9x16xf32> to vector<1x16xf32>
    %24 = vector.broadcast %23 : vector<1x16xf32> to vector<256x16xf32>
    %25 = arith.mulf %22, %24 : vector<256x16xf32>
    %26 = arith.addf %19, %25 : vector<256x16xf32>
    %c0_15 = arith.constant 0 : index
    %c2_16 = arith.constant 2 : index
    %c1_17 = arith.constant 1 : index
    %c0_18 = arith.constant 0 : index
    %27 = vector.load %arg3[%c0_15, %c2_16, %c1_17, %c0_18] : memref<1x20x20x16xf32, #tpu.memory_space<vmem>>, vector<1x16x16x16xf32>
    %28 = vector.shape_cast %27 : vector<1x16x16x16xf32> to vector<16x16x16xf32>
    %29 = vector.shape_cast %28 : vector<16x16x16xf32> to vector<256x16xf32>
    %30 = vector.extract_strided_slice %4 {offsets = [3, 0], sizes = [1, 16], strides = [1, 1]} : vector<9x16xf32> to vector<1x16xf32>
    %31 = vector.broadcast %30 : vector<1x16xf32> to vector<256x16xf32>
    %32 = arith.mulf %29, %31 : vector<256x16xf32>
    %33 = arith.addf %26, %32 : vector<256x16xf32>
    %c0_19 = arith.constant 0 : index
    %c2_20 = arith.constant 2 : index
    %c2_21 = arith.constant 2 : index
    %c0_22 = arith.constant 0 : index
    %34 = vector.load %arg3[%c0_19, %c2_20, %c2_21, %c0_22] : memref<1x20x20x16xf32, #tpu.memory_space<vmem>>, vector<1x16x16x16xf32>
    %35 = vector.shape_cast %34 : vector<1x16x16x16xf32> to vector<16x16x16xf32>
    %36 = vector.shape_cast %35 : vector<16x16x16xf32> to vector<256x16xf32>
    %37 = vector.extract_strided_slice %4 {offsets = [4, 0], sizes = [1, 16], strides = [1, 1]} : vector<9x16xf32> to vector<1x16xf32>
    %38 = vector.broadcast %37 : vector<1x16xf32> to vector<256x16xf32>
    %39 = arith.mulf %36, %38 : vector<256x16xf32>
    %40 = arith.addf %33, %39 : vector<256x16xf32>
    %c0_23 = arith.constant 0 : index
    %c2_24 = arith.constant 2 : index
    %c3_25 = arith.constant 3 : index
    %c0_26 = arith.constant 0 : index
    %41 = vector.load %arg3[%c0_23, %c2_24, %c3_25, %c0_26] : memref<1x20x20x16xf32, #tpu.memory_space<vmem>>, vector<1x16x16x16xf32>
    %42 = vector.shape_cast %41 : vector<1x16x16x16xf32> to vector<16x16x16xf32>
    %43 = vector.shape_cast %42 : vector<16x16x16xf32> to vector<256x16xf32>
    %44 = vector.extract_strided_slice %4 {offsets = [5, 0], sizes = [1, 16], strides = [1, 1]} : vector<9x16xf32> to vector<1x16xf32>
    %45 = vector.broadcast %44 : vector<1x16xf32> to vector<256x16xf32>
    %46 = arith.mulf %43, %45 : vector<256x16xf32>
    %47 = arith.addf %40, %46 : vector<256x16xf32>
    %c0_27 = arith.constant 0 : index
    %c3_28 = arith.constant 3 : index
    %c1_29 = arith.constant 1 : index
    %c0_30 = arith.constant 0 : index
    %48 = vector.load %arg3[%c0_27, %c3_28, %c1_29, %c0_30] : memref<1x20x20x16xf32, #tpu.memory_space<vmem>>, vector<1x16x16x16xf32>
    %49 = vector.shape_cast %48 : vector<1x16x16x16xf32> to vector<16x16x16xf32>
    %50 = vector.shape_cast %49 : vector<16x16x16xf32> to vector<256x16xf32>
    %51 = vector.extract_strided_slice %4 {offsets = [6, 0], sizes = [1, 16], strides = [1, 1]} : vector<9x16xf32> to vector<1x16xf32>
    %52 = vector.broadcast %51 : vector<1x16xf32> to vector<256x16xf32>
    %53 = arith.mulf %50, %52 : vector<256x16xf32>
    %54 = arith.addf %47, %53 : vector<256x16xf32>
    %c0_31 = arith.constant 0 : index
    %c3_32 = arith.constant 3 : index
    %c2_33 = arith.constant 2 : index
    %c0_34 = arith.constant 0 : index
    %55 = vector.load %arg3[%c0_31, %c3_32, %c2_33, %c0_34] : memref<1x20x20x16xf32, #tpu.memory_space<vmem>>, vector<1x16x16x16xf32>
    %56 = vector.shape_cast %55 : vector<1x16x16x16xf32> to vector<16x16x16xf32>
    %57 = vector.shape_cast %56 : vector<16x16x16xf32> to vector<256x16xf32>
    %58 = vector.extract_strided_slice %4 {offsets = [7, 0], sizes = [1, 16], strides = [1, 1]} : vector<9x16xf32> to vector<1x16xf32>
    %59 = vector.broadcast %58 : vector<1x16xf32> to vector<256x16xf32>
    %60 = arith.mulf %57, %59 : vector<256x16xf32>
    %61 = arith.addf %54, %60 : vector<256x16xf32>
    %c0_35 = arith.constant 0 : index
    %c3_36 = arith.constant 3 : index
    %c3_37 = arith.constant 3 : index
    %c0_38 = arith.constant 0 : index
    %62 = vector.load %arg3[%c0_35, %c3_36, %c3_37, %c0_38] : memref<1x20x20x16xf32, #tpu.memory_space<vmem>>, vector<1x16x16x16xf32>
    %63 = vector.shape_cast %62 : vector<1x16x16x16xf32> to vector<16x16x16xf32>
    %64 = vector.shape_cast %63 : vector<16x16x16xf32> to vector<256x16xf32>
    %65 = vector.extract_strided_slice %4 {offsets = [8, 0], sizes = [1, 16], strides = [1, 1]} : vector<9x16xf32> to vector<1x16xf32>
    %66 = vector.broadcast %65 : vector<1x16xf32> to vector<256x16xf32>
    %67 = arith.mulf %64, %66 : vector<256x16xf32>
    %68 = arith.addf %61, %67 : vector<256x16xf32>
    %c0_39 = arith.constant 0 : index
    %c0_40 = arith.constant 0 : index
    %c0_41 = arith.constant 0 : index
    %69 = vector.load %arg5[%c0_39, %c0_40, %c0_41] : memref<1x1x16xf32, #tpu.memory_space<vmem>>, vector<1x1x16xf32>
    %70 = vector.shape_cast %69 : vector<1x1x16xf32> to vector<1x16xf32>
    %71 = vector.broadcast %70 : vector<1x16xf32> to vector<256x16xf32>
    %72 = arith.addf %68, %71 : vector<256x16xf32>
    %c0_42 = arith.constant 0 : index
    %c0_43 = arith.constant 0 : index
    %c0_44 = arith.constant 0 : index
    %73 = vector.load %arg6[%c0_42, %c0_43, %c0_44] : memref<1x25x16xf32, #tpu.memory_space<vmem>>, vector<1x25x16xf32>
    %74 = vector.shape_cast %73 : vector<1x25x16xf32> to vector<25x16xf32>
    %cst_45 = arith.constant 0.000000e+00 : f32
    %75 = vector.broadcast %cst_45 : f32 to vector<256x16xf32>
    %c0_46 = arith.constant 0 : index
    %c0_47 = arith.constant 0 : index
    %c0_48 = arith.constant 0 : index
    %c0_49 = arith.constant 0 : index
    %76 = vector.load %arg3[%c0_46, %c0_47, %c0_48, %c0_49] : memref<1x20x20x16xf32, #tpu.memory_space<vmem>>, vector<1x16x16x16xf32>
    %77 = vector.shape_cast %76 : vector<1x16x16x16xf32> to vector<16x16x16xf32>
    %78 = vector.shape_cast %77 : vector<16x16x16xf32> to vector<256x16xf32>
    %79 = vector.extract_strided_slice %74 {offsets = [0, 0], sizes = [1, 16], strides = [1, 1]} : vector<25x16xf32> to vector<1x16xf32>
    %80 = vector.broadcast %79 : vector<1x16xf32> to vector<256x16xf32>
    %81 = arith.mulf %78, %80 : vector<256x16xf32>
    %82 = arith.addf %75, %81 : vector<256x16xf32>
    %c0_50 = arith.constant 0 : index
    %c0_51 = arith.constant 0 : index
    %c1_52 = arith.constant 1 : index
    %c0_53 = arith.constant 0 : index
    %83 = vector.load %arg3[%c0_50, %c0_51, %c1_52, %c0_53] : memref<1x20x20x16xf32, #tpu.memory_space<vmem>>, vector<1x16x16x16xf32>
    %84 = vector.shape_cast %83 : vector<1x16x16x16xf32> to vector<16x16x16xf32>
    %85 = vector.shape_cast %84 : vector<16x16x16xf32> to vector<256x16xf32>
    %86 = vector.extract_strided_slice %74 {offsets = [1, 0], sizes = [1, 16], strides = [1, 1]} : vector<25x16xf32> to vector<1x16xf32>
    %87 = vector.broadcast %86 : vector<1x16xf32> to vector<256x16xf32>
    %88 = arith.mulf %85, %87 : vector<256x16xf32>
    %89 = arith.addf %82, %88 : vector<256x16xf32>
    %c0_54 = arith.constant 0 : index
    %c0_55 = arith.constant 0 : index
    %c2_56 = arith.constant 2 : index
    %c0_57 = arith.constant 0 : index
    %90 = vector.load %arg3[%c0_54, %c0_55, %c2_56, %c0_57] : memref<1x20x20x16xf32, #tpu.memory_space<vmem>>, vector<1x16x16x16xf32>
    %91 = vector.shape_cast %90 : vector<1x16x16x16xf32> to vector<16x16x16xf32>
    %92 = vector.shape_cast %91 : vector<16x16x16xf32> to vector<256x16xf32>
    %93 = vector.extract_strided_slice %74 {offsets = [2, 0], sizes = [1, 16], strides = [1, 1]} : vector<25x16xf32> to vector<1x16xf32>
    %94 = vector.broadcast %93 : vector<1x16xf32> to vector<256x16xf32>
    %95 = arith.mulf %92, %94 : vector<256x16xf32>
    %96 = arith.addf %89, %95 : vector<256x16xf32>
    %c0_58 = arith.constant 0 : index
    %c0_59 = arith.constant 0 : index
    %c3_60 = arith.constant 3 : index
    %c0_61 = arith.constant 0 : index
    %97 = vector.load %arg3[%c0_58, %c0_59, %c3_60, %c0_61] : memref<1x20x20x16xf32, #tpu.memory_space<vmem>>, vector<1x16x16x16xf32>
    %98 = vector.shape_cast %97 : vector<1x16x16x16xf32> to vector<16x16x16xf32>
    %99 = vector.shape_cast %98 : vector<16x16x16xf32> to vector<256x16xf32>
    %100 = vector.extract_strided_slice %74 {offsets = [3, 0], sizes = [1, 16], strides = [1, 1]} : vector<25x16xf32> to vector<1x16xf32>
    %101 = vector.broadcast %100 : vector<1x16xf32> to vector<256x16xf32>
    %102 = arith.mulf %99, %101 : vector<256x16xf32>
    %103 = arith.addf %96, %102 : vector<256x16xf32>
    %c0_62 = arith.constant 0 : index
    %c0_63 = arith.constant 0 : index
    %c4 = arith.constant 4 : index
    %c0_64 = arith.constant 0 : index
    %104 = vector.load %arg3[%c0_62, %c0_63, %c4, %c0_64] : memref<1x20x20x16xf32, #tpu.memory_space<vmem>>, vector<1x16x16x16xf32>
    %105 = vector.shape_cast %104 : vector<1x16x16x16xf32> to vector<16x16x16xf32>
    %106 = vector.shape_cast %105 : vector<16x16x16xf32> to vector<256x16xf32>
    %107 = vector.extract_strided_slice %74 {offsets = [4, 0], sizes = [1, 16], strides = [1, 1]} : vector<25x16xf32> to vector<1x16xf32>
    %108 = vector.broadcast %107 : vector<1x16xf32> to vector<256x16xf32>
    %109 = arith.mulf %106, %108 : vector<256x16xf32>
    %110 = arith.addf %103, %109 : vector<256x16xf32>
    %c0_65 = arith.constant 0 : index
    %c1_66 = arith.constant 1 : index
    %c0_67 = arith.constant 0 : index
    %c0_68 = arith.constant 0 : index
    %111 = vector.load %arg3[%c0_65, %c1_66, %c0_67, %c0_68] : memref<1x20x20x16xf32, #tpu.memory_space<vmem>>, vector<1x16x16x16xf32>
    %112 = vector.shape_cast %111 : vector<1x16x16x16xf32> to vector<16x16x16xf32>
    %113 = vector.shape_cast %112 : vector<16x16x16xf32> to vector<256x16xf32>
    %114 = vector.extract_strided_slice %74 {offsets = [5, 0], sizes = [1, 16], strides = [1, 1]} : vector<25x16xf32> to vector<1x16xf32>
    %115 = vector.broadcast %114 : vector<1x16xf32> to vector<256x16xf32>
    %116 = arith.mulf %113, %115 : vector<256x16xf32>
    %117 = arith.addf %110, %116 : vector<256x16xf32>
    %c0_69 = arith.constant 0 : index
    %c1_70 = arith.constant 1 : index
    %c1_71 = arith.constant 1 : index
    %c0_72 = arith.constant 0 : index
    %118 = vector.load %arg3[%c0_69, %c1_70, %c1_71, %c0_72] : memref<1x20x20x16xf32, #tpu.memory_space<vmem>>, vector<1x16x16x16xf32>
    %119 = vector.shape_cast %118 : vector<1x16x16x16xf32> to vector<16x16x16xf32>
    %120 = vector.shape_cast %119 : vector<16x16x16xf32> to vector<256x16xf32>
    %121 = vector.extract_strided_slice %74 {offsets = [6, 0], sizes = [1, 16], strides = [1, 1]} : vector<25x16xf32> to vector<1x16xf32>
    %122 = vector.broadcast %121 : vector<1x16xf32> to vector<256x16xf32>
    %123 = arith.mulf %120, %122 : vector<256x16xf32>
    %124 = arith.addf %117, %123 : vector<256x16xf32>
    %c0_73 = arith.constant 0 : index
    %c1_74 = arith.constant 1 : index
    %c2_75 = arith.constant 2 : index
    %c0_76 = arith.constant 0 : index
    %125 = vector.load %arg3[%c0_73, %c1_74, %c2_75, %c0_76] : memref<1x20x20x16xf32, #tpu.memory_space<vmem>>, vector<1x16x16x16xf32>
    %126 = vector.shape_cast %125 : vector<1x16x16x16xf32> to vector<16x16x16xf32>
    %127 = vector.shape_cast %126 : vector<16x16x16xf32> to vector<256x16xf32>
    %128 = vector.extract_strided_slice %74 {offsets = [7, 0], sizes = [1, 16], strides = [1, 1]} : vector<25x16xf32> to vector<1x16xf32>
    %129 = vector.broadcast %128 : vector<1x16xf32> to vector<256x16xf32>
    %130 = arith.mulf %127, %129 : vector<256x16xf32>
    %131 = arith.addf %124, %130 : vector<256x16xf32>
    %c0_77 = arith.constant 0 : index
    %c1_78 = arith.constant 1 : index
    %c3_79 = arith.constant 3 : index
    %c0_80 = arith.constant 0 : index
    %132 = vector.load %arg3[%c0_77, %c1_78, %c3_79, %c0_80] : memref<1x20x20x16xf32, #tpu.memory_space<vmem>>, vector<1x16x16x16xf32>
    %133 = vector.shape_cast %132 : vector<1x16x16x16xf32> to vector<16x16x16xf32>
    %134 = vector.shape_cast %133 : vector<16x16x16xf32> to vector<256x16xf32>
    %135 = vector.extract_strided_slice %74 {offsets = [8, 0], sizes = [1, 16], strides = [1, 1]} : vector<25x16xf32> to vector<1x16xf32>
    %136 = vector.broadcast %135 : vector<1x16xf32> to vector<256x16xf32>
    %137 = arith.mulf %134, %136 : vector<256x16xf32>
    %138 = arith.addf %131, %137 : vector<256x16xf32>
    %c0_81 = arith.constant 0 : index
    %c1_82 = arith.constant 1 : index
    %c4_83 = arith.constant 4 : index
    %c0_84 = arith.constant 0 : index
    %139 = vector.load %arg3[%c0_81, %c1_82, %c4_83, %c0_84] : memref<1x20x20x16xf32, #tpu.memory_space<vmem>>, vector<1x16x16x16xf32>
    %140 = vector.shape_cast %139 : vector<1x16x16x16xf32> to vector<16x16x16xf32>
    %141 = vector.shape_cast %140 : vector<16x16x16xf32> to vector<256x16xf32>
    %142 = vector.extract_strided_slice %74 {offsets = [9, 0], sizes = [1, 16], strides = [1, 1]} : vector<25x16xf32> to vector<1x16xf32>
    %143 = vector.broadcast %142 : vector<1x16xf32> to vector<256x16xf32>
    %144 = arith.mulf %141, %143 : vector<256x16xf32>
    %145 = arith.addf %138, %144 : vector<256x16xf32>
    %c0_85 = arith.constant 0 : index
    %c2_86 = arith.constant 2 : index
    %c0_87 = arith.constant 0 : index
    %c0_88 = arith.constant 0 : index
    %146 = vector.load %arg3[%c0_85, %c2_86, %c0_87, %c0_88] : memref<1x20x20x16xf32, #tpu.memory_space<vmem>>, vector<1x16x16x16xf32>
    %147 = vector.shape_cast %146 : vector<1x16x16x16xf32> to vector<16x16x16xf32>
    %148 = vector.shape_cast %147 : vector<16x16x16xf32> to vector<256x16xf32>
    %149 = vector.extract_strided_slice %74 {offsets = [10, 0], sizes = [1, 16], strides = [1, 1]} : vector<25x16xf32> to vector<1x16xf32>
    %150 = vector.broadcast %149 : vector<1x16xf32> to vector<256x16xf32>
    %151 = arith.mulf %148, %150 : vector<256x16xf32>
    %152 = arith.addf %145, %151 : vector<256x16xf32>
    %c0_89 = arith.constant 0 : index
    %c2_90 = arith.constant 2 : index
    %c1_91 = arith.constant 1 : index
    %c0_92 = arith.constant 0 : index
    %153 = vector.load %arg3[%c0_89, %c2_90, %c1_91, %c0_92] : memref<1x20x20x16xf32, #tpu.memory_space<vmem>>, vector<1x16x16x16xf32>
    %154 = vector.shape_cast %153 : vector<1x16x16x16xf32> to vector<16x16x16xf32>
    %155 = vector.shape_cast %154 : vector<16x16x16xf32> to vector<256x16xf32>
    %156 = vector.extract_strided_slice %74 {offsets = [11, 0], sizes = [1, 16], strides = [1, 1]} : vector<25x16xf32> to vector<1x16xf32>
    %157 = vector.broadcast %156 : vector<1x16xf32> to vector<256x16xf32>
    %158 = arith.mulf %155, %157 : vector<256x16xf32>
    %159 = arith.addf %152, %158 : vector<256x16xf32>
    %c0_93 = arith.constant 0 : index
    %c2_94 = arith.constant 2 : index
    %c2_95 = arith.constant 2 : index
    %c0_96 = arith.constant 0 : index
    %160 = vector.load %arg3[%c0_93, %c2_94, %c2_95, %c0_96] : memref<1x20x20x16xf32, #tpu.memory_space<vmem>>, vector<1x16x16x16xf32>
    %161 = vector.shape_cast %160 : vector<1x16x16x16xf32> to vector<16x16x16xf32>
    %162 = vector.shape_cast %161 : vector<16x16x16xf32> to vector<256x16xf32>
    %163 = vector.extract_strided_slice %74 {offsets = [12, 0], sizes = [1, 16], strides = [1, 1]} : vector<25x16xf32> to vector<1x16xf32>
    %164 = vector.broadcast %163 : vector<1x16xf32> to vector<256x16xf32>
    %165 = arith.mulf %162, %164 : vector<256x16xf32>
    %166 = arith.addf %159, %165 : vector<256x16xf32>
    %c0_97 = arith.constant 0 : index
    %c2_98 = arith.constant 2 : index
    %c3_99 = arith.constant 3 : index
    %c0_100 = arith.constant 0 : index
    %167 = vector.load %arg3[%c0_97, %c2_98, %c3_99, %c0_100] : memref<1x20x20x16xf32, #tpu.memory_space<vmem>>, vector<1x16x16x16xf32>
    %168 = vector.shape_cast %167 : vector<1x16x16x16xf32> to vector<16x16x16xf32>
    %169 = vector.shape_cast %168 : vector<16x16x16xf32> to vector<256x16xf32>
    %170 = vector.extract_strided_slice %74 {offsets = [13, 0], sizes = [1, 16], strides = [1, 1]} : vector<25x16xf32> to vector<1x16xf32>
    %171 = vector.broadcast %170 : vector<1x16xf32> to vector<256x16xf32>
    %172 = arith.mulf %169, %171 : vector<256x16xf32>
    %173 = arith.addf %166, %172 : vector<256x16xf32>
    %c0_101 = arith.constant 0 : index
    %c2_102 = arith.constant 2 : index
    %c4_103 = arith.constant 4 : index
    %c0_104 = arith.constant 0 : index
    %174 = vector.load %arg3[%c0_101, %c2_102, %c4_103, %c0_104] : memref<1x20x20x16xf32, #tpu.memory_space<vmem>>, vector<1x16x16x16xf32>
    %175 = vector.shape_cast %174 : vector<1x16x16x16xf32> to vector<16x16x16xf32>
    %176 = vector.shape_cast %175 : vector<16x16x16xf32> to vector<256x16xf32>
    %177 = vector.extract_strided_slice %74 {offsets = [14, 0], sizes = [1, 16], strides = [1, 1]} : vector<25x16xf32> to vector<1x16xf32>
    %178 = vector.broadcast %177 : vector<1x16xf32> to vector<256x16xf32>
    %179 = arith.mulf %176, %178 : vector<256x16xf32>
    %180 = arith.addf %173, %179 : vector<256x16xf32>
    %c0_105 = arith.constant 0 : index
    %c3_106 = arith.constant 3 : index
    %c0_107 = arith.constant 0 : index
    %c0_108 = arith.constant 0 : index
    %181 = vector.load %arg3[%c0_105, %c3_106, %c0_107, %c0_108] : memref<1x20x20x16xf32, #tpu.memory_space<vmem>>, vector<1x16x16x16xf32>
    %182 = vector.shape_cast %181 : vector<1x16x16x16xf32> to vector<16x16x16xf32>
    %183 = vector.shape_cast %182 : vector<16x16x16xf32> to vector<256x16xf32>
    %184 = vector.extract_strided_slice %74 {offsets = [15, 0], sizes = [1, 16], strides = [1, 1]} : vector<25x16xf32> to vector<1x16xf32>
    %185 = vector.broadcast %184 : vector<1x16xf32> to vector<256x16xf32>
    %186 = arith.mulf %183, %185 : vector<256x16xf32>
    %187 = arith.addf %180, %186 : vector<256x16xf32>
    %c0_109 = arith.constant 0 : index
    %c3_110 = arith.constant 3 : index
    %c1_111 = arith.constant 1 : index
    %c0_112 = arith.constant 0 : index
    %188 = vector.load %arg3[%c0_109, %c3_110, %c1_111, %c0_112] : memref<1x20x20x16xf32, #tpu.memory_space<vmem>>, vector<1x16x16x16xf32>
    %189 = vector.shape_cast %188 : vector<1x16x16x16xf32> to vector<16x16x16xf32>
    %190 = vector.shape_cast %189 : vector<16x16x16xf32> to vector<256x16xf32>
    %191 = vector.extract_strided_slice %74 {offsets = [16, 0], sizes = [1, 16], strides = [1, 1]} : vector<25x16xf32> to vector<1x16xf32>
    %192 = vector.broadcast %191 : vector<1x16xf32> to vector<256x16xf32>
    %193 = arith.mulf %190, %192 : vector<256x16xf32>
    %194 = arith.addf %187, %193 : vector<256x16xf32>
    %c0_113 = arith.constant 0 : index
    %c3_114 = arith.constant 3 : index
    %c2_115 = arith.constant 2 : index
    %c0_116 = arith.constant 0 : index
    %195 = vector.load %arg3[%c0_113, %c3_114, %c2_115, %c0_116] : memref<1x20x20x16xf32, #tpu.memory_space<vmem>>, vector<1x16x16x16xf32>
    %196 = vector.shape_cast %195 : vector<1x16x16x16xf32> to vector<16x16x16xf32>
    %197 = vector.shape_cast %196 : vector<16x16x16xf32> to vector<256x16xf32>
    %198 = vector.extract_strided_slice %74 {offsets = [17, 0], sizes = [1, 16], strides = [1, 1]} : vector<25x16xf32> to vector<1x16xf32>
    %199 = vector.broadcast %198 : vector<1x16xf32> to vector<256x16xf32>
    %200 = arith.mulf %197, %199 : vector<256x16xf32>
    %201 = arith.addf %194, %200 : vector<256x16xf32>
    %c0_117 = arith.constant 0 : index
    %c3_118 = arith.constant 3 : index
    %c3_119 = arith.constant 3 : index
    %c0_120 = arith.constant 0 : index
    %202 = vector.load %arg3[%c0_117, %c3_118, %c3_119, %c0_120] : memref<1x20x20x16xf32, #tpu.memory_space<vmem>>, vector<1x16x16x16xf32>
    %203 = vector.shape_cast %202 : vector<1x16x16x16xf32> to vector<16x16x16xf32>
    %204 = vector.shape_cast %203 : vector<16x16x16xf32> to vector<256x16xf32>
    %205 = vector.extract_strided_slice %74 {offsets = [18, 0], sizes = [1, 16], strides = [1, 1]} : vector<25x16xf32> to vector<1x16xf32>
    %206 = vector.broadcast %205 : vector<1x16xf32> to vector<256x16xf32>
    %207 = arith.mulf %204, %206 : vector<256x16xf32>
    %208 = arith.addf %201, %207 : vector<256x16xf32>
    %c0_121 = arith.constant 0 : index
    %c3_122 = arith.constant 3 : index
    %c4_123 = arith.constant 4 : index
    %c0_124 = arith.constant 0 : index
    %209 = vector.load %arg3[%c0_121, %c3_122, %c4_123, %c0_124] : memref<1x20x20x16xf32, #tpu.memory_space<vmem>>, vector<1x16x16x16xf32>
    %210 = vector.shape_cast %209 : vector<1x16x16x16xf32> to vector<16x16x16xf32>
    %211 = vector.shape_cast %210 : vector<16x16x16xf32> to vector<256x16xf32>
    %212 = vector.extract_strided_slice %74 {offsets = [19, 0], sizes = [1, 16], strides = [1, 1]} : vector<25x16xf32> to vector<1x16xf32>
    %213 = vector.broadcast %212 : vector<1x16xf32> to vector<256x16xf32>
    %214 = arith.mulf %211, %213 : vector<256x16xf32>
    %215 = arith.addf %208, %214 : vector<256x16xf32>
    %c0_125 = arith.constant 0 : index
    %c4_126 = arith.constant 4 : index
    %c0_127 = arith.constant 0 : index
    %c0_128 = arith.constant 0 : index
    %216 = vector.load %arg3[%c0_125, %c4_126, %c0_127, %c0_128] : memref<1x20x20x16xf32, #tpu.memory_space<vmem>>, vector<1x16x16x16xf32>
    %217 = vector.shape_cast %216 : vector<1x16x16x16xf32> to vector<16x16x16xf32>
    %218 = vector.shape_cast %217 : vector<16x16x16xf32> to vector<256x16xf32>
    %219 = vector.extract_strided_slice %74 {offsets = [20, 0], sizes = [1, 16], strides = [1, 1]} : vector<25x16xf32> to vector<1x16xf32>
    %220 = vector.broadcast %219 : vector<1x16xf32> to vector<256x16xf32>
    %221 = arith.mulf %218, %220 : vector<256x16xf32>
    %222 = arith.addf %215, %221 : vector<256x16xf32>
    %c0_129 = arith.constant 0 : index
    %c4_130 = arith.constant 4 : index
    %c1_131 = arith.constant 1 : index
    %c0_132 = arith.constant 0 : index
    %223 = vector.load %arg3[%c0_129, %c4_130, %c1_131, %c0_132] : memref<1x20x20x16xf32, #tpu.memory_space<vmem>>, vector<1x16x16x16xf32>
    %224 = vector.shape_cast %223 : vector<1x16x16x16xf32> to vector<16x16x16xf32>
    %225 = vector.shape_cast %224 : vector<16x16x16xf32> to vector<256x16xf32>
    %226 = vector.extract_strided_slice %74 {offsets = [21, 0], sizes = [1, 16], strides = [1, 1]} : vector<25x16xf32> to vector<1x16xf32>
    %227 = vector.broadcast %226 : vector<1x16xf32> to vector<256x16xf32>
    %228 = arith.mulf %225, %227 : vector<256x16xf32>
    %229 = arith.addf %222, %228 : vector<256x16xf32>
    %c0_133 = arith.constant 0 : index
    %c4_134 = arith.constant 4 : index
    %c2_135 = arith.constant 2 : index
    %c0_136 = arith.constant 0 : index
    %230 = vector.load %arg3[%c0_133, %c4_134, %c2_135, %c0_136] : memref<1x20x20x16xf32, #tpu.memory_space<vmem>>, vector<1x16x16x16xf32>
    %231 = vector.shape_cast %230 : vector<1x16x16x16xf32> to vector<16x16x16xf32>
    %232 = vector.shape_cast %231 : vector<16x16x16xf32> to vector<256x16xf32>
    %233 = vector.extract_strided_slice %74 {offsets = [22, 0], sizes = [1, 16], strides = [1, 1]} : vector<25x16xf32> to vector<1x16xf32>
    %234 = vector.broadcast %233 : vector<1x16xf32> to vector<256x16xf32>
    %235 = arith.mulf %232, %234 : vector<256x16xf32>
    %236 = arith.addf %229, %235 : vector<256x16xf32>
    %c0_137 = arith.constant 0 : index
    %c4_138 = arith.constant 4 : index
    %c3_139 = arith.constant 3 : index
    %c0_140 = arith.constant 0 : index
    %237 = vector.load %arg3[%c0_137, %c4_138, %c3_139, %c0_140] : memref<1x20x20x16xf32, #tpu.memory_space<vmem>>, vector<1x16x16x16xf32>
    %238 = vector.shape_cast %237 : vector<1x16x16x16xf32> to vector<16x16x16xf32>
    %239 = vector.shape_cast %238 : vector<16x16x16xf32> to vector<256x16xf32>
    %240 = vector.extract_strided_slice %74 {offsets = [23, 0], sizes = [1, 16], strides = [1, 1]} : vector<25x16xf32> to vector<1x16xf32>
    %241 = vector.broadcast %240 : vector<1x16xf32> to vector<256x16xf32>
    %242 = arith.mulf %239, %241 : vector<256x16xf32>
    %243 = arith.addf %236, %242 : vector<256x16xf32>
    %c0_141 = arith.constant 0 : index
    %c4_142 = arith.constant 4 : index
    %c4_143 = arith.constant 4 : index
    %c0_144 = arith.constant 0 : index
    %244 = vector.load %arg3[%c0_141, %c4_142, %c4_143, %c0_144] : memref<1x20x20x16xf32, #tpu.memory_space<vmem>>, vector<1x16x16x16xf32>
    %245 = vector.shape_cast %244 : vector<1x16x16x16xf32> to vector<16x16x16xf32>
    %246 = vector.shape_cast %245 : vector<16x16x16xf32> to vector<256x16xf32>
    %247 = vector.extract_strided_slice %74 {offsets = [24, 0], sizes = [1, 16], strides = [1, 1]} : vector<25x16xf32> to vector<1x16xf32>
    %248 = vector.broadcast %247 : vector<1x16xf32> to vector<256x16xf32>
    %249 = arith.mulf %246, %248 : vector<256x16xf32>
    %250 = arith.addf %243, %249 : vector<256x16xf32>
    %c0_145 = arith.constant 0 : index
    %c0_146 = arith.constant 0 : index
    %c0_147 = arith.constant 0 : index
    %251 = vector.load %arg7[%c0_145, %c0_146, %c0_147] : memref<1x1x16xf32, #tpu.memory_space<vmem>>, vector<1x1x16xf32>
    %252 = vector.shape_cast %251 : vector<1x1x16xf32> to vector<1x16xf32>
    %253 = vector.broadcast %252 : vector<1x16xf32> to vector<256x16xf32>
    %254 = arith.addf %250, %253 : vector<256x16xf32>
    %255 = tpu.concatenate %2, %72, %254 in 1 : vector<256x16xf32>, vector<256x16xf32>, vector<256x16xf32> -> vector<256x48xf32>
    %c0_148 = arith.constant 0 : index
    %c0_149 = arith.constant 0 : index
    %c0_150 = arith.constant 0 : index
    %256 = vector.load %arg8[%c0_148, %c0_149, %c0_150] : memref<1x48x192xf32, #tpu.memory_space<vmem>>, vector<1x48x192xf32>
    %257 = vector.shape_cast %256 : vector<1x48x192xf32> to vector<48x192xf32>
    %cst_151 = arith.constant dense<0.000000e+00> : vector<256x192xf32>
    %258 = tpu.matmul %255, %257, %cst_151 {dimension_numbers = #tpu.dot_dimension_numbers<[1], [0], [0], [1], [0, 0, 1, 1], [], []>} : vector<256x48xf32>, vector<48x192xf32>, vector<256x192xf32> -> vector<256x192xf32>
    %c0_152 = arith.constant 0 : index
    %c0_153 = arith.constant 0 : index
    %c0_154 = arith.constant 0 : index
    %259 = vector.load %arg9[%c0_152, %c0_153, %c0_154] : memref<1x1x192xf32, #tpu.memory_space<vmem>>, vector<1x1x192xf32>
    %260 = vector.shape_cast %259 : vector<1x1x192xf32> to vector<1x192xf32>
    %261 = vector.broadcast %260 : vector<1x192xf32> to vector<256x192xf32>
    %262 = arith.addf %258, %261 : vector<256x192xf32>
    %263 = arith.negf %262 : vector<256x192xf32>
    %264 = math.exp %263 : vector<256x192xf32>
    %cst_155 = arith.constant 1.000000e+00 : f32
    %265 = vector.broadcast %cst_155 : f32 to vector<256x192xf32>
    %266 = arith.addf %265, %264 : vector<256x192xf32>
    %267 = arith.divf %265, %266 : vector<256x192xf32>
    %268 = arith.mulf %262, %267 : vector<256x192xf32>
    %c0_156 = arith.constant 0 : index
    %c0_157 = arith.constant 0 : index
    %c0_158 = arith.constant 0 : index
    %269 = vector.load %arg10[%c0_156, %c0_157, %c0_158] : memref<1x192x16xf32, #tpu.memory_space<vmem>>, vector<1x192x16xf32>
    %270 = vector.shape_cast %269 : vector<1x192x16xf32> to vector<192x16xf32>
    %cst_159 = arith.constant dense<0.000000e+00> : vector<256x16xf32>
    %271 = tpu.matmul %268, %270, %cst_159 {dimension_numbers = #tpu.dot_dimension_numbers<[1], [0], [0], [1], [0, 0, 1, 1], [], []>} : vector<256x192xf32>, vector<192x16xf32>, vector<256x16xf32> -> vector<256x16xf32>
    %c0_160 = arith.constant 0 : index
    %c0_161 = arith.constant 0 : index
    %c0_162 = arith.constant 0 : index
    %272 = vector.load %arg11[%c0_160, %c0_161, %c0_162] : memref<1x1x16xf32, #tpu.memory_space<vmem>>, vector<1x1x16xf32>
    %273 = vector.shape_cast %272 : vector<1x1x16xf32> to vector<1x16xf32>
    %274 = vector.broadcast %273 : vector<1x16xf32> to vector<256x16xf32>
    %275 = arith.addf %271, %274 : vector<256x16xf32>
    %276 = arith.negf %275 : vector<256x16xf32>
    %277 = math.exp %276 : vector<256x16xf32>
    %cst_163 = arith.constant 1.000000e+00 : f32
    %278 = vector.broadcast %cst_163 : f32 to vector<256x16xf32>
    %279 = arith.addf %278, %277 : vector<256x16xf32>
    %280 = arith.divf %278, %279 : vector<256x16xf32>
    %281 = arith.mulf %275, %280 : vector<256x16xf32>
    %cst_164 = arith.constant dense<0.000000e+00> : vector<16xf32>
    %282 = vector.multi_reduction <add>, %281, %cst_164 [0] : vector<256x16xf32> to vector<16xf32>
    %283 = vector.shape_cast %282 : vector<16xf32> to vector<1x16xf32>
    %cst_165 = arith.constant 2.560000e+02 : f32
    %284 = vector.broadcast %cst_165 : f32 to vector<1x16xf32>
    %285 = arith.divf %283, %284 : vector<1x16xf32>
    %c0_166 = arith.constant 0 : index
    %c0_167 = arith.constant 0 : index
    %c0_168 = arith.constant 0 : index
    %286 = vector.load %arg12[%c0_166, %c0_167, %c0_168] : memref<1x16x1xf32, #tpu.memory_space<vmem>>, vector<1x16x1xf32>
    %287 = vector.shape_cast %286 : vector<1x16x1xf32> to vector<16x1xf32>
    %cst_169 = arith.constant dense<0.000000e+00> : vector<1x1xf32>
    %288 = tpu.matmul %285, %287, %cst_169 {dimension_numbers = #tpu.dot_dimension_numbers<[1], [0], [0], [1], [0, 0, 1, 1], [], []>} : vector<1x16xf32>, vector<16x1xf32>, vector<1x1xf32> -> vector<1x1xf32>
    %c0_170 = arith.constant 0 : index
    %c0_171 = arith.constant 0 : index
    %c0_172 = arith.constant 0 : index
    %289 = vector.load %arg13[%c0_170, %c0_171, %c0_172] : memref<1x1x1xf32, #tpu.memory_space<vmem>>, vector<1x1x1xf32>
    %290 = vector.shape_cast %289 : vector<1x1x1xf32> to vector<1x1xf32>
    %291 = arith.addf %288, %290 : vector<1x1xf32>
    %292 = arith.negf %291 : vector<1x1xf32>
    %293 = math.exp %292 : vector<1x1xf32>
    %cst_173 = arith.constant 1.000000e+00 : f32
    %294 = vector.broadcast %cst_173 : f32 to vector<1x1xf32>
    %295 = arith.addf %294, %293 : vector<1x1xf32>
    %296 = arith.divf %294, %295 : vector<1x1xf32>
    %297 = arith.mulf %291, %296 : vector<1x1xf32>
    %c0_174 = arith.constant 0 : index
    %c0_175 = arith.constant 0 : index
    %c0_176 = arith.constant 0 : index
    %298 = vector.load %arg14[%c0_174, %c0_175, %c0_176] : memref<1x1x16xf32, #tpu.memory_space<vmem>>, vector<1x1x16xf32>
    %299 = vector.shape_cast %298 : vector<1x1x16xf32> to vector<1x16xf32>
    %cst_177 = arith.constant dense<0.000000e+00> : vector<1x16xf32>
    %300 = tpu.matmul %297, %299, %cst_177 {dimension_numbers = #tpu.dot_dimension_numbers<[1], [0], [0], [1], [0, 0, 1, 1], [], []>} : vector<1x1xf32>, vector<1x16xf32>, vector<1x16xf32> -> vector<1x16xf32>
    %c0_178 = arith.constant 0 : index
    %c0_179 = arith.constant 0 : index
    %c0_180 = arith.constant 0 : index
    %301 = vector.load %arg15[%c0_178, %c0_179, %c0_180] : memref<1x1x16xf32, #tpu.memory_space<vmem>>, vector<1x1x16xf32>
    %302 = vector.shape_cast %301 : vector<1x1x16xf32> to vector<1x16xf32>
    %303 = arith.addf %300, %302 : vector<1x16xf32>
    %304 = arith.negf %303 : vector<1x16xf32>
    %305 = math.exp %304 : vector<1x16xf32>
    %cst_181 = arith.constant 1.000000e+00 : f32
    %306 = vector.broadcast %cst_181 : f32 to vector<1x16xf32>
    %307 = arith.addf %306, %305 : vector<1x16xf32>
    %308 = arith.divf %306, %307 : vector<1x16xf32>
    %309 = vector.broadcast %308 : vector<1x16xf32> to vector<256x16xf32>
    %310 = arith.mulf %281, %309 : vector<256x16xf32>
    %311 = arith.addf %310, %2 : vector<256x16xf32>
    %312 = arith.index_cast %arg0 : i32 to index
    %313 = arith.index_cast %arg1 : i32 to index
    %314 = memref.load %arg2[%312, %313] : memref<2x3xf32, #tpu.memory_space<smem>>
    %315 = vector.broadcast %314 : f32 to vector<256x16xf32>
    %316 = arith.mulf %311, %315 : vector<256x16xf32>
    %c0_i32 = arith.constant 0 : i32
    %317 = arith.cmpi eq, %arg1, %c0_i32 : i32
    %318 = arith.extui %317 : i1 to i32
    %c0_i32_182 = arith.constant 0 : i32
    %319 = arith.cmpi ne, %318, %c0_i32_182 : i32
    scf.if %319 {
      %c0_185 = arith.constant 0 : index
      %c0_186 = arith.constant 0 : index
      %c0_187 = arith.constant 0 : index
      %323 = vector.load %arg16[%c0_185, %c0_186, %c0_187] : memref<1x256x16xf32, #tpu.memory_space<vmem>>, vector<1x256x16xf32>
      %324 = vector.shape_cast %323 : vector<1x256x16xf32> to vector<256x16xf32>
      %325 = vector.shape_cast %316 : vector<256x16xf32> to vector<1x256x16xf32>
      tpu.vector_store %arg16[%c0_185, %c0_186, %c0_187], %325 {strides = array<i32>} : memref<1x256x16xf32, #tpu.memory_space<vmem>>, vector<1x256x16xf32>,
    } else {
    }
    %c0_i32_183 = arith.constant 0 : i32
    %320 = arith.cmpi sgt, %arg1, %c0_i32_183 : i32
    %321 = arith.extui %320 : i1 to i32
    %c0_i32_184 = arith.constant 0 : i32
    %322 = arith.cmpi ne, %321, %c0_i32_184 : i32
    scf.if %322 {
      %c0_185 = arith.constant 0 : index
      %c0_186 = arith.constant 0 : index
      %c0_187 = arith.constant 0 : index
      %323 = vector.load %arg16[%c0_185, %c0_186, %c0_187] : memref<1x256x16xf32, #tpu.memory_space<vmem>>, vector<1x256x16xf32>
      %324 = vector.shape_cast %323 : vector<1x256x16xf32> to vector<256x16xf32>
      %325 = arith.addf %324, %316 : vector<256x16xf32>
      %c0_188 = arith.constant 0 : index
      %c0_189 = arith.constant 0 : index
      %c0_190 = arith.constant 0 : index
      %326 = vector.load %arg16[%c0_188, %c0_189, %c0_190] : memref<1x256x16xf32, #tpu.memory_space<vmem>>, vector<1x256x16xf32>
      %327 = vector.shape_cast %326 : vector<1x256x16xf32> to vector<256x16xf32>
      %328 = vector.shape_cast %325 : vector<256x16xf32> to vector<1x256x16xf32>
      tpu.vector_store %arg16[%c0_188, %c0_189, %c0_190], %328 {strides = array<i32>} : memref<1x256x16xf32, #tpu.memory_space<vmem>>, vector<1x256x16xf32>,
    } else {
    }
    return
  }
  func.func @transform_0(%arg0: i32, %arg1: i32) -> (i32, i32) {
    %c0_i32 = arith.constant 0 : i32
    %c0_i32_0 = arith.constant 0 : i32
    %c0_i32_1 = arith.constant 0 : i32
    return %c0_i32, %c0_i32_0 : i32, i32
  }
  func.func @transform_1(%arg0: i32, %arg1: i32) -> (i32, i32, i32, i32) {
    %c0_i32 = arith.constant 0 : i32
    %c0_i32_0 = arith.constant 0 : i32
    %c0_i32_1 = arith.constant 0 : i32
    %c0_i32_2 = arith.constant 0 : i32
    return %arg0, %c0_i32, %c0_i32_0, %c0_i32_1 : i32, i32, i32, i32
  }
  func.func @transform_2(%arg0: i32, %arg1: i32) -> (i32, i32, i32) {
    %c0_i32 = arith.constant 0 : i32
    %c0_i32_0 = arith.constant 0 : i32
    %c0_i32_1 = arith.constant 0 : i32
    return %arg1, %c0_i32, %c0_i32_0 : i32, i32, i32
  }
  func.func @transform_3(%arg0: i32, %arg1: i32) -> (i32, i32, i32) {
    %c0_i32 = arith.constant 0 : i32
    %c0_i32_0 = arith.constant 0 : i32
    %c0_i32_1 = arith.constant 0 : i32
    return %arg1, %c0_i32, %c0_i32_0 : i32, i32, i32
  }
  func.func @transform_4(%arg0: i32, %arg1: i32) -> (i32, i32, i32) {
    %c0_i32 = arith.constant 0 : i32
    %c0_i32_0 = arith.constant 0 : i32
    %c0_i32_1 = arith.constant 0 : i32
    return %arg1, %c0_i32, %c0_i32_0 : i32, i32, i32
  }
  func.func @transform_5(%arg0: i32, %arg1: i32) -> (i32, i32, i32) {
    %c0_i32 = arith.constant 0 : i32
    %c0_i32_0 = arith.constant 0 : i32
    %c0_i32_1 = arith.constant 0 : i32
    return %arg1, %c0_i32, %c0_i32_0 : i32, i32, i32
  }
  func.func @transform_6(%arg0: i32, %arg1: i32) -> (i32, i32, i32) {
    %c0_i32 = arith.constant 0 : i32
    %c0_i32_0 = arith.constant 0 : i32
    %c0_i32_1 = arith.constant 0 : i32
    return %arg1, %c0_i32, %c0_i32_0 : i32, i32, i32
  }
  func.func @transform_7(%arg0: i32, %arg1: i32) -> (i32, i32, i32) {
    %c0_i32 = arith.constant 0 : i32
    %c0_i32_0 = arith.constant 0 : i32
    %c0_i32_1 = arith.constant 0 : i32
    return %arg1, %c0_i32, %c0_i32_0 : i32, i32, i32
  }
  func.func @transform_8(%arg0: i32, %arg1: i32) -> (i32, i32, i32) {
    %c0_i32 = arith.constant 0 : i32
    %c0_i32_0 = arith.constant 0 : i32
    %c0_i32_1 = arith.constant 0 : i32
    return %arg1, %c0_i32, %c0_i32_0 : i32, i32, i32
  }
  func.func @transform_9(%arg0: i32, %arg1: i32) -> (i32, i32, i32) {
    %c0_i32 = arith.constant 0 : i32
    %c0_i32_0 = arith.constant 0 : i32
    %c0_i32_1 = arith.constant 0 : i32
    return %arg1, %c0_i32, %c0_i32_0 : i32, i32, i32
  }
  func.func @transform_10(%arg0: i32, %arg1: i32) -> (i32, i32, i32) {
    %c0_i32 = arith.constant 0 : i32
    %c0_i32_0 = arith.constant 0 : i32
    %c0_i32_1 = arith.constant 0 : i32
    return %arg1, %c0_i32, %c0_i32_0 : i32, i32, i32
  }
  func.func @transform_11(%arg0: i32, %arg1: i32) -> (i32, i32, i32) {
    %c0_i32 = arith.constant 0 : i32
    %c0_i32_0 = arith.constant 0 : i32
    %c0_i32_1 = arith.constant 0 : i32
    return %arg1, %c0_i32, %c0_i32_0 : i32, i32, i32
  }
  func.func @transform_12(%arg0: i32, %arg1: i32) -> (i32, i32, i32) {
    %c0_i32 = arith.constant 0 : i32
    %c0_i32_0 = arith.constant 0 : i32
    %c0_i32_1 = arith.constant 0 : i32
    return %arg1, %c0_i32, %c0_i32_0 : i32, i32, i32
  }
  func.func @transform_13(%arg0: i32, %arg1: i32) -> (i32, i32, i32) {
    %c0_i32 = arith.constant 0 : i32
    %c0_i32_0 = arith.constant 0 : i32
    %c0_i32_1 = arith.constant 0 : i32
    return %arg1, %c0_i32, %c0_i32_0 : i32, i32, i32
  }
  func.func @transform_14(%arg0: i32, %arg1: i32) -> (i32, i32, i32) {
    %c0_i32 = arith.constant 0 : i32
    %c0_i32_0 = arith.constant 0 : i32
    %c0_i32_1 = arith.constant 0 : i32
    return %arg0, %c0_i32, %c0_i32_0 : i32, i32, i32
  }
}

</mosaic_0001>

<bundles_post_ra>
// kernel: category_specific_adapter_multi.2
= control target key start
LH: loop header
LB: loop body
LE: loop exit
PB: predicated region body
PF: predicated region fallthrough
CT: control target
= control target key end

     0   :  { %s472_s12 = smov 0   ;;  %s572_s0 = inlined_call_operand.vmem [shape: f32[2,16,16,16], index: 0, kind: input, shape index: {}]   ;;  %s573_s1 = inlined_call_operand.vmem [shape: f32[16,3], index: 1, kind: input, shape index: {}]   ;;  %s574_s2 = inlined_call_operand.vmem [shape: f32[1,3], index: 2, kind: input, shape index: {}]   ;;  %s575_s3 = inlined_call_operand.vmem [shape: f32[2,1,3], index: 3, kind: output, shape index: {}]  }
   0x1 LB: > { %s407_s13 = sadd.s32 4294967295, %s448_s12   ;;  %p411_p0 = scmp.ge.s32.totalorder %s448_s12, 1  ;;  %s448_s12 = sphi %s472_s12, %s13_s12  }
   0x2   : > { %p137_p1 = scmp.lt.s32.totalorder %s448_s12, 3 }
   0x4   : > { %p138_p2 = pnand %p411_p0, %p137_p1 }
   0x5   : > { %p159_p3 = scmp.lt.s32.totalorder (!%p138_p2), %s407_s13, 1 }
   0x6   : > { %141 = sbr.rel (%p138_p2) target bundleno = 600 (0x258), region = 32 }
   0xb   : > { %v272_v0 = vld [vmem:[%s573_s1 + $0x8] sm:$0xff]  ;;  %v450_v1 = vmov 0.0   ;;  %v271_v2 = vld [vmem:[%s573_s1] sm:$0xff]  ;;  %vm451_vm0 = vmmov 0   ;;  %s577_s13 = smov (!%p159_p3, %s407_s13), 1  ;;  %vm199_vm1 = vcmask 130048  }
   0xc   : > { %421 = vmatprep.subr.mxu0 %v450_v1  ;;  %425 = vmatprep.mubr.msk.f32.mxu0 %vm451_vm0, %v450_v1  ;;  %s417_s18 = sshll.u32 %s577_s13, 8  ;;  %vm347_vm2 = vcmask 16384   ;;  %s166_s26 = scalar_lea.vmem %s575_s3, %s577_s13 }
   0xd   : > { %422 = vmatpush3.msra.mxu0 %v272_v0  ;;  %s492_s21 = scalar_lea.vmem %s572_s0, %s417_s18 }
   0xe   : > { %423 = vmatprep.subr.mxu0 %v450_v1  ;;  %v167_v3 = vld [vmem:[%s492_s21] sm:$0xff]  ;;  %v168_v4 = vld [vmem:[%s492_s21 + $0x8] sm:$0xff]  ;;  %v169_v5 = vld [vmem:[%s492_s21 + $0x10] sm:$0xff] }
   0xf   : > { %424 = vmatpush3.msra.mxu0 %v271_v2  ;;  %v170_v6 = vld [vmem:[%s492_s21 + $0x18] sm:$0xff]  ;;  %v200_v7 = vsel %vm199_vm1, %v167_v3, 0.0  ;;  %v201_v8 = vsel %vm199_vm1, %v168_v4, 0.0  ;;  %v203_v9 = vsel %vm199_vm1, %v169_v5, 0.0  ;;  %v171_v10 = vld [vmem:[%s492_s21 + $0x20] sm:$0xff]  ;;  %v172_v13 = vld [vmem:[%s492_s21 + $0x28] sm:$0xff] }
  0x10   : > { %v202_v11 = vadd.f32 %v201_v8, %v200_v7  ;;  %v205_v12 = vsel %vm199_vm1, %v170_v6, 0.0  ;;  %v207_v15 = vsel %vm199_vm1, %v171_v10, 0.0  ;;  %v173_v16 = vld [vmem:[%s492_s21 + $0x30] sm:$0xff]  ;;  %v209_v18 = vsel %vm199_vm1, %v172_v13, 0.0  ;;  %v174_v19 = vld [vmem:[%s492_s21 + $0x38] sm:$0xff]  ;;  %v175_v22 = vld [vmem:[%s492_s21 + $0x40] sm:$0xff] }
  0x11   : > { %v211_v21 = vsel %vm199_vm1, %v173_v16, 0.0  ;;  %v213_v24 = vsel %vm199_vm1, %v174_v19, 0.0  ;;  %v176_v25 = vld [vmem:[%s492_s21 + $0x48] sm:$0xff]  ;;  %v215_v27 = vsel %vm199_vm1, %v175_v22, 0.0  ;;  %v177_v28 = vld [vmem:[%s492_s21 + $0x50] sm:$0xff]  ;;  %v178_v31 = vld [vmem:[%s492_s21 + $0x58] sm:$0xff] }
  0x12   : > { %v204_v14 = vadd.f32 %v203_v9, %v202_v11  ;;  %v217_v30 = vsel %vm199_vm1, %v176_v25, 0.0  ;;  %v219_v33 = vsel %vm199_vm1, %v177_v28, 0.0  ;;  %v179_v34 = vld [vmem:[%s492_s21 + $0x60] sm:$0xff]  ;;  %v221_v36 = vsel %vm199_vm1, %v178_v31, 0.0  ;;  %v180_v37 = vld [vmem:[%s492_s21 + $0x68] sm:$0xff]  ;;  %v181_v40 = vld [vmem:[%s492_s21 + $0x70] sm:$0xff] }
  0x13   : > { %v223_v39 = vsel %vm199_vm1, %v179_v34, 0.0  ;;  %v225_v42 = vsel %vm199_vm1, %v180_v37, 0.0  ;;  %v182_v43 = vld [vmem:[%s492_s21 + $0x78] sm:$0xff]  ;;  %v227_v45 = vsel %vm199_vm1, %v181_v40, 0.0  ;;  %v183_v46 = vld [vmem:[%s492_s21 + $0x80] sm:$0xff]  ;;  %v184_v49 = vld [vmem:[%s492_s21 + $0x88] sm:$0xff] }
  0x14   : > { %v206_v17 = vadd.f32 %v205_v12, %v204_v14  ;;  %v229_v48 = vsel %vm199_vm1, %v182_v43, 0.0  ;;  %v231_v51 = vsel %vm199_vm1, %v183_v46, 0.0  ;;  %v185_v52 = vld [vmem:[%s492_s21 + $0x90] sm:$0xff]  ;;  %v233_v54 = vsel %vm199_vm1, %v184_v49, 0.0  ;;  %v186_v55 = vld [vmem:[%s492_s21 + $0x98] sm:$0xff]  ;;  %v187_v58 = vld [vmem:[%s492_s21 + $0xa0] sm:$0xff] }
  0x15   : > { %v235_v57 = vsel %vm199_vm1, %v185_v52, 0.0  ;;  %v237_v60 = vsel %vm199_vm1, %v186_v55, 0.0  ;;  %v188_v61 = vld [vmem:[%s492_s21 + $0xa8] sm:$0xff]  ;;  %v239_v63 = vsel %vm199_vm1, %v187_v58, 0.0  ;;  %v189_v0 = vld [vmem:[%s492_s21 + $0xb0] sm:$0xff]  ;;  %v190_v3 = vld [vmem:[%s492_s21 + $0xb8] sm:$0xff] }
  0x16   : > { %v208_v20 = vadd.f32 %v207_v15, %v206_v17  ;;  %v241_v2 = vsel %vm199_vm1, %v188_v61, 0.0  ;;  %v243_v5 = vsel %vm199_vm1, %v189_v0, 0.0  ;;  %v191_v6 = vld [vmem:[%s492_s21 + $0xc0] sm:$0xff]  ;;  %v245_v8 = vsel %vm199_vm1, %v190_v3, 0.0  ;;  %v192_v9 = vld [vmem:[%s492_s21 + $0xc8] sm:$0xff]  ;;  %v193_v12 = vld [vmem:[%s492_s21 + $0xd0] sm:$0xff] }
  0x17   : > { %v247_v11 = vsel %vm199_vm1, %v191_v6, 0.0  ;;  %v249_v14 = vsel %vm199_vm1, %v192_v9, 0.0  ;;  %v194_v15 = vld [vmem:[%s492_s21 + $0xd8] sm:$0xff]  ;;  %v251_v17 = vsel %vm199_vm1, %v193_v12, 0.0 }
  0x18   : > { %v210_v23 = vadd.f32 %v209_v18, %v208_v20  ;;  %v195_v18 = vld [vmem:[%s492_s21 + $0xe0] sm:$0xff]  ;;  %v253_v20 = vsel %vm199_vm1, %v194_v15, 0.0 }
  0x1a   : > { %v212_v26 = vadd.f32 %v211_v21, %v210_v23  ;;  %v196_v21 = vld [vmem:[%s492_s21 + $0xe8] sm:$0xff]  ;;  %v255_v23 = vsel %vm199_vm1, %v195_v18, 0.0 }
  0x1c   : > { %v214_v29 = vadd.f32 %v213_v24, %v212_v26  ;;  %v197_v24 = vld [vmem:[%s492_s21 + $0xf0] sm:$0xff]  ;;  %v257_v26 = vsel %vm199_vm1, %v196_v21, 0.0 }
  0x1e   : > { %v216_v32 = vadd.f32 %v215_v27, %v214_v29  ;;  %v198_v27 = vld [vmem:[%s492_s21 + $0xf8] sm:$0xff]  ;;  %v259_v29 = vsel %vm199_vm1, %v197_v24, 0.0 }
  0x1f   : > { %v261_v31 = vsel %vm199_vm1, %v198_v27, 0.0 }
  0x20   : > { %v218_v35 = vadd.f32 %v217_v30, %v216_v32 }
  0x22   : > { %v220_v38 = vadd.f32 %v219_v33, %v218_v35 }
  0x24   : > { %v222_v41 = vadd.f32 %v221_v36, %v220_v38 }
  0x26   : > { %v224_v44 = vadd.f32 %v223_v39, %v222_v41  ;;  %v273_v41 = vld [vmem:[%s574_s2] sm:$0x1] }
  0x28   : > { %v226_v47 = vadd.f32 %v225_v42, %v224_v44 }
  0x2a   : > { %v228_v50 = vadd.f32 %v227_v45, %v226_v47 }
  0x2c   : > { %v230_v53 = vadd.f32 %v229_v48, %v228_v50 }
  0x2e   : > { %v232_v56 = vadd.f32 %v231_v51, %v230_v53 }
  0x30   : > { %v234_v59 = vadd.f32 %v233_v54, %v232_v56 }
  0x32   : > { %v236_v62 = vadd.f32 %v235_v57, %v234_v59 }
  0x34   : > { %v238_v1 = vadd.f32 %v237_v60, %v236_v62 }
  0x36   : > { %v240_v4 = vadd.f32 %v239_v63, %v238_v1 }
  0x38   : > { %v242_v7 = vadd.f32 %v241_v2, %v240_v4 }
  0x3a   : > { %v244_v10 = vadd.f32 %v243_v5, %v242_v7 }
  0x3c   : > { %v246_v13 = vadd.f32 %v245_v8, %v244_v10 }
  0x3e   : > { %v248_v16 = vadd.f32 %v247_v11, %v246_v13 }
  0x40   : > { %v250_v19 = vadd.f32 %v249_v14, %v248_v16 }
  0x42   : > { %v252_v22 = vadd.f32 %v251_v17, %v250_v19 }
  0x44   : > { %v254_v25 = vadd.f32 %v253_v20, %v252_v22 }
  0x46   : > { %v256_v28 = vadd.f32 %v255_v23, %v254_v25 }
  0x48   : > { %v258_v30 = vadd.f32 %v257_v26, %v256_v28 }
  0x4a   : > { %v260_v32 = vadd.f32 %v259_v29, %v258_v30 }
  0x4c   : > { %v262_v33 = vadd.f32 %v261_v31, %v260_v32 }
  0x4e   : > { %v263_v34 = vrot.slane %v262_v33, 4 }
  0x50   : > { %v264_v35 = vadd.f32 %v263_v34, %v262_v33 }
  0x52   : > { %v265_v36 = vrot.slane %v264_v35, 2 }
  0x54   : > { %v266_v37 = vadd.f32 %v265_v36, %v264_v35 }
  0x56   : > { %v267_v38 = vrot.slane %v266_v37, 1 }
  0x58   : > { %v268_v39 = vadd.f32 %v267_v38, %v266_v37 }
  0x5a   : > { %v270_v40 = vmul.f32 0.00390625, %v268_v39 }
  0x5c   : > { %426 = vmatmul.mubr.msk.f32.vlgmr.msra.gmra.mxu0 %vm199_vm1, %v270_v40 }
 0x11c   : > { %v343_v42 = vpop.f32.mrf.mxu0 }
 0x11d   : > { %v344_v43 = vadd.f32 %v343_v42, %v273_v41 }
 0x11e   : > { %v427_v44 = vpop.f32.mrf.mxu0 }
 0x11f   : > { %v348_v45 = vsel %vm347_vm2, %v344_v43, -inf }
 0x120   : > { %349 = vmax.xlane.f32.xlu0 %v348_v45 }
 0x1a9   : > { %v350_v46 = vpop.xlane.xlu0 %349 }
 0x1aa   : > { %v351_v47 = vsub.f32 %v344_v43, %v350_v46 }
 0x1ac   : > { %v352_v48 = vmul.f32 1.442695, %v351_v47 }
 0x1ae   : > { %438 = vpow2.f32 %v352_v48 }
 0x1bb   : > { %v439_v49 = vpop.eup %438 }
 0x1bc   : > { %v354_v50 = vsel %vm347_vm2, %v439_v49, 0.0 }
 0x1bd   : > { %355 = vadd.xlane.f32.xlu0 %v354_v50 }
 0x246   : > { %v356_v51 = vpop.xlane.xlu0 %355 }
 0x247   : > { %440 = vrcp.f32 %v356_v51 }
 0x254   : > { %v441_v52 = vpop.eup %440 }
 0x255   : > { %v358_v53 = vmul.f32 %v441_v52, %v439_v49 }
 0x257   : > { %359 = vst.msk [vmem:[%s166_s26] sm:$0x1] %vm347_vm2, %v358_v53 }
 0x258 PF: > { %s13_s12 = sadd.s32 1, %s448_s12  }
 0x259   : > { %p10_p4 = scmp.ge.s32.totalorder %s13_s12, 4  }
 0x25b   :  { %12 = sbr.rel (!%p10_p4) target bundleno = 1 (0x1), region = 62 }

// kernel: category_specific_adapter_multi.3
= control target key start
LH: loop header
LB: loop body
LE: loop exit
PB: predicated region body
PF: predicated region fallthrough
CT: control target
= control target key end

     0   :  { %s12730_s0 = inlined_call_operand.vmem [shape: f32[2,3], index: 0, kind: input, shape index: {}]   ;;  %s12731_s1 = inlined_call_operand.vmem [shape: f32[2,20,20,16], index: 1, kind: input, shape index: {}]   ;;  %s12732_s2 = inlined_call_operand.vmem [shape: f32[3,9,16], index: 2, kind: input, shape index: {}]   ;;  %s12733_s3 = inlined_call_operand.vmem [shape: f32[3,1,16], index: 3, kind: input, shape index: {}]   ;;  %s12734_s4 = inlined_call_operand.vmem [shape: f32[3,25,16], index: 4, kind: input, shape index: {}]   ;;  %s12735_s5 = inlined_call_operand.vmem [shape: f32[3,1,16], index: 5, kind: input, shape index: {}]   ;;  %s12736_s6 = inlined_call_operand.vmem [shape: f32[3,48,192], index: 6, kind: input, shape index: {}]   ;;  %s12737_s7 = inlined_call_operand.vmem [shape: f32[3,1,192], index: 7, kind: input, shape index: {}]   ;;  %s12738_s8 = inlined_call_operand.vmem [shape: f32[3,192,16], index: 8, kind: input, shape index: {}]   ;;  %s12739_s9 = inlined_call_operand.vmem [shape: f32[3,1,16], index: 9, kind: input, shape index: {}]   ;;  %s12740_s10 = inlined_call_operand.vmem [shape: f32[3,16,1], index: 10, kind: input, shape index: {}]   ;;  %s12741_s11 = inlined_call_operand.vmem [shape: f32[3,1,1], index: 11, kind: input, shape index: {}]   ;;  %s12742_s12 = inlined_call_operand.vmem [shape: f32[3,1,16], index: 12, kind: input, shape index: {}]   ;;  %s12743_s13 = inlined_call_operand.vmem [shape: f32[3,1,16], index: 13, kind: input, shape index: {}]   ;;  %s12744_s14 = inlined_call_operand.vmem [shape: f32[2,256,16], index: 14, kind: output, shape index: {}]  }
   0x1   :  { %13274 = sst [smem:[#allocation67_spill]] %s12730_s0 }
   0x2   :  { %13275 = sst [smem:[#allocation68_spill]] %s12731_s1 }
   0x3   :  { %19 = vsyncpa [#allocation3], 0  ;;  %s7882_s29 = smov 0   ;;  %s7884_s30 = smov 0  }
   0x4   :  { %s7886_s15 = smov 0   ;;  %s7888_s16 = smov 0  }
   0x5   :  { %s7890_s17 = smov 0  }
   0x6 LB: > { %s6310_s18 = sadd.s32 4294967295, %s7800_s17   ;;  %s34_s19 = sadd.s32 1, %s7792_s15  ;;  %s7800_s17 = sphi %s7890_s17, %s25_s17   ;;  %s7796_s16 = sphi %s7888_s16, %s14207_s16   ;;  %s7792_s15 = sphi %s7886_s15, %s14206_s15   ;;  %s7788_s30 = sphi %s7884_s30, %s14205_s30   ;;  %s7784_s29 = sphi %s7882_s29, %s14204_s29  }
   0x7   : > { %p35_p0 = scmp.ge.s32.totalorder %s34_s19, 3  ;;  %s37_s20 = sadd.s32 1, %s7796_s16 }
   0x8   : > { %p6312_p1 = scmp.ge.s32.totalorder %s7800_s17, 1  ;;  %p427_p2 = scmp.lt.s32.totalorder %s7800_s17, 7 }
   0x9   : > { %s14209_s19 = smov (%p35_p0, %s34_s19), 0  ;;  %s14211_s20 = smov (!%p35_p0, %s37_s20), %s7796_s16 }
   0xa   : > { %p7915_p3 = pnand %p6312_p1, %p427_p2  ;;  %p39_p4 = scmp.ge.s32.totalorder %s14211_s20, 2 }
   0xb   : > { %p7919_p5 = scmp.eq.s32.totalorder %s6310_s18, 0  ;;  %s13278_s0 = sld [smem:[#allocation67_spill]] }
   0xc   : > { %p7220_p6 = pneg %p7915_p3  ;;  %s14213_s20 = smov (%p39_p4, %s14211_s20), 0 }
   0xd   : > { %13279 = sst [smem:[#allocation5_spill]] %s14213_s20 }
   0xe   : > { %p7221_p7 = pnand %p7919_p5, %p7220_p6 }
  0x10   : > { %p7745_p9 = pneg %p7221_p7 }
  0x11   : > { %s440_s25 = sshll.u32 %s13278_s0, 4  ;;  %s441_s25 = int_to_ptr.vmem [resolvable:$true] %s440_s25 }
  0x12   : > { %s7743_s26 = scalar_lea.vmem %s441_s25, 32  ;;  %p7751_p12 = scmp.lt.s32.totalorder %s441_s25, %s441_s25 }
  0x13   : > { %p7744_p8 = scmp.ne.s32.totalorder %s441_s25, %s7743_s26  ;;  %p7752_p13 = scmp.lt.s32.totalorder %s7743_s26, %s7743_s26 }
  0x15   : > { %p7746_p10 = pnand %p7745_p9, %p7744_p8  ;;  %p7753_p0 = por %p7752_p13, %p7751_p12 }
  0x17   : > { %p7747_p11 = pneg %p7746_p10 }
  0x19   : > { %p7754_p1 = pnand %p7753_p0, %p7747_p11 }
  0x1b   : > { %7757 = shalt.err (!%p7754_p1)
}
  0x1c   : > { %s7802_s27 = smov [#allocation2]   ;;  %544 = sbr.rel (%p7915_p3) target bundleno = 1764 (0x6e4), region = 76 }
  0x1d   : > { %7223 = dma.vmem_to_smem (!%p7221_p7), %s441_s25, 32, %s7802_s27, [#allocation3]  }
  0x21   : > { %7779 = dma.done.wait (%p7919_p5), [#allocation3], 32  }
  0x22   : > { %7781 = vsyncadd (%p7919_p5), [#allocation3], 4294967264 }
  0x23   : > { %550 = sfence }
  0x24   : > { %p638_p2 = scmp.lt.s32.totalorder %s7788_s30, 1  ;;  %p643_p4 = scmp.lt.s32.totalorder %s7784_s29, 2  ;;  %v763_v0 = vlaneseq  ;;  %vm4151_vm0 = vcmask 130048   ;;  %vm4184_vm1 = vcmask 261120   ;;  %vm4241_vm2 = vcmask 392192  }
  0x25   : > { %s13282_s1 = sld [smem:[#allocation68_spill]]  ;;  %s13115_s24 = smov 16   ;;  %vm5074_vm3 = vcmask 523264   ;;  %vm7806_vm4 = vmmov 0   ;;  %vm5780_vm5 = vcmask 1040384   ;;  %vm5776_vm6 = vcmask 7168  }
  0x26   : > { %s639_s28 = scalar_select %p638_p2, %s7788_s30, 1  ;;  %v764_v1 = vshrl.u32 %v763_v0, 7 }
  0x27   : > { %s7942_s18 = scalar_select %p643_p4, %s7784_s29, 2 }
  0x28   : > { %s7213_s21 = smul.u32 480, %s639_s28  ;;  %s7147_s26 = sshll.u32 %s639_s28, 8  ;;  %v7952_v2 = vsub.s32 0, %v764_v1  ;;  %v7954_v3 = vsub.s32 1, %v764_v1  ;;  %v7956_v4 = vsub.s32 2, %v764_v1  ;;  %v7958_v5 = vsub.s32 3, %v764_v1 }
  0x29   : > { %s12745_s23 = sshll.u32 %s7942_s18, 4  ;;  %s7145_s27 = sshll.u32 %s7942_s18, 5  ;;  %v7962_v7 = vsub.s32 4, %v764_v1  ;;  %v8003_v16 = vsub.s32 5, %v764_v1  ;;  %v8018_v23 = vsub.s32 6, %v764_v1  ;;  %v8020_v24 = vsub.s32 7, %v764_v1 }
  0x2a   : > { %s7950_s25 = scalar_lea.vmem %s12732_s2, %s12745_s23  ;;  %13280 = vst [vmem:[#allocation6_spill] sm:$0xff] %v7952_v2  ;;  %13281 = vst [vmem:[#allocation7_spill] sm:$0xff] %v7954_v3  ;;  %s7972_s28 = scalar_lea.vmem %s12734_s4, %s7145_s27 }
  0x2b   : > { %v728_v6 = vld [vmem:[%s7950_s25] sm:$0xff]  ;;  %s7967_s22 = scalar_lea.vmem %s13282_s1, %s7213_s21  ;;  %s7989_s21 = scalar_lea.vmem %s12744_s14, %s7147_s26  ;;  %13291 = vst [vmem:[#allocation16_spill] sm:$0xff] %v8003_v16  ;;  %13294 = vst [vmem:[#allocation19_spill] sm:$0xff] %v8018_v23  ;;  %v8076_v54 = vld [vmem:[%s7950_s25 + $0x8] ss:$0 sm:$0xff] }
  0x2c   : > { %v7975_v8 = vrot.slane %v728_v6, %v7952_v2  ;;  %v7978_v9 = vrot.slane %v728_v6, %v7954_v3  ;;  %v7981_v10 = vrot.slane %v728_v6, %v7956_v4  ;;  %v7984_v11 = vrot.slane %v728_v6, %v7958_v5  ;;  %v7992_v12 = vld [vmem:[%s7967_s22 + $0x19] sm:$0xff]  ;;  %v8013_v21 = vld [vmem:[%s7967_s22 + $0x31] sm:$0xff]  ;;  %v1743_v30 = vld [vmem:[%s7967_s22 + $0x1] sm:$0xff]  ;;  %13305 = vst [vmem:[#allocation30_spill] sm:$0xff] %v8076_v54  ;;  %s8104_s27 = scalar_lea.vmem %s12733_s3, %s7942_s18  ;;  %s8399_s23 = scalar_lea.vmem %s12735_s5, %s7942_s18 }
  0x2d   : > { %13287 = vst [vmem:[#allocation12_spill] sm:$0xff] %v7992_v12  ;;  %v7995_v13 = vld [vmem:[%s7967_s22 + $0x1a] sm:$0xff]  ;;  %v8001_v15 = vrot.slane %v728_v6, %v7962_v7  ;;  %13292 = vst [vmem:[#allocation17_spill] sm:$0xff] %v8013_v21  ;;  %v8016_v22 = vrot.slane %v728_v6, %v8003_v16  ;;  %v8024_v26 = vld [vmem:[%s7967_s22 + $0x32] sm:$0xff]  ;;  %v8039_v34 = vrot.slane %v728_v6, %v8018_v23  ;;  %s13113_s26 = smov 32   ;;  %s7214_s0 = smul.u32 96, %s7942_s18 }
  0x2e   : > { %13283 = vst [vmem:[#allocation8_spill] sm:$0xff] %v7975_v8  ;;  %13284 = vst [vmem:[#allocation9_spill] sm:$0xff] %v7978_v9  ;;  %v7998_v14 = vld [vmem:[%s7967_s22 + $0x1b] sm:$0xff]  ;;  %v767_v17 = vmul.f32 %v7992_v12, %v7975_v8  ;;  %v867_v18 = vmul.f32 %v7995_v13, %v7978_v9  ;;  %v1067_v28 = vmul.f32 %v8013_v21, %v7984_v11  ;;  %v1943_v36 = vld [vmem:[%s7967_s22 + $0x3] sm:$0xff]  ;;  %s13869_s1 = smov 16   ;;  %p7140_p3 = scmp.ne.s32.totalorder %s7784_s29, 0 }
  0x2f   : > { %13285 = vst [vmem:[#allocation10_spill] sm:$0xff] %v7981_v10  ;;  %13286 = vst [vmem:[#allocation11_spill] sm:$0xff] %v7984_v11  ;;  %v967_v19 = vmul.f32 %v7998_v14, %v7981_v10  ;;  %v1639_v20 = vld [vmem:[%s7972_s28] sm:$0xff]  ;;  %v1135_v33 = vmul.f32 %v8024_v26, %v8001_v15  ;;  %v8049_v39 = vld [vmem:[%s7967_s22 + $0x33] sm:$0xff]  ;;  %v8059_v44 = vrot.slane %v728_v6, %v8020_v24 }
  0x30   : > { %13288 = vst [vmem:[#allocation13_spill] sm:$0xff] %v7995_v13  ;;  %13289 = vst [vmem:[#allocation14_spill] sm:$0xff] %v7998_v14  ;;  %v1643_v25 = vld [vmem:[%s7967_s22] sm:$0xff]  ;;  %v899_v27 = vadd.f32 %v867_v18, %v767_v17  ;;  %v8029_v29 = vrot.slane %v1639_v20, %v7952_v2  ;;  %v8033_v31 = vrot.slane %v1639_v20, %v7954_v3  ;;  %v8064_v48 = vld [vmem:[%s7967_s22 + $0x49] sm:$0xff] }
  0x31   : > { %13290 = vst [vmem:[#allocation15_spill] sm:$0xff] %v8001_v15  ;;  %13293 = vst [vmem:[#allocation18_spill] sm:$0xff] %v8016_v22  ;;  %v1843_v32 = vld [vmem:[%s7967_s22 + $0x2] sm:$0xff]  ;;  %v8042_v35 = vrot.slane %v1639_v20, %v7956_v4  ;;  %v8046_v37 = vrot.slane %v1639_v20, %v7958_v5  ;;  %v8054_v42 = vrot.slane %v1639_v20, %v7962_v7  ;;  %v8073_v53 = vld [vmem:[%s7967_s22 + $0x18] sm:$0xff] }
  0x32   : > { %13295 = vst [vmem:[#allocation20_spill] sm:$0xff] %v8024_v26  ;;  %13296 = vst [vmem:[#allocation21_spill] sm:$0xff] %v8029_v29  ;;  %v999_v38 = vadd.f32 %v967_v19, %v899_v27  ;;  %v1679_v40 = vmul.f32 %v8029_v29, %v1643_v25  ;;  %v1779_v41 = vmul.f32 %v8033_v31, %v1743_v30  ;;  %v2043_v46 = vld [vmem:[%s7967_s22 + $0x4] sm:$0xff] }
  0x33   : > { %13297 = vst [vmem:[#allocation22_spill] sm:$0xff] %v8033_v31  ;;  %13298 = vst [vmem:[#allocation23_spill] sm:$0xff] %v8039_v34  ;;  %v1235_v43 = vmul.f32 %v8049_v39, %v8016_v22  ;;  %v1879_v45 = vmul.f32 %v8042_v35, %v1843_v32  ;;  %v1979_v50 = vmul.f32 %v8046_v37, %v1943_v36  ;;  %v8079_v56 = vld [vmem:[%s7967_s22 + $0x4a] sm:$0xff]  ;;  %v8122_v36 = vld [vmem:[%s8104_s27] ss:$0 sm:$0xff] }
  0x34   : > { %13299 = vst [vmem:[#allocation24_spill] sm:$0xff] %v8042_v35  ;;  %13300 = vst [vmem:[#allocation25_spill] sm:$0xff] %v8046_v37  ;;  %v1099_v47 = vadd.f32 %v1067_v28, %v999_v38  ;;  %v1811_v49 = vadd.f32 %v1779_v41, %v1679_v40  ;;  %v8068_v51 = vrot.slane %v1639_v20, %v8003_v16  ;;  %v8088_v61 = vld [vmem:[%s7972_s28 + $0x8] sm:$0xff] }
  0x35   : > { %13301 = vst [vmem:[#allocation26_spill] sm:$0xff] %v8049_v39  ;;  %13302 = vst [vmem:[#allocation27_spill] sm:$0xff] %v8059_v44  ;;  %v1336_v52 = vmul.f32 %v8064_v48, %v8039_v34  ;;  %v2079_v58 = vmul.f32 %v8054_v42, %v2043_v46  ;;  %v8083_v59 = vrot.slane %v1639_v20, %v8018_v23  ;;  %v8091_v63 = vld [vmem:[%s7967_s22 + $0x4b] sm:$0xff] }
  0x36   : > { %13303 = vst [vmem:[#allocation28_spill] sm:$0xff] %v8068_v51  ;;  %13304 = vst [vmem:[#allocation29_spill] sm:$0xff] %v8073_v53  ;;  %v1167_v55 = vadd.f32 %v1135_v33, %v1099_v47  ;;  %v1911_v57 = vadd.f32 %v1879_v45, %v1811_v49  ;;  %v1436_v60 = vmul.f32 %v8079_v56, %v8059_v44  ;;  %v8119_v33 = vld [vmem:[%s7967_s22 + $0x21] sm:$0xff] }
  0x37   : > { %13306 = vst [vmem:[#allocation31_spill] sm:$0xff] %v8079_v56  ;;  %13307 = vst [vmem:[#allocation32_spill] sm:$0xff] %v8083_v59  ;;  %v2179_v1 = vmul.f32 %v8073_v53, %v8068_v51  ;;  %v8096_v6 = vrot.slane %v1639_v20, %v8020_v24  ;;  %v1536_v17 = vmul.f32 %v8076_v54, %v8091_v63  ;;  %v8140_v49 = vld [vmem:[%s7967_s22 + $0x1c] sm:$0xff] }
  0x38   : > { %v1267_v62 = vadd.f32 %v1235_v43, %v1167_v55  ;;  %v2011_v0 = vadd.f32 %v1979_v50, %v1911_v57  ;;  %v2247_v25 = vmul.f32 %v7992_v12, %v8083_v59  ;;  %v8110_v20 = vrot.slane %v8088_v61, %v7952_v2  ;;  %13311 = vst [vmem:[#allocation36_spill] sm:$0xff] %v8119_v33  ;;  %v8135_v43 = vld [vmem:[%s7967_s22 + $0x22] sm:$0xff] }
  0x39   : > { %13308 = vst [vmem:[#allocation33_spill] sm:$0xff] %v8096_v6  ;;  %v8114_v27 = vrot.slane %v8088_v61, %v7954_v3  ;;  %v2315_v32 = vmul.f32 %v7995_v13, %v8096_v6  ;;  %v8126_v38 = vrot.slane %v8088_v61, %v7956_v4  ;;  %v8130_v40 = vrot.slane %v8088_v61, %v7958_v5  ;;  %v1644_v55 = vld [vmem:[%s7967_s22 + $0x8] sm:$0xff]  ;;  %v8179_v13 = vld [vmem:[%s7972_s28 + $0x10] sm:$0xff]  ;;  %v8183_v12 = vld [vmem:[%s7967_s22 + $0x3b] sm:$0xff] }
  0x3a   : > { %v1368_v18 = vadd.f32 %v1336_v52, %v1267_v62  ;;  %v2111_v19 = vadd.f32 %v2079_v58, %v2011_v0  ;;  %13309 = vst [vmem:[#allocation34_spill] sm:$0xff] %v8110_v20  ;;  %v768_v41 = vmul.f32 %v8119_v33, %v7975_v8  ;;  %13314 = vst [vmem:[#allocation39_spill] sm:$0xff] %v8135_v43  ;;  %v8145_v52 = vld [vmem:[%s7967_s22 + $0x23] sm:$0xff]  ;;  %v8157_v62 = vld [vmem:[%s7967_s22 + $0x39] sm:$0xff] }
  0x3b   : > { %13310 = vst [vmem:[#allocation35_spill] sm:$0xff] %v8114_v27  ;;  %13312 = vst [vmem:[#allocation37_spill] sm:$0xff] %v8126_v38  ;;  %v2383_v47 = vmul.f32 %v7998_v14, %v8110_v20  ;;  %v868_v50 = vmul.f32 %v8135_v43, %v7978_v9  ;;  %v2483_v57 = vmul.f32 %v8140_v49, %v8114_v27  ;;  %v1744_v0 = vld [vmem:[%s7967_s22 + $0x9] sm:$0xff] }
  0x3c   : > { %v1468_v28 = vadd.f32 %v1436_v60, %v1368_v18  ;;  %v2211_v30 = vadd.f32 %v2179_v1, %v2111_v19  ;;  %13313 = vst [vmem:[#allocation38_spill] sm:$0xff] %v8130_v40  ;;  %13315 = vst [vmem:[#allocation40_spill] sm:$0xff] %v8140_v49  ;;  %v8152_v58 = vrot.slane %v8088_v61, %v7962_v7  ;;  %v1844_v1 = vld [vmem:[%s7967_s22 + $0xa] sm:$0xff] }
  0x3d   : > { %13316 = vst [vmem:[#allocation41_spill] sm:$0xff] %v8145_v52  ;;  %v968_v60 = vmul.f32 %v8145_v52, %v7981_v10  ;;  %13318 = vst [vmem:[#allocation43_spill] sm:$0xff] %v8157_v62  ;;  %v8163_v19 = vld [vmem:[%s7967_s22 + $0x30] sm:$0xff]  ;;  %v2651_v14 = vmul.f32 %v8013_v21, %v8130_v40  ;;  %v1880_v53 = vmul.f32 %v8042_v35, %v1844_v1 }
  0x3e   : > { %v1568_v45 = vadd.f32 %v1536_v17, %v1468_v28  ;;  %v2279_v46 = vadd.f32 %v2247_v25, %v2211_v30  ;;  %13317 = vst [vmem:[#allocation42_spill] sm:$0xff] %v8152_v58  ;;  %13319 = vst [vmem:[#allocation44_spill] sm:$0xff] %v8163_v19  ;;  %v8166_v25 = vld [vmem:[%s7967_s22 + $0x3a] sm:$0xff]  ;;  %v900_v28 = vadd.f32 %v868_v50, %v768_v41 }
  0x3f   : > { %13320 = vst [vmem:[#allocation45_spill] sm:$0xff] %v8166_v25  ;;  %v1068_v30 = vmul.f32 %v8157_v62, %v7984_v11  ;;  %v2583_v49 = vmul.f32 %v8163_v19, %v8126_v38  ;;  %13321 = vst [vmem:[#allocation46_spill] sm:$0xff] %v8183_v12  ;;  %v1780_v19 = vmul.f32 %v8033_v31, %v1744_v0 }
  0x40   : > { %v1607_v17 = vadd.f32 %v8122_v36, %v1568_v45  ;;  %v2347_v18 = vadd.f32 %v2315_v32, %v2279_v46  ;;  %v1136_v45 = vmul.f32 %v8166_v25, %v8001_v15  ;;  %v1680_v32 = vmul.f32 %v8029_v29, %v1644_v55  ;;  %v1944_v46 = vld [vmem:[%s7967_s22 + $0xb] sm:$0xff] }
  0x41   : > { %v1000_v50 = vadd.f32 %v968_v60, %v900_v28  ;;  %v2719_v15 = vmul.f32 %v8024_v26, %v8152_v58  ;;  %v8191_v55 = vrot.slane %v8088_v61, %v8003_v16  ;;  %v1236_v60 = vmul.f32 %v8183_v12, %v8016_v22  ;;  %v8201_v28 = vld [vmem:[%s7967_s22 + $0x51] sm:$0xff] }
  0x42   : > { %v2415_v41 = vadd.f32 %v2383_v47, %v2347_v18  ;;  %3927 = vrot.lane.b32.xlu0 %v1607_v17, %s13115_s24  ;;  %v8195_v47 = vrot.slane %v8088_v61, %v8018_v23  ;;  %v2044_v17 = vld [vmem:[%s7967_s22 + $0xc] sm:$0xff]  ;;  %v1812_v1 = vadd.f32 %v1780_v19, %v1680_v32  ;;  %v1980_v35 = vmul.f32 %v8046_v37, %v1944_v46  ;;  %v8219_v19 = vld [vmem:[%s7967_s22 + $0x20] sm:$0xff] }
  0x43   : > { %13322 = vst [vmem:[#allocation47_spill] sm:$0xff] %v8191_v55  ;;  %v1100_v18 = vadd.f32 %v1068_v30, %v1000_v50  ;;  %v8206_v16 = vrot.slane %v8088_v61, %v8020_v24  ;;  %v8210_v23 = vrot.slane %v8179_v13, %v7952_v2  ;;  %v8214_v22 = vrot.slane %v8179_v13, %v7954_v3  ;;  %v8222_v46 = vld [vmem:[%s7967_s22 + $0x52] sm:$0xff] }
  0x44   : > { %13323 = vst [vmem:[#allocation48_spill] sm:$0xff] %v8195_v47  ;;  %v2515_v0 = vadd.f32 %v2483_v57, %v2415_v41  ;;  %v1337_v57 = vmul.f32 %v8201_v28, %v8039_v34  ;;  %13327 = vst [vmem:[#allocation52_spill] sm:$0xff] %v8219_v19  ;;  %v1912_v61 = vadd.f32 %v1880_v53, %v1812_v1  ;;  %v8238_v53 = vld [vmem:[%s7967_s22 + $0x34] sm:$0xff] }
  0x45   : > { %13324 = vst [vmem:[#allocation49_spill] sm:$0xff] %v8206_v16  ;;  %13325 = vst [vmem:[#allocation50_spill] sm:$0xff] %v8210_v23  ;;  %v1168_v32 = vadd.f32 %v1136_v45, %v1100_v18  ;;  %v2080_v41 = vmul.f32 %v8054_v42, %v2044_v17  ;;  %v2787_v50 = vmul.f32 %v8049_v39, %v8191_v55  ;;  %v8241_v17 = vld [vmem:[%s7967_s22 + $0x48] sm:$0xff]  ;;  %v8244_v18 = vld [vmem:[%s7967_s22 + $0x53] sm:$0xff] }
  0x46   : > { %13326 = vst [vmem:[#allocation51_spill] sm:$0xff] %v8214_v22  ;;  %v2615_v30 = vadd.f32 %v2583_v49, %v2515_v0  ;;  %13328 = vst [vmem:[#allocation53_spill] sm:$0xff] %v8222_v46  ;;  %v8229_v3 = vrot.slane %v8179_v13, %v7956_v4  ;;  %v8233_v2 = vrot.slane %v8179_v13, %v7958_v5 }
  0x47   : > { %v1437_v49 = vmul.f32 %v8222_v46, %v8059_v44  ;;  %13331 = vst [vmem:[#allocation56_spill] sm:$0xff] %v8238_v53  ;;  %13332 = vst [vmem:[#allocation57_spill] sm:$0xff] %v8241_v17  ;;  %v1268_v0 = vadd.f32 %v1236_v60, %v1168_v32  ;;  %v2012_v1 = vadd.f32 %v1980_v35, %v1912_v61  ;;  %v8259_v44 = vld [vmem:[%s7967_s22 + $0x4c] sm:$0xff]  ;;  %v8267_v46 = vld [vmem:[%s7967_s22 + $0x38] sm:$0xff] }
  0x48   : > { %13329 = vst [vmem:[#allocation54_spill] sm:$0xff] %v8229_v3  ;;  %13330 = vst [vmem:[#allocation55_spill] sm:$0xff] %v8233_v2  ;;  %v2683_v45 = vadd.f32 %v2651_v14, %v2615_v30  ;;  %v2180_v4 = vmul.f32 %v8219_v19, %v8068_v51  ;;  %v2887_v5 = vmul.f32 %v8238_v53, %v8195_v47  ;;  %v8264_v53 = vld [vmem:[%s7967_s22 + $0x24] sm:$0xff] }
  0x49   : > { %13333 = vst [vmem:[#allocation58_spill] sm:$0xff] %v8244_v18  ;;  %v2987_v14 = vmul.f32 %v8241_v17, %v8206_v16  ;;  %v8254_v30 = vrot.slane %v8179_v13, %v7962_v7  ;;  %v1537_v60 = vmul.f32 %v8076_v54, %v8244_v18  ;;  %13335 = vst [vmem:[#allocation60_spill] sm:$0xff] %v8259_v44 }
  0x4a   : > { %v2751_v32 = vadd.f32 %v2719_v15, %v2683_v45  ;;  %v1369_v35 = vadd.f32 %v1337_v57, %v1268_v0  ;;  %v2112_v61 = vadd.f32 %v2080_v41, %v2012_v1  ;;  %v2248_v19 = vmul.f32 %v8119_v33, %v8083_v59  ;;  %13336 = vst [vmem:[#allocation61_spill] sm:$0xff] %v8264_v53  ;;  %v8278_v45 = vld [vmem:[%s7967_s22 + $0x60] sm:$0xff] }
  0x4b   : > { %13334 = vst [vmem:[#allocation59_spill] sm:$0xff] %v8254_v30  ;;  %13337 = vst [vmem:[#allocation62_spill] sm:$0xff] %v8267_v46  ;;  %v3055_v17 = vmul.f32 %v8064_v48, %v8210_v23  ;;  %v3123_v7 = vmul.f32 %v8079_v56, %v8214_v22  ;;  %v3191_v15 = vmul.f32 %v8091_v63, %v8229_v3 }
  0x4c   : > { %v3291_v57 = vmul.f32 %v8259_v44, %v8233_v2  ;;  %v2819_v41 = vadd.f32 %v2787_v50, %v2751_v32  ;;  %13338 = vst [vmem:[#allocation63_spill] sm:$0xff] %v8278_v45  ;;  %v1469_v0 = vadd.f32 %v1437_v49, %v1369_v35  ;;  %v2212_v1 = vadd.f32 %v2180_v4, %v2112_v61  ;;  %v8291_v49 = vld [vmem:[%s7967_s22 + $0x3c] sm:$0xff]  ;;  %v8294_v4 = vld [vmem:[%s7967_s22 + $0x50] sm:$0xff] }
  0x4d   : > { %v2316_v33 = vmul.f32 %v8135_v43, %v8096_v6  ;;  %v3392_v54 = vmul.f32 %v8278_v45, %v8254_v30  ;;  %v2384_v18 = vmul.f32 %v8145_v52, %v8110_v20  ;;  %v2484_v3 = vmul.f32 %v8264_v53, %v8114_v27  ;;  %13339 = vst [vmem:[#allocation64_spill] sm:$0xff] %v8291_v49 }
  0x4e   : > { %v2584_v44 = vmul.f32 %v8267_v46, %v8126_v38  ;;  %v2919_v50 = vadd.f32 %v2887_v5, %v2819_v41  ;;  %v1569_v32 = vadd.f32 %v1537_v60, %v1469_v0  ;;  %v2280_v2 = vadd.f32 %v2248_v19, %v2212_v1  ;;  %13340 = vst [vmem:[#allocation65_spill] sm:$0xff] %v8294_v4 }
  0x4f   : > { %v769_v35 = vmul.f32 %v8013_v21, %v7975_v8  ;;  %v2652_v61 = vmul.f32 %v8157_v62, %v8130_v40  ;;  %v2720_v45 = vmul.f32 %v8166_v25, %v8152_v58  ;;  %v869_v53 = vmul.f32 %v8024_v26, %v7978_v9 }
  0x50   : > { %v969_v5 = vmul.f32 %v8049_v39, %v7981_v10  ;;  %v3019_v19 = vadd.f32 %v2987_v14, %v2919_v50  ;;  %v1608_v60 = vadd.f32 %v8122_v36, %v1569_v32  ;;  %v2348_v41 = vadd.f32 %v2316_v33, %v2280_v2  ;;  %v13341_v2 = vld [vmem:[#allocation29_spill] sm:$0xff]  ;;  %v13342_v14 = vld [vmem:[#allocation12_spill] sm:$0xff] }
  0x51   : > { %v2788_v0 = vmul.f32 %v8183_v12, %v8191_v55  ;;  %v2888_v1 = vmul.f32 %v8291_v49, %v8195_v47  ;;  %v8313_v46 = vmul.f32 %v8294_v4, %v8206_v16  ;;  %v901_v58 = vadd.f32 %v869_v53, %v769_v35  ;;  %v13343_v32 = vld [vmem:[#allocation16_spill] sm:$0xff]  ;;  %v13345_v53 = vld [vmem:[#allocation15_spill] sm:$0xff] }
  0x52   : > { %v1069_v52 = vmul.f32 %v8064_v48, %v7984_v11  ;;  %v3087_v43 = vadd.f32 %v3055_v17, %v3019_v19  ;;  %v2416_v40 = vadd.f32 %v2384_v18, %v2348_v41  ;;  %3929 = vrot.lane.b32.xlu1 %v1608_v60, %s13115_s24  ;;  %v1681_v33 = vmul.f32 %v13341_v2, %v8029_v29  ;;  %v13346_v16 = vld [vmem:[#allocation24_spill] sm:$0xff]  ;;  %v13347_v17 = vld [vmem:[#allocation13_spill] sm:$0xff]  ;;  %v13348_v2 = vld [vmem:[#allocation14_spill] sm:$0xff] }
  0x53   : > { %v1781_v50 = vmul.f32 %v13342_v14, %v8033_v31  ;;  %v8324_v49 = vrot.slane %v8179_v13, %v13343_v32  ;;  %v1001_v4 = vadd.f32 %v969_v5, %v901_v58  ;;  %v1137_v35 = vmul.f32 %v8079_v56, %v13345_v53  ;;  %v13349_v55 = vld [vmem:[#allocation19_spill] sm:$0xff]  ;;  %v13351_v32 = vld [vmem:[#allocation18_spill] sm:$0xff] }
  0x54   : > { %v1881_v18 = vmul.f32 %v13347_v17, %v13346_v16  ;;  %v3155_v19 = vadd.f32 %v3123_v7, %v3087_v43  ;;  %v2516_v60 = vadd.f32 %v2484_v3, %v2416_v40  ;;  %v1981_v47 = vmul.f32 %v13348_v2, %v8046_v37  ;;  %v8341_v3 = vld [vmem:[%s7967_s22 + $0x61] sm:$0xff]  ;;  %v13353_v7 = vld [vmem:[#allocation40_spill] sm:$0xff] }
  0x55   : > { %13344 = vst [vmem:[#allocation29_spill] sm:$0xff] %v8324_v49  ;;  %v1813_v41 = vadd.f32 %v1781_v50, %v1681_v33  ;;  %v3056_v14 = vmul.f32 %v8201_v28, %v8210_v23  ;;  %v8336_v58 = vrot.slane %v8179_v13, %v13349_v55  ;;  %v1101_v5 = vadd.f32 %v1069_v52, %v1001_v4 }
  0x56   : > { %v1237_v56 = vmul.f32 %v8091_v63, %v13351_v32  ;;  %v3223_v17 = vadd.f32 %v3191_v15, %v3155_v19  ;;  %v2616_v43 = vadd.f32 %v2584_v44, %v2516_v60  ;;  %13352 = vst [vmem:[#allocation16_spill] sm:$0xff] %v8341_v3  ;;  %v2081_v33 = vmul.f32 %v13353_v7, %v8054_v42  ;;  %v8354_v19 = vld [vmem:[%s7967_s22 + $0x54] sm:$0xff] }
  0x57   : > { %13350 = vst [vmem:[#allocation12_spill] sm:$0xff] %v8336_v58  ;;  %v1913_v40 = vadd.f32 %v1881_v18, %v1813_v41  ;;  %v3492_v50 = vmul.f32 %v8341_v3, %v8324_v49  ;;  %v8349_v55 = vrot.slane %v8179_v13, %v8020_v24  ;;  %v1169_v52 = vadd.f32 %v1137_v35, %v1101_v5  ;;  %v8357_v18 = vld [vmem:[%s7967_s22 + $0x62] sm:$0xff]  ;;  %v13357_v41 = vld [vmem:[#allocation44_spill] sm:$0xff]  ;;  %v13358_v7 = vld [vmem:[#allocation53_spill] sm:$0xff] }
  0x58   : > { %v1338_v15 = vmul.f32 %v8341_v3, %v8039_v34  ;;  %v3323_v44 = vadd.f32 %v3291_v57, %v3223_v17  ;;  %v2684_v4 = vadd.f32 %v2652_v61, %v2616_v43  ;;  %13355 = vst [vmem:[#allocation14_spill] sm:$0xff] %v8354_v19  ;;  %13356 = vst [vmem:[#allocation19_spill] sm:$0xff] %v8357_v18  ;;  %v13359_v5 = vld [vmem:[#allocation27_spill] sm:$0xff]  ;;  %v8368_v43 = vld [vmem:[%s7972_s28 + $0x18] ss:$0 sm:$0xff] }
  0x59   : > { %13354 = vst [vmem:[#allocation13_spill] sm:$0xff] %v8349_v55  ;;  %v2013_v60 = vadd.f32 %v1981_v47, %v1913_v40  ;;  %v2181_v2 = vmul.f32 %v13357_v41, %v8068_v51  ;;  %v3124_v13 = vmul.f32 %v13358_v7, %v8214_v22  ;;  %v3592_v24 = vmul.f32 %v8357_v18, %v8336_v58  ;;  %v8371_v47 = vld [vmem:[%s7967_s22 + $0x63] sm:$0xff] }
  0x5a   : > { %v1269_v35 = vadd.f32 %v1237_v56, %v1169_v52  ;;  %v1438_v57 = vmul.f32 %v8357_v18, %v13359_v5  ;;  %v3424_v61 = vadd.f32 %v3392_v54, %v3323_v44  ;;  %v2752_v17 = vadd.f32 %v2720_v45, %v2684_v4  ;;  %13360 = vst [vmem:[#allocation40_spill] sm:$0xff] %v8371_v47  ;;  %v13361_v3 = vld [vmem:[#allocation54_spill] sm:$0xff]  ;;  %v13363_v51 = vld [vmem:[#allocation55_spill] sm:$0xff] }
  0x5b   : > { %v2113_v40 = vadd.f32 %v2081_v33, %v2013_v60  ;;  %v2249_v41 = vmul.f32 %v8013_v21, %v8083_v59  ;;  %v13362_v22 = vld [vmem:[#allocation58_spill] sm:$0xff]  ;;  %v3292_v56 = vmul.f32 %v8354_v19, %v13363_v51  ;;  %v3692_v54 = vmul.f32 %v8371_v47, %v8349_v55  ;;  %v8382_v44 = vld [vmem:[%s7967_s22 + $0x68] sm:$0xff] }
  0x5c   : > { %v3192_v23 = vmul.f32 %v13362_v22, %v13361_v3  ;;  %v1370_v45 = vadd.f32 %v1338_v15, %v1269_v35  ;;  %v2820_v52 = vadd.f32 %v2788_v0, %v2752_v17  ;;  %13364 = vst [vmem:[#allocation53_spill] sm:$0xff] %v8382_v44  ;;  %v3524_v4 = vadd.f32 %v3492_v50, %v3424_v61  ;;  %v8385_v33 = vld [vmem:[%s7967_s22 + $0x64] sm:$0xff] }
  0x5d   : > { %13365 = vst [vmem:[#allocation58_spill] sm:$0xff] %v8385_v33  ;;  %v2213_v60 = vadd.f32 %v2181_v2, %v2113_v40  ;;  %v2317_v21 = vmul.f32 %v8024_v26, %v8096_v6  ;;  %v3792_v3 = vmul.f32 %v8368_v43, %v8385_v33  ;;  %v13366_v19 = vld [vmem:[#allocation30_spill] sm:$0xff]  ;;  %v2385_v15 = vmul.f32 %v8049_v39, %v8110_v20  ;;  %v8402_v2 = vld [vmem:[%s7967_s22 + $0x69] sm:$0xff] }
  0x5e   : > { %v1470_v18 = vadd.f32 %v1438_v57, %v1370_v45  ;;  %v1538_v51 = vmul.f32 %v8371_v47, %v13366_v19  ;;  %v2920_v0 = vadd.f32 %v2888_v1, %v2820_v52  ;;  %v3624_v50 = vadd.f32 %v3592_v24, %v3524_v4  ;;  %13367 = vst [vmem:[#allocation30_spill] sm:$0xff] %v8402_v2  ;;  %v13371_v26 = vld [vmem:[#allocation38_spill] sm:$0xff] }
  0x5f   : > { %v2281_v35 = vadd.f32 %v2249_v41, %v2213_v60  ;;  %v770_v57 = vmul.f32 %v8157_v62, %v7975_v8  ;;  %v3393_v61 = vmul.f32 %v8382_v44, %v8254_v30  ;;  %v3493_v17 = vmul.f32 %v8402_v2, %v8324_v49  ;;  %v13368_v41 = vld [vmem:[#allocation56_spill] sm:$0xff]  ;;  %v8418_v60 = vld [vmem:[%s8399_s23] ss:$0 sm:$0xff]  ;;  %v13370_v44 = vld [vmem:[#allocation57_spill] sm:$0xff] }
  0x60   : > { %v870_v1 = vmul.f32 %v8166_v25, %v7978_v9  ;;  %v970_v40 = vmul.f32 %v8183_v12, %v7981_v10  ;;  %v3020_v24 = vadd.f32 %v8313_v46, %v2920_v0  ;;  %v3724_v45 = vadd.f32 %v3692_v54, %v3624_v50  ;;  %13369 = vst [vmem:[#allocation66_spill] sm:$0xff] %v8418_v60  ;;  %v13372_v50 = vld [vmem:[#allocation52_spill] sm:$0xff] }
  0x61   : > { %v2349_v52 = vadd.f32 %v2317_v21, %v2281_v35  ;;  %v2485_v4 = vmul.f32 %v13368_v41, %v8114_v27  ;;  %v2585_v39 = vmul.f32 %v13370_v44, %v8126_v38  ;;  %v2653_v49 = vmul.f32 %v8064_v48, %v13371_v26  ;;  %v13373_v44 = vld [vmem:[#allocation36_spill] sm:$0xff] }
  0x62   : > { %v902_v30 = vadd.f32 %v870_v1, %v770_v57  ;;  %v1070_v9 = vmul.f32 %v8201_v28, %v7984_v11  ;;  %v3088_v10 = vadd.f32 %v3056_v14, %v3020_v24  ;;  %v3824_v8 = vadd.f32 %v3792_v3, %v3724_v45  ;;  %v13374_v14 = vld [vmem:[#allocation39_spill] sm:$0xff] }
  0x63   : > { %v1570_v46 = vadd.f32 %v1538_v51, %v1470_v18  ;;  %v2417_v54 = vadd.f32 %v2385_v15, %v2349_v52  ;;  %v1138_v0 = vmul.f32 %v13358_v7, %v13345_v53  ;;  %v1682_v35 = vmul.f32 %v13372_v50, %v8029_v29  ;;  %v13375_v15 = vld [vmem:[#allocation41_spill] sm:$0xff] }
  0x64   : > { %v1002_v21 = vadd.f32 %v970_v40, %v902_v30  ;;  %v1782_v41 = vmul.f32 %v13373_v44, %v8033_v31  ;;  %v3156_v26 = vadd.f32 %v3124_v13, %v3088_v10  ;;  %v3863_v57 = vadd.f32 %v8418_v60, %v3824_v8  ;;  %v13376_v13 = vld [vmem:[#allocation42_spill] sm:$0xff]  ;;  %v13377_v44 = vld [vmem:[#allocation31_spill] sm:$0xff] }
  0x65   : > { %v2517_v1 = vadd.f32 %v2485_v4, %v2417_v54  ;;  %v1882_v3 = vmul.f32 %v13374_v14, %v13346_v16  ;;  %v1238_v30 = vmul.f32 %v13362_v22, %v13351_v32  ;;  %v1982_v40 = vmul.f32 %v13375_v15, %v8046_v37  ;;  %v13379_v54 = vld [vmem:[#allocation61_spill] sm:$0xff] }
  0x66   : > { %v1102_v51 = vadd.f32 %v1070_v9, %v1002_v21  ;;  %v1814_v18 = vadd.f32 %v1782_v41, %v1682_v35  ;;  %v3224_v24 = vadd.f32 %v3192_v23, %v3156_v26  ;;  %4055 = vrot.lane.b32.xlu0 %v3863_v57, %s13113_s26  ;;  %v1609_v8 = vadd.f32 %v8122_v36, %v1570_v46  ;;  %v8444_v9 = vld [vmem:[%s7967_s22 + $0x6a] sm:$0xff] }
  0x67   : > { %v2617_v10 = vadd.f32 %v2585_v39, %v2517_v1  ;;  %v2721_v45 = vmul.f32 %v13377_v44, %v13376_v13  ;;  %13378 = vst [vmem:[#allocation52_spill] sm:$0xff] %v8444_v9  ;;  %v1339_v41 = vmul.f32 %v8402_v2, %v8039_v34  ;;  %v2082_v23 = vmul.f32 %v13379_v54, %v8054_v42  ;;  %v13380_v46 = vld [vmem:[#allocation47_spill] sm:$0xff] }
  0x68   : > { %v1170_v52 = vadd.f32 %v1138_v0, %v1102_v51  ;;  %v1914_v4 = vadd.f32 %v1882_v3, %v1814_v18  ;;  %v3324_v26 = vadd.f32 %v3292_v56, %v3224_v24  ;;  %v3593_v21 = vmul.f32 %v8444_v9, %v8336_v58  ;;  %v8455_v35 = vld [vmem:[%s7967_s22 + $0x6b] sm:$0xff]  ;;  %v13384_v51 = vld [vmem:[#allocation62_spill] sm:$0xff] }
  0x69   : > { %v2685_v50 = vadd.f32 %v2653_v49, %v2617_v10  ;;  %v2789_v39 = vmul.f32 %v8091_v63, %v13380_v46  ;;  %13381 = vst [vmem:[#allocation36_spill] sm:$0xff] %v8455_v35  ;;  %v8458_v57 = vld [vmem:[%s7967_s22 + $0x6c] sm:$0xff]  ;;  %v1439_v1 = vmul.f32 %v8444_v9, %v13359_v5  ;;  %v3693_v15 = vmul.f32 %v8455_v35, %v8349_v55  ;;  %v13389_v9 = vld [vmem:[#allocation50_spill] sm:$0xff] }
  0x6a   : > { %13382 = vst [vmem:[#allocation39_spill] sm:$0xff] %v8458_v57  ;;  %v1270_v0 = vadd.f32 %v1238_v30, %v1170_v52  ;;  %v2014_v14 = vadd.f32 %v1982_v40, %v1914_v4  ;;  %v13383_v3 = vld [vmem:[#allocation28_spill] sm:$0xff]  ;;  %v3425_v56 = vadd.f32 %v3393_v61, %v3324_v26  ;;  %3931 = vrot.lane.b32.xlu0 %v1609_v8, %s13115_s24 }
  0x6b   : > { %v2182_v18 = vmul.f32 %v13384_v51, %v13383_v3  ;;  %v2753_v49 = vadd.f32 %v2721_v45, %v2685_v50  ;;  %v13385_v24 = vld [vmem:[#allocation48_spill] sm:$0xff]  ;;  %v1539_v30 = vmul.f32 %v8455_v35, %v13366_v19  ;;  %v2250_v40 = vmul.f32 %v8157_v62, %v8083_v59  ;;  %v13387_v51 = vld [vmem:[#allocation49_spill] sm:$0xff]  ;;  %v13388_v45 = vld [vmem:[#allocation63_spill] sm:$0xff] }
  0x6c   : > { %v13386_v10 = vld [vmem:[#allocation60_spill] sm:$0xff]  ;;  %v1371_v2 = vadd.f32 %v1339_v41, %v1270_v0  ;;  %v2114_v52 = vadd.f32 %v2082_v23, %v2014_v14  ;;  %v3525_v4 = vadd.f32 %v3493_v17, %v3425_v56  ;;  %v3793_v61 = vmul.f32 %v8368_v43, %v8458_v57  ;;  %v13391_v35 = vld [vmem:[#allocation51_spill] sm:$0xff]  ;;  %v13393_v56 = vld [vmem:[#allocation54_spill] sm:$0xff] }
  0x6d   : > { %v2889_v54 = vmul.f32 %v13386_v10, %v13385_v24  ;;  %v2821_v26 = vadd.f32 %v2789_v39, %v2753_v49  ;;  %v2989_v50 = vmul.f32 %v13388_v45, %v13387_v51  ;;  %v13390_v10 = vld [vmem:[#allocation16_spill] sm:$0xff]  ;;  %v2318_v0 = vmul.f32 %v8166_v25, %v8096_v6  ;;  %v13392_v62 = vld [vmem:[#allocation19_spill] sm:$0xff] }
  0x6e   : > { %v3057_v3 = vmul.f32 %v13390_v10, %v13389_v9  ;;  %v1471_v8 = vadd.f32 %v1439_v1, %v1371_v2  ;;  %v2214_v41 = vadd.f32 %v2182_v18, %v2114_v52  ;;  %v3625_v23 = vadd.f32 %v3593_v21, %v3525_v4  ;;  %v13394_v49 = vld [vmem:[#allocation55_spill] sm:$0xff]  ;;  %v13395_v52 = vld [vmem:[#allocation8_spill] sm:$0xff] }
  0x6f   : > { %v2921_v14 = vadd.f32 %v2889_v54, %v2821_v26  ;;  %v3125_v17 = vmul.f32 %v13392_v62, %v13391_v35  ;;  %v3193_v39 = vmul.f32 %v8371_v47, %v13393_v56  ;;  %v3293_v45 = vmul.f32 %v8385_v33, %v13394_v49  ;;  %v13396_v54 = vld [vmem:[#allocation9_spill] sm:$0xff]  ;;  %v13397_v6 = vld [vmem:[#allocation64_spill] sm:$0xff]  ;;  %v13398_v33 = vld [vmem:[#allocation10_spill] sm:$0xff] }
  0x70   : > { %v1571_v57 = vadd.f32 %v1539_v30, %v1471_v8  ;;  %v2282_v59 = vadd.f32 %v2250_v40, %v2214_v41  ;;  %v2386_v2 = vmul.f32 %v8183_v12, %v8110_v20  ;;  %v3725_v1 = vadd.f32 %v3693_v15, %v3625_v23  ;;  %v8499_v15 = vld [vmem:[%s7967_s22 + $0x78] sm:$0xff]  ;;  %v13400_v23 = vld [vmem:[#allocation59_spill] sm:$0xff] }
  0x71   : > { %v3021_v18 = vadd.f32 %v2989_v50, %v2921_v14  ;;  %v771_v21 = vmul.f32 %v8064_v48, %v13395_v52  ;;  %v871_v4 = vmul.f32 %v13377_v44, %v13396_v54  ;;  %v2486_v56 = vmul.f32 %v13397_v6, %v8114_v27  ;;  %13399 = vst [vmem:[#allocation41_spill] sm:$0xff] %v8499_v15  ;;  %v13402_v6 = vld [vmem:[#allocation38_spill] sm:$0xff] }
  0x72   : > { %v1610_v26 = vadd.f32 %v8122_v36, %v1571_v57  ;;  %v2350_v25 = vadd.f32 %v2318_v0, %v2282_v59  ;;  %v971_v30 = vmul.f32 %v8091_v63, %v13398_v33  ;;  %v3825_v40 = vadd.f32 %v3793_v61, %v3725_v1  ;;  %v13401_v59 = vld [vmem:[#allocation65_spill] sm:$0xff] }
  0x73   : > { %v3089_v8 = vadd.f32 %v3057_v3, %v3021_v18  ;;  %v903_v50 = vadd.f32 %v871_v4, %v771_v21  ;;  %v1071_v41 = vmul.f32 %v13390_v10, %v7984_v11  ;;  %v3394_v14 = vmul.f32 %v8499_v15, %v13400_v23  ;;  %v8514_v21 = vld [vmem:[%s7967_s22 + $0x79] sm:$0xff]  ;;  %v13406_v10 = vld [vmem:[#allocation20_spill] sm:$0xff] }
  0x74   : > { %v2418_v57 = vadd.f32 %v2386_v2, %v2350_v25  ;;  %v2586_v0 = vmul.f32 %v13401_v59, %v8126_v38  ;;  %v2654_v12 = vmul.f32 %v8201_v28, %v13402_v6  ;;  %3933 = vrot.lane.b32.xlu0 %v1610_v26, %s13115_s24  ;;  %v3864_v3 = vadd.f32 %v8418_v60, %v3825_v40  ;;  %v13404_v25 = vld [vmem:[#allocation44_spill] sm:$0xff]  ;;  %v13405_v15 = vld [vmem:[#allocation17_spill] sm:$0xff] }
  0x75   : > { %v3157_v61 = vadd.f32 %v3125_v17, %v3089_v8  ;;  %v1003_v1 = vadd.f32 %v971_v30, %v903_v50  ;;  %v1139_v18 = vmul.f32 %v13392_v62, %v13345_v53  ;;  %13403 = vst [vmem:[#allocation31_spill] sm:$0xff] %v8514_v21  ;;  %v1683_v2 = vmul.f32 %v13404_v25, %v8029_v29  ;;  %v13407_v30 = vld [vmem:[#allocation29_spill] sm:$0xff] }
  0x76   : > { %v2518_v4 = vadd.f32 %v2486_v56, %v2418_v57  ;;  %v1783_v59 = vmul.f32 %v13405_v15, %v8033_v31  ;;  %v1883_v26 = vmul.f32 %v13406_v10, %v13346_v16  ;;  %4057 = vrot.lane.b32.xlu1 %v3864_v3, %s13113_s26  ;;  %v3494_v40 = vmul.f32 %v8514_v21, %v13407_v30  ;;  %v8528_v50 = vld [vmem:[%s7967_s22 + $0x7a] sm:$0xff] }
  0x77   : > { %v3225_v17 = vadd.f32 %v3193_v39, %v3157_v61  ;;  %v1103_v8 = vadd.f32 %v1071_v41, %v1003_v1  ;;  %v1239_v56 = vmul.f32 %v8371_v47, %v13351_v32  ;;  %13408 = vst [vmem:[#allocation61_spill] sm:$0xff] %v8528_v50  ;;  %v2722_v15 = vmul.f32 %v13358_v7, %v13376_v13  ;;  %v13409_v10 = vld [vmem:[#allocation26_spill] sm:$0xff] }
  0x78   : > { %v2618_v57 = vadd.f32 %v2586_v0, %v2518_v4  ;;  %v1815_v25 = vadd.f32 %v1783_v59, %v1683_v2  ;;  %v1983_v62 = vmul.f32 %v13409_v10, %v8046_v37  ;;  %v3594_v39 = vmul.f32 %v8528_v50, %v8336_v58  ;;  %v8539_v1 = vld [vmem:[%s7967_s22 + $0x7b] sm:$0xff]  ;;  %v13411_v59 = vld [vmem:[#allocation56_spill] sm:$0xff] }
  0x79   : > { %v3325_v3 = vadd.f32 %v3293_v45, %v3225_v17  ;;  %v1171_v61 = vadd.f32 %v1139_v18, %v1103_v8  ;;  %v1340_v41 = vmul.f32 %v8514_v21, %v8039_v34  ;;  %13410 = vst [vmem:[#allocation48_spill] sm:$0xff] %v8539_v1  ;;  %v2790_v0 = vmul.f32 %v13362_v22, %v13380_v46  ;;  %v8550_v8 = vld [vmem:[%s7967_s22 + $0x7c] sm:$0xff]  ;;  %v13414_v46 = vld [vmem:[#allocation28_spill] sm:$0xff] }
  0x7a   : > { %v2686_v47 = vadd.f32 %v2654_v12, %v2618_v57  ;;  %v1915_v4 = vadd.f32 %v1883_v26, %v1815_v25  ;;  %v2083_v2 = vmul.f32 %v13411_v59, %v8054_v42  ;;  %v3694_v45 = vmul.f32 %v8539_v1, %v8349_v55  ;;  %13412 = vst [vmem:[#allocation49_spill] sm:$0xff] %v8550_v8  ;;  %v13413_v12 = vld [vmem:[#allocation14_spill] sm:$0xff]  ;;  %v13415_v26 = vld [vmem:[#allocation57_spill] sm:$0xff] }
  0x7b   : > { %v3426_v13 = vadd.f32 %v3394_v14, %v3325_v3  ;;  %v1271_v17 = vadd.f32 %v1239_v56, %v1171_v61  ;;  %v1440_v18 = vmul.f32 %v8528_v50, %v13359_v5  ;;  %v2890_v57 = vmul.f32 %v13413_v12, %v13385_v24  ;;  %v13416_v59 = vld [vmem:[#allocation53_spill] sm:$0xff] }
  0x7c   : > { %v2754_v10 = vadd.f32 %v2722_v15, %v2686_v47  ;;  %v2015_v21 = vadd.f32 %v1983_v62, %v1915_v4  ;;  %v2183_v25 = vmul.f32 %v13415_v26, %v13414_v46  ;;  %v3794_v14 = vmul.f32 %v8368_v43, %v8550_v8  ;;  %v13417_v15 = vld [vmem:[#allocation32_spill] sm:$0xff]  ;;  %v13418_v4 = vld [vmem:[#allocation30_spill] sm:$0xff] }
  0x7d   : > { %v3526_v34 = vadd.f32 %v3494_v40, %v3426_v13  ;;  %v1372_v3 = vadd.f32 %v1340_v41, %v1271_v17  ;;  %v1540_v56 = vmul.f32 %v8539_v1, %v13366_v19  ;;  %v2990_v50 = vmul.f32 %v13416_v59, %v13387_v51  ;;  %v13419_v13 = vld [vmem:[#allocation52_spill] sm:$0xff]  ;;  %v13420_v17 = vld [vmem:[#allocation54_spill] sm:$0xff] }
  0x7e   : > { %v2822_v61 = vadd.f32 %v2790_v0, %v2754_v10  ;;  %v2115_v47 = vadd.f32 %v2083_v2, %v2015_v21  ;;  %v2251_v12 = vmul.f32 %v8064_v48, %v13417_v15  ;;  %v3058_v26 = vmul.f32 %v13418_v4, %v13389_v9  ;;  %v13421_v46 = vld [vmem:[#allocation36_spill] sm:$0xff]  ;;  %v13422_v10 = vld [vmem:[#allocation33_spill] sm:$0xff] }
  0x7f   : > { %v3626_v62 = vadd.f32 %v3594_v39, %v3526_v34  ;;  %v3126_v40 = vmul.f32 %v13419_v13, %v13391_v35  ;;  %v1472_v8 = vadd.f32 %v1440_v18, %v1372_v3  ;;  %v3194_v1 = vmul.f32 %v13421_v46, %v13420_v17  ;;  %v13423_v34 = vld [vmem:[#allocation39_spill] sm:$0xff] }
  0x80   : > { %v2922_v41 = vadd.f32 %v2890_v57, %v2822_v61  ;;  %v2215_v0 = vadd.f32 %v2183_v25, %v2115_v47  ;;  %v2319_v21 = vmul.f32 %v13377_v44, %v13422_v10  ;;  %v3294_v48 = vmul.f32 %v13423_v34, %v13394_v49  ;;  %v13424_v44 = vld [vmem:[#allocation60_spill] sm:$0xff]  ;;  %v8586_v47 = vld [vmem:[%s7967_s22 + $0x80] sm:$0xff] }
  0x81   : > { %v3726_v2 = vadd.f32 %v3694_v45, %v3626_v62  ;;  %v1572_v39 = vadd.f32 %v1540_v56, %v1472_v8  ;;  %v2387_v59 = vmul.f32 %v8091_v63, %v8110_v20  ;;  %v772_v57 = vmul.f32 %v8201_v28, %v13395_v52  ;;  %13425 = vst [vmem:[#allocation50_spill] sm:$0xff] %v8586_v47  ;;  %v8589_v63 = vld [vmem:[%s7967_s22 + $0x81] sm:$0xff] }
  0x82   : > { %v3022_v35 = vadd.f32 %v2990_v50, %v2922_v41  ;;  %v2283_v18 = vadd.f32 %v2251_v12, %v2215_v0  ;;  %v872_v25 = vmul.f32 %v13358_v7, %v13396_v54  ;;  %v2487_v45 = vmul.f32 %v13424_v44, %v8114_v27  ;;  %13426 = vst [vmem:[#allocation44_spill] sm:$0xff] %v8589_v63  ;;  %v13433_v34 = vld [vmem:[#allocation42_spill] sm:$0xff] }
  0x83   : > { %v3826_v3 = vadd.f32 %v3794_v14, %v3726_v2  ;;  %v1611_v61 = vadd.f32 %v8122_v36, %v1572_v39  ;;  %v972_v8 = vmul.f32 %v13362_v22, %v13398_v33  ;;  %v1072_v62 = vmul.f32 %v13418_v4, %v7984_v11 }
  0x84   : > { %v3090_v56 = vadd.f32 %v3058_v26, %v3022_v35  ;;  %v2351_v50 = vadd.f32 %v2319_v21, %v2283_v18  ;;  %v904_v12 = vadd.f32 %v872_v25, %v772_v57  ;;  %v3395_v41 = vmul.f32 %v8586_v47, %v13400_v23  ;;  %v13427_v35 = vld [vmem:[#allocation63_spill] sm:$0xff]  ;;  %v13428_v57 = vld [vmem:[#allocation16_spill] sm:$0xff] }
  0x85   : > { %v3865_v14 = vadd.f32 %v8418_v60, %v3826_v3  ;;  %v3495_v0 = vmul.f32 %v8589_v63, %v13407_v30  ;;  %v2587_v26 = vmul.f32 %v13427_v35, %v8126_v38  ;;  %3935 = vrot.lane.b32.xlu0 %v1611_v61, %s13115_s24  ;;  %v1140_v18 = vmul.f32 %v13419_v13, %v13345_v53  ;;  %v13429_v3 = vld [vmem:[#allocation62_spill] sm:$0xff]  ;;  %v13430_v47 = vld [vmem:[#allocation43_spill] sm:$0xff]  ;;  %v13431_v61 = vld [vmem:[#allocation45_spill] sm:$0xff] }
  0x86   : > { %v3158_v2 = vadd.f32 %v3126_v40, %v3090_v56  ;;  %v2419_v21 = vadd.f32 %v2387_v59, %v2351_v50  ;;  %v1004_v39 = vadd.f32 %v972_v8, %v904_v12  ;;  %v2655_v25 = vmul.f32 %v13428_v57, %v13402_v6  ;;  %v8613_v8 = vld [vmem:[%s7967_s22 + $0x82] sm:$0xff] }
  0x87   : > { %4059 = vrot.lane.b32.xlu1 %v3865_v14, %s13113_s26  ;;  %v1684_v44 = vmul.f32 %v13429_v3, %v8029_v29  ;;  %v1784_v35 = vmul.f32 %v13430_v47, %v8033_v31  ;;  %v1884_v40 = vmul.f32 %v13431_v61, %v13346_v16  ;;  %13432 = vst [vmem:[#allocation17_spill] sm:$0xff] %v8613_v8  ;;  %v13434_v3 = vld [vmem:[#allocation19_spill] sm:$0xff]  ;;  %v13435_v47 = vld [vmem:[#allocation46_spill] sm:$0xff] }
  0x88   : > { %v3226_v59 = vadd.f32 %v3194_v1, %v3158_v2  ;;  %v2519_v56 = vadd.f32 %v2487_v45, %v2419_v21  ;;  %v1104_v50 = vadd.f32 %v1072_v62, %v1004_v39  ;;  %v1240_v12 = vmul.f32 %v13421_v46, %v13351_v32  ;;  %v8624_v1 = vld [vmem:[%s7967_s22 + $0x83] sm:$0xff]  ;;  %v13439_v32 = vld [vmem:[#allocation40_spill] sm:$0xff] }
  0x89   : > { %v3595_v14 = vmul.f32 %v8613_v8, %v8336_v58  ;;  %v2723_v13 = vmul.f32 %v13434_v3, %v13433_v34  ;;  %v1816_v4 = vadd.f32 %v1784_v35, %v1684_v44  ;;  %v1984_v6 = vmul.f32 %v13435_v47, %v8046_v37  ;;  %13436 = vst [vmem:[#allocation20_spill] sm:$0xff] %v8624_v1  ;;  %v13437_v62 = vld [vmem:[#allocation23_spill] sm:$0xff]  ;;  %v13440_v44 = vld [vmem:[#allocation64_spill] sm:$0xff] }
  0x8a   : > { %v3326_v61 = vadd.f32 %v3294_v48, %v3226_v59  ;;  %v2619_v2 = vadd.f32 %v2587_v26, %v2519_v56  ;;  %v1172_v45 = vadd.f32 %v1140_v18, %v1104_v50  ;;  %v1341_v21 = vmul.f32 %v8589_v63, %v13437_v62  ;;  %v13438_v46 = vld [vmem:[#allocation47_spill] sm:$0xff]  ;;  %v13442_v56 = vld [vmem:[#allocation58_spill] sm:$0xff] }
  0x8b   : > { %v3695_v39 = vmul.f32 %v8624_v1, %v8349_v55  ;;  %v2791_v16 = vmul.f32 %v13439_v32, %v13438_v46  ;;  %v1916_v31 = vadd.f32 %v1884_v40, %v1816_v4  ;;  %v2084_v35 = vmul.f32 %v13440_v44, %v8054_v42  ;;  %v8635_v47 = vld [vmem:[%s7967_s22 + $0x84] sm:$0xff]  ;;  %v13443_v46 = vld [vmem:[#allocation28_spill] sm:$0xff]  ;;  %v13444_v4 = vld [vmem:[#allocation65_spill] sm:$0xff] }
  0x8c   : > { %v3427_v34 = vadd.f32 %v3395_v41, %v3326_v61  ;;  %13441 = vst [vmem:[#allocation26_spill] sm:$0xff] %v8635_v47  ;;  %v2687_v48 = vadd.f32 %v2655_v25, %v2619_v2  ;;  %v1272_v59 = vadd.f32 %v1240_v12, %v1172_v45  ;;  %v1441_v26 = vmul.f32 %v8613_v8, %v13359_v5  ;;  %v13445_v12 = vld [vmem:[#allocation41_spill] sm:$0xff]  ;;  %v13446_v2 = vld [vmem:[#allocation31_spill] sm:$0xff] }
  0x8d   : > { %v3795_v18 = vmul.f32 %v8368_v43, %v8635_v47  ;;  %v2891_v50 = vmul.f32 %v13442_v56, %v13385_v24  ;;  %v2016_v63 = vadd.f32 %v1984_v6, %v1916_v31  ;;  %v2184_v40 = vmul.f32 %v13444_v4, %v13443_v46  ;;  %v13447_v4 = vld [vmem:[#allocation51_spill] sm:$0xff] }
  0x8e   : > { %v3527_v62 = vadd.f32 %v3495_v0, %v3427_v34  ;;  %v2755_v44 = vadd.f32 %v2723_v13, %v2687_v48  ;;  %v1373_v41 = vadd.f32 %v1341_v21, %v1272_v59  ;;  %v1541_v25 = vmul.f32 %v8624_v1, %v13366_v19  ;;  %v13448_v34 = vld [vmem:[#allocation61_spill] sm:$0xff]  ;;  %v13449_v21 = vld [vmem:[#allocation48_spill] sm:$0xff] }
  0x8f   : > { %v2991_v61 = vmul.f32 %v13445_v12, %v13387_v51  ;;  %v3059_v45 = vmul.f32 %v13446_v2, %v13389_v9  ;;  %v2116_v47 = vadd.f32 %v2084_v35, %v2016_v63  ;;  %v2252_v31 = vmul.f32 %v8201_v28, %v13417_v15  ;;  %v13450_v59 = vld [vmem:[#allocation49_spill] sm:$0xff] }
  0x90   : > { %v3627_v6 = vadd.f32 %v3595_v14, %v3527_v62  ;;  %v2823_v56 = vadd.f32 %v2791_v16, %v2755_v44  ;;  %v3127_v13 = vmul.f32 %v13448_v34, %v13447_v4  ;;  %v1473_v0 = vadd.f32 %v1441_v26, %v1373_v41  ;;  %v8664_v62 = vld [vmem:[%s7967_s22 + $0x90] sm:$0xff] }
  0x91   : > { %v3195_v48 = vmul.f32 %v13449_v21, %v13420_v17  ;;  %v3295_v12 = vmul.f32 %v13450_v59, %v13394_v49  ;;  %v2216_v1 = vadd.f32 %v2184_v40, %v2116_v47  ;;  %v2320_v63 = vmul.f32 %v13358_v7, %v13422_v10  ;;  %13451 = vst [vmem:[#allocation56_spill] sm:$0xff] %v8664_v62  ;;  %v1649_v40 = vld [vmem:[%s7967_s22 + $0x48] sm:$0xff]  ;;  %v8677_v41 = vld [vmem:[%s7967_s22 + $0x91] sm:$0xff] }
  0x92   : > { %v3727_v35 = vadd.f32 %v3695_v39, %v3627_v6  ;;  %v2923_v28 = vadd.f32 %v2891_v50, %v2823_v56  ;;  %v1573_v14 = vadd.f32 %v1541_v25, %v1473_v0  ;;  %v2388_v16 = vmul.f32 %v13362_v22, %v8110_v20  ;;  %13452 = vst [vmem:[#allocation57_spill] sm:$0xff] %v8677_v41  ;;  %v13453_v25 = vld [vmem:[#allocation14_spill] sm:$0xff]  ;;  %v1949_v59 = vld [vmem:[%s7967_s22 + $0x4b] sm:$0xff] }
  0x93   : > { %v2284_v26 = vadd.f32 %v2252_v31, %v2216_v1  ;;  %v773_v44 = vmul.f32 %v13428_v57, %v13395_v52  ;;  %v873_v47 = vmul.f32 %v13434_v3, %v13396_v54  ;;  %v973_v7 = vmul.f32 %v13439_v32, %v13398_v33 }
  0x94   : > { %v3827_v39 = vadd.f32 %v3795_v18, %v3727_v35  ;;  %v3023_v56 = vadd.f32 %v2991_v61, %v2923_v28  ;;  %v3396_v22 = vmul.f32 %v8664_v62, %v13400_v23  ;;  %v1612_v50 = vadd.f32 %v8122_v36, %v1573_v14  ;;  %v1749_v18 = vld [vmem:[%s7967_s22 + $0x49] sm:$0xff]  ;;  %v13454_v62 = vld [vmem:[#allocation53_spill] sm:$0xff] }
  0x95   : > { %v2352_v1 = vadd.f32 %v2320_v63, %v2284_v26  ;;  %v2488_v31 = vmul.f32 %v13453_v25, %v8114_v27  ;;  %v905_v6 = vadd.f32 %v873_v47, %v773_v44  ;;  %v1073_v0 = vmul.f32 %v13446_v2, %v7984_v11  ;;  %v1849_v61 = vld [vmem:[%s7967_s22 + $0x4a] sm:$0xff]  ;;  %v8692_v26 = vld [vmem:[%s7967_s22 + $0x92] sm:$0xff] }
  0x96   : > { %v3866_v35 = vadd.f32 %v8418_v60, %v3827_v39  ;;  %v3091_v28 = vadd.f32 %v3059_v45, %v3023_v56  ;;  %v3496_v14 = vmul.f32 %v8677_v41, %v13407_v30  ;;  %v2588_v63 = vmul.f32 %v13454_v62, %v8126_v38  ;;  %3937 = vrot.lane.b32.xlu0 %v1612_v50, %s13115_s24  ;;  %v13456_v56 = vld [vmem:[#allocation22_spill] sm:$0xff]  ;;  %v13457_v2 = vld [vmem:[#allocation24_spill] sm:$0xff] }
  0x97   : > { %13455 = vst [vmem:[#allocation32_spill] sm:$0xff] %v8692_v26  ;;  %v2420_v44 = vadd.f32 %v2388_v16, %v2352_v1  ;;  %v1005_v47 = vadd.f32 %v973_v7, %v905_v6  ;;  %v1141_v25 = vmul.f32 %v13448_v34, %v13345_v53  ;;  %v1685_v39 = vmul.f32 %v8029_v29, %v1649_v40  ;;  %v8704_v16 = vld [vmem:[%s7967_s22 + $0x93] sm:$0xff]  ;;  %v13459_v1 = vld [vmem:[#allocation38_spill] sm:$0xff] }
  0x98   : > { %4061 = vrot.lane.b32.xlu1 %v3866_v35, %s13113_s26  ;;  %v3159_v45 = vadd.f32 %v3127_v13, %v3091_v28  ;;  %v3596_v62 = vmul.f32 %v8692_v26, %v8336_v58  ;;  %v1785_v50 = vmul.f32 %v13456_v56, %v1749_v18  ;;  %v1885_v60 = vmul.f32 %v13457_v2, %v1849_v61  ;;  %v13460_v6 = vld [vmem:[#allocation30_spill] sm:$0xff]  ;;  %v2049_v35 = vld [vmem:[%s7967_s22 + $0x4c] sm:$0xff]  ;;  %v8715_v61 = vld [vmem:[%s7967_s22 + $0x94] sm:$0xff] }
  0x99   : > { %13458 = vst [vmem:[#allocation54_spill] sm:$0xff] %v8704_v16  ;;  %v2520_v7 = vadd.f32 %v2488_v31, %v2420_v44  ;;  %v2656_v34 = vmul.f32 %v13460_v6, %v13459_v1  ;;  %v1105_v40 = vadd.f32 %v1073_v0, %v1005_v47  ;;  %v13461_v29 = vld [vmem:[#allocation18_spill] sm:$0xff]  ;;  %v3696_v28 = vmul.f32 %v8704_v16, %v8349_v55  ;;  %v13464_v31 = vld [vmem:[#allocation52_spill] sm:$0xff]  ;;  %v13465_v1 = vld [vmem:[#allocation23_spill] sm:$0xff] }
  0x9a   : > { %v1241_v53 = vmul.f32 %v13449_v21, %v13461_v29  ;;  %v3227_v13 = vadd.f32 %v3195_v48, %v3159_v45  ;;  %v1817_v58 = vadd.f32 %v1785_v50, %v1685_v39  ;;  %v1985_v18 = vmul.f32 %v8046_v37, %v1949_v59  ;;  %13462 = vst [vmem:[#allocation33_spill] sm:$0xff] %v8715_v61  ;;  %v13463_v56 = vld [vmem:[#allocation42_spill] sm:$0xff]  ;;  %v13467_v50 = vld [vmem:[#allocation47_spill] sm:$0xff]  ;;  %v13468_v37 = vld [vmem:[#allocation36_spill] sm:$0xff] }
  0x9b   : > { %v2620_v2 = vadd.f32 %v2588_v63, %v2520_v7  ;;  %v2724_v44 = vmul.f32 %v13464_v31, %v13463_v56  ;;  %v1173_v38 = vadd.f32 %v1141_v25, %v1105_v40  ;;  %v1342_v0 = vmul.f32 %v8677_v41, %v13465_v1  ;;  %v8722_v47 = vld [vmem:[%s7967_s22 + $0x60] sm:$0xff]  ;;  %v13469_v41 = vld [vmem:[#allocation39_spill] sm:$0xff] }
  0x9c   : > { %13466 = vst [vmem:[#allocation60_spill] sm:$0xff] %v8722_v47  ;;  %v3327_v21 = vadd.f32 %v3295_v12, %v3227_v13  ;;  %v3796_v48 = vmul.f32 %v8368_v43, %v8715_v61  ;;  %v1917_v45 = vadd.f32 %v1885_v60, %v1817_v58  ;;  %v2085_v39 = vmul.f32 %v8054_v42, %v2049_v35  ;;  %v13470_v58 = vld [vmem:[#allocation50_spill] sm:$0xff] }
  0x9d   : > { %v2688_v59 = vadd.f32 %v2656_v34, %v2620_v2  ;;  %v2792_v63 = vmul.f32 %v13468_v37, %v13467_v50  ;;  %v1273_v7 = vadd.f32 %v1241_v53, %v1173_v38  ;;  %v1442_v25 = vmul.f32 %v8692_v26, %v13359_v5  ;;  %v13471_v53 = vld [vmem:[#allocation44_spill] sm:$0xff] }
  0x9e   : > { %v3428_v40 = vadd.f32 %v3396_v22, %v3327_v21  ;;  %v2892_v1 = vmul.f32 %v13469_v41, %v13385_v24  ;;  %v2017_v56 = vadd.f32 %v1985_v18, %v1917_v45  ;;  %v2185_v12 = vmul.f32 %v8722_v47, %v13443_v46 }
  0x9f   : > { %v2756_v13 = vadd.f32 %v2724_v44, %v2688_v59  ;;  %v2992_v60 = vmul.f32 %v13470_v58, %v13387_v51  ;;  %v1374_v2 = vadd.f32 %v1342_v0, %v1273_v7  ;;  %v1542_v34 = vmul.f32 %v8704_v16, %v13366_v19  ;;  %v13472_v44 = vld [vmem:[#allocation20_spill] sm:$0xff]  ;;  %v13473_v19 = vld [vmem:[#allocation26_spill] sm:$0xff] }
  0xa0   : > { %v3528_v38 = vadd.f32 %v3496_v14, %v3428_v40  ;;  %v3060_v35 = vmul.f32 %v13471_v53, %v13389_v9  ;;  %v2117_v21 = vadd.f32 %v2085_v39, %v2017_v56  ;;  %v2253_v22 = vmul.f32 %v13428_v57, %v13417_v15  ;;  %v13483_v58 = vld [vmem:[#allocation12_spill] sm:$0xff] }
  0xa1   : > { %v2824_v41 = vadd.f32 %v2792_v63, %v2756_v13  ;;  %v3128_v18 = vmul.f32 %v8613_v8, %v13447_v4  ;;  %v3196_v45 = vmul.f32 %v13472_v44, %v13420_v17  ;;  %v1474_v0 = vadd.f32 %v1442_v25, %v1374_v2 }
  0xa2   : > { %v3628_v59 = vadd.f32 %v3596_v62, %v3528_v38  ;;  %v3296_v14 = vmul.f32 %v13473_v19, %v13394_v49  ;;  %v2217_v7 = vadd.f32 %v2185_v12, %v2117_v21  ;;  %v2321_v56 = vmul.f32 %v13434_v3, %v13422_v10  ;;  %v8756_v62 = vld [vmem:[%s7967_s22 + $0x98] sm:$0xff]  ;;  %v1650_v38 = vld [vmem:[%s7967_s22 + $0x50] sm:$0xff] }
  0xa3   : > { %v2924_v39 = vadd.f32 %v2892_v1, %v2824_v41  ;;  %v1574_v57 = vadd.f32 %v1542_v34, %v1474_v0  ;;  %v2389_v63 = vmul.f32 %v13439_v32, %v8110_v20  ;;  %v774_v40 = vmul.f32 %v13460_v6, %v13395_v52  ;;  %13474 = vst [vmem:[#allocation63_spill] sm:$0xff] %v8756_v62  ;;  %v13475_v34 = vld [vmem:[#allocation58_spill] sm:$0xff] }
  0xa4   : > { %v3728_v25 = vadd.f32 %v3696_v28, %v3628_v59  ;;  %v2285_v13 = vadd.f32 %v2253_v22, %v2217_v7  ;;  %v874_v12 = vmul.f32 %v13464_v31, %v13396_v54  ;;  %v974_v3 = vmul.f32 %v13468_v37, %v13398_v33  ;;  %v8769_v41 = vld [vmem:[%s7967_s22 + $0x99] sm:$0xff] }
  0xa5   : > { %v3024_v1 = vadd.f32 %v2992_v60, %v2924_v39  ;;  %v3397_v2 = vmul.f32 %v8756_v62, %v13400_v23  ;;  %v1613_v32 = vadd.f32 %v8122_v36, %v1574_v57  ;;  %v2489_v28 = vmul.f32 %v13475_v34, %v8114_v27  ;;  %13476 = vst [vmem:[#allocation16_spill] sm:$0xff] %v8769_v41  ;;  %v1750_v60 = vld [vmem:[%s7967_s22 + $0x51] sm:$0xff] }
  0xa6   : > { %v3828_v21 = vadd.f32 %v3796_v48, %v3728_v25  ;;  %v2353_v22 = vadd.f32 %v2321_v56, %v2285_v13  ;;  %v906_v0 = vadd.f32 %v874_v12, %v774_v40  ;;  %v1074_v59 = vmul.f32 %v13471_v53, %v7984_v11  ;;  %v1850_v7 = vld [vmem:[%s7967_s22 + $0x52] sm:$0xff]  ;;  %v13479_v48 = vld [vmem:[#allocation15_spill] sm:$0xff]  ;;  %v13480_v56 = vld [vmem:[#allocation66_spill] sm:$0xff] }
  0xa7   : > { %v3092_v39 = vadd.f32 %v3060_v35, %v3024_v1  ;;  %v3497_v36 = vmul.f32 %v8769_v41, %v13407_v30  ;;  %v13477_v57 = vld [vmem:[#allocation37_spill] sm:$0xff]  ;;  %3939 = vrot.lane.b32.xlu0 %v1613_v32, %s13115_s24  ;;  %v1142_v25 = vmul.f32 %v8613_v8, %v13479_v48  ;;  %v13485_v30 = vld [vmem:[#allocation24_spill] sm:$0xff] }
  0xa8   : > { %v13478_v62 = vld [vmem:[#allocation41_spill] sm:$0xff]  ;;  %v3867_v40 = vadd.f32 %v13480_v56, %v3828_v21  ;;  %v2421_v12 = vadd.f32 %v2389_v63, %v2353_v22  ;;  %v1006_v19 = vadd.f32 %v974_v3, %v906_v0  ;;  %v1886_v11 = vmul.f32 %v13485_v30, %v1850_v7  ;;  %v13487_v63 = vld [vmem:[#allocation38_spill] sm:$0xff]  ;;  %v13488_v3 = vld [vmem:[#allocation31_spill] sm:$0xff] }
  0xa9   : > { %v2589_v34 = vmul.f32 %v13478_v62, %v13477_v57  ;;  %v8784_v13 = vld [vmem:[%s7967_s22 + $0x9a] sm:$0xff]  ;;  %v3160_v47 = vadd.f32 %v3128_v18, %v3092_v39  ;;  %v2657_v22 = vmul.f32 %v13488_v3, %v13487_v63  ;;  %v1242_v18 = vmul.f32 %v13472_v44, %v13461_v29  ;;  %v13493_v63 = vld [vmem:[#allocation23_spill] sm:$0xff] }
  0xaa   : > { %13481 = vst [vmem:[#allocation62_spill] sm:$0xff] %v8784_v13  ;;  %v13482_v35 = vld [vmem:[#allocation21_spill] sm:$0xff]  ;;  %v3597_v62 = vmul.f32 %v8784_v13, %v13483_v58  ;;  %v13484_v57 = vld [vmem:[#allocation22_spill] sm:$0xff]  ;;  %4063 = vrot.lane.b32.xlu1 %v3867_v40, %s13113_s26  ;;  %v2521_v8 = vadd.f32 %v2489_v28, %v2421_v12 }
  0xab   : > { %v1686_v1 = vmul.f32 %v13482_v35, %v1650_v38  ;;  %v1950_v53 = vld [vmem:[%s7967_s22 + $0x53] sm:$0xff]  ;;  %v1786_v32 = vmul.f32 %v13484_v57, %v1750_v60  ;;  %v8794_v21 = vld [vmem:[%s7967_s22 + $0x9b] sm:$0xff]  ;;  %v1106_v38 = vadd.f32 %v1074_v59, %v1006_v19  ;;  %v3228_v39 = vadd.f32 %v3196_v45, %v3160_v47  ;;  %v8812_v59 = vld [vmem:[%s7967_s22 + $0x68] sm:$0xff] }
  0xac   : > { %13486 = vst [vmem:[#allocation43_spill] sm:$0xff] %v8794_v21  ;;  %v2050_v0 = vld [vmem:[%s7967_s22 + $0x54] sm:$0xff]  ;;  %v3697_v60 = vmul.f32 %v8794_v21, %v8349_v55  ;;  %v8805_v40 = vld [vmem:[%s7967_s22 + $0x9c] sm:$0xff]  ;;  %v2621_v58 = vadd.f32 %v2589_v34, %v2521_v8  ;;  %v1343_v19 = vmul.f32 %v8769_v41, %v13493_v63  ;;  %13494 = vst [vmem:[#allocation19_spill] sm:$0xff] %v8812_v59 }
  0xad   : > { %v1818_v57 = vadd.f32 %v1786_v32, %v1686_v1  ;;  %v13489_v7 = vld [vmem:[#allocation25_spill] sm:$0xff]  ;;  %13490 = vst [vmem:[#allocation45_spill] sm:$0xff] %v8805_v40  ;;  %v13491_v35 = vld [vmem:[#allocation42_spill] sm:$0xff]  ;;  %v1174_v56 = vadd.f32 %v1142_v25, %v1106_v38  ;;  %v3328_v47 = vadd.f32 %v3296_v14, %v3228_v39  ;;  %v3797_v45 = vmul.f32 %v8368_v43, %v8805_v40  ;;  %v13495_v8 = vld [vmem:[#allocation48_spill] sm:$0xff] }
  0xae   : > { %v1986_v30 = vmul.f32 %v13489_v7, %v1950_v53  ;;  %v13492_v28 = vld [vmem:[#allocation61_spill] sm:$0xff]  ;;  %v2086_v53 = vmul.f32 %v8054_v42, %v2050_v0  ;;  %v2689_v32 = vadd.f32 %v2657_v22, %v2621_v58  ;;  %v2793_v34 = vmul.f32 %v13495_v8, %v13467_v50  ;;  %v8828_v22 = vld [vmem:[%s7950_s25 + $0x8] ss:$0 sm:$0xff] }
  0xaf   : > { %v2725_v12 = vmul.f32 %v13492_v28, %v13491_v35  ;;  %v1918_v1 = vadd.f32 %v1886_v11, %v1818_v57  ;;  %v1274_v44 = vadd.f32 %v1242_v18, %v1174_v56  ;;  %v1443_v25 = vmul.f32 %v8784_v13, %v13359_v5  ;;  %v13496_v41 = vld [vmem:[#allocation49_spill] sm:$0xff]  ;;  %v13497_v11 = vld [vmem:[#allocation56_spill] sm:$0xff] }
  0xb0   : > { %v3429_v38 = vadd.f32 %v3397_v2, %v3328_v47  ;;  %v2893_v63 = vmul.f32 %v13496_v41, %v13385_v24  ;;  %v2186_v14 = vmul.f32 %v8812_v59, %v13443_v46  ;;  %v2993_v57 = vmul.f32 %v13497_v11, %v13387_v51  ;;  %v13498_v2 = vld [vmem:[#allocation57_spill] sm:$0xff]  ;;  %v13506_v11 = vld [vmem:[#allocation50_spill] sm:$0xff] }
  0xb1   : > { %v2018_v35 = vadd.f32 %v1986_v30, %v1918_v1  ;;  %v2757_v39 = vadd.f32 %v2725_v12, %v2689_v32  ;;  %v1375_v58 = vadd.f32 %v1343_v19, %v1274_v44  ;;  %v1543_v56 = vmul.f32 %v8828_v22, %v8794_v21 }
  0xb2   : > { %v3529_v18 = vadd.f32 %v3497_v36, %v3429_v38  ;;  %v3061_v0 = vmul.f32 %v13498_v2, %v13389_v9  ;;  %v2254_v30 = vmul.f32 %v13460_v6, %v13417_v15  ;;  %v3129_v47 = vmul.f32 %v8692_v26, %v13447_v4 }
  0xb3   : > { %v2118_v41 = vadd.f32 %v2086_v53, %v2018_v35  ;;  %v2825_v12 = vadd.f32 %v2793_v34, %v2757_v39  ;;  %v3197_v44 = vmul.f32 %v8704_v16, %v13420_v17  ;;  %v1475_v19 = vadd.f32 %v1443_v25, %v1375_v58  ;;  %v8852_v58 = vld [vmem:[%s7967_s22 + $0x6c] sm:$0xff] }
  0xb4   : > { %v3629_v1 = vadd.f32 %v3597_v62, %v3529_v18  ;;  %v3297_v36 = vmul.f32 %v8715_v61, %v13394_v49  ;;  %v2322_v35 = vmul.f32 %v13464_v31, %v13422_v10  ;;  %v2390_v34 = vmul.f32 %v13468_v37, %v8110_v20  ;;  %v8849_v62 = vld [vmem:[%s7967_s22 + $0xa8] sm:$0xff]  ;;  %13500 = vst [vmem:[#allocation40_spill] sm:$0xff] %v8852_v58  ;;  %v13504_v61 = vld [vmem:[#allocation29_spill] sm:$0xff] }
  0xb5   : > { %v2218_v32 = vadd.f32 %v2186_v14, %v2118_v41  ;;  %v2925_v53 = vadd.f32 %v2893_v63, %v2825_v12  ;;  %v1575_v6 = vadd.f32 %v1543_v56, %v1475_v19  ;;  %v775_v38 = vmul.f32 %v13488_v3, %v13395_v52  ;;  %13499 = vst [vmem:[#allocation46_spill] sm:$0xff] %v8849_v62  ;;  %v8861_v56 = vld [vmem:[%s8104_s27] ss:$0 sm:$0xff] }
  0xb6   : > { %v3729_v39 = vadd.f32 %v3697_v60, %v3629_v1  ;;  %v875_v31 = vmul.f32 %v13492_v28, %v13396_v54  ;;  %v975_v63 = vmul.f32 %v13495_v8, %v13398_v33  ;;  %v3398_v37 = vmul.f32 %v8849_v62, %v13400_v23  ;;  %13501 = vst [vmem:[#allocation64_spill] sm:$0xff] %v8861_v56  ;;  %v13503_v1 = vld [vmem:[#allocation11_spill] sm:$0xff] }
  0xb7   : > { %v2286_v25 = vadd.f32 %v2254_v30, %v2218_v32  ;;  %v3025_v14 = vadd.f32 %v2993_v57, %v2925_v53  ;;  %v1614_v60 = vadd.f32 %v8861_v56, %v1575_v6  ;;  %v2490_v18 = vmul.f32 %v8852_v58, %v8114_v27  ;;  %v8867_v30 = vld [vmem:[%s7967_s22 + $0xa9] sm:$0xff]  ;;  %v1751_v32 = vld [vmem:[%s7967_s22 + $0x61] sm:$0xff]  ;;  %v13505_v6 = vld [vmem:[#allocation37_spill] sm:$0xff] }
  0xb8   : > { %v3829_v41 = vadd.f32 %v3797_v45, %v3729_v39  ;;  %13502 = vst [vmem:[#allocation28_spill] sm:$0xff] %v8867_v30  ;;  %v907_v19 = vadd.f32 %v875_v31, %v775_v38  ;;  %v1075_v57 = vmul.f32 %v13498_v2, %v13503_v1  ;;  %v1851_v53 = vld [vmem:[%s7967_s22 + $0x62] sm:$0xff]  ;;  %v3498_v59 = vmul.f32 %v8867_v30, %v13504_v61  ;;  %v8882_v39 = vld [vmem:[%s7967_s22 + $0xaa] sm:$0xff] }
  0xb9   : > { %v2354_v12 = vadd.f32 %v2322_v35, %v2286_v25  ;;  %v3093_v62 = vadd.f32 %v3061_v0, %v3025_v14  ;;  %v2590_v56 = vmul.f32 %v13506_v11, %v13505_v6  ;;  %3941 = vrot.lane.b32.xlu0 %v1614_v60, %s13115_s24  ;;  %v1143_v45 = vmul.f32 %v8692_v26, %v13479_v48  ;;  %v13507_v35 = vld [vmem:[#allocation66_spill] sm:$0xff]  ;;  %v13509_v0 = vld [vmem:[#allocation21_spill] sm:$0xff]  ;;  %v13510_v14 = vld [vmem:[#allocation60_spill] sm:$0xff] }
  0xba   : > { %v3868_v38 = vadd.f32 %v13507_v35, %v3829_v41  ;;  %13508 = vst [vmem:[#allocation65_spill] sm:$0xff] %v8882_v39  ;;  %v1007_v31 = vadd.f32 %v975_v63, %v907_v19  ;;  %v1687_v58 = vmul.f32 %v13510_v14, %v13509_v0  ;;  %v1951_v2 = vld [vmem:[%s7967_s22 + $0x63] sm:$0xff]  ;;  %v13511_v1 = vld [vmem:[#allocation12_spill] sm:$0xff] }
  0xbb   : > { %v2422_v25 = vadd.f32 %v2390_v34, %v2354_v12  ;;  %v3161_v61 = vadd.f32 %v3129_v47, %v3093_v62  ;;  %v3598_v11 = vmul.f32 %v8882_v39, %v13511_v1  ;;  %v13512_v60 = vld [vmem:[#allocation22_spill] sm:$0xff]  ;;  %v13513_v27 = vld [vmem:[#allocation24_spill] sm:$0xff]  ;;  %v1243_v47 = vmul.f32 %v8704_v16, %v13461_v29 }
  0xbc   : > { %v1787_v6 = vmul.f32 %v13512_v60, %v1751_v32  ;;  %v1887_v26 = vmul.f32 %v13513_v27, %v1851_v53  ;;  %4065 = vrot.lane.b32.xlu1 %v3868_v38, %s13113_s26  ;;  %v8893_v41 = vld [vmem:[%s7967_s22 + $0xab] sm:$0xff]  ;;  %v13515_v63 = vld [vmem:[#allocation38_spill] sm:$0xff]  ;;  %v1107_v14 = vadd.f32 %v1075_v57, %v1007_v31  ;;  %v1987_v53 = vmul.f32 %v13489_v7, %v1951_v2  ;;  %v8911_v31 = vld [vmem:[%s7967_s22 + $0x78] sm:$0xff] }
  0xbd   : > { %13514 = vst [vmem:[#allocation51_spill] sm:$0xff] %v8893_v41  ;;  %v2522_v34 = vadd.f32 %v2490_v18, %v2422_v25  ;;  %v13516_v12 = vld [vmem:[#allocation44_spill] sm:$0xff]  ;;  %v2051_v62 = vld [vmem:[%s7967_s22 + $0x64] sm:$0xff]  ;;  %v3229_v0 = vadd.f32 %v3197_v44, %v3161_v61  ;;  %v3698_v32 = vmul.f32 %v8893_v41, %v8349_v55  ;;  %v13519_v18 = vld [vmem:[#allocation17_spill] sm:$0xff] }
  0xbe   : > { %v2658_v19 = vmul.f32 %v13516_v12, %v13515_v63  ;;  %v1819_v60 = vadd.f32 %v1787_v6, %v1687_v58  ;;  %v8904_v38 = vld [vmem:[%s7967_s22 + $0xac] sm:$0xff]  ;;  %v13518_v1 = vld [vmem:[#allocation42_spill] sm:$0xff]  ;;  %v1175_v35 = vadd.f32 %v1143_v45, %v1107_v14  ;;  %13521 = vst [vmem:[#allocation53_spill] sm:$0xff] %v8911_v31  ;;  %v2087_v58 = vmul.f32 %v8054_v42, %v2051_v62 }
  0xbf   : > { %13517 = vst [vmem:[#allocation14_spill] sm:$0xff] %v8904_v38  ;;  %v2622_v27 = vadd.f32 %v2590_v56, %v2522_v34  ;;  %v2726_v25 = vmul.f32 %v13519_v18, %v13518_v1  ;;  %v13520_v63 = vld [vmem:[#allocation23_spill] sm:$0xff]  ;;  %v3329_v16 = vadd.f32 %v3297_v36, %v3229_v0  ;;  %v3798_v61 = vmul.f32 %v8368_v43, %v8904_v38  ;;  %v13522_v6 = vld [vmem:[#allocation20_spill] sm:$0xff] }
  0xc0   : > { %v1344_v57 = vmul.f32 %v8867_v30, %v13520_v63  ;;  %v1919_v44 = vadd.f32 %v1887_v26, %v1819_v60  ;;  %v2794_v56 = vmul.f32 %v13522_v6, %v13467_v50  ;;  %v1275_v34 = vadd.f32 %v1243_v47, %v1175_v35  ;;  %v13523_v30 = vld [vmem:[#allocation26_spill] sm:$0xff]  ;;  %v13524_v26 = vld [vmem:[#allocation63_spill] sm:$0xff] }
  0xc1   : > { %v2690_v2 = vadd.f32 %v2658_v19, %v2622_v27  ;;  %v1444_v45 = vmul.f32 %v8882_v39, %v13359_v5  ;;  %v3430_v14 = vadd.f32 %v3398_v37, %v3329_v16  ;;  %v2894_v63 = vmul.f32 %v13523_v30, %v13385_v24  ;;  %v13525_v19 = vld [vmem:[#allocation16_spill] sm:$0xff] }
  0xc2   : > { %v2019_v1 = vadd.f32 %v1987_v53, %v1919_v44  ;;  %v2187_v36 = vmul.f32 %v8911_v31, %v13443_v46  ;;  %v2994_v0 = vmul.f32 %v13524_v26, %v13387_v51  ;;  %v1376_v27 = vadd.f32 %v1344_v57, %v1275_v34  ;;  %v13534_v31 = vld [vmem:[#allocation56_spill] sm:$0xff] }
  0xc3   : > { %v2758_v43 = vadd.f32 %v2726_v25, %v2690_v2  ;;  %v1544_v60 = vmul.f32 %v8828_v22, %v8893_v41  ;;  %v3530_v35 = vadd.f32 %v3498_v59, %v3430_v14  ;;  %v3062_v47 = vmul.f32 %v13525_v19, %v13389_v9  ;;  %v8948_v14 = vld [vmem:[%s7967_s22 + $0x7c] sm:$0xff] }
  0xc4   : > { %v2119_v16 = vadd.f32 %v2087_v58, %v2019_v1  ;;  %v2255_v37 = vmul.f32 %v13488_v3, %v13417_v15  ;;  %v3130_v62 = vmul.f32 %v8784_v13, %v13447_v4  ;;  %v3198_v53 = vmul.f32 %v8794_v21, %v13420_v17  ;;  %13527 = vst [vmem:[#allocation52_spill] sm:$0xff] %v8948_v14 }
  0xc5   : > { %v2826_v30 = vadd.f32 %v2794_v56, %v2758_v43  ;;  %v1476_v25 = vadd.f32 %v1444_v45, %v1376_v27  ;;  %v3630_v57 = vadd.f32 %v3598_v11, %v3530_v35  ;;  %v3298_v59 = vmul.f32 %v8805_v40, %v13394_v49  ;;  %v8945_v11 = vld [vmem:[%s7967_s22 + $0xb0] sm:$0xff]  ;;  %v13532_v40 = vld [vmem:[#allocation29_spill] sm:$0xff] }
  0xc6   : > { %v2219_v44 = vadd.f32 %v2187_v36, %v2119_v16  ;;  %v2323_v1 = vmul.f32 %v13492_v28, %v13422_v10  ;;  %v2391_v2 = vmul.f32 %v13495_v8, %v8110_v20  ;;  %v776_v56 = vmul.f32 %v13516_v12, %v13395_v52  ;;  %13526 = vst [vmem:[#allocation30_spill] sm:$0xff] %v8945_v11  ;;  %v13528_v43 = vld [vmem:[#allocation64_spill] sm:$0xff] }
  0xc7   : > { %v2926_v58 = vadd.f32 %v2894_v63, %v2826_v30  ;;  %v1576_v3 = vadd.f32 %v1544_v60, %v1476_v25  ;;  %v3730_v34 = vadd.f32 %v3698_v32, %v3630_v57  ;;  %v876_v28 = vmul.f32 %v13519_v18, %v13396_v54  ;;  %v13529_v32 = vld [vmem:[#allocation35_spill] sm:$0xff]  ;;  %v8960_v16 = vld [vmem:[%s7967_s22 + $0xb1] sm:$0xff] }
  0xc8   : > { %v2287_v45 = vadd.f32 %v2255_v37, %v2219_v44  ;;  %v976_v63 = vmul.f32 %v13522_v6, %v13398_v33  ;;  %v3399_v8 = vmul.f32 %v8945_v11, %v13400_v23  ;;  %v2491_v60 = vmul.f32 %v8948_v14, %v13529_v32  ;;  %13530 = vst [vmem:[#allocation47_spill] sm:$0xff] %v8960_v16  ;;  %v13531_v25 = vld [vmem:[#allocation11_spill] sm:$0xff]  ;;  %v13537_v14 = vld [vmem:[#allocation21_spill] sm:$0xff]  ;;  %v13541_v32 = vld [vmem:[#allocation24_spill] sm:$0xff] }
  0xc9   : > { %v3026_v36 = vadd.f32 %v2994_v0, %v2926_v58  ;;  %v1615_v27 = vadd.f32 %v13528_v43, %v1576_v3  ;;  %v3830_v35 = vadd.f32 %v3798_v61, %v3730_v34  ;;  %v908_v30 = vadd.f32 %v876_v28, %v776_v56  ;;  %v1752_v44 = vld [vmem:[%s7967_s22 + $0x69] sm:$0xff]  ;;  %v13533_v3 = vld [vmem:[#allocation37_spill] sm:$0xff] }
  0xca   : > { %v2355_v37 = vadd.f32 %v2323_v1, %v2287_v45  ;;  %v1076_v57 = vmul.f32 %v13525_v19, %v13531_v25  ;;  %v1852_v0 = vld [vmem:[%s7967_s22 + $0x6a] sm:$0xff]  ;;  %v3499_v11 = vmul.f32 %v8960_v16, %v13532_v40  ;;  %v2591_v26 = vmul.f32 %v13534_v31, %v13533_v3  ;;  %v13535_v1 = vld [vmem:[#allocation66_spill] sm:$0xff]  ;;  %v8975_v34 = vld [vmem:[%s7967_s22 + $0xb2] sm:$0xff] }
  0xcb   : > { %v3094_v58 = vadd.f32 %v3062_v47, %v3026_v36  ;;  %3943 = vrot.lane.b32.xlu0 %v1615_v27, %s13115_s24  ;;  %v1144_v61 = vmul.f32 %v8784_v13, %v13479_v48  ;;  %v3869_v56 = vadd.f32 %v13535_v1, %v3830_v35  ;;  %13536 = vst [vmem:[#allocation36_spill] sm:$0xff] %v8975_v34  ;;  %v13538_v47 = vld [vmem:[#allocation19_spill] sm:$0xff]  ;;  %v13539_v25 = vld [vmem:[#allocation12_spill] sm:$0xff]  ;;  %v13540_v3 = vld [vmem:[#allocation22_spill] sm:$0xff] }
  0xcc   : > { %v2423_v45 = vadd.f32 %v2391_v2, %v2355_v37  ;;  %v1008_v28 = vadd.f32 %v976_v63, %v908_v30  ;;  %v1688_v36 = vmul.f32 %v13538_v47, %v13537_v14  ;;  %v1952_v19 = vld [vmem:[%s7967_s22 + $0x6b] sm:$0xff]  ;;  %v3599_v31 = vmul.f32 %v8975_v34, %v13539_v25  ;;  %v8986_v35 = vld [vmem:[%s7967_s22 + $0xb3] sm:$0xff]  ;;  %v13543_v63 = vld [vmem:[#allocation38_spill] sm:$0xff] }
  0xcd   : > { %v3162_v40 = vadd.f32 %v3130_v62, %v3094_v58  ;;  %v1788_v27 = vmul.f32 %v13540_v3, %v1752_v44  ;;  %v1888_v43 = vmul.f32 %v13541_v32, %v1852_v0  ;;  %4067 = vrot.lane.b32.xlu1 %v3869_v56, %s13113_s26  ;;  %13542 = vst [vmem:[#allocation39_spill] sm:$0xff] %v8986_v35  ;;  %v13544_v37 = vld [vmem:[#allocation57_spill] sm:$0xff]  ;;  %v13546_v32 = vld [vmem:[#allocation42_spill] sm:$0xff]  ;;  %v13547_v3 = vld [vmem:[#allocation32_spill] sm:$0xff] }
  0xce   : > { %v2523_v2 = vadd.f32 %v2491_v60, %v2423_v45  ;;  %v2659_v30 = vmul.f32 %v13544_v37, %v13543_v63  ;;  %v1108_v1 = vadd.f32 %v1076_v57, %v1008_v28  ;;  %v1244_v62 = vmul.f32 %v8794_v21, %v13461_v29  ;;  %v8996_v13 = vld [vmem:[%s7967_s22 + $0xb4] sm:$0xff]  ;;  %v13548_v25 = vld [vmem:[#allocation23_spill] sm:$0xff]  ;;  %v9003_v28 = vld [vmem:[%s7967_s22 + $0x80] sm:$0xff] }
  0xcf   : > { %v3230_v58 = vadd.f32 %v3198_v53, %v3162_v40  ;;  %v3699_v44 = vmul.f32 %v8986_v35, %v8349_v55  ;;  %v1820_v47 = vadd.f32 %v1788_v27, %v1688_v36  ;;  %v1988_v0 = vmul.f32 %v13489_v7, %v1952_v19  ;;  %13545 = vst [vmem:[#allocation58_spill] sm:$0xff] %v8996_v13  ;;  %v9006_v40 = vld [vmem:[%s7972_s28 + $0x18] ss:$0 sm:$0xff]  ;;  %v13550_v19 = vld [vmem:[#allocation40_spill] sm:$0xff] }
  0xd0   : > { %v2623_v56 = vadd.f32 %v2591_v26, %v2523_v2  ;;  %v2727_v60 = vmul.f32 %v13547_v3, %v13546_v32  ;;  %v1176_v45 = vadd.f32 %v1144_v61, %v1108_v1  ;;  %v1345_v57 = vmul.f32 %v8960_v16, %v13548_v25  ;;  %13549 = vst [vmem:[#allocation41_spill] sm:$0xff] %v9003_v28  ;;  %v13551_v2 = vld [vmem:[#allocation54_spill] sm:$0xff] }
  0xd1   : > { %v3330_v21 = vadd.f32 %v3298_v59, %v3230_v58  ;;  %v3799_v53 = vmul.f32 %v9006_v40, %v8996_v13  ;;  %v1920_v36 = vadd.f32 %v1888_v43, %v1820_v47  ;;  %v2088_v27 = vmul.f32 %v13550_v19, %v8054_v42  ;;  %v13552_v59 = vld [vmem:[#allocation33_spill] sm:$0xff]  ;;  %v13553_v47 = vld [vmem:[#allocation46_spill] sm:$0xff] }
  0xd2   : > { %v2691_v26 = vadd.f32 %v2659_v30, %v2623_v56  ;;  %v2795_v32 = vmul.f32 %v13551_v2, %v13467_v50  ;;  %v1276_v61 = vadd.f32 %v1244_v62, %v1176_v45  ;;  %v1445_v1 = vmul.f32 %v8975_v34, %v13359_v5  ;;  %v13554_v45 = vld [vmem:[#allocation28_spill] sm:$0xff] }
  0xd3   : > { %v3431_v16 = vadd.f32 %v3399_v8, %v3330_v21  ;;  %v2895_v58 = vmul.f32 %v13552_v59, %v13385_v24  ;;  %v2020_v25 = vadd.f32 %v1988_v0, %v1920_v36  ;;  %v2188_v13 = vmul.f32 %v9003_v28, %v13443_v46  ;;  %v13561_v28 = vld [vmem:[#allocation29_spill] sm:$0xff] }
  0xd4   : > { %v2759_v43 = vadd.f32 %v2727_v60, %v2691_v26  ;;  %v2995_v19 = vmul.f32 %v13553_v47, %v13387_v51  ;;  %v1377_v30 = vadd.f32 %v1345_v57, %v1276_v61  ;;  %v1545_v56 = vmul.f32 %v8828_v22, %v8986_v35  ;;  %v13563_v47 = vld [vmem:[#allocation63_spill] sm:$0xff] }
  0xd5   : > { %v3531_v62 = vadd.f32 %v3499_v11, %v3431_v16  ;;  %v3063_v34 = vmul.f32 %v13554_v45, %v13389_v9  ;;  %v2120_v21 = vadd.f32 %v2088_v27, %v2020_v25  ;;  %v2256_v8 = vmul.f32 %v13516_v12, %v13417_v15 }
  0xd6   : > { %v2827_v0 = vadd.f32 %v2795_v32, %v2759_v43  ;;  %v3131_v60 = vmul.f32 %v8882_v39, %v13447_v4  ;;  %v3199_v57 = vmul.f32 %v8893_v41, %v13420_v17  ;;  %v1477_v36 = vadd.f32 %v1445_v1, %v1377_v30  ;;  %v9044_v43 = vld [vmem:[%s7967_s22 + $0x84] sm:$0xff]  ;;  %v13557_v30 = vld [vmem:[#allocation64_spill] sm:$0xff] }
  0xd7   : > { %v3631_v26 = vadd.f32 %v3599_v31, %v3531_v62  ;;  %v3299_v11 = vmul.f32 %v8904_v38, %v13394_v49  ;;  %v2220_v16 = vadd.f32 %v2188_v13, %v2120_v21  ;;  %v2324_v25 = vmul.f32 %v13519_v18, %v13422_v10  ;;  %v9041_v31 = vld [vmem:[%s7967_s22 + $0xc0] sm:$0xff]  ;;  %13556 = vst [vmem:[#allocation61_spill] sm:$0xff] %v9044_v43 }
  0xd8   : > { %v2927_v27 = vadd.f32 %v2895_v58, %v2827_v0  ;;  %v1577_v12 = vadd.f32 %v1545_v56, %v1477_v36  ;;  %v2392_v32 = vmul.f32 %v13522_v6, %v8110_v20  ;;  %v777_v61 = vmul.f32 %v13544_v37, %v13395_v52  ;;  %13555 = vst [vmem:[#allocation31_spill] sm:$0xff] %v9041_v31 }
  0xd9   : > { %v3731_v59 = vadd.f32 %v3699_v44, %v3631_v26  ;;  %v2288_v1 = vadd.f32 %v2256_v8, %v2220_v16  ;;  %v877_v13 = vmul.f32 %v13547_v3, %v13396_v54  ;;  %v977_v18 = vmul.f32 %v13551_v2, %v13398_v33  ;;  %v13558_v44 = vld [vmem:[#allocation35_spill] sm:$0xff] }
  0xda   : > { %v3027_v58 = vadd.f32 %v2995_v19, %v2927_v27  ;;  %v3400_v6 = vmul.f32 %v9041_v31, %v13400_v23  ;;  %v1616_v56 = vadd.f32 %v13557_v30, %v1577_v12  ;;  %v2492_v62 = vmul.f32 %v9044_v43, %v13558_v44  ;;  %v9056_v8 = vld [vmem:[%s7967_s22 + $0xc1] sm:$0xff]  ;;  %v1753_v19 = vld [vmem:[%s7967_s22 + $0x79] sm:$0xff] }
  0xdb   : > { %v3831_v21 = vadd.f32 %v3799_v53, %v3731_v59  ;;  %13559 = vst [vmem:[#allocation48_spill] sm:$0xff] %v9056_v8  ;;  %v2356_v0 = vadd.f32 %v2324_v25, %v2288_v1  ;;  %v909_v36 = vadd.f32 %v877_v13, %v777_v61  ;;  %v13560_v26 = vld [vmem:[#allocation11_spill] sm:$0xff]  ;;  %v1853_v27 = vld [vmem:[%s7967_s22 + $0x7a] sm:$0xff]  ;;  %v3500_v31 = vmul.f32 %v9056_v8, %v13561_v28 }
  0xdc   : > { %v1077_v16 = vmul.f32 %v13554_v45, %v13560_v26  ;;  %v3095_v38 = vadd.f32 %v3063_v34, %v3027_v58  ;;  %v13562_v12 = vld [vmem:[#allocation37_spill] sm:$0xff]  ;;  %3945 = vrot.lane.b32.xlu0 %v1616_v56, %s13115_s24  ;;  %v1145_v53 = vmul.f32 %v8882_v39, %v13479_v48  ;;  %v9070_v25 = vld [vmem:[%s8399_s23] ss:$0 sm:$0xff]  ;;  %v9074_v59 = vld [vmem:[%s7967_s22 + $0xc2] sm:$0xff] }
  0xdd   : > { %v2592_v30 = vmul.f32 %v13563_v47, %v13562_v12  ;;  %v3870_v61 = vadd.f32 %v9070_v25, %v3831_v21  ;;  %13564 = vst [vmem:[#allocation49_spill] sm:$0xff] %v9074_v59  ;;  %v2424_v1 = vadd.f32 %v2392_v32, %v2356_v0  ;;  %v1009_v34 = vadd.f32 %v977_v18, %v909_v36  ;;  %v13565_v13 = vld [vmem:[#allocation53_spill] sm:$0xff]  ;;  %v13566_v47 = vld [vmem:[#allocation12_spill] sm:$0xff]  ;;  %v13567_v12 = vld [vmem:[#allocation22_spill] sm:$0xff] }
  0xde   : > { %v1689_v58 = vmul.f32 %v13565_v13, %v13537_v14  ;;  %v1953_v43 = vld [vmem:[%s7967_s22 + $0x7b] sm:$0xff]  ;;  %v3163_v45 = vadd.f32 %v3131_v60, %v3095_v38  ;;  %v3600_v56 = vmul.f32 %v9074_v59, %v13566_v47  ;;  %v1789_v28 = vmul.f32 %v13567_v12, %v1753_v19  ;;  %v13568_v39 = vld [vmem:[#allocation24_spill] sm:$0xff]  ;;  %v9085_v21 = vld [vmem:[%s7967_s22 + $0xc3] sm:$0xff] }
  0xdf   : > { %v1889_v48 = vmul.f32 %v13568_v39, %v1853_v27  ;;  %4069 = vrot.lane.b32.xlu1 %v3870_v61, %s13113_s26  ;;  %13569 = vst [vmem:[#allocation50_spill] sm:$0xff] %v9085_v21  ;;  %v2524_v32 = vadd.f32 %v2492_v62, %v2424_v1  ;;  %v13570_v18 = vld [vmem:[#allocation16_spill] sm:$0xff]  ;;  %v1109_v36 = vadd.f32 %v1077_v16, %v1009_v34  ;;  %v9095_v39 = vld [vmem:[%s7967_s22 + $0xc4] sm:$0xff] }
  0xe0   : > { %v2660_v0 = vmul.f32 %v13570_v18, %v13543_v63  ;;  %v1245_v38 = vmul.f32 %v8893_v41, %v13461_v29  ;;  %v3231_v60 = vadd.f32 %v3199_v57, %v3163_v45  ;;  %v3700_v13 = vmul.f32 %v9085_v21, %v8349_v55  ;;  %13571 = vst [vmem:[#allocation60_spill] sm:$0xff] %v9095_v39  ;;  %v13572_v12 = vld [vmem:[#allocation42_spill] sm:$0xff]  ;;  %v13574_v14 = vld [vmem:[#allocation23_spill] sm:$0xff]  ;;  %v9102_v34 = vld [vmem:[%s7967_s22 + $0x90] sm:$0xff] }
  0xe1   : > { %v1821_v19 = vadd.f32 %v1789_v28, %v1689_v58  ;;  %v1989_v27 = vmul.f32 %v13489_v7, %v1953_v43  ;;  %v2624_v61 = vadd.f32 %v2592_v30, %v2524_v32  ;;  %v13573_v47 = vld [vmem:[#allocation62_spill] sm:$0xff]  ;;  %v1177_v1 = vadd.f32 %v1145_v53, %v1109_v36  ;;  %13575 = vst [vmem:[#allocation44_spill] sm:$0xff] %v9102_v34  ;;  %v13576_v28 = vld [vmem:[#allocation52_spill] sm:$0xff]  ;;  %v13577_v30 = vld [vmem:[#allocation43_spill] sm:$0xff] }
  0xe2   : > { %v2728_v62 = vmul.f32 %v13573_v47, %v13572_v12  ;;  %v1346_v16 = vmul.f32 %v9056_v8, %v13574_v14  ;;  %v3331_v41 = vadd.f32 %v3299_v11, %v3231_v60  ;;  %v3800_v45 = vmul.f32 %v9006_v40, %v9095_v39  ;;  %v13578_v8 = vld [vmem:[#allocation45_spill] sm:$0xff] }
  0xe3   : > { %v1921_v57 = vadd.f32 %v1889_v48, %v1821_v19  ;;  %v2089_v43 = vmul.f32 %v13576_v28, %v8054_v42  ;;  %v2692_v58 = vadd.f32 %v2660_v0, %v2624_v61  ;;  %v2796_v32 = vmul.f32 %v13577_v30, %v13467_v50  ;;  %v13579_v19 = vld [vmem:[#allocation30_spill] sm:$0xff] }
  0xe4   : > { %v1277_v7 = vadd.f32 %v1245_v38, %v1177_v1  ;;  %v1446_v53 = vmul.f32 %v9074_v59, %v13359_v5  ;;  %v3432_v36 = vadd.f32 %v3400_v6, %v3331_v41  ;;  %v2896_v14 = vmul.f32 %v13578_v8, %v13385_v24  ;;  %v13580_v1 = vld [vmem:[#allocation47_spill] sm:$0xff] }
  0xe5   : > { %v2021_v11 = vadd.f32 %v1989_v27, %v1921_v57  ;;  %v2189_v60 = vmul.f32 %v9102_v34, %v13443_v46  ;;  %v2760_v48 = vadd.f32 %v2728_v62, %v2692_v58  ;;  %v2996_v28 = vmul.f32 %v13579_v19, %v13387_v51  ;;  %v13581_v27 = vld [vmem:[#allocation36_spill] sm:$0xff]  ;;  %v13589_v19 = vld [vmem:[#allocation46_spill] sm:$0xff] }
  0xe6   : > { %v1378_v0 = vadd.f32 %v1346_v16, %v1277_v7  ;;  %v1546_v61 = vmul.f32 %v8828_v22, %v9085_v21  ;;  %v3532_v38 = vadd.f32 %v3500_v31, %v3432_v36  ;;  %v3064_v39 = vmul.f32 %v13580_v1, %v13389_v9  ;;  %v13582_v31 = vld [vmem:[#allocation58_spill] sm:$0xff] }
  0xe7   : > { %v2121_v41 = vadd.f32 %v2089_v43, %v2021_v11  ;;  %v2257_v6 = vmul.f32 %v13544_v37, %v13417_v15  ;;  %v2828_v8 = vadd.f32 %v2796_v32, %v2760_v48  ;;  %v3132_v62 = vmul.f32 %v13581_v27, %v13447_v4 }
  0xe8   : > { %v3200_v7 = vmul.f32 %v8986_v35, %v13420_v17  ;;  %v1478_v16 = vadd.f32 %v1446_v53, %v1378_v0  ;;  %v3632_v57 = vadd.f32 %v3600_v56, %v3532_v38  ;;  %v3300_v58 = vmul.f32 %v13582_v31, %v13394_v49  ;;  %v9137_v56 = vld [vmem:[%s7967_s22 + $0xc8] sm:$0xff]  ;;  %v9140_v0 = vld [vmem:[%s7967_s22 + $0x94] sm:$0xff] }
  0xe9   : > { %v2221_v36 = vadd.f32 %v2189_v60, %v2121_v41  ;;  %v2325_v43 = vmul.f32 %v13547_v3, %v13422_v10  ;;  %v2928_v11 = vadd.f32 %v2896_v14, %v2828_v8  ;;  %v2393_v32 = vmul.f32 %v13551_v2, %v8110_v20  ;;  %13583 = vst [vmem:[#allocation17_spill] sm:$0xff] %v9137_v56  ;;  %v13587_v31 = vld [vmem:[#allocation29_spill] sm:$0xff] }
  0xea   : > { %v1578_v37 = vadd.f32 %v1546_v61, %v1478_v16  ;;  %v778_v48 = vmul.f32 %v13570_v18, %v13395_v52  ;;  %v3732_v34 = vadd.f32 %v3700_v13, %v3632_v57  ;;  %13584 = vst [vmem:[#allocation20_spill] sm:$0xff] %v9140_v0  ;;  %v878_v3 = vmul.f32 %v13573_v47, %v13396_v54  ;;  %v13585_v61 = vld [vmem:[#allocation64_spill] sm:$0xff] }
  0xeb   : > { %v2289_v53 = vadd.f32 %v2257_v6, %v2221_v36  ;;  %v978_v14 = vmul.f32 %v13577_v30, %v13398_v33  ;;  %v3028_v60 = vadd.f32 %v2996_v28, %v2928_v11  ;;  %v3401_v2 = vmul.f32 %v9137_v56, %v13400_v23  ;;  %v9152_v6 = vld [vmem:[%s7967_s22 + $0xc9] sm:$0xff]  ;;  %v1754_v36 = vld [vmem:[%s7967_s22 + $0x81] sm:$0xff] }
  0xec   : > { %v1617_v38 = vadd.f32 %v13585_v61, %v1578_v37  ;;  %v2493_v13 = vmul.f32 %v9140_v0, %v13558_v44  ;;  %v3832_v41 = vadd.f32 %v3800_v45, %v3732_v34  ;;  %13586 = vst [vmem:[#allocation26_spill] sm:$0xff] %v9152_v6  ;;  %v910_v16 = vadd.f32 %v878_v3, %v778_v48  ;;  %v1854_v28 = vld [vmem:[%s7967_s22 + $0x82] sm:$0xff]  ;;  %v13588_v37 = vld [vmem:[#allocation37_spill] sm:$0xff]  ;;  %v9167_v48 = vld [vmem:[%s7967_s22 + $0xca] sm:$0xff] }
  0xed   : > { %v2357_v8 = vadd.f32 %v2325_v43, %v2289_v53  ;;  %v1078_v57 = vmul.f32 %v13580_v1, %v13560_v26  ;;  %v3096_v11 = vadd.f32 %v3064_v39, %v3028_v60  ;;  %v3501_v56 = vmul.f32 %v9152_v6, %v13587_v31  ;;  %v13590_v34 = vld [vmem:[#allocation15_spill] sm:$0xff]  ;;  %13591 = vst [vmem:[#allocation56_spill] sm:$0xff] %v9167_v48  ;;  %v13592_v0 = vld [vmem:[#allocation21_spill] sm:$0xff]  ;;  %v13594_v26 = vld [vmem:[#allocation12_spill] sm:$0xff] }
  0xee   : > { %v2593_v61 = vmul.f32 %v13589_v19, %v13588_v37  ;;  %3947 = vrot.lane.b32.xlu0 %v1617_v38, %s13115_s24  ;;  %v1146_v45 = vmul.f32 %v13581_v27, %v13590_v34  ;;  %v3871_v43 = vadd.f32 %v9070_v25, %v3832_v41  ;;  %v1010_v3 = vadd.f32 %v978_v14, %v910_v16  ;;  %v13593_v39 = vld [vmem:[#allocation41_spill] sm:$0xff]  ;;  %v1954_v1 = vld [vmem:[%s7967_s22 + $0x83] sm:$0xff]  ;;  %v13596_v44 = vld [vmem:[#allocation24_spill] sm:$0xff] }
  0xef   : > { %v2425_v53 = vadd.f32 %v2393_v32, %v2357_v8  ;;  %v1690_v60 = vmul.f32 %v13593_v39, %v13592_v0  ;;  %v3164_v31 = vadd.f32 %v3132_v62, %v3096_v11  ;;  %v3601_v19 = vmul.f32 %v9167_v48, %v13594_v26  ;;  %v13595_v37 = vld [vmem:[#allocation22_spill] sm:$0xff]  ;;  %v9178_v41 = vld [vmem:[%s7967_s22 + $0xcb] sm:$0xff]  ;;  %v13599_v27 = vld [vmem:[#allocation25_spill] sm:$0xff] }
  0xf0   : > { %v1790_v38 = vmul.f32 %v13595_v37, %v1754_v36  ;;  %v1890_v23 = vmul.f32 %v13596_v44, %v1854_v28  ;;  %4071 = vrot.lane.b32.xlu1 %v3871_v43, %s13113_s26  ;;  %13597 = vst [vmem:[#allocation66_spill] sm:$0xff] %v9178_v41  ;;  %v13598_v14 = vld [vmem:[#allocation28_spill] sm:$0xff]  ;;  %v1110_v16 = vadd.f32 %v1078_v57, %v1010_v3  ;;  %v13601_v37 = vld [vmem:[#allocation65_spill] sm:$0xff]  ;;  %v13602_v26 = vld [vmem:[#allocation23_spill] sm:$0xff] }
  0xf1   : > { %v2525_v32 = vadd.f32 %v2493_v13, %v2425_v53  ;;  %v2661_v8 = vmul.f32 %v13598_v14, %v13543_v63  ;;  %v1246_v62 = vmul.f32 %v8986_v35, %v13461_v29  ;;  %v3232_v11 = vadd.f32 %v3200_v7, %v3164_v31  ;;  %v9188_v44 = vld [vmem:[%s7967_s22 + $0xcc] sm:$0xff]  ;;  %v9195_v3 = vld [vmem:[%s7967_s22 + $0x98] sm:$0xff] }
  0xf2   : > { %v3701_v39 = vmul.f32 %v9178_v41, %v8349_v55  ;;  %v1822_v36 = vadd.f32 %v1790_v38, %v1690_v60  ;;  %v1990_v28 = vmul.f32 %v13599_v27, %v1954_v1  ;;  %13600 = vst [vmem:[#allocation19_spill] sm:$0xff] %v9188_v44  ;;  %v2729_v13 = vmul.f32 %v13601_v37, %v13572_v12  ;;  %v13604_v60 = vld [vmem:[#allocation61_spill] sm:$0xff] }
  0xf3   : > { %v2625_v43 = vadd.f32 %v2593_v61, %v2525_v32  ;;  %v1178_v53 = vadd.f32 %v1146_v45, %v1110_v16  ;;  %v1347_v57 = vmul.f32 %v9152_v6, %v13602_v26  ;;  %13603 = vst [vmem:[#allocation38_spill] sm:$0xff] %v9195_v3  ;;  %v3332_v35 = vadd.f32 %v3300_v58, %v3232_v11  ;;  %v13605_v61 = vld [vmem:[#allocation51_spill] sm:$0xff]  ;;  %v13606_v6 = vld [vmem:[#allocation14_spill] sm:$0xff] }
  0xf4   : > { %v3801_v7 = vmul.f32 %v9006_v40, %v9188_v44  ;;  %v1922_v31 = vadd.f32 %v1890_v23, %v1822_v36  ;;  %v2090_v1 = vmul.f32 %v13604_v60, %v8054_v42  ;;  %v2797_v32 = vmul.f32 %v13605_v61, %v13467_v50  ;;  %v13607_v36 = vld [vmem:[#allocation31_spill] sm:$0xff] }
  0xf5   : > { %v2693_v38 = vadd.f32 %v2661_v8, %v2625_v43  ;;  %v1278_v27 = vadd.f32 %v1246_v62, %v1178_v53  ;;  %v1447_v45 = vmul.f32 %v9167_v48, %v13359_v5  ;;  %v3433_v16 = vadd.f32 %v3401_v2, %v3332_v35  ;;  %v13608_v53 = vld [vmem:[#allocation48_spill] sm:$0xff] }
  0xf6   : > { %v2897_v26 = vmul.f32 %v13606_v6, %v13385_v24  ;;  %v2022_v58 = vadd.f32 %v1990_v28, %v1922_v31  ;;  %v2190_v11 = vmul.f32 %v9195_v3, %v13443_v46  ;;  %v2997_v60 = vmul.f32 %v13607_v36, %v13387_v51  ;;  %v1755_v36 = vld [vmem:[%s7967_s22 + $0x91] sm:$0xff] }
  0xf7   : > { %v2761_v23 = vadd.f32 %v2729_v13, %v2693_v38  ;;  %v1379_v8 = vadd.f32 %v1347_v57, %v1278_v27  ;;  %v1547_v43 = vmul.f32 %v8828_v22, %v9178_v41  ;;  %v3533_v62 = vadd.f32 %v3501_v56, %v3433_v16  ;;  %v13609_v56 = vld [vmem:[#allocation60_spill] sm:$0xff] }
  0xf8   : > { %v3065_v44 = vmul.f32 %v13608_v53, %v13389_v9  ;;  %v2122_v35 = vadd.f32 %v2090_v1, %v2022_v58  ;;  %v2258_v2 = vmul.f32 %v13570_v18, %v13417_v15  ;;  %v3133_v28 = vmul.f32 %v9074_v59, %v13447_v4 }
  0xf9   : > { %v2829_v6 = vadd.f32 %v2797_v32, %v2761_v23  ;;  %v3201_v27 = vmul.f32 %v9085_v21, %v13420_v17  ;;  %v1479_v13 = vadd.f32 %v1447_v45, %v1379_v8  ;;  %v3633_v57 = vadd.f32 %v3601_v19, %v3533_v62  ;;  %v9230_v19 = vld [vmem:[%s7967_s22 + $0xd8] sm:$0xff]  ;;  %v13613_v62 = vld [vmem:[#allocation64_spill] sm:$0xff] }
  0xfa   : > { %v3301_v31 = vmul.f32 %v13609_v56, %v13394_v49  ;;  %v2222_v38 = vadd.f32 %v2190_v11, %v2122_v35  ;;  %v2326_v1 = vmul.f32 %v13573_v47, %v13422_v10  ;;  %v2394_v32 = vmul.f32 %v13577_v30, %v8110_v20  ;;  %13610 = vst [vmem:[#allocation57_spill] sm:$0xff] %v9230_v19  ;;  %v9233_v8 = vld [vmem:[%s7967_s22 + $0x9c] sm:$0xff]  ;;  %v13616_v56 = vld [vmem:[#allocation11_spill] sm:$0xff] }
  0xfb   : > { %v2929_v16 = vadd.f32 %v2897_v26, %v2829_v6  ;;  %v1579_v18 = vadd.f32 %v1547_v43, %v1479_v13  ;;  %v779_v58 = vmul.f32 %v13598_v14, %v13395_v52  ;;  %v3733_v23 = vadd.f32 %v3701_v39, %v3633_v57  ;;  %13611 = vst [vmem:[#allocation32_spill] sm:$0xff] %v9233_v8  ;;  %v13612_v43 = vld [vmem:[#allocation59_spill] sm:$0xff] }
  0xfc   : > { %v2290_v45 = vadd.f32 %v2258_v2, %v2222_v38  ;;  %v879_v47 = vmul.f32 %v13601_v37, %v13396_v54  ;;  %v979_v26 = vmul.f32 %v13605_v61, %v13398_v33  ;;  %v3402_v30 = vmul.f32 %v9230_v19, %v13612_v43  ;;  %v13614_v39 = vld [vmem:[#allocation35_spill] sm:$0xff]  ;;  %v9245_v2 = vld [vmem:[%s7967_s22 + $0xd9] sm:$0xff] }
  0xfd   : > { %v3029_v11 = vadd.f32 %v2997_v60, %v2929_v16  ;;  %v1618_v35 = vadd.f32 %v13613_v62, %v1579_v18  ;;  %v2494_v6 = vmul.f32 %v9233_v8, %v13614_v39  ;;  %v3833_v13 = vadd.f32 %v3801_v7, %v3733_v23  ;;  %13615 = vst [vmem:[#allocation40_spill] sm:$0xff] %v9245_v2  ;;  %v1855_v60 = vld [vmem:[%s7967_s22 + $0x92] sm:$0xff]  ;;  %v13619_v62 = vld [vmem:[#allocation30_spill] sm:$0xff] }
  0xfe   : > { %v2358_v57 = vadd.f32 %v2326_v1, %v2290_v45  ;;  %v911_v38 = vadd.f32 %v879_v47, %v779_v58  ;;  %v1079_v3 = vmul.f32 %v13608_v53, %v13616_v56  ;;  %v13617_v33 = vld [vmem:[#allocation29_spill] sm:$0xff]  ;;  %v1147_v7 = vmul.f32 %v9074_v59, %v13590_v34  ;;  %v13622_v53 = vld [vmem:[#allocation12_spill] sm:$0xff] }
  0xff   : > { %v3097_v16 = vadd.f32 %v3065_v44, %v3029_v11  ;;  %v3502_v19 = vmul.f32 %v9245_v2, %v13617_v33  ;;  %v13618_v18 = vld [vmem:[#allocation37_spill] sm:$0xff]  ;;  %3949 = vrot.lane.b32.xlu0 %v1618_v35, %s13115_s24  ;;  %v3872_v1 = vadd.f32 %v9070_v25, %v3833_v13  ;;  %v13621_v44 = vld [vmem:[#allocation44_spill] sm:$0xff] }
 0x100   : > { %v2594_v43 = vmul.f32 %v13619_v62, %v13618_v18  ;;  %v9260_v58 = vld [vmem:[%s7967_s22 + $0xda] sm:$0xff]  ;;  %v2426_v23 = vadd.f32 %v2394_v32, %v2358_v57  ;;  %v1011_v45 = vadd.f32 %v979_v26, %v911_v38  ;;  %v1691_v47 = vmul.f32 %v13621_v44, %v13592_v0  ;;  %v13624_v33 = vld [vmem:[#allocation24_spill] sm:$0xff]  ;;  %v13626_v26 = vld [vmem:[#allocation47_spill] sm:$0xff] }
 0x101   : > { %13620 = vst [vmem:[#allocation54_spill] sm:$0xff] %v9260_v58  ;;  %v1955_v11 = vld [vmem:[%s7967_s22 + $0x93] sm:$0xff]  ;;  %v3165_v8 = vadd.f32 %v3133_v28, %v3097_v16  ;;  %v3602_v62 = vmul.f32 %v9260_v58, %v13622_v53  ;;  %v13623_v18 = vld [vmem:[#allocation22_spill] sm:$0xff]  ;;  %v1891_v56 = vmul.f32 %v13624_v33, %v1855_v60  ;;  %4073 = vrot.lane.b32.xlu1 %v3872_v1, %s13113_s26  ;;  %v13630_v53 = vld [vmem:[#allocation23_spill] sm:$0xff] }
 0x102   : > { %v1791_v35 = vmul.f32 %v13623_v18, %v1755_v36  ;;  %v9271_v13 = vld [vmem:[%s7967_s22 + $0xdb] sm:$0xff]  ;;  %v2526_v32 = vadd.f32 %v2494_v6, %v2426_v23  ;;  %v2662_v57 = vmul.f32 %v13626_v26, %v13543_v63  ;;  %v1111_v38 = vadd.f32 %v1079_v3, %v1011_v45  ;;  %v13629_v18 = vld [vmem:[#allocation36_spill] sm:$0xff]  ;;  %v9288_v45 = vld [vmem:[%s7967_s22 + $0xa8] sm:$0xff] }
 0x103   : > { %13625 = vst [vmem:[#allocation33_spill] sm:$0xff] %v9271_v13  ;;  %v1247_v28 = vmul.f32 %v9085_v21, %v13461_v29  ;;  %v3233_v16 = vadd.f32 %v3201_v27, %v3165_v8  ;;  %v3702_v44 = vmul.f32 %v9271_v13, %v8349_v55  ;;  %v13627_v59 = vld [vmem:[#allocation25_spill] sm:$0xff]  ;;  %v2730_v6 = vmul.f32 %v13629_v18, %v13572_v12 }
 0x104   : > { %v1823_v36 = vadd.f32 %v1791_v35, %v1691_v47  ;;  %v1991_v60 = vmul.f32 %v13627_v59, %v1955_v11  ;;  %v9281_v33 = vld [vmem:[%s7967_s22 + $0xdc] sm:$0xff]  ;;  %v2626_v1 = vadd.f32 %v2594_v43, %v2526_v32  ;;  %v1179_v23 = vadd.f32 %v1147_v7, %v1111_v38  ;;  %13631 = vst [vmem:[#allocation53_spill] sm:$0xff] %v9288_v45  ;;  %v13632_v47 = vld [vmem:[#allocation20_spill] sm:$0xff]  ;;  %v13633_v43 = vld [vmem:[#allocation39_spill] sm:$0xff] }
 0x105   : > { %13628 = vst [vmem:[#allocation63_spill] sm:$0xff] %v9281_v33  ;;  %v1348_v3 = vmul.f32 %v9245_v2, %v13630_v53  ;;  %v3333_v21 = vadd.f32 %v3301_v31, %v3233_v16  ;;  %v3802_v27 = vmul.f32 %v9006_v40, %v9281_v33  ;;  %v2091_v11 = vmul.f32 %v13632_v47, %v8054_v42  ;;  %v13634_v2 = vld [vmem:[#allocation58_spill] sm:$0xff] }
 0x106   : > { %v1923_v8 = vadd.f32 %v1891_v56, %v1823_v36  ;;  %v2694_v35 = vadd.f32 %v2662_v57, %v2626_v1  ;;  %v2798_v32 = vmul.f32 %v13633_v43, %v13467_v50  ;;  %v1279_v59 = vadd.f32 %v1247_v28, %v1179_v23  ;;  %v13635_v36 = vld [vmem:[#allocation17_spill] sm:$0xff]  ;;  %v13636_v23 = vld [vmem:[#allocation26_spill] sm:$0xff] }
 0x107   : > { %v1448_v7 = vmul.f32 %v9260_v58, %v13359_v5  ;;  %v3434_v38 = vadd.f32 %v3402_v30, %v3333_v21  ;;  %v2898_v53 = vmul.f32 %v13634_v2, %v13385_v24  ;;  %v2191_v16 = vmul.f32 %v9288_v45, %v13443_v46 }
 0x108   : > { %v2023_v31 = vadd.f32 %v1991_v60, %v1923_v8  ;;  %v2762_v56 = vadd.f32 %v2730_v6, %v2694_v35  ;;  %v2998_v47 = vmul.f32 %v13635_v36, %v13387_v51  ;;  %v1380_v57 = vadd.f32 %v1348_v3, %v1279_v59  ;;  %v1756_v36 = vld [vmem:[%s7967_s22 + $0x99] sm:$0xff] }
 0x109   : > { %v1548_v1 = vmul.f32 %v8828_v22, %v9271_v13  ;;  %v3534_v28 = vadd.f32 %v3502_v19, %v3434_v38  ;;  %v3066_v33 = vmul.f32 %v13636_v23, %v13389_v9  ;;  %v2259_v30 = vmul.f32 %v13598_v14, %v13417_v15  ;;  %v13637_v19 = vld [vmem:[#allocation19_spill] sm:$0xff] }
 0x10a   : > { %v2123_v21 = vadd.f32 %v2091_v11, %v2023_v31  ;;  %v2830_v2 = vadd.f32 %v2798_v32, %v2762_v56  ;;  %v3134_v60 = vmul.f32 %v9167_v48, %v13447_v4  ;;  %v3202_v59 = vmul.f32 %v9178_v41, %v13420_v17 }
 0x10b   : > { %v1480_v6 = vadd.f32 %v1448_v7, %v1380_v57  ;;  %v3634_v3 = vadd.f32 %v3602_v62, %v3534_v28  ;;  %v3302_v8 = vmul.f32 %v13637_v19, %v13394_v49  ;;  %v2327_v11 = vmul.f32 %v13601_v37, %v13422_v10  ;;  %v9323_v62 = vld [vmem:[%s7967_s22 + $0xe0] sm:$0xff]  ;;  %v9326_v57 = vld [vmem:[%s7967_s22 + $0xac] sm:$0xff] }
 0x10c   : > { %v2223_v35 = vadd.f32 %v2191_v16, %v2123_v21  ;;  %v2930_v38 = vadd.f32 %v2898_v53, %v2830_v2  ;;  %v2395_v32 = vmul.f32 %v13605_v61, %v8110_v20  ;;  %v780_v31 = vmul.f32 %v13626_v26, %v13395_v52  ;;  %13638 = vst [vmem:[#allocation16_spill] sm:$0xff] %v9323_v62  ;;  %v13640_v16 = vld [vmem:[#allocation10_spill] sm:$0xff]  ;;  %v13641_v28 = vld [vmem:[#allocation59_spill] sm:$0xff]  ;;  %v13642_v21 = vld [vmem:[#allocation64_spill] sm:$0xff] }
 0x10d   : > { %v1580_v14 = vadd.f32 %v1548_v1, %v1480_v6  ;;  %v3734_v56 = vadd.f32 %v3702_v44, %v3634_v3  ;;  %13639 = vst [vmem:[#allocation62_spill] sm:$0xff] %v9326_v57  ;;  %v880_v37 = vmul.f32 %v13629_v18, %v13396_v54  ;;  %v980_v53 = vmul.f32 %v13633_v43, %v13640_v16  ;;  %v13644_v19 = vld [vmem:[#allocation11_spill] sm:$0xff]  ;;  %v13645_v16 = vld [vmem:[#allocation29_spill] sm:$0xff] }
 0x10e   : > { %v2291_v7 = vadd.f32 %v2259_v30, %v2223_v35  ;;  %v3030_v1 = vadd.f32 %v2998_v47, %v2930_v38  ;;  %v3403_v61 = vmul.f32 %v9323_v62, %v13641_v28  ;;  %v2495_v44 = vmul.f32 %v9326_v57, %v13614_v39  ;;  %v9338_v30 = vld [vmem:[%s7967_s22 + $0xe1] sm:$0xff] }
 0x10f   : > { %v1619_v2 = vadd.f32 %v13642_v21, %v1580_v14  ;;  %v3834_v6 = vadd.f32 %v3802_v27, %v3734_v56  ;;  %13643 = vst [vmem:[#allocation52_spill] sm:$0xff] %v9338_v30  ;;  %v912_v35 = vadd.f32 %v880_v37, %v780_v31  ;;  %v1080_v45 = vmul.f32 %v13636_v23, %v13644_v19  ;;  %v1856_v47 = vld [vmem:[%s7967_s22 + $0x9a] sm:$0xff]  ;;  %v13647_v21 = vld [vmem:[#allocation31_spill] sm:$0xff]  ;;  %v13650_v23 = vld [vmem:[#allocation12_spill] sm:$0xff] }
 0x110   : > { %v2359_v3 = vadd.f32 %v2327_v11, %v2291_v7  ;;  %v3098_v38 = vadd.f32 %v3066_v33, %v3030_v1  ;;  %v3503_v62 = vmul.f32 %v9338_v30, %v13645_v16  ;;  %v13646_v14 = vld [vmem:[#allocation37_spill] sm:$0xff]  ;;  %v1148_v27 = vmul.f32 %v9167_v48, %v13590_v34  ;;  %v9353_v31 = vld [vmem:[%s7967_s22 + $0xe2] sm:$0xff]  ;;  %v13652_v16 = vld [vmem:[#allocation24_spill] sm:$0xff] }
 0x111   : > { %v2595_v28 = vmul.f32 %v13647_v21, %v13646_v14  ;;  %3951 = vrot.lane.b32.xlu0 %v1619_v2, %s13115_s24  ;;  %v3873_v11 = vadd.f32 %v9070_v25, %v3834_v6  ;;  %13648 = vst [vmem:[#allocation43_spill] sm:$0xff] %v9353_v31  ;;  %v1012_v7 = vadd.f32 %v980_v53, %v912_v35  ;;  %v13649_v33 = vld [vmem:[#allocation38_spill] sm:$0xff]  ;;  %v13654_v53 = vld [vmem:[#allocation48_spill] sm:$0xff]  ;;  %v13655_v48 = vld [vmem:[#allocation25_spill] sm:$0xff] }
 0x112   : > { %v2427_v56 = vadd.f32 %v2395_v32, %v2359_v3  ;;  %v1692_v37 = vmul.f32 %v13649_v33, %v13592_v0  ;;  %v1956_v1 = vld [vmem:[%s7967_s22 + $0x9b] sm:$0xff]  ;;  %v3166_v57 = vadd.f32 %v3134_v60, %v3098_v38  ;;  %v3603_v21 = vmul.f32 %v9353_v31, %v13650_v23  ;;  %v9364_v6 = vld [vmem:[%s7967_s22 + $0xe3] sm:$0xff] }
 0x113   : > { %v13651_v14 = vld [vmem:[#allocation22_spill] sm:$0xff]  ;;  %v1892_v19 = vmul.f32 %v13652_v16, %v1856_v47  ;;  %4075 = vrot.lane.b32.xlu1 %v3873_v11, %s13113_s26  ;;  %13653 = vst [vmem:[#allocation45_spill] sm:$0xff] %v9364_v6  ;;  %v2663_v3 = vmul.f32 %v13654_v53, %v13543_v63  ;;  %v1112_v35 = vadd.f32 %v1080_v45, %v1012_v7  ;;  %v13658_v23 = vld [vmem:[#allocation23_spill] sm:$0xff]  ;;  %v9381_v7 = vld [vmem:[%s7967_s22 + $0xb0] sm:$0xff] }
 0x114   : > { %v1792_v2 = vmul.f32 %v13651_v14, %v1756_v36  ;;  %v2527_v32 = vadd.f32 %v2495_v44, %v2427_v56  ;;  %v1248_v60 = vmul.f32 %v9178_v41, %v13461_v29  ;;  %v3234_v38 = vadd.f32 %v3202_v59, %v3166_v57  ;;  %v9374_v16 = vld [vmem:[%s7967_s22 + $0xe4] sm:$0xff]  ;;  %v13657_v14 = vld [vmem:[#allocation49_spill] sm:$0xff]  ;;  %13659 = vst [vmem:[#allocation41_spill] sm:$0xff] %v9381_v7 }
 0x115   : > { %v3703_v33 = vmul.f32 %v9364_v6, %v8349_v55  ;;  %v1992_v47 = vmul.f32 %v13655_v48, %v1956_v1  ;;  %13656 = vst [vmem:[#allocation46_spill] sm:$0xff] %v9374_v16  ;;  %v2731_v44 = vmul.f32 %v13657_v14, %v13572_v12  ;;  %v1180_v56 = vadd.f32 %v1148_v27, %v1112_v35 }
 0x116   : > { %v1824_v36 = vadd.f32 %v1792_v2, %v1692_v37  ;;  %v2627_v11 = vadd.f32 %v2595_v28, %v2527_v32  ;;  %v1349_v45 = vmul.f32 %v9338_v30, %v13658_v23  ;;  %v3334_v41 = vadd.f32 %v3302_v8, %v3234_v38  ;;  %v13660_v37 = vld [vmem:[#allocation32_spill] sm:$0xff]  ;;  %v13661_v28 = vld [vmem:[#allocation50_spill] sm:$0xff] }
 0x117   : > { %v3803_v59 = vmul.f32 %v9006_v40, %v9374_v16  ;;  %v2092_v1 = vmul.f32 %v13660_v37, %v8054_v42  ;;  %v2799_v32 = vmul.f32 %v13661_v28, %v13467_v50  ;;  %v1280_v48 = vadd.f32 %v1248_v60, %v1180_v56  ;;  %v13662_v30 = vld [vmem:[#allocation60_spill] sm:$0xff] }
 0x118   : > { %v1924_v57 = vadd.f32 %v1892_v19, %v1824_v36  ;;  %v2695_v2 = vadd.f32 %v2663_v3, %v2627_v11  ;;  %v1449_v27 = vmul.f32 %v9353_v31, %v13359_v5  ;;  %v3435_v35 = vadd.f32 %v3403_v61, %v3334_v41  ;;  %v13663_v36 = vld [vmem:[#allocation57_spill] sm:$0xff]  ;;  %v13664_v56 = vld [vmem:[#allocation40_spill] sm:$0xff] }
 0x119   : > { %v2899_v23 = vmul.f32 %v13662_v30, %v13385_v24  ;;  %v2192_v38 = vmul.f32 %v9381_v7, %v13443_v46  ;;  %v2999_v37 = vmul.f32 %v13663_v36, %v13387_v51  ;;  %v1381_v3 = vadd.f32 %v1349_v45, %v1280_v48  ;;  %v1757_v7 = vld [vmem:[%s7967_s22 + $0xa9] sm:$0xff]  ;;  %v13673_v36 = vld [vmem:[#allocation29_spill] sm:$0xff] }
 0x11a   : > { %v2024_v8 = vadd.f32 %v1992_v47, %v1924_v57  ;;  %v2763_v19 = vadd.f32 %v2731_v44, %v2695_v2  ;;  %v1549_v11 = vmul.f32 %v8828_v22, %v9364_v6  ;;  %v3535_v60 = vadd.f32 %v3503_v62, %v3435_v35  ;;  %v13665_v22 = vld [vmem:[#allocation63_spill] sm:$0xff] }
 0x11b   : > { %v3067_v16 = vmul.f32 %v13664_v56, %v13389_v9  ;;  %v2260_v61 = vmul.f32 %v13626_v26, %v13417_v15  ;;  %v3135_v47 = vmul.f32 %v9260_v58, %v13447_v4  ;;  %v3203_v48 = vmul.f32 %v9271_v13, %v13420_v17 }
 0x11c   : > { %v2124_v41 = vadd.f32 %v2092_v1, %v2024_v8  ;;  %v2831_v30 = vadd.f32 %v2799_v32, %v2763_v19  ;;  %v1481_v44 = vadd.f32 %v1449_v27, %v1381_v3  ;;  %v3635_v45 = vadd.f32 %v3603_v21, %v3535_v60  ;;  %v9416_v21 = vld [vmem:[%s7967_s22 + $0xf0] sm:$0xff] }
 0x11d   : > { %v3303_v62 = vmul.f32 %v13665_v22, %v13394_v49  ;;  %v2328_v1 = vmul.f32 %v13629_v18, %v13422_v10  ;;  %v2396_v32 = vmul.f32 %v13633_v43, %v8110_v20  ;;  %v781_v35 = vmul.f32 %v13654_v53, %v13395_v52  ;;  %13666 = vst [vmem:[#allocation28_spill] sm:$0xff] %v9416_v21  ;;  %v9419_v19 = vld [vmem:[%s7967_s22 + $0xb4] sm:$0xff] }
 0x11e   : > { %v2224_v57 = vadd.f32 %v2192_v38, %v2124_v41  ;;  %v2931_v2 = vadd.f32 %v2899_v23, %v2831_v30  ;;  %v1581_v26 = vadd.f32 %v1549_v11, %v1481_v44  ;;  %v3735_v8 = vadd.f32 %v3703_v33, %v3635_v45  ;;  %13667 = vst [vmem:[#allocation65_spill] sm:$0xff] %v9419_v19  ;;  %v13668_v38 = vld [vmem:[#allocation10_spill] sm:$0xff]  ;;  %v13669_v11 = vld [vmem:[#allocation59_spill] sm:$0xff]  ;;  %v13670_v60 = vld [vmem:[#allocation64_spill] sm:$0xff] }
 0x11f   : > { %v881_v18 = vmul.f32 %v13657_v14, %v13396_v54  ;;  %v981_v23 = vmul.f32 %v13661_v28, %v13668_v38  ;;  %v3404_v43 = vmul.f32 %v9416_v21, %v13669_v11  ;;  %v2496_v33 = vmul.f32 %v9419_v19, %v13614_v39 }
 0x120   : > { %v2292_v27 = vadd.f32 %v2260_v61, %v2224_v57  ;;  %v3031_v3 = vadd.f32 %v2999_v37, %v2931_v2  ;;  %v1620_v41 = vadd.f32 %v13670_v60, %v1581_v26  ;;  %v3835_v30 = vadd.f32 %v3803_v59, %v3735_v8  ;;  %v9431_v61 = vld [vmem:[%s7967_s22 + $0xf1] sm:$0xff]  ;;  %v13672_v57 = vld [vmem:[#allocation11_spill] sm:$0xff] }
 0x121   : > { %13671 = vst [vmem:[#allocation61_spill] sm:$0xff] %v9431_v61  ;;  %v913_v45 = vadd.f32 %v881_v18, %v781_v35  ;;  %v1081_v22 = vmul.f32 %v13664_v56, %v13672_v57  ;;  %v1857_v37 = vld [vmem:[%s7967_s22 + $0xaa] sm:$0xff]  ;;  %v3504_v21 = vmul.f32 %v9431_v61, %v13673_v36  ;;  %v13674_v26 = vld [vmem:[#allocation37_spill] sm:$0xff]  ;;  %v1149_v59 = vmul.f32 %v9260_v58, %v13590_v34 }
 0x122   : > { %v2360_v44 = vadd.f32 %v2328_v1, %v2292_v27  ;;  %v3099_v2 = vadd.f32 %v3067_v16, %v3031_v3  ;;  %v13675_v60 = vld [vmem:[#allocation17_spill] sm:$0xff]  ;;  %3953 = vrot.lane.b32.xlu0 %v1620_v41, %s13115_s24  ;;  %v3874_v1 = vadd.f32 %v9070_v25, %v3835_v30  ;;  %v1957_v3 = vld [vmem:[%s7967_s22 + $0xab] sm:$0xff] }
 0x123   : > { %v2596_v11 = vmul.f32 %v13675_v60, %v13674_v26  ;;  %v9446_v35 = vld [vmem:[%s7967_s22 + $0xf2] sm:$0xff]  ;;  %v1013_v27 = vadd.f32 %v981_v23, %v913_v45  ;;  %v13679_v26 = vld [vmem:[#allocation22_spill] sm:$0xff] }
 0x124   : > { %13676 = vst [vmem:[#allocation51_spill] sm:$0xff] %v9446_v35  ;;  %v2428_v8 = vadd.f32 %v2396_v32, %v2360_v44  ;;  %v13677_v16 = vld [vmem:[#allocation53_spill] sm:$0xff]  ;;  %v3167_v19 = vadd.f32 %v3135_v47, %v3099_v2  ;;  %v13678_v56 = vld [vmem:[#allocation12_spill] sm:$0xff]  ;;  %v1793_v41 = vmul.f32 %v13679_v26, %v1757_v7  ;;  %4077 = vrot.lane.b32.xlu1 %v3874_v1, %s13113_s26  ;;  %v13682_v23 = vld [vmem:[#allocation26_spill] sm:$0xff] }
 0x125   : > { %v1693_v18 = vmul.f32 %v13677_v16, %v13592_v0  ;;  %v3604_v60 = vmul.f32 %v9446_v35, %v13678_v56  ;;  %v13680_v36 = vld [vmem:[#allocation24_spill] sm:$0xff]  ;;  %v2664_v44 = vmul.f32 %v13682_v23, %v13543_v63  ;;  %v1113_v45 = vadd.f32 %v1081_v22, %v1013_v27  ;;  %v13683_v58 = vld [vmem:[#allocation25_spill] sm:$0xff]  ;;  %v13686_v56 = vld [vmem:[#allocation23_spill] sm:$0xff] }
 0x126   : > { %v1893_v57 = vmul.f32 %v13680_v36, %v1857_v37  ;;  %v9457_v30 = vld [vmem:[%s7967_s22 + $0xf3] sm:$0xff]  ;;  %v2528_v32 = vadd.f32 %v2496_v33, %v2428_v8  ;;  %v1249_v47 = vmul.f32 %v9271_v13, %v13461_v29  ;;  %v3235_v2 = vadd.f32 %v3203_v48, %v3167_v19  ;;  %v9474_v27 = vld [vmem:[%s7967_s22 + $0xc0] sm:$0xff] }
 0x127   : > { %13681 = vst [vmem:[#allocation14_spill] sm:$0xff] %v9457_v30  ;;  %v3704_v16 = vmul.f32 %v9457_v30, %v8349_v55  ;;  %v1825_v7 = vadd.f32 %v1793_v41, %v1693_v18  ;;  %v1993_v37 = vmul.f32 %v13683_v58, %v1957_v3  ;;  %v9467_v36 = vld [vmem:[%s7967_s22 + $0xf4] sm:$0xff]  ;;  %v1181_v8 = vadd.f32 %v1149_v59, %v1113_v45  ;;  %v13688_v3 = vld [vmem:[#allocation62_spill] sm:$0xff] }
 0x128   : > { %13684 = vst [vmem:[#allocation30_spill] sm:$0xff] %v9467_v36  ;;  %v2628_v1 = vadd.f32 %v2596_v11, %v2528_v32  ;;  %v13685_v26 = vld [vmem:[#allocation56_spill] sm:$0xff]  ;;  %v1350_v22 = vmul.f32 %v9431_v61, %v13686_v56  ;;  %13687 = vst [vmem:[#allocation44_spill] sm:$0xff] %v9474_v27  ;;  %v3335_v48 = vadd.f32 %v3303_v62, %v3235_v2  ;;  %v13689_v11 = vld [vmem:[#allocation66_spill] sm:$0xff] }
 0x129   : > { %v2732_v33 = vmul.f32 %v13685_v26, %v13572_v12  ;;  %v3804_v19 = vmul.f32 %v9006_v40, %v9467_v36  ;;  %v1925_v18 = vadd.f32 %v1893_v57, %v1825_v7  ;;  %v2093_v41 = vmul.f32 %v13688_v3, %v8054_v42  ;;  %v13690_v61 = vld [vmem:[#allocation19_spill] sm:$0xff]  ;;  %v13691_v7 = vld [vmem:[#allocation16_spill] sm:$0xff] }
 0x12a   : > { %v2696_v13 = vadd.f32 %v2664_v44, %v2628_v1  ;;  %v2800_v32 = vmul.f32 %v13689_v11, %v13467_v50  ;;  %v1281_v12 = vadd.f32 %v1249_v47, %v1181_v8  ;;  %v1450_v59 = vmul.f32 %v9446_v35, %v13359_v5  ;;  %v9491_v1 = vld [vmem:[%s7950_s25 + $0x8] ss:$0 sm:$0xff] }
 0x12b   : > { %v3436_v45 = vadd.f32 %v3404_v43, %v3335_v48  ;;  %v2900_v56 = vmul.f32 %v13690_v61, %v13385_v24  ;;  %v2025_v62 = vadd.f32 %v1993_v37, %v1925_v18  ;;  %v2193_v2 = vmul.f32 %v9474_v27, %v13443_v46  ;;  %v13692_v43 = vld [vmem:[#allocation52_spill] sm:$0xff] }
 0x12c   : > { %v2764_v57 = vadd.f32 %v2732_v33, %v2696_v13  ;;  %v3000_v3 = vmul.f32 %v13691_v7, %v13387_v51  ;;  %v1382_v44 = vadd.f32 %v1350_v22, %v1281_v12  ;;  %v1550_v47 = vmul.f32 %v9491_v1, %v9457_v30 }
 0x12d   : > { %v3536_v8 = vadd.f32 %v3504_v21, %v3436_v45  ;;  %v3068_v48 = vmul.f32 %v13692_v43, %v13389_v9  ;;  %v2125_v61 = vadd.f32 %v2093_v41, %v2025_v62  ;;  %v2261_v37 = vmul.f32 %v13654_v53, %v13417_v15  ;;  %v13693_v21 = vld [vmem:[#allocation46_spill] sm:$0xff] }
 0x12e   : > { %v2832_v13 = vadd.f32 %v2800_v32, %v2764_v57  ;;  %v3136_v33 = vmul.f32 %v9353_v31, %v13447_v4  ;;  %v3204_v12 = vmul.f32 %v9364_v6, %v13420_v17  ;;  %v1482_v22 = vadd.f32 %v1450_v59, %v1382_v44  ;;  %v9515_v44 = vld [vmem:[%s7967_s22 + $0xc4] sm:$0xff] }
 0x12f   : > { %v3636_v18 = vadd.f32 %v3604_v60, %v3536_v8  ;;  %v3304_v45 = vmul.f32 %v13693_v21, %v13394_v49  ;;  %v2225_v27 = vadd.f32 %v2193_v2, %v2125_v61  ;;  %v2329_v41 = vmul.f32 %v13657_v14, %v13422_v10  ;;  %v9512_v60 = vld [vmem:[%s7967_s22 + $0xf8] sm:$0xff]  ;;  %13695 = vst [vmem:[#allocation36_spill] sm:$0xff] %v9515_v44  ;;  %v9524_v8 = vld [vmem:[%s8104_s27] ss:$0 sm:$0xff] }
 0x130   : > { %v2932_v62 = vadd.f32 %v2900_v56, %v2832_v13  ;;  %v1582_v53 = vadd.f32 %v1550_v47, %v1482_v22  ;;  %v2397_v32 = vmul.f32 %v13661_v28, %v8110_v20  ;;  %v782_v57 = vmul.f32 %v13682_v23, %v13395_v52  ;;  %13694 = vst [vmem:[#allocation47_spill] sm:$0xff] %v9512_v60  ;;  %v13696_v47 = vld [vmem:[#allocation59_spill] sm:$0xff]  ;;  %v1858_v21 = vld [vmem:[%s7967_s22 + $0xb2] sm:$0xff] }
 0x131   : > { %v3736_v7 = vadd.f32 %v3704_v16, %v3636_v18  ;;  %v2293_v59 = vadd.f32 %v2261_v37, %v2225_v27  ;;  %v882_v14 = vmul.f32 %v13685_v26, %v13396_v54  ;;  %v982_v56 = vmul.f32 %v13689_v11, %v13668_v38  ;;  %13697 = vst [vmem:[#allocation20_spill] sm:$0xff] %v9524_v8  ;;  %v9530_v37 = vld [vmem:[%s7967_s22 + $0xf9] sm:$0xff]  ;;  %v13699_v18 = vld [vmem:[#allocation11_spill] sm:$0xff] }
 0x132   : > { %v3032_v2 = vadd.f32 %v3000_v3, %v2932_v62  ;;  %v3405_v28 = vmul.f32 %v9512_v60, %v13696_v47  ;;  %v1621_v16 = vadd.f32 %v9524_v8, %v1582_v53  ;;  %v2497_v27 = vmul.f32 %v9515_v44, %v13614_v39  ;;  %13698 = vst [vmem:[#allocation39_spill] sm:$0xff] %v9530_v37  ;;  %v1758_v62 = vld [vmem:[%s7967_s22 + $0xb1] sm:$0xff] }
 0x133   : > { %v3836_v61 = vadd.f32 %v3804_v19, %v3736_v7  ;;  %v2361_v13 = vadd.f32 %v2329_v41, %v2293_v59  ;;  %v914_v22 = vadd.f32 %v882_v14, %v782_v57  ;;  %v1082_v3 = vmul.f32 %v13692_v43, %v13699_v18  ;;  %v13700_v47 = vld [vmem:[#allocation29_spill] sm:$0xff]  ;;  %v13705_v43 = vld [vmem:[#allocation12_spill] sm:$0xff] }
 0x134   : > { %v3100_v60 = vadd.f32 %v3068_v48, %v3032_v2  ;;  %v3505_v38 = vmul.f32 %v9530_v37, %v13700_v47  ;;  %v13701_v53 = vld [vmem:[#allocation37_spill] sm:$0xff]  ;;  %3955 = vrot.lane.b32.xlu0 %v1621_v16, %s13115_s24  ;;  %v1150_v19 = vmul.f32 %v9353_v31, %v13590_v34  ;;  %v13707_v47 = vld [vmem:[#allocation24_spill] sm:$0xff] }
 0x135   : > { %v13702_v8 = vld [vmem:[#allocation57_spill] sm:$0xff]  ;;  %v3875_v7 = vadd.f32 %v9070_v25, %v3836_v61  ;;  %v2429_v57 = vadd.f32 %v2397_v32, %v2361_v13  ;;  %v1014_v59 = vadd.f32 %v982_v56, %v914_v22  ;;  %v1894_v18 = vmul.f32 %v13707_v47, %v1858_v21  ;;  %v13709_v56 = vld [vmem:[#allocation40_spill] sm:$0xff]  ;;  %v13711_v47 = vld [vmem:[#allocation42_spill] sm:$0xff] }
 0x136   : > { %v2597_v54 = vmul.f32 %v13702_v8, %v13701_v53  ;;  %v9545_v41 = vld [vmem:[%s7967_s22 + $0xfa] sm:$0xff]  ;;  %v3168_v44 = vadd.f32 %v3136_v33, %v3100_v60  ;;  %v2665_v13 = vmul.f32 %v13709_v56, %v13543_v63  ;;  %v1250_v33 = vmul.f32 %v9364_v6, %v13461_v29 }
 0x137   : > { %13703 = vst [vmem:[#allocation58_spill] sm:$0xff] %v9545_v41  ;;  %v13704_v48 = vld [vmem:[#allocation41_spill] sm:$0xff]  ;;  %v3605_v8 = vmul.f32 %v9545_v41, %v13705_v43  ;;  %v13706_v53 = vld [vmem:[#allocation22_spill] sm:$0xff]  ;;  %4079 = vrot.lane.b32.xlu1 %v3875_v7, %s13113_s26  ;;  %v2529_v32 = vadd.f32 %v2497_v27, %v2429_v57  ;;  %v1114_v22 = vadd.f32 %v1082_v3, %v1014_v59  ;;  %v13713_v43 = vld [vmem:[#allocation23_spill] sm:$0xff] }
 0x138   : > { %v1694_v14 = vmul.f32 %v13704_v48, %v13592_v0  ;;  %v1958_v2 = vld [vmem:[%s7967_s22 + $0xb3] sm:$0xff]  ;;  %v1794_v16 = vmul.f32 %v13706_v53, %v1758_v62  ;;  %v9556_v61 = vld [vmem:[%s7967_s22 + $0xfb] sm:$0xff]  ;;  %v3236_v60 = vadd.f32 %v3204_v12, %v3168_v44  ;;  %v1351_v3 = vmul.f32 %v9530_v37, %v13713_v43  ;;  %v9573_v59 = vld [vmem:[%s7967_s22 + $0xc8] sm:$0xff] }
 0x139   : > { %13708 = vst [vmem:[#allocation31_spill] sm:$0xff] %v9556_v61  ;;  %v3705_v48 = vmul.f32 %v9556_v61, %v8349_v55  ;;  %v1994_v21 = vmul.f32 %v13683_v58, %v1958_v2  ;;  %v9566_v31 = vld [vmem:[%s7967_s22 + $0xfc] sm:$0xff]  ;;  %v2629_v7 = vadd.f32 %v2597_v54, %v2529_v32  ;;  %v1182_v57 = vadd.f32 %v1150_v19, %v1114_v22  ;;  %v13717_v37 = vld [vmem:[#allocation63_spill] sm:$0xff] }
 0x13a   : > { %v1826_v62 = vadd.f32 %v1794_v16, %v1694_v14  ;;  %13710 = vst [vmem:[#allocation38_spill] sm:$0xff] %v9566_v31  ;;  %v13712_v53 = vld [vmem:[#allocation54_spill] sm:$0xff]  ;;  %13714 = vst [vmem:[#allocation48_spill] sm:$0xff] %v9573_v59  ;;  %v3336_v6 = vadd.f32 %v3304_v45, %v3236_v60  ;;  %v3805_v12 = vmul.f32 %v9006_v40, %v9566_v31  ;;  %v13715_v14 = vld [vmem:[#allocation65_spill] sm:$0xff] }
 0x13b   : > { %v2733_v27 = vmul.f32 %v13712_v53, %v13711_v47  ;;  %v2094_v2 = vmul.f32 %v13715_v14, %v8054_v42  ;;  %v2697_v16 = vadd.f32 %v2665_v13, %v2629_v7  ;;  %v13716_v54 = vld [vmem:[#allocation33_spill] sm:$0xff]  ;;  %v1282_v58 = vadd.f32 %v1250_v33, %v1182_v57  ;;  %v13718_v60 = vld [vmem:[#allocation28_spill] sm:$0xff] }
 0x13c   : > { %v1926_v44 = vadd.f32 %v1894_v18, %v1826_v62  ;;  %v2801_v32 = vmul.f32 %v13716_v54, %v13467_v50  ;;  %v1451_v19 = vmul.f32 %v9545_v41, %v13359_v5  ;;  %v3437_v22 = vadd.f32 %v3405_v28, %v3336_v6  ;;  %v13719_v57 = vld [vmem:[#allocation61_spill] sm:$0xff] }
 0x13d   : > { %v2901_v43 = vmul.f32 %v13717_v37, %v13385_v24  ;;  %v2194_v40 = vmul.f32 %v9573_v59, %v13443_v46  ;;  %v2765_v18 = vadd.f32 %v2733_v27, %v2697_v16  ;;  %v3001_v62 = vmul.f32 %v13718_v60, %v13387_v51  ;;  %v1759_v60 = vld [vmem:[%s7967_s22 + $0xc1] sm:$0xff] }
 0x13e   : > { %v2026_v45 = vadd.f32 %v1994_v21, %v1926_v44  ;;  %v1383_v13 = vadd.f32 %v1351_v3, %v1282_v58  ;;  %v1551_v7 = vmul.f32 %v9491_v1, %v9556_v61  ;;  %v3537_v33 = vadd.f32 %v3505_v38, %v3437_v22 }
 0x13f   : > { %v3069_v14 = vmul.f32 %v13719_v57, %v13389_v9  ;;  %v2262_v28 = vmul.f32 %v13682_v23, %v13417_v15  ;;  %v2833_v37 = vadd.f32 %v2801_v32, %v2765_v18  ;;  %v3137_v21 = vmul.f32 %v9446_v35, %v13447_v4  ;;  %v9611_v18 = vld [vmem:[%s7967_s22 + $0xcc] sm:$0xff] }
 0x140   : > { %v2126_v6 = vadd.f32 %v2094_v2, %v2026_v45  ;;  %v3205_v58 = vmul.f32 %v9457_v30, %v13420_v17  ;;  %v1483_v27 = vadd.f32 %v1451_v19, %v1383_v13  ;;  %v3637_v3 = vadd.f32 %v3605_v8, %v3537_v33  ;;  %v9608_v8 = vld [vmem:[%s7967_s22 + $0x108] sm:$0xff]  ;;  %13721 = vst [vmem:[#allocation32_spill] sm:$0xff] %v9611_v18  ;;  %v13723_v13 = vld [vmem:[#allocation10_spill] sm:$0xff] }
 0x141   : > { %v3305_v38 = vmul.f32 %v9467_v36, %v13394_v49  ;;  %v2330_v2 = vmul.f32 %v13685_v26, %v13422_v10  ;;  %v2933_v16 = vadd.f32 %v2901_v43, %v2833_v37  ;;  %v2398_v32 = vmul.f32 %v13689_v11, %v8110_v20  ;;  %13720 = vst [vmem:[#allocation49_spill] sm:$0xff] %v9608_v8  ;;  %v13724_v33 = vld [vmem:[#allocation59_spill] sm:$0xff] }
 0x142   : > { %v2226_v44 = vadd.f32 %v2194_v40, %v2126_v6  ;;  %v1583_v23 = vadd.f32 %v1551_v7, %v1483_v27  ;;  %v783_v22 = vmul.f32 %v13709_v56, %v13395_v52  ;;  %v3737_v45 = vadd.f32 %v3705_v48, %v3637_v3  ;;  %v13722_v40 = vld [vmem:[#allocation9_spill] sm:$0xff]  ;;  %v13725_v6 = vld [vmem:[#allocation20_spill] sm:$0xff]  ;;  %v13727_v36 = vld [vmem:[#allocation11_spill] sm:$0xff] }
 0x143   : > { %v883_v26 = vmul.f32 %v13712_v53, %v13722_v40  ;;  %v983_v43 = vmul.f32 %v13716_v54, %v13723_v13  ;;  %v3033_v7 = vadd.f32 %v3001_v62, %v2933_v16  ;;  %v3406_v11 = vmul.f32 %v9608_v8, %v13724_v33  ;;  %v1859_v62 = vld [vmem:[%s7967_s22 + $0xc2] sm:$0xff]  ;;  %v13728_v13 = vld [vmem:[#allocation29_spill] sm:$0xff] }
 0x144   : > { %v2294_v19 = vadd.f32 %v2262_v28, %v2226_v44  ;;  %v1622_v37 = vadd.f32 %v13725_v6, %v1583_v23  ;;  %v2498_v48 = vmul.f32 %v9611_v18, %v13614_v39  ;;  %v3837_v27 = vadd.f32 %v3805_v12, %v3737_v45  ;;  %v9623_v28 = vld [vmem:[%s7967_s22 + $0x109] sm:$0xff]  ;;  %v13729_v23 = vld [vmem:[#allocation37_spill] sm:$0xff] }
 0x145   : > { %13726 = vst [vmem:[#allocation50_spill] sm:$0xff] %v9623_v28  ;;  %v915_v44 = vadd.f32 %v883_v26, %v783_v22  ;;  %v1083_v59 = vmul.f32 %v13719_v57, %v13727_v36  ;;  %v3101_v16 = vadd.f32 %v3069_v14, %v3033_v7  ;;  %v3506_v8 = vmul.f32 %v9623_v28, %v13728_v13  ;;  %v13730_v6 = vld [vmem:[#allocation16_spill] sm:$0xff]  ;;  %v1959_v7 = vld [vmem:[%s7967_s22 + $0xc3] sm:$0xff] }
 0x146   : > { %v2362_v3 = vadd.f32 %v2330_v2, %v2294_v19  ;;  %v2598_v33 = vmul.f32 %v13730_v6, %v13729_v23  ;;  %3957 = vrot.lane.b32.xlu0 %v1622_v37, %s13115_s24  ;;  %v1151_v12 = vmul.f32 %v9446_v35, %v13590_v34  ;;  %v3876_v2 = vadd.f32 %v9070_v25, %v3837_v27  ;;  %v9638_v22 = vld [vmem:[%s7967_s22 + $0x10a] sm:$0xff]  ;;  %v13734_v23 = vld [vmem:[#allocation22_spill] sm:$0xff] }
 0x147   : > { %13731 = vst [vmem:[#allocation60_spill] sm:$0xff] %v9638_v22  ;;  %v1015_v19 = vadd.f32 %v983_v43, %v915_v44  ;;  %v13732_v14 = vld [vmem:[#allocation44_spill] sm:$0xff]  ;;  %v3169_v18 = vadd.f32 %v3137_v21, %v3101_v16  ;;  %v1795_v37 = vmul.f32 %v13734_v23, %v1759_v60  ;;  %v1251_v21 = vmul.f32 %v9457_v30, %v13461_v29  ;;  %v13741_v23 = vld [vmem:[#allocation23_spill] sm:$0xff] }
 0x148   : > { %v2430_v45 = vadd.f32 %v2398_v32, %v2362_v3  ;;  %v1695_v26 = vmul.f32 %v13732_v14, %v13592_v0  ;;  %v13733_v57 = vld [vmem:[#allocation12_spill] sm:$0xff]  ;;  %4081 = vrot.lane.b32.xlu1 %v3876_v2, %s13113_s26 }
 0x149   : > { %v3606_v6 = vmul.f32 %v9638_v22, %v13733_v57  ;;  %v13735_v13 = vld [vmem:[#allocation24_spill] sm:$0xff]  ;;  %v1115_v3 = vadd.f32 %v1083_v59, %v1015_v19  ;;  %v3237_v44 = vadd.f32 %v3205_v58, %v3169_v18  ;;  %v1352_v59 = vmul.f32 %v9623_v28, %v13741_v23  ;;  %v9666_v19 = vld [vmem:[%s7967_s22 + $0xd8] sm:$0xff] }
 0x14a   : > { %v1895_v36 = vmul.f32 %v13735_v13, %v1859_v62  ;;  %v9649_v25 = vld [vmem:[%s7967_s22 + $0x10b] sm:$0xff]  ;;  %v2530_v32 = vadd.f32 %v2498_v48, %v2430_v45  ;;  %v1827_v16 = vadd.f32 %v1795_v37, %v1695_v26  ;;  %v13738_v62 = vld [vmem:[#allocation25_spill] sm:$0xff]  ;;  %13742 = vst [vmem:[#allocation53_spill] sm:$0xff] %v9666_v19 }
 0x14b   : > { %13736 = vst [vmem:[#allocation64_spill] sm:$0xff] %v9649_v25  ;;  %v13737_v43 = vld [vmem:[#allocation52_spill] sm:$0xff]  ;;  %v3706_v60 = vmul.f32 %v9649_v25, %v8349_v55  ;;  %v1995_v14 = vmul.f32 %v13738_v62, %v1959_v7  ;;  %v13740_v13 = vld [vmem:[#allocation43_spill] sm:$0xff]  ;;  %v1183_v45 = vadd.f32 %v1151_v12, %v1115_v3  ;;  %v3337_v30 = vadd.f32 %v3305_v38, %v3237_v44  ;;  %v9669_v58 = vld [vmem:[%s7972_s28 + $0x18] ss:$0 sm:$0xff] }
 0x14c   : > { %v2666_v27 = vmul.f32 %v13737_v43, %v13543_v63  ;;  %v9659_v35 = vld [vmem:[%s7967_s22 + $0x10c] sm:$0xff]  ;;  %v2630_v2 = vadd.f32 %v2598_v33, %v2530_v32  ;;  %v2734_v48 = vmul.f32 %v13740_v13, %v13711_v47  ;;  %v1927_v26 = vadd.f32 %v1895_v36, %v1827_v16  ;;  %v13744_v32 = vld [vmem:[#allocation45_spill] sm:$0xff]  ;;  %v13745_v38 = vld [vmem:[#allocation46_spill] sm:$0xff] }
 0x14d   : > { %13739 = vst [vmem:[#allocation17_spill] sm:$0xff] %v9659_v35  ;;  %v3806_v18 = vmul.f32 %v9669_v58, %v9659_v35  ;;  %v13743_v7 = vld [vmem:[#allocation36_spill] sm:$0xff]  ;;  %v2802_v47 = vmul.f32 %v13744_v32, %v13467_v50  ;;  %v1283_v12 = vadd.f32 %v1251_v21, %v1183_v45  ;;  %v1452_v3 = vmul.f32 %v9638_v22, %v13359_v5  ;;  %v13746_v16 = vld [vmem:[#allocation47_spill] sm:$0xff] }
 0x14e   : > { %v2095_v37 = vmul.f32 %v13743_v7, %v8054_v42  ;;  %v2698_v33 = vadd.f32 %v2666_v27, %v2630_v2  ;;  %v3438_v28 = vadd.f32 %v3406_v11, %v3337_v30  ;;  %v2902_v44 = vmul.f32 %v13745_v38, %v13385_v24  ;;  %v13747_v45 = vld [vmem:[#allocation39_spill] sm:$0xff] }
 0x14f   : > { %v2027_v23 = vadd.f32 %v1995_v14, %v1927_v26  ;;  %v2195_v35 = vmul.f32 %v9666_v19, %v13443_v46  ;;  %v3002_v7 = vmul.f32 %v13746_v16, %v13387_v51  ;;  %v1384_v27 = vadd.f32 %v1352_v59, %v1283_v12  ;;  %v13755_v16 = vld [vmem:[#allocation29_spill] sm:$0xff] }
 0x150   : > { %v2766_v36 = vadd.f32 %v2734_v48, %v2698_v33  ;;  %v1552_v2 = vmul.f32 %v9491_v1, %v9649_v25  ;;  %v3538_v21 = vadd.f32 %v3506_v8, %v3438_v28  ;;  %v3070_v22 = vmul.f32 %v13747_v45, %v13389_v9 }
 0x151   : > { %v2127_v30 = vadd.f32 %v2095_v37, %v2027_v23  ;;  %v2263_v11 = vmul.f32 %v13709_v56, %v13417_v15  ;;  %v3138_v48 = vmul.f32 %v9545_v41, %v13447_v4  ;;  %v3206_v59 = vmul.f32 %v9556_v61, %v13420_v17 }
 0x152   : > { %v2834_v14 = vadd.f32 %v2802_v47, %v2766_v36  ;;  %v1484_v26 = vadd.f32 %v1452_v3, %v1384_v27  ;;  %v3638_v33 = vadd.f32 %v3606_v6, %v3538_v21  ;;  %v3306_v8 = vmul.f32 %v9566_v31, %v13394_v49  ;;  %v9704_v6 = vld [vmem:[%s7967_s22 + $0x110] sm:$0xff]  ;;  %v9707_v36 = vld [vmem:[%s7967_s22 + $0xdc] sm:$0xff] }
 0x153   : > { %v2227_v28 = vadd.f32 %v2195_v35, %v2127_v30  ;;  %v2331_v23 = vmul.f32 %v13712_v53, %v13422_v10  ;;  %v2399_v47 = vmul.f32 %v13716_v54, %v8110_v20  ;;  %v784_v12 = vmul.f32 %v13737_v43, %v13395_v52  ;;  %13748 = vst [vmem:[#allocation26_spill] sm:$0xff] %v9704_v6  ;;  %v13750_v53 = vld [vmem:[#allocation10_spill] sm:$0xff]  ;;  %v13752_v21 = vld [vmem:[#allocation20_spill] sm:$0xff] }
 0x154   : > { %v2934_v37 = vadd.f32 %v2902_v44, %v2834_v14  ;;  %v1584_v56 = vadd.f32 %v1552_v2, %v1484_v26  ;;  %v3738_v38 = vadd.f32 %v3706_v60, %v3638_v33  ;;  %13749 = vst [vmem:[#allocation56_spill] sm:$0xff] %v9707_v36  ;;  %v884_v35 = vmul.f32 %v13740_v13, %v13722_v40  ;;  %v13751_v2 = vld [vmem:[#allocation59_spill] sm:$0xff]  ;;  %v9719_v14 = vld [vmem:[%s7967_s22 + $0x111] sm:$0xff] }
 0x155   : > { %v2295_v3 = vadd.f32 %v2263_v11, %v2227_v28  ;;  %v984_v44 = vmul.f32 %v13744_v32, %v13750_v53  ;;  %v3407_v54 = vmul.f32 %v9704_v6, %v13751_v2  ;;  %v2499_v60 = vmul.f32 %v9707_v36, %v13614_v39  ;;  %13753 = vst [vmem:[#allocation62_spill] sm:$0xff] %v9719_v14  ;;  %v13754_v28 = vld [vmem:[#allocation11_spill] sm:$0xff] }
 0x156   : > { %v3034_v27 = vadd.f32 %v3002_v7, %v2934_v37  ;;  %v1623_v30 = vadd.f32 %v13752_v21, %v1584_v56  ;;  %v3838_v11 = vadd.f32 %v3806_v18, %v3738_v38  ;;  %v916_v33 = vadd.f32 %v884_v35, %v784_v12  ;;  %v1760_v7 = vld [vmem:[%s7967_s22 + $0xc9] sm:$0xff]  ;;  %v13756_v56 = vld [vmem:[#allocation37_spill] sm:$0xff] }
 0x157   : > { %v2363_v26 = vadd.f32 %v2331_v23, %v2295_v3  ;;  %v1084_v31 = vmul.f32 %v13747_v45, %v13754_v28  ;;  %v1860_v37 = vld [vmem:[%s7967_s22 + $0xca] sm:$0xff]  ;;  %v3507_v6 = vmul.f32 %v9719_v14, %v13755_v16  ;;  %v1152_v18 = vmul.f32 %v9545_v41, %v13590_v34  ;;  %v9733_v23 = vld [vmem:[%s8399_s23] ss:$0 sm:$0xff]  ;;  %v9737_v38 = vld [vmem:[%s7967_s22 + $0x112] sm:$0xff] }
 0x158   : > { %v3102_v19 = vadd.f32 %v3070_v22, %v3034_v27  ;;  %v13757_v21 = vld [vmem:[#allocation28_spill] sm:$0xff]  ;;  %3959 = vrot.lane.b32.xlu0 %v1623_v30, %s13115_s24  ;;  %v3877_v12 = vadd.f32 %v9733_v23, %v3838_v11  ;;  %13758 = vst [vmem:[#allocation66_spill] sm:$0xff] %v9737_v38  ;;  %v1016_v22 = vadd.f32 %v984_v44, %v916_v33  ;;  %v13760_v30 = vld [vmem:[#allocation22_spill] sm:$0xff]  ;;  %v13763_v44 = vld [vmem:[#allocation61_spill] sm:$0xff] }
 0x159   : > { %v2599_v2 = vmul.f32 %v13757_v21, %v13756_v56  ;;  %v2431_v3 = vadd.f32 %v2399_v47, %v2363_v26  ;;  %v13759_v35 = vld [vmem:[#allocation48_spill] sm:$0xff]  ;;  %v3607_v21 = vmul.f32 %v9737_v38, %v13733_v57  ;;  %v1796_v56 = vmul.f32 %v13760_v30, %v1760_v7  ;;  %v13765_v30 = vld [vmem:[#allocation42_spill] sm:$0xff]  ;;  %v13766_v57 = vld [vmem:[#allocation51_spill] sm:$0xff] }
 0x15a   : > { %v1696_v27 = vmul.f32 %v13759_v35, %v13592_v0  ;;  %v1960_v36 = vld [vmem:[%s7967_s22 + $0xcb] sm:$0xff]  ;;  %v3170_v45 = vadd.f32 %v3138_v48, %v3102_v19  ;;  %4083 = vrot.lane.b32.xlu1 %v3877_v12, %s13113_s26  ;;  %v9748_v11 = vld [vmem:[%s7967_s22 + $0x113] sm:$0xff]  ;;  %v2667_v26 = vmul.f32 %v13763_v44, %v13543_v63  ;;  %v1116_v33 = vadd.f32 %v1084_v31, %v1016_v22  ;;  %v9765_v22 = vld [vmem:[%s7967_s22 + $0xe0] sm:$0xff] }
 0x15b   : > { %v13761_v41 = vld [vmem:[#allocation24_spill] sm:$0xff]  ;;  %13762 = vst [vmem:[#allocation19_spill] sm:$0xff] %v9748_v11  ;;  %v2531_v47 = vadd.f32 %v2499_v60, %v2431_v3  ;;  %v1252_v19 = vmul.f32 %v9556_v61, %v13461_v29  ;;  %v3707_v35 = vmul.f32 %v9748_v11, %v8349_v55  ;;  %v2735_v60 = vmul.f32 %v13766_v57, %v13765_v30  ;;  %v13767_v0 = vld [vmem:[#allocation23_spill] sm:$0xff] }
 0x15c   : > { %v1896_v34 = vmul.f32 %v13761_v41, %v1860_v37  ;;  %v3238_v48 = vadd.f32 %v3206_v59, %v3170_v45  ;;  %v1828_v7 = vadd.f32 %v1796_v56, %v1696_v27  ;;  %v1996_v37 = vmul.f32 %v13738_v62, %v1960_v36  ;;  %v9758_v41 = vld [vmem:[%s7967_s22 + $0x114] sm:$0xff]  ;;  %13768 = vst [vmem:[#allocation41_spill] sm:$0xff] %v9765_v22 }
 0x15d   : > { %13764 = vst [vmem:[#allocation57_spill] sm:$0xff] %v9758_v41  ;;  %v2631_v12 = vadd.f32 %v2599_v2, %v2531_v47  ;;  %v1184_v3 = vadd.f32 %v1152_v18, %v1116_v33  ;;  %v1353_v31 = vmul.f32 %v9719_v14, %v13767_v0  ;;  %v3807_v45 = vmul.f32 %v9669_v58, %v9758_v41  ;;  %v13769_v56 = vld [vmem:[#allocation32_spill] sm:$0xff]  ;;  %v13770_v2 = vld [vmem:[#allocation14_spill] sm:$0xff] }
 0x15e   : > { %v3338_v61 = vadd.f32 %v3306_v8, %v3238_v48  ;;  %v1928_v59 = vadd.f32 %v1896_v34, %v1828_v7  ;;  %v2096_v36 = vmul.f32 %v13769_v56, %v8054_v42  ;;  %v2803_v47 = vmul.f32 %v13770_v2, %v13467_v50  ;;  %v13771_v14 = vld [vmem:[#allocation30_spill] sm:$0xff]  ;;  %v13772_v7 = vld [vmem:[#allocation49_spill] sm:$0xff] }
 0x15f   : > { %v2699_v27 = vadd.f32 %v2667_v26, %v2631_v12  ;;  %v1284_v62 = vadd.f32 %v1252_v19, %v1184_v3  ;;  %v1453_v18 = vmul.f32 %v9737_v38, %v13359_v5  ;;  %v2903_v0 = vmul.f32 %v13771_v14, %v13385_v24  ;;  %v13773_v3 = vld [vmem:[#allocation50_spill] sm:$0xff] }
 0x160   : > { %v3439_v33 = vadd.f32 %v3407_v54, %v3338_v61  ;;  %v2028_v8 = vadd.f32 %v1996_v37, %v1928_v59  ;;  %v2196_v48 = vmul.f32 %v9765_v22, %v13443_v46  ;;  %v3003_v56 = vmul.f32 %v13772_v7, %v13387_v51  ;;  %v13774_v37 = vld [vmem:[#allocation60_spill] sm:$0xff]  ;;  %v13782_v7 = vld [vmem:[#allocation47_spill] sm:$0xff] }
 0x161   : > { %v2767_v34 = vadd.f32 %v2735_v60, %v2699_v27  ;;  %v1385_v26 = vadd.f32 %v1353_v31, %v1284_v62  ;;  %v1553_v12 = vmul.f32 %v9491_v1, %v9748_v11  ;;  %v3071_v41 = vmul.f32 %v13773_v3, %v13389_v9 }
 0x162   : > { %v3539_v19 = vadd.f32 %v3507_v6, %v3439_v33  ;;  %v2128_v61 = vadd.f32 %v2096_v36, %v2028_v8  ;;  %v2264_v54 = vmul.f32 %v13737_v43, %v13417_v15  ;;  %v3139_v60 = vmul.f32 %v13774_v37, %v13447_v4  ;;  %v13775_v6 = vld [vmem:[#allocation17_spill] sm:$0xff] }
 0x163   : > { %v2835_v14 = vadd.f32 %v2803_v47, %v2767_v34  ;;  %v3207_v62 = vmul.f32 %v9649_v25, %v13420_v17  ;;  %v1485_v31 = vadd.f32 %v1453_v18, %v1385_v26  ;;  %v3307_v27 = vmul.f32 %v13775_v6, %v13394_v49  ;;  %v9803_v26 = vld [vmem:[%s7967_s22 + $0xe4] sm:$0xff]  ;;  %v1761_v6 = vld [vmem:[%s7967_s22 + $0xd9] sm:$0xff] }
 0x164   : > { %v3639_v59 = vadd.f32 %v3607_v21, %v3539_v19  ;;  %v2228_v33 = vadd.f32 %v2196_v48, %v2128_v61  ;;  %v2332_v36 = vmul.f32 %v13740_v13, %v13422_v10  ;;  %v2400_v47 = vmul.f32 %v13744_v32, %v8110_v20  ;;  %v9800_v21 = vld [vmem:[%s7967_s22 + $0x120] sm:$0xff]  ;;  %13777 = vst [vmem:[#allocation54_spill] sm:$0xff] %v9803_v26  ;;  %v13779_v19 = vld [vmem:[#allocation20_spill] sm:$0xff] }
 0x165   : > { %v2935_v8 = vadd.f32 %v2903_v0, %v2835_v14  ;;  %v1585_v43 = vadd.f32 %v1553_v12, %v1485_v31  ;;  %v785_v34 = vmul.f32 %v13763_v44, %v13395_v52  ;;  %13776 = vst [vmem:[#allocation40_spill] sm:$0xff] %v9800_v21  ;;  %v885_v13 = vmul.f32 %v13766_v57, %v13722_v40  ;;  %v13778_v12 = vld [vmem:[#allocation59_spill] sm:$0xff] }
 0x166   : > { %v3739_v22 = vadd.f32 %v3707_v35, %v3639_v59  ;;  %v2296_v18 = vadd.f32 %v2264_v54, %v2228_v33  ;;  %v985_v0 = vmul.f32 %v13770_v2, %v13750_v53  ;;  %v3408_v32 = vmul.f32 %v9800_v21, %v13778_v12  ;;  %v9815_v54 = vld [vmem:[%s7967_s22 + $0x121] sm:$0xff] }
 0x167   : > { %v3035_v48 = vadd.f32 %v3003_v56, %v2935_v8  ;;  %v1624_v61 = vadd.f32 %v13779_v19, %v1585_v43  ;;  %v2500_v35 = vmul.f32 %v9803_v26, %v13614_v39  ;;  %13780 = vst [vmem:[#allocation65_spill] sm:$0xff] %v9815_v54  ;;  %v917_v59 = vadd.f32 %v885_v13, %v785_v34  ;;  %v1861_v56 = vld [vmem:[%s7967_s22 + $0xda] sm:$0xff]  ;;  %v9830_v34 = vld [vmem:[%s7967_s22 + $0x122] sm:$0xff]  ;;  %v13789_v39 = vld [vmem:[#allocation24_spill] sm:$0xff] }
 0x168   : > { %v3839_v14 = vadd.f32 %v3807_v45, %v3739_v22  ;;  %v2364_v31 = vadd.f32 %v2332_v36, %v2296_v18  ;;  %v1085_v33 = vmul.f32 %v13773_v3, %v13754_v28  ;;  %v3508_v21 = vmul.f32 %v9815_v54, %v13755_v16  ;;  %v13781_v43 = vld [vmem:[#allocation37_spill] sm:$0xff]  ;;  %v13783_v22 = vld [vmem:[#allocation15_spill] sm:$0xff]  ;;  %13784 = vst [vmem:[#allocation33_spill] sm:$0xff] %v9830_v34  ;;  %v13787_v28 = vld [vmem:[#allocation12_spill] sm:$0xff] }
 0x169   : > { %v3103_v8 = vadd.f32 %v3071_v41, %v3035_v48  ;;  %v2600_v19 = vmul.f32 %v13782_v7, %v13781_v43  ;;  %3961 = vrot.lane.b32.xlu0 %v1624_v61, %s13115_s24  ;;  %v1153_v45 = vmul.f32 %v13774_v37, %v13783_v22  ;;  %v1017_v13 = vadd.f32 %v985_v0, %v917_v59  ;;  %v13785_v26 = vld [vmem:[#allocation21_spill] sm:$0xff]  ;;  %v13788_v43 = vld [vmem:[#allocation22_spill] sm:$0xff]  ;;  %v13791_v0 = vld [vmem:[#allocation39_spill] sm:$0xff] }
 0x16a   : > { %v3878_v36 = vadd.f32 %v9733_v23, %v3839_v14  ;;  %v2432_v18 = vadd.f32 %v2400_v47, %v2364_v31  ;;  %v13786_v41 = vld [vmem:[#allocation53_spill] sm:$0xff]  ;;  %v3608_v7 = vmul.f32 %v9830_v34, %v13787_v28  ;;  %v1797_v61 = vmul.f32 %v13788_v43, %v1761_v6  ;;  %v9841_v14 = vld [vmem:[%s7967_s22 + $0x123] sm:$0xff] }
 0x16b   : > { %v1697_v48 = vmul.f32 %v13786_v41, %v13785_v26  ;;  %v1961_v3 = vld [vmem:[%s7967_s22 + $0xdb] sm:$0xff]  ;;  %v3171_v16 = vadd.f32 %v3139_v60, %v3103_v8  ;;  %v1897_v12 = vmul.f32 %v13789_v39, %v1861_v56  ;;  %13790 = vst [vmem:[#allocation63_spill] sm:$0xff] %v9841_v14  ;;  %v2668_v31 = vmul.f32 %v13791_v0, %v13543_v63  ;;  %v9851_v39 = vld [vmem:[%s7967_s22 + $0x124] sm:$0xff] }
 0x16c   : > { %4085 = vrot.lane.b32.xlu1 %v3878_v36, %s13113_s26  ;;  %v2532_v47 = vadd.f32 %v2500_v35, %v2432_v18  ;;  %v1117_v59 = vadd.f32 %v1085_v33, %v1017_v13  ;;  %v1253_v60 = vmul.f32 %v9649_v25, %v13461_v29  ;;  %v3708_v41 = vmul.f32 %v9841_v14, %v8349_v55  ;;  %v13792_v37 = vld [vmem:[#allocation25_spill] sm:$0xff]  ;;  %v13794_v43 = vld [vmem:[#allocation58_spill] sm:$0xff]  ;;  %v13795_v28 = vld [vmem:[#allocation23_spill] sm:$0xff] }
 0x16d   : > { %v3239_v8 = vadd.f32 %v3207_v62, %v3171_v16  ;;  %v1829_v6 = vadd.f32 %v1797_v61, %v1697_v48  ;;  %v1997_v56 = vmul.f32 %v13792_v37, %v1961_v3  ;;  %13793 = vst [vmem:[#allocation16_spill] sm:$0xff] %v9851_v39  ;;  %v2736_v35 = vmul.f32 %v13794_v43, %v13765_v30  ;;  %v9858_v13 = vld [vmem:[%s7967_s22 + $0xf0] sm:$0xff] }
 0x16e   : > { %v2632_v36 = vadd.f32 %v2600_v19, %v2532_v47  ;;  %v1185_v18 = vadd.f32 %v1153_v45, %v1117_v59  ;;  %v1354_v33 = vmul.f32 %v9815_v54, %v13795_v28  ;;  %13796 = vst [vmem:[#allocation44_spill] sm:$0xff] %v9858_v13  ;;  %v3808_v16 = vmul.f32 %v9669_v58, %v9851_v39  ;;  %v13797_v48 = vld [vmem:[#allocation56_spill] sm:$0xff]  ;;  %v13798_v19 = vld [vmem:[#allocation31_spill] sm:$0xff]  ;;  %v13799_v54 = vld [vmem:[#allocation38_spill] sm:$0xff] }
 0x16f   : > { %v3339_v25 = vadd.f32 %v3307_v27, %v3239_v8  ;;  %v1929_v62 = vadd.f32 %v1897_v12, %v1829_v6  ;;  %v2097_v3 = vmul.f32 %v13797_v48, %v8054_v42  ;;  %v2804_v47 = vmul.f32 %v13798_v19, %v13467_v50  ;;  %v13800_v6 = vld [vmem:[#allocation26_spill] sm:$0xff] }
 0x170   : > { %v2700_v61 = vadd.f32 %v2668_v31, %v2632_v36  ;;  %v1285_v37 = vadd.f32 %v1253_v60, %v1185_v18  ;;  %v1454_v45 = vmul.f32 %v9830_v34, %v13359_v5  ;;  %v2904_v28 = vmul.f32 %v13799_v54, %v13385_v24  ;;  %v13801_v18 = vld [vmem:[#allocation62_spill] sm:$0xff] }
 0x171   : > { %v3440_v59 = vadd.f32 %v3408_v32, %v3339_v25  ;;  %v2029_v27 = vadd.f32 %v1997_v56, %v1929_v62  ;;  %v2197_v8 = vmul.f32 %v9858_v13, %v13443_v46  ;;  %v3004_v48 = vmul.f32 %v13800_v6, %v13387_v51  ;;  %v1762_v6 = vld [vmem:[%s7967_s22 + $0xe1] sm:$0xff] }
 0x172   : > { %v2768_v12 = vadd.f32 %v2736_v35, %v2700_v61  ;;  %v1386_v31 = vadd.f32 %v1354_v33, %v1285_v37  ;;  %v1554_v36 = vmul.f32 %v9491_v1, %v9841_v14  ;;  %v3072_v39 = vmul.f32 %v13801_v18, %v13389_v9 }
 0x173   : > { %v3540_v60 = vadd.f32 %v3508_v21, %v3440_v59  ;;  %v2129_v25 = vadd.f32 %v2097_v3, %v2029_v27  ;;  %v2265_v32 = vmul.f32 %v13763_v44, %v13417_v15  ;;  %v3140_v56 = vmul.f32 %v9737_v38, %v13447_v4  ;;  %v13802_v21 = vld [vmem:[#allocation57_spill] sm:$0xff] }
 0x174   : > { %v2836_v54 = vadd.f32 %v2804_v47, %v2768_v12  ;;  %v3208_v37 = vmul.f32 %v9748_v11, %v13420_v17  ;;  %v1486_v35 = vadd.f32 %v1454_v45, %v1386_v31  ;;  %v3308_v62 = vmul.f32 %v13802_v21, %v13394_v49  ;;  %v9896_v31 = vld [vmem:[%s7967_s22 + $0xf4] sm:$0xff]  ;;  %v13809_v21 = vld [vmem:[#allocation11_spill] sm:$0xff] }
 0x175   : > { %v3640_v33 = vadd.f32 %v3608_v7, %v3540_v60  ;;  %v2229_v61 = vadd.f32 %v2197_v8, %v2129_v25  ;;  %v2333_v3 = vmul.f32 %v13766_v57, %v13422_v10  ;;  %v2401_v47 = vmul.f32 %v13770_v2, %v8110_v20  ;;  %v9893_v7 = vld [vmem:[%s7967_s22 + $0x128] sm:$0xff]  ;;  %13804 = vst [vmem:[#allocation43_spill] sm:$0xff] %v9896_v31  ;;  %v13806_v60 = vld [vmem:[#allocation20_spill] sm:$0xff] }
 0x176   : > { %v2936_v59 = vadd.f32 %v2904_v28, %v2836_v54  ;;  %v1586_v44 = vadd.f32 %v1554_v36, %v1486_v35  ;;  %v786_v27 = vmul.f32 %v13791_v0, %v13395_v52  ;;  %13803 = vst [vmem:[#allocation52_spill] sm:$0xff] %v9893_v7  ;;  %v886_v57 = vmul.f32 %v13794_v43, %v13722_v40  ;;  %v13805_v36 = vld [vmem:[#allocation59_spill] sm:$0xff] }
 0x177   : > { %v3740_v12 = vadd.f32 %v3708_v41, %v3640_v33  ;;  %v2297_v45 = vadd.f32 %v2265_v32, %v2229_v61  ;;  %v986_v28 = vmul.f32 %v13798_v19, %v13750_v53  ;;  %v3409_v2 = vmul.f32 %v9893_v7, %v13805_v36  ;;  %v13807_v41 = vld [vmem:[#allocation35_spill] sm:$0xff]  ;;  %v13810_v53 = vld [vmem:[#allocation29_spill] sm:$0xff] }
 0x178   : > { %v3036_v8 = vadd.f32 %v3004_v48, %v2936_v59  ;;  %v1625_v25 = vadd.f32 %v13806_v60, %v1586_v44  ;;  %v2501_v54 = vmul.f32 %v9896_v31, %v13807_v41  ;;  %v9908_v32 = vld [vmem:[%s7967_s22 + $0x129] sm:$0xff]  ;;  %v918_v61 = vadd.f32 %v886_v57, %v786_v27  ;;  %v13811_v44 = vld [vmem:[#allocation37_spill] sm:$0xff] }
 0x179   : > { %v3840_v35 = vadd.f32 %v3808_v16, %v3740_v12  ;;  %13808 = vst [vmem:[#allocation36_spill] sm:$0xff] %v9908_v32  ;;  %v2365_v33 = vadd.f32 %v2333_v3, %v2297_v45  ;;  %v1086_v13 = vmul.f32 %v13801_v18, %v13809_v21  ;;  %v1862_v48 = vld [vmem:[%s7967_s22 + $0xe2] sm:$0xff]  ;;  %v3509_v7 = vmul.f32 %v9908_v32, %v13810_v53  ;;  %v13812_v60 = vld [vmem:[#allocation49_spill] sm:$0xff]  ;;  %v9923_v27 = vld [vmem:[%s7967_s22 + $0x12a] sm:$0xff] }
 0x17a   : > { %v3104_v59 = vadd.f32 %v3072_v39, %v3036_v8  ;;  %v2601_v36 = vmul.f32 %v13812_v60, %v13811_v44  ;;  %3963 = vrot.lane.b32.xlu0 %v1625_v25, %s13115_s24  ;;  %v1154_v16 = vmul.f32 %v9737_v38, %v13783_v22  ;;  %13813 = vst [vmem:[#allocation45_spill] sm:$0xff] %v9923_v27  ;;  %v13814_v39 = vld [vmem:[#allocation41_spill] sm:$0xff]  ;;  %v1962_v8 = vld [vmem:[%s7967_s22 + $0xe3] sm:$0xff]  ;;  %v13815_v18 = vld [vmem:[#allocation12_spill] sm:$0xff] }
 0x17b   : > { %v3879_v3 = vadd.f32 %v9733_v23, %v3840_v35  ;;  %v2433_v12 = vadd.f32 %v2401_v47, %v2365_v33  ;;  %v1018_v45 = vadd.f32 %v986_v28, %v918_v61  ;;  %v1698_v57 = vmul.f32 %v13814_v39, %v13785_v26  ;;  %v13816_v44 = vld [vmem:[#allocation22_spill] sm:$0xff]  ;;  %v13817_v53 = vld [vmem:[#allocation24_spill] sm:$0xff]  ;;  %v13820_v38 = vld [vmem:[#allocation25_spill] sm:$0xff] }
 0x17c   : > { %v3172_v31 = vadd.f32 %v3140_v56, %v3104_v59  ;;  %v3609_v60 = vmul.f32 %v9923_v27, %v13815_v18  ;;  %v1798_v25 = vmul.f32 %v13816_v44, %v1762_v6  ;;  %v1898_v21 = vmul.f32 %v13817_v53, %v1862_v48  ;;  %v9934_v35 = vld [vmem:[%s7967_s22 + $0x12b] sm:$0xff]  ;;  %v13819_v28 = vld [vmem:[#allocation50_spill] sm:$0xff] }
 0x17d   : > { %4087 = vrot.lane.b32.xlu1 %v3879_v3, %s13113_s26  ;;  %13818 = vst [vmem:[#allocation46_spill] sm:$0xff] %v9934_v35  ;;  %v2533_v47 = vadd.f32 %v2501_v54, %v2433_v12  ;;  %v2669_v33 = vmul.f32 %v13819_v28, %v13543_v63  ;;  %v1118_v61 = vadd.f32 %v1086_v13, %v1018_v45  ;;  %v9944_v53 = vld [vmem:[%s7967_s22 + $0x12c] sm:$0xff]  ;;  %v9951_v45 = vld [vmem:[%s7967_s22 + $0xf8] sm:$0xff] }
 0x17e   : > { %v1254_v56 = vmul.f32 %v9748_v11, %v13461_v29  ;;  %v3240_v59 = vadd.f32 %v3208_v37, %v3172_v31  ;;  %v3709_v39 = vmul.f32 %v9934_v35, %v8349_v55  ;;  %v1830_v6 = vadd.f32 %v1798_v25, %v1698_v57  ;;  %13821 = vst [vmem:[#allocation28_spill] sm:$0xff] %v9944_v53  ;;  %v13822_v44 = vld [vmem:[#allocation60_spill] sm:$0xff]  ;;  %v13823_v18 = vld [vmem:[#allocation23_spill] sm:$0xff]  ;;  %v13825_v57 = vld [vmem:[#allocation54_spill] sm:$0xff] }
 0x17f   : > { %v1998_v48 = vmul.f32 %v13820_v38, %v1962_v8  ;;  %v2633_v3 = vadd.f32 %v2601_v36, %v2533_v47  ;;  %v2737_v54 = vmul.f32 %v13822_v44, %v13765_v30  ;;  %v1186_v12 = vadd.f32 %v1154_v16, %v1118_v61  ;;  %13824 = vst [vmem:[#allocation48_spill] sm:$0xff] %v9951_v45  ;;  %v13826_v36 = vld [vmem:[#allocation64_spill] sm:$0xff] }
 0x180   : > { %v1355_v13 = vmul.f32 %v9908_v32, %v13823_v18  ;;  %v3340_v11 = vadd.f32 %v3308_v62, %v3240_v59  ;;  %v3809_v37 = vmul.f32 %v9669_v58, %v9944_v53  ;;  %v1930_v31 = vadd.f32 %v1898_v21, %v1830_v6  ;;  %v13827_v32 = vld [vmem:[#allocation17_spill] sm:$0xff]  ;;  %v13828_v6 = vld [vmem:[#allocation40_spill] sm:$0xff] }
 0x181   : > { %v2098_v8 = vmul.f32 %v13825_v57, %v8054_v42  ;;  %v2701_v25 = vadd.f32 %v2669_v33, %v2633_v3  ;;  %v2805_v47 = vmul.f32 %v13826_v36, %v13467_v50  ;;  %v1286_v38 = vadd.f32 %v1254_v56, %v1186_v12  ;;  %v13829_v12 = vld [vmem:[#allocation65_spill] sm:$0xff] }
 0x182   : > { %v1455_v16 = vmul.f32 %v9923_v27, %v13359_v5  ;;  %v3441_v61 = vadd.f32 %v3409_v2, %v3340_v11  ;;  %v2905_v18 = vmul.f32 %v13827_v32, %v13385_v24  ;;  %v2030_v62 = vadd.f32 %v1998_v48, %v1930_v31 }
 0x183   : > { %v2198_v59 = vmul.f32 %v9951_v45, %v13443_v46  ;;  %v2769_v21 = vadd.f32 %v2737_v54, %v2701_v25  ;;  %v3005_v57 = vmul.f32 %v13828_v6, %v13387_v51  ;;  %v1387_v33 = vadd.f32 %v1355_v13, %v1286_v38  ;;  %v1763_v6 = vld [vmem:[%s7967_s22 + $0xf1] sm:$0xff] }
 0x184   : > { %v1555_v3 = vmul.f32 %v9491_v1, %v9934_v35  ;;  %v3541_v56 = vadd.f32 %v3509_v7, %v3441_v61  ;;  %v3073_v53 = vmul.f32 %v13829_v12, %v13389_v9  ;;  %v2130_v11 = vadd.f32 %v2098_v8, %v2030_v62  ;;  %v13830_v7 = vld [vmem:[#allocation16_spill] sm:$0xff] }
 0x185   : > { %v2266_v2 = vmul.f32 %v13791_v0, %v13417_v15  ;;  %v2837_v32 = vadd.f32 %v2805_v47, %v2769_v21  ;;  %v3141_v48 = vmul.f32 %v9830_v34, %v13447_v4  ;;  %v3209_v38 = vmul.f32 %v9841_v14, %v13420_v17 }
 0x186   : > { %v1487_v54 = vadd.f32 %v1455_v16, %v1387_v33  ;;  %v3641_v13 = vadd.f32 %v3609_v60, %v3541_v56  ;;  %v3309_v31 = vmul.f32 %v13830_v7, %v13394_v49  ;;  %v2230_v25 = vadd.f32 %v2198_v59, %v2130_v11  ;;  %v9986_v60 = vld [vmem:[%s7967_s22 + $0x138] sm:$0xff]  ;;  %v13833_v59 = vld [vmem:[#allocation10_spill] sm:$0xff]  ;;  %v13834_v56 = vld [vmem:[#allocation59_spill] sm:$0xff] }
 0x187   : > { %v2334_v8 = vmul.f32 %v13794_v43, %v13422_v10  ;;  %v2937_v61 = vadd.f32 %v2905_v18, %v2837_v32  ;;  %v2402_v47 = vmul.f32 %v13798_v19, %v8110_v20  ;;  %v787_v62 = vmul.f32 %v13819_v28, %v13395_v52  ;;  %13831 = vst [vmem:[#allocation61_spill] sm:$0xff] %v9986_v60  ;;  %v9989_v33 = vld [vmem:[%s7967_s22 + $0xfc] sm:$0xff]  ;;  %v13835_v11 = vld [vmem:[#allocation20_spill] sm:$0xff]  ;;  %v13837_v7 = vld [vmem:[#allocation11_spill] sm:$0xff] }
 0x188   : > { %v1587_v0 = vadd.f32 %v1555_v3, %v1487_v54  ;;  %v3741_v21 = vadd.f32 %v3709_v39, %v3641_v13  ;;  %v2298_v16 = vadd.f32 %v2266_v2, %v2230_v25  ;;  %13832 = vst [vmem:[#allocation51_spill] sm:$0xff] %v9989_v33  ;;  %v887_v43 = vmul.f32 %v13822_v44, %v13722_v40  ;;  %v10001_v2 = vld [vmem:[%s7967_s22 + $0x139] sm:$0xff] }
 0x189   : > { %v987_v18 = vmul.f32 %v13826_v36, %v13833_v59  ;;  %v3037_v3 = vadd.f32 %v3005_v57, %v2937_v61  ;;  %v3410_v19 = vmul.f32 %v9986_v60, %v13834_v56  ;;  %v2502_v39 = vmul.f32 %v9989_v33, %v13807_v41  ;;  %13836 = vst [vmem:[#allocation32_spill] sm:$0xff] %v10001_v2  ;;  %v1863_v57 = vld [vmem:[%s7967_s22 + $0xf2] sm:$0xff] }
 0x18a   : > { %v1626_v32 = vadd.f32 %v13835_v11, %v1587_v0  ;;  %v3841_v54 = vadd.f32 %v3809_v37, %v3741_v21  ;;  %v2366_v13 = vadd.f32 %v2334_v8, %v2298_v16  ;;  %v919_v25 = vadd.f32 %v887_v43, %v787_v62  ;;  %v13838_v59 = vld [vmem:[#allocation29_spill] sm:$0xff]  ;;  %v13840_v11 = vld [vmem:[#allocation26_spill] sm:$0xff] }
 0x18b   : > { %v1087_v45 = vmul.f32 %v13829_v12, %v13837_v7  ;;  %v3105_v61 = vadd.f32 %v3073_v53, %v3037_v3  ;;  %v3510_v60 = vmul.f32 %v10001_v2, %v13838_v59  ;;  %v13839_v0 = vld [vmem:[#allocation37_spill] sm:$0xff]  ;;  %v1155_v37 = vmul.f32 %v9830_v34, %v13783_v22  ;;  %v13842_v53 = vld [vmem:[#allocation44_spill] sm:$0xff] }
 0x18c   : > { %v2602_v56 = vmul.f32 %v13840_v11, %v13839_v0  ;;  %3965 = vrot.lane.b32.xlu0 %v1626_v32, %s13115_s24  ;;  %v3880_v8 = vadd.f32 %v9733_v23, %v3841_v54  ;;  %v10016_v62 = vld [vmem:[%s7967_s22 + $0x13a] sm:$0xff]  ;;  %v2434_v21 = vadd.f32 %v2402_v47, %v2366_v13  ;;  %v1019_v16 = vadd.f32 %v987_v18, %v919_v25  ;;  %v13843_v12 = vld [vmem:[#allocation12_spill] sm:$0xff]  ;;  %s10104_s24 = scalar_lea.vmem %s12736_s6, %s7214_s0  ;;  %s5928_s0 = sshra.s32 %s7784_s29, 7 }
 0x18d   : > { %13841 = vst [vmem:[#allocation14_spill] sm:$0xff] %v10016_v62  ;;  %v1699_v43 = vmul.f32 %v13842_v53, %v13785_v26  ;;  %v1963_v3 = vld [vmem:[%s7967_s22 + $0xf3] sm:$0xff]  ;;  %v3173_v33 = vadd.f32 %v3141_v48, %v3105_v61  ;;  %v3610_v11 = vmul.f32 %v10016_v62, %v13843_v12  ;;  %v13844_v0 = vld [vmem:[#allocation22_spill] sm:$0xff]  ;;  %v1255_v48 = vmul.f32 %v9841_v14, %v13461_v29  ;;  %v13851_v12 = vld [vmem:[#allocation23_spill] sm:$0xff] }
 0x18e   : > { %v1799_v32 = vmul.f32 %v13844_v0, %v1763_v6  ;;  %v13845_v59 = vld [vmem:[#allocation24_spill] sm:$0xff]  ;;  %4089 = vrot.lane.b32.xlu1 %v3880_v8, %s13113_s26  ;;  %v10027_v54 = vld [vmem:[%s7967_s22 + $0x13b] sm:$0xff]  ;;  %v2534_v47 = vadd.f32 %v2502_v39, %v2434_v21  ;;  %v1119_v25 = vadd.f32 %v1087_v45, %v1019_v16  ;;  %v1356_v45 = vmul.f32 %v10001_v2, %v13851_v12  ;;  %v10044_v16 = vld [vmem:[%s7967_s22 + $0x108] sm:$0xff]  ;;  %s13875_s26 = smov 32  }
 0x18f   : > { %v1899_v7 = vmul.f32 %v13845_v59, %v1863_v57  ;;  %13846 = vst [vmem:[#allocation30_spill] sm:$0xff] %v10027_v54  ;;  %v13847_v18 = vld [vmem:[#allocation62_spill] sm:$0xff]  ;;  %v3241_v61 = vadd.f32 %v3209_v38, %v3173_v33  ;;  %v3710_v53 = vmul.f32 %v10027_v54, %v8349_v55  ;;  %v13848_v34 = vld [vmem:[#allocation25_spill] sm:$0xff]  ;;  %13852 = vst [vmem:[#allocation53_spill] sm:$0xff] %v10044_v16 }
 0x190   : > { %v2670_v13 = vmul.f32 %v13847_v18, %v13543_v63  ;;  %v1831_v6 = vadd.f32 %v1799_v32, %v1699_v43  ;;  %v1999_v57 = vmul.f32 %v13848_v34, %v1963_v3  ;;  %v10037_v59 = vld [vmem:[%s7967_s22 + $0x13c] sm:$0xff]  ;;  %v2634_v8 = vadd.f32 %v2602_v56, %v2534_v47  ;;  %v13853_v43 = vld [vmem:[#allocation43_spill] sm:$0xff] }
 0x191   : > { %13849 = vst [vmem:[#allocation47_spill] sm:$0xff] %v10037_v59  ;;  %v13850_v0 = vld [vmem:[#allocation66_spill] sm:$0xff]  ;;  %v1187_v21 = vadd.f32 %v1155_v37, %v1119_v25  ;;  %v3341_v14 = vadd.f32 %v3309_v31, %v3241_v61  ;;  %v3810_v38 = vmul.f32 %v9669_v58, %v10037_v59  ;;  %v2099_v3 = vmul.f32 %v13853_v43, %v8054_v42  ;;  %v13854_v56 = vld [vmem:[#allocation19_spill] sm:$0xff]  ;;  %v13855_v2 = vld [vmem:[#allocation57_spill] sm:$0xff] }
 0x192   : > { %v2738_v39 = vmul.f32 %v13850_v0, %v13765_v30  ;;  %v1931_v33 = vadd.f32 %v1899_v7, %v1831_v6  ;;  %v2702_v32 = vadd.f32 %v2670_v13, %v2634_v8  ;;  %v2806_v47 = vmul.f32 %v13854_v56, %v13467_v50  ;;  %v13856_v6 = vld [vmem:[#allocation52_spill] sm:$0xff] }
 0x193   : > { %v1287_v34 = vadd.f32 %v1255_v48, %v1187_v21  ;;  %v1456_v37 = vmul.f32 %v10016_v62, %v13359_v5  ;;  %v3442_v25 = vadd.f32 %v3410_v19, %v3341_v14  ;;  %v2906_v12 = vmul.f32 %v13855_v2, %v13385_v24  ;;  %v13857_v21 = vld [vmem:[#allocation36_spill] sm:$0xff] }
 0x194   : > { %v2031_v31 = vadd.f32 %v1999_v57, %v1931_v33  ;;  %v2199_v61 = vmul.f32 %v10044_v16, %v13443_v46  ;;  %v2770_v7 = vadd.f32 %v2738_v39, %v2702_v32  ;;  %v3006_v43 = vmul.f32 %v13856_v6, %v13387_v51  ;;  %v1764_v16 = vld [vmem:[%s7967_s22 + $0xf9] sm:$0xff] }
 0x195   : > { %v1388_v13 = vadd.f32 %v1356_v45, %v1287_v34  ;;  %v1556_v8 = vmul.f32 %v9491_v1, %v10027_v54  ;;  %v3542_v48 = vadd.f32 %v3510_v60, %v3442_v25  ;;  %v3074_v59 = vmul.f32 %v13857_v21, %v13389_v9  ;;  %v13858_v60 = vld [vmem:[#allocation28_spill] sm:$0xff]  ;;  %v1964_v6 = vld [vmem:[%s7967_s22 + $0xfb] sm:$0xff] }
 0x196   : > { %v2131_v14 = vadd.f32 %v2099_v3, %v2031_v31  ;;  %v2267_v19 = vmul.f32 %v13819_v28, %v13417_v15  ;;  %v2838_v2 = vadd.f32 %v2806_v47, %v2770_v7  ;;  %v3142_v57 = vmul.f32 %v9923_v27, %v13447_v4  ;;  %v10082_v7 = vld [vmem:[%s7967_s22 + $0x10c] sm:$0xff] }
 0x197   : > { %v3210_v34 = vmul.f32 %v9934_v35, %v13420_v17  ;;  %v1488_v39 = vadd.f32 %v1456_v37, %v1388_v13  ;;  %v3642_v1 = vadd.f32 %v3610_v11, %v3542_v48  ;;  %v3310_v45 = vmul.f32 %v13858_v60, %v13394_v49  ;;  %v10079_v37 = vld [vmem:[%s7967_s22 + $0x140] sm:$0xff]  ;;  %13860 = vst [vmem:[#allocation58_spill] sm:$0xff] %v10082_v7  ;;  %v13863_v48 = vld [vmem:[#allocation20_spill] sm:$0xff] }
 0x198   : > { %v2231_v33 = vadd.f32 %v2199_v61, %v2131_v14  ;;  %v2335_v3 = vmul.f32 %v13822_v44, %v13422_v10  ;;  %v2938_v32 = vadd.f32 %v2906_v12, %v2838_v2  ;;  %v2403_v47 = vmul.f32 %v13826_v36, %v8110_v20  ;;  %13859 = vst [vmem:[#allocation39_spill] sm:$0xff] %v10079_v37  ;;  %v13861_v12 = vld [vmem:[#allocation10_spill] sm:$0xff]  ;;  %v13862_v36 = vld [vmem:[#allocation59_spill] sm:$0xff] }
 0x199   : > { %v1588_v28 = vadd.f32 %v1556_v8, %v1488_v39  ;;  %v788_v25 = vmul.f32 %v13847_v18, %v13395_v52  ;;  %v3742_v31 = vadd.f32 %v3710_v53, %v3642_v1  ;;  %v888_v44 = vmul.f32 %v13850_v0, %v13722_v40  ;;  %v10095_v2 = vld [vmem:[%s7967_s22 + $0x141] sm:$0xff] }
 0x19a   : > { %v2299_v11 = vadd.f32 %v2267_v19, %v2231_v33  ;;  %v988_v61 = vmul.f32 %v13854_v56, %v13861_v12  ;;  %v3038_v13 = vadd.f32 %v3006_v43, %v2938_v32  ;;  %v3411_v8 = vmul.f32 %v10079_v37, %v13862_v36  ;;  %13864 = vst [vmem:[#allocation56_spill] sm:$0xff] %v10095_v2  ;;  %v13865_v33 = vld [vmem:[#allocation11_spill] sm:$0xff]  ;;  %v1864_v43 = vld [vmem:[%s7967_s22 + $0xfa] sm:$0xff] }
 0x19b   : > { %v1627_v53 = vadd.f32 %v13863_v48, %v1588_v28  ;;  %v2503_v14 = vmul.f32 %v10082_v7, %v13807_v41  ;;  %v3842_v19 = vadd.f32 %v3810_v38, %v3742_v31  ;;  %v920_v1 = vadd.f32 %v888_v44, %v788_v25  ;;  %v13866_v28 = vld [vmem:[#allocation29_spill] sm:$0xff]  ;;  %v13868_v48 = vld [vmem:[#allocation40_spill] sm:$0xff]  ;;  %v10116_v37 = vld [vmem:[%s7967_s22 + $0x142] sm:$0xff] }
 0x19c   : > { %v2367_v39 = vadd.f32 %v2335_v3, %v2299_v11  ;;  %v1088_v60 = vmul.f32 %v13857_v21, %v13865_v33  ;;  %v3106_v32 = vadd.f32 %v3074_v59, %v3038_v13  ;;  %v3511_v38 = vmul.f32 %v10095_v2, %v13866_v28  ;;  %v13867_v31 = vld [vmem:[#allocation37_spill] sm:$0xff]  ;;  %13870 = vst [vmem:[#allocation31_spill] sm:$0xff] %v10116_v37  ;;  %v13871_v59 = vld [vmem:[#allocation48_spill] sm:$0xff]  ;;  %v13873_v28 = vld [vmem:[#allocation22_spill] sm:$0xff] }
 0x19d   : > { %v2603_v3 = vmul.f32 %v13868_v48, %v13867_v31  ;;  %3967 = vrot.lane.b32.xlu0 %v1627_v53, %s13869_s1  ;;  %v1156_v25 = vmul.f32 %v9923_v27, %v13783_v22  ;;  %v4228_v11 = vld [vmem:[%s10104_s24 + $0x58] sm:$0xff]  ;;  %v3881_v44 = vadd.f32 %v9733_v23, %v3842_v19  ;;  %v1020_v21 = vadd.f32 %v988_v61, %v920_v1  ;;  %v13872_v31 = vld [vmem:[#allocation12_spill] sm:$0xff]  ;;  %v10127_v19 = vld [vmem:[%s7967_s22 + $0x143] sm:$0xff] }
 0x19e   : > { %v2435_v7 = vadd.f32 %v2403_v47, %v2367_v39  ;;  %v1700_v13 = vmul.f32 %v13871_v59, %v13785_v26  ;;  %4358 = vmatprep.subr.mxu0 %v4228_v11  ;;  %v3174_v48 = vadd.f32 %v3142_v57, %v3106_v32  ;;  %v3611_v53 = vmul.f32 %v10116_v37, %v13872_v31  ;;  %v13874_v27 = vld [vmem:[#allocation24_spill] sm:$0xff]  ;;  %v13877_v61 = vld [vmem:[#allocation65_spill] sm:$0xff]  ;;  %v13881_v31 = vld [vmem:[#allocation23_spill] sm:$0xff] }
 0x19f   : > { %v1800_v33 = vmul.f32 %v13873_v28, %v1764_v16  ;;  %v1900_v22 = vmul.f32 %v13874_v27, %v1864_v43  ;;  %4091 = vrot.lane.b32.xlu1 %v3881_v44, %s13875_s26  ;;  %13876 = vst [vmem:[#allocation38_spill] sm:$0xff] %v10127_v19  ;;  %v2671_v39 = vmul.f32 %v13877_v61, %v13543_v63  ;;  %v13878_v59 = vld [vmem:[#allocation25_spill] sm:$0xff]  ;;  %v10137_v27 = vld [vmem:[%s7967_s22 + $0x144] sm:$0xff] }
 0x1a0   : > { %v2535_v47 = vadd.f32 %v2503_v14, %v2435_v7  ;;  %v1120_v1 = vadd.f32 %v1088_v60, %v1020_v21  ;;  %v1256_v57 = vmul.f32 %v9934_v35, %v13461_v29  ;;  %v3242_v32 = vadd.f32 %v3210_v34, %v3174_v48  ;;  %13879 = vst [vmem:[#allocation49_spill] sm:$0xff] %v10137_v27  ;;  %v13880_v28 = vld [vmem:[#allocation33_spill] sm:$0xff]  ;;  %v10144_v60 = vld [vmem:[%s7967_s22 + $0x110] sm:$0xff] }
 0x1a1   : > { %v3711_v11 = vmul.f32 %v10127_v19, %v8349_v55  ;;  %v1832_v16 = vadd.f32 %v1800_v33, %v1700_v13  ;;  %v2000_v43 = vmul.f32 %v13878_v59, %v1964_v6  ;;  %v2739_v7 = vmul.f32 %v13880_v28, %v13765_v30  ;;  %13882 = vst [vmem:[#allocation41_spill] sm:$0xff] %v10144_v60  ;;  %v13883_v6 = vld [vmem:[#allocation51_spill] sm:$0xff] }
 0x1a2   : > { %v2635_v44 = vadd.f32 %v2603_v3, %v2535_v47  ;;  %v1188_v14 = vadd.f32 %v1156_v25, %v1120_v1  ;;  %v1357_v21 = vmul.f32 %v10095_v2, %v13881_v31  ;;  %v3342_v34 = vadd.f32 %v3310_v45, %v3242_v32  ;;  %v13884_v3 = vld [vmem:[#allocation63_spill] sm:$0xff]  ;;  %v13885_v2 = vld [vmem:[#allocation16_spill] sm:$0xff] }
 0x1a3   : > { %v3811_v48 = vmul.f32 %v9669_v58, %v10137_v27  ;;  %v1932_v33 = vadd.f32 %v1900_v22, %v1832_v16  ;;  %v2100_v13 = vmul.f32 %v13883_v6, %v8054_v42  ;;  %v2807_v47 = vmul.f32 %v13884_v3, %v13467_v50 }
 0x1a4   : > { %v2703_v35 = vadd.f32 %v2671_v39, %v2635_v44  ;;  %v1288_v30 = vadd.f32 %v1256_v57, %v1188_v14  ;;  %v1457_v25 = vmul.f32 %v10116_v37, %v13359_v5  ;;  %v3443_v1 = vadd.f32 %v3411_v8, %v3342_v34  ;;  %v13886_v39 = vld [vmem:[#allocation61_spill] sm:$0xff]  ;;  %v10161_v57 = vld [vmem:[%s7950_s25 + $0x8] ss:$0 sm:$0xff] }
 0x1a5   : > { %v2907_v31 = vmul.f32 %v13885_v2, %v13385_v24  ;;  %v2032_v45 = vadd.f32 %v2000_v43, %v1932_v33  ;;  %v2200_v22 = vmul.f32 %v10144_v60, %v13443_v46  ;;  %v3007_v16 = vmul.f32 %v13886_v39, %v13387_v51  ;;  %v13887_v2 = vld [vmem:[#allocation32_spill] sm:$0xff]  ;;  %v4226_v60 = vld [vmem:[%s10104_s24 + $0x48] sm:$0xff] }
 0x1a6   : > { %v2771_v32 = vadd.f32 %v2739_v7, %v2703_v35  ;;  %v1389_v44 = vadd.f32 %v1357_v21, %v1288_v30  ;;  %v1557_v8 = vmul.f32 %v10161_v57, %v10127_v19  ;;  %v3543_v14 = vadd.f32 %v3511_v38, %v3443_v1  ;;  %v4227_v21 = vld [vmem:[%s10104_s24 + $0x50] sm:$0xff]  ;;  %v4225_v38 = vld [vmem:[%s10104_s24 + $0x40] sm:$0xff]  ;;  %v13888_v39 = vld [vmem:[#allocation47_spill] sm:$0xff] }
 0x1a7   : > { %v3075_v34 = vmul.f32 %v13887_v2, %v13389_v9  ;;  %v2132_v43 = vadd.f32 %v2100_v13, %v2032_v45  ;;  %v2268_v33 = vmul.f32 %v13847_v18, %v13417_v15  ;;  %v3143_v35 = vmul.f32 %v10016_v62, %v13447_v4  ;;  %4359 = vmatpush1.msra.mxu0 %v4227_v21 }
 0x1a8   : > { %v2839_v6 = vadd.f32 %v2807_v47, %v2771_v32  ;;  %v3211_v30 = vmul.f32 %v10027_v54, %v13420_v17  ;;  %v1489_v7 = vadd.f32 %v1457_v25, %v1389_v44  ;;  %v3643_v1 = vadd.f32 %v3611_v53, %v3543_v14  ;;  %4360 = vmatprep.subr.mxu0 %v4226_v60  ;;  %v10185_v14 = vld [vmem:[%s7967_s22 + $0x150] sm:$0xff] }
 0x1a9   : > { %v3311_v13 = vmul.f32 %v13888_v39, %v13394_v49  ;;  %v2232_v45 = vadd.f32 %v2200_v22, %v2132_v43  ;;  %v2336_v18 = vmul.f32 %v13850_v0, %v13422_v10  ;;  %v2404_v25 = vmul.f32 %v13854_v56, %v8110_v20  ;;  %13889 = vst [vmem:[#allocation50_spill] sm:$0xff] %v10185_v14  ;;  %v10188_v22 = vld [vmem:[%s7967_s22 + $0x114] sm:$0xff] }
 0x1aa   : > { %v2939_v47 = vadd.f32 %v2907_v31, %v2839_v6  ;;  %v1589_v32 = vadd.f32 %v1557_v8, %v1489_v7  ;;  %v789_v44 = vmul.f32 %v13877_v61, %v13395_v52  ;;  %v3743_v53 = vadd.f32 %v3711_v11, %v3643_v1  ;;  %13890 = vst [vmem:[#allocation60_spill] sm:$0xff] %v10188_v22  ;;  %v4224_v56 = vld [vmem:[%s10104_s24 + $0x38] sm:$0xff]  ;;  %v10198_v11 = vld [vmem:[%s8104_s27] ss:$0 sm:$0xff]  ;;  %v13893_v1 = vld [vmem:[#allocation11_spill] sm:$0xff] }
 0x1ab   : > { %v2300_v39 = vadd.f32 %v2268_v33, %v2232_v45  ;;  %v889_v0 = vmul.f32 %v13880_v28, %v13722_v40  ;;  %v989_v31 = vmul.f32 %v13884_v3, %v13861_v12  ;;  %4361 = vmatpush1.msra.mxu0 %v4225_v38  ;;  %v3412_v60 = vmul.f32 %v10185_v14, %v13862_v36  ;;  %v10204_v7 = vld [vmem:[%s7967_s22 + $0x151] sm:$0xff]  ;;  %v1765_v45 = vld [vmem:[%s7967_s22 + $0x109] sm:$0xff] }
 0x1ac   : > { %v3039_v8 = vadd.f32 %v3007_v16, %v2939_v47  ;;  %13891 = vst [vmem:[#allocation54_spill] sm:$0xff] %v10198_v11  ;;  %v1628_v43 = vadd.f32 %v10198_v11, %v1589_v32  ;;  %v2504_v33 = vmul.f32 %v10188_v22, %v13807_v41  ;;  %4362 = vmatprep.subr.mxu0 %v4224_v56  ;;  %13892 = vst [vmem:[#allocation64_spill] sm:$0xff] %v10204_v7  ;;  %v1865_v47 = vld [vmem:[%s7967_s22 + $0x10a] sm:$0xff]  ;;  %v13894_v36 = vld [vmem:[#allocation29_spill] sm:$0xff] }
 0x1ad   : > { %v3843_v6 = vadd.f32 %v3811_v48, %v3743_v53  ;;  %v2368_v21 = vadd.f32 %v2336_v18, %v2300_v39  ;;  %v921_v38 = vadd.f32 %v889_v0, %v789_v44  ;;  %v1089_v16 = vmul.f32 %v13887_v2, %v13893_v1  ;;  %v13895_v11 = vld [vmem:[#allocation37_spill] sm:$0xff]  ;;  %v13896_v12 = vld [vmem:[#allocation52_spill] sm:$0xff]  ;;  %v13897_v48 = vld [vmem:[#allocation15_spill] sm:$0xff] }
 0x1ae   : > { %v3107_v14 = vadd.f32 %v3075_v34, %v3039_v8  ;;  %v3512_v32 = vmul.f32 %v10204_v7, %v13894_v36  ;;  %v2604_v22 = vmul.f32 %v13896_v12, %v13895_v11  ;;  %3969 = vrot.lane.b32.xlu0 %v1628_v43, %s13869_s1  ;;  %v1157_v53 = vmul.f32 %v10016_v62, %v13897_v48  ;;  %v10219_v18 = vld [vmem:[%s7967_s22 + $0x152] sm:$0xff]  ;;  %v13901_v11 = vld [vmem:[#allocation22_spill] sm:$0xff] }
 0x1af   : > { %v3882_v39 = vadd.f32 %v9733_v23, %v3843_v6  ;;  %13898 = vst [vmem:[#allocation17_spill] sm:$0xff] %v10219_v18  ;;  %v2436_v44 = vadd.f32 %v2404_v25, %v2368_v21  ;;  %v1021_v0 = vadd.f32 %v989_v31, %v921_v38  ;;  %v13899_v34 = vld [vmem:[#allocation53_spill] sm:$0xff]  ;;  %v1965_v8 = vld [vmem:[%s7967_s22 + $0x10b] sm:$0xff]  ;;  %v1801_v43 = vmul.f32 %v13901_v11, %v1765_v45 }
 0x1b0   : > { %v1701_v56 = vmul.f32 %v13899_v34, %v13785_v26  ;;  %v3175_v2 = vadd.f32 %v3143_v35, %v3107_v14  ;;  %v13900_v36 = vld [vmem:[#allocation12_spill] sm:$0xff]  ;;  %v1257_v35 = vmul.f32 %v10027_v54, %v13461_v29  ;;  %v13907_v11 = vld [vmem:[#allocation45_spill] sm:$0xff] }
 0x1b1   : > { %v3612_v12 = vmul.f32 %v10219_v18, %v13900_v36  ;;  %v13902_v1 = vld [vmem:[#allocation24_spill] sm:$0xff]  ;;  %4093 = vrot.lane.b32.xlu1 %v3882_v39, %s13875_s26  ;;  %v2536_v25 = vadd.f32 %v2504_v33, %v2436_v44  ;;  %v1121_v38 = vadd.f32 %v1089_v16, %v1021_v0  ;;  %v13908_v36 = vld [vmem:[#allocation23_spill] sm:$0xff]  ;;  %v10247_v0 = vld [vmem:[%s7967_s22 + $0x120] sm:$0xff] }
 0x1b2   : > { %v1901_v41 = vmul.f32 %v13902_v1, %v1865_v47  ;;  %v10230_v6 = vld [vmem:[%s7967_s22 + $0x153] sm:$0xff]  ;;  %v3243_v14 = vadd.f32 %v3211_v30, %v3175_v2  ;;  %v1833_v45 = vadd.f32 %v1801_v43, %v1701_v56  ;;  %v2001_v47 = vmul.f32 %v13878_v59, %v1965_v8  ;;  %v13906_v1 = vld [vmem:[#allocation42_spill] sm:$0xff]  ;;  %13909 = vst [vmem:[#allocation62_spill] sm:$0xff] %v10247_v0 }
 0x1b3   : > { %13903 = vst [vmem:[#allocation26_spill] sm:$0xff] %v10230_v6  ;;  %v13904_v31 = vld [vmem:[#allocation36_spill] sm:$0xff]  ;;  %v3712_v34 = vmul.f32 %v10230_v6, %v8349_v55  ;;  %v2636_v39 = vadd.f32 %v2604_v22, %v2536_v25  ;;  %v2740_v33 = vmul.f32 %v13907_v11, %v13906_v1  ;;  %v1189_v44 = vadd.f32 %v1157_v53, %v1121_v38  ;;  %v13910_v56 = vld [vmem:[#allocation58_spill] sm:$0xff] }
 0x1b4   : > { %v2672_v21 = vmul.f32 %v13904_v31, %v13543_v63  ;;  %v10240_v62 = vld [vmem:[%s7967_s22 + $0x154] sm:$0xff]  ;;  %v1358_v16 = vmul.f32 %v10204_v7, %v13908_v36  ;;  %v3343_v54 = vadd.f32 %v3311_v13, %v3243_v14  ;;  %v1933_v30 = vadd.f32 %v1901_v41, %v1833_v45  ;;  %v13911_v22 = vld [vmem:[#allocation46_spill] sm:$0xff] }
 0x1b5   : > { %13905 = vst [vmem:[#allocation44_spill] sm:$0xff] %v10240_v62  ;;  %v3812_v2 = vmul.f32 %v9669_v58, %v10240_v62  ;;  %v2101_v8 = vmul.f32 %v13910_v56, %v8054_v42  ;;  %v2808_v25 = vmul.f32 %v13911_v22, %v13467_v50  ;;  %v1289_v59 = vadd.f32 %v1257_v35, %v1189_v44  ;;  %v13912_v7 = vld [vmem:[#allocation28_spill] sm:$0xff] }
 0x1b6   : > { %v2704_v43 = vadd.f32 %v2672_v21, %v2636_v39  ;;  %v1458_v53 = vmul.f32 %v10219_v18, %v13359_v5  ;;  %v3444_v38 = vadd.f32 %v3412_v60, %v3343_v54  ;;  %v2908_v13 = vmul.f32 %v13912_v7, %v13385_v24  ;;  %v13913_v21 = vld [vmem:[#allocation39_spill] sm:$0xff]  ;;  %v13914_v54 = vld [vmem:[#allocation56_spill] sm:$0xff] }
 0x1b7   : > { %v2033_v14 = vadd.f32 %v2001_v47, %v1933_v30  ;;  %v2201_v58 = vmul.f32 %v10247_v0, %v13443_v46  ;;  %v3008_v45 = vmul.f32 %v13913_v21, %v13387_v51  ;;  %v1390_v39 = vadd.f32 %v1358_v16, %v1289_v59  ;;  %v4223_v16 = vld [vmem:[%s10104_s24 + $0x30] sm:$0xff] }
 0x1b8   : > { %v2772_v41 = vadd.f32 %v2740_v33, %v2704_v43  ;;  %v1558_v35 = vmul.f32 %v10161_v57, %v10230_v6  ;;  %v3544_v44 = vadd.f32 %v3512_v32, %v3444_v38  ;;  %v3076_v60 = vmul.f32 %v13914_v54, %v13389_v9  ;;  %v4222_v43 = vld [vmem:[%s10104_s24 + $0x28] sm:$0xff]  ;;  %v4221_v32 = vld [vmem:[%s10104_s24 + $0x20] sm:$0xff]  ;;  %4363 = vmatpush1.msra.mxu0 %v4223_v16 }
 0x1b9   : > { %v2133_v56 = vadd.f32 %v2101_v8, %v2033_v14  ;;  %v2269_v7 = vmul.f32 %v13877_v61, %v13417_v15  ;;  %v3144_v30 = vmul.f32 %v10116_v37, %v13447_v4  ;;  %v3212_v33 = vmul.f32 %v10127_v19, %v13420_v17  ;;  %4364 = vmatprep.subr.mxu0 %v4222_v43  ;;  %v13920_v16 = vld [vmem:[#allocation35_spill] sm:$0xff] }
 0x1ba   : > { %v2840_v47 = vadd.f32 %v2808_v25, %v2772_v41  ;;  %v1490_v59 = vadd.f32 %v1458_v53, %v1390_v39  ;;  %v3644_v38 = vadd.f32 %v3612_v12, %v3544_v44  ;;  %v3312_v8 = vmul.f32 %v10137_v27, %v13394_v49  ;;  %v10285_v39 = vld [vmem:[%s7967_s22 + $0x158] sm:$0xff]  ;;  %v10288_v44 = vld [vmem:[%s7967_s22 + $0x124] sm:$0xff]  ;;  %4365 = vmatpush1.msra.mxu0 %v4221_v32 }
 0x1bb   : > { %v2233_v14 = vadd.f32 %v2201_v58, %v2133_v56  ;;  %v2337_v61 = vmul.f32 %v13880_v28, %v13422_v10  ;;  %v2405_v0 = vmul.f32 %v13884_v3, %v8110_v20  ;;  %v790_v53 = vmul.f32 %v13904_v31, %v13395_v52  ;;  %13915 = vst [vmem:[#allocation66_spill] sm:$0xff] %v10285_v39  ;;  %v13918_v56 = vld [vmem:[#allocation59_spill] sm:$0xff] }
 0x1bc   : > { %v2940_v25 = vadd.f32 %v2908_v13, %v2840_v47  ;;  %v1590_v41 = vadd.f32 %v1558_v35, %v1490_v59  ;;  %v3744_v12 = vadd.f32 %v3712_v34, %v3644_v38  ;;  %13916 = vst [vmem:[#allocation43_spill] sm:$0xff] %v10288_v44  ;;  %v890_v28 = vmul.f32 %v13907_v11, %v13722_v40  ;;  %v13917_v13 = vld [vmem:[#allocation10_spill] sm:$0xff]  ;;  %v13922_v40 = vld [vmem:[#allocation11_spill] sm:$0xff] }
 0x1bd   : > { %v2301_v58 = vadd.f32 %v2269_v7, %v2233_v14  ;;  %v990_v35 = vmul.f32 %v13911_v22, %v13917_v13  ;;  %v3413_v47 = vmul.f32 %v10285_v39, %v13918_v56  ;;  %v13919_v59 = vld [vmem:[#allocation54_spill] sm:$0xff]  ;;  %v2505_v43 = vmul.f32 %v10288_v44, %v13920_v16  ;;  %v4220_v7 = vld [vmem:[%s10104_s24 + $0x18] sm:$0xff] }
 0x1be   : > { %v3040_v3 = vadd.f32 %v3008_v45, %v2940_v25  ;;  %v1629_v34 = vadd.f32 %v13919_v59, %v1590_v41  ;;  %v3844_v38 = vadd.f32 %v3812_v2, %v3744_v12  ;;  %v10301_v14 = vld [vmem:[%s7967_s22 + $0x159] sm:$0xff]  ;;  %v922_v21 = vadd.f32 %v890_v28, %v790_v53  ;;  %v1766_v45 = vld [vmem:[%s7967_s22 + $0x111] sm:$0xff]  ;;  %4366 = vmatprep.subr.mxu0 %v4220_v7 }
 0x1bf   : > { %13921 = vst [vmem:[#allocation19_spill] sm:$0xff] %v10301_v14  ;;  %v2369_v27 = vadd.f32 %v2337_v61, %v2301_v58  ;;  %v1090_v32 = vmul.f32 %v13914_v54, %v13922_v40  ;;  %v1866_v25 = vld [vmem:[%s7967_s22 + $0x112] sm:$0xff]  ;;  %v1158_v2 = vmul.f32 %v10116_v37, %v13897_v48  ;;  %v10316_v53 = vld [vmem:[%s7967_s22 + $0x15a] sm:$0xff] }
 0x1c0   : > { %v3108_v39 = vadd.f32 %v3076_v60, %v3040_v3  ;;  %v13923_v56 = vld [vmem:[#allocation29_spill] sm:$0xff]  ;;  %3971 = vrot.lane.b32.xlu0 %v1629_v34, %s13869_s1  ;;  %v3883_v61 = vadd.f32 %v9733_v23, %v3844_v38  ;;  %13926 = vst [vmem:[#allocation57_spill] sm:$0xff] %v10316_v53  ;;  %v1022_v58 = vadd.f32 %v990_v35, %v922_v21  ;;  %v13928_v54 = vld [vmem:[#allocation12_spill] sm:$0xff] }
 0x1c1   : > { %v3513_v41 = vmul.f32 %v10301_v14, %v13923_v56  ;;  %v13924_v44 = vld [vmem:[#allocation37_spill] sm:$0xff]  ;;  %v2437_v12 = vadd.f32 %v2405_v0, %v2369_v27  ;;  %v13930_v56 = vld [vmem:[#allocation24_spill] sm:$0xff] }
 0x1c2   : > { %v13925_v16 = vld [vmem:[#allocation61_spill] sm:$0xff]  ;;  %v3176_v7 = vadd.f32 %v3144_v30, %v3108_v39  ;;  %v1902_v40 = vmul.f32 %v13930_v56, %v1866_v25  ;;  %4095 = vrot.lane.b32.xlu1 %v3883_v61, %s13875_s26  ;;  %v13932_v0 = vld [vmem:[#allocation32_spill] sm:$0xff]  ;;  %v1122_v35 = vadd.f32 %v1090_v32, %v1022_v58  ;;  %v1258_v30 = vmul.f32 %v10127_v19, %v13461_v29  ;;  %v13935_v56 = vld [vmem:[#allocation14_spill] sm:$0xff] }
 0x1c3   : > { %v2605_v59 = vmul.f32 %v13925_v16, %v13924_v44  ;;  %v13927_v60 = vld [vmem:[#allocation41_spill] sm:$0xff]  ;;  %v3613_v16 = vmul.f32 %v10316_v53, %v13928_v54  ;;  %v13929_v44 = vld [vmem:[#allocation22_spill] sm:$0xff]  ;;  %v2537_v27 = vadd.f32 %v2505_v43, %v2437_v12  ;;  %v2673_v21 = vmul.f32 %v13932_v0, %v13543_v63  ;;  %v10344_v58 = vld [vmem:[%s7967_s22 + $0x128] sm:$0xff] }
 0x1c4   : > { %v1702_v28 = vmul.f32 %v13927_v60, %v13785_v26  ;;  %v1966_v3 = vld [vmem:[%s7967_s22 + $0x113] sm:$0xff]  ;;  %v1802_v34 = vmul.f32 %v13929_v44, %v1766_v45  ;;  %v10327_v23 = vld [vmem:[%s7967_s22 + $0x15b] sm:$0xff]  ;;  %v3244_v39 = vadd.f32 %v3212_v33, %v3176_v7  ;;  %v2741_v43 = vmul.f32 %v13935_v56, %v13906_v1  ;;  %13936 = vst [vmem:[#allocation48_spill] sm:$0xff] %v10344_v58 }
 0x1c5   : > { %13931 = vst [vmem:[#allocation20_spill] sm:$0xff] %v10327_v23  ;;  %v3713_v38 = vmul.f32 %v10327_v23, %v8349_v55  ;;  %v13933_v25 = vld [vmem:[#allocation25_spill] sm:$0xff]  ;;  %v2637_v61 = vadd.f32 %v2605_v59, %v2537_v27  ;;  %v1190_v12 = vadd.f32 %v1158_v2, %v1122_v35  ;;  %v1359_v32 = vmul.f32 %v10301_v14, %v13908_v36  ;;  %v13938_v27 = vld [vmem:[#allocation30_spill] sm:$0xff] }
 0x1c6   : > { %v1834_v45 = vadd.f32 %v1802_v34, %v1702_v28  ;;  %v2002_v60 = vmul.f32 %v13933_v25, %v1966_v3  ;;  %v10337_v37 = vld [vmem:[%s7967_s22 + $0x15c] sm:$0xff]  ;;  %v3344_v19 = vadd.f32 %v3312_v8, %v3244_v39  ;;  %v10347_v33 = vld [vmem:[%s7972_s28 + $0x18] ss:$0 sm:$0xff]  ;;  %v13937_v3 = vld [vmem:[#allocation60_spill] sm:$0xff]  ;;  %v2809_v1 = vmul.f32 %v13938_v27, %v13467_v50 }
 0x1c7   : > { %13934 = vst [vmem:[#allocation40_spill] sm:$0xff] %v10337_v37  ;;  %v3813_v28 = vmul.f32 %v10347_v33, %v10337_v37  ;;  %v2102_v34 = vmul.f32 %v13937_v3, %v8054_v42  ;;  %v2705_v59 = vadd.f32 %v2673_v21, %v2637_v61  ;;  %v1290_v2 = vadd.f32 %v1258_v30, %v1190_v12  ;;  %v13939_v8 = vld [vmem:[#allocation47_spill] sm:$0xff] }
 0x1c8   : > { %v1934_v7 = vadd.f32 %v1902_v40, %v1834_v45  ;;  %v1459_v35 = vmul.f32 %v10316_v53, %v13359_v5  ;;  %v3445_v14 = vadd.f32 %v3413_v47, %v3344_v19  ;;  %v2909_v39 = vmul.f32 %v13939_v8, %v13385_v24  ;;  %v13940_v45 = vld [vmem:[#allocation50_spill] sm:$0xff]  ;;  %v13941_v19 = vld [vmem:[#allocation64_spill] sm:$0xff] }
 0x1c9   : > { %v2202_v37 = vmul.f32 %v10344_v58, %v13443_v46  ;;  %v2773_v40 = vadd.f32 %v2741_v43, %v2705_v59  ;;  %v3009_v21 = vmul.f32 %v13940_v45, %v13387_v51  ;;  %v1391_v61 = vadd.f32 %v1359_v32, %v1290_v2 }
 0x1ca   : > { %v2034_v36 = vadd.f32 %v2002_v60, %v1934_v7  ;;  %v1559_v30 = vmul.f32 %v10161_v57, %v10327_v23  ;;  %v3545_v12 = vadd.f32 %v3513_v41, %v3445_v14  ;;  %v3077_v47 = vmul.f32 %v13941_v19, %v13389_v9 }
 0x1cb   : > { %v2270_v60 = vmul.f32 %v13904_v31, %v13417_v15  ;;  %v2841_v7 = vadd.f32 %v2809_v1, %v2773_v40  ;;  %v3145_v43 = vmul.f32 %v10219_v18, %v13447_v4  ;;  %v3213_v32 = vmul.f32 %v10230_v6, %v13420_v17  ;;  %v4218_v31 = vld [vmem:[%s10104_s24 + $0x8] sm:$0xff]  ;;  %v4217_v1 = vld [vmem:[%s10104_s24] sm:$0xff] }
 0x1cc   : > { %v2134_v3 = vadd.f32 %v2102_v34, %v2034_v36  ;;  %v1491_v59 = vadd.f32 %v1459_v35, %v1391_v61  ;;  %v3645_v2 = vadd.f32 %v3613_v16, %v3545_v12  ;;  %v3313_v14 = vmul.f32 %v10240_v62, %v13394_v49  ;;  %v4219_v34 = vld [vmem:[%s10104_s24 + $0x10] sm:$0xff]  ;;  %v10385_v61 = vld [vmem:[%s7967_s22 + $0x168] sm:$0xff]  ;;  %v13944_v12 = vld [vmem:[#allocation9_spill] sm:$0xff]  ;;  %s6323_s24 = sshll.u32 %s7942_s18, 1 }
 0x1cd   : > { %v2338_v36 = vmul.f32 %v13907_v11, %v13422_v10  ;;  %v2941_v8 = vadd.f32 %v2909_v39, %v2841_v7  ;;  %v2406_v58 = vmul.f32 %v13911_v22, %v8110_v20  ;;  %v791_v35 = vmul.f32 %v13932_v0, %v13395_v52  ;;  %4367 = vmatpush1.msra.mxu0 %v4219_v34  ;;  %v10388_v11 = vld [vmem:[%s7967_s22 + $0x12c] sm:$0xff]  ;;  %s667_s20 = scalar_lea.vmem %s12737_s7, %s6323_s24 }
 0x1ce   : > { %v2234_v41 = vadd.f32 %v2202_v37, %v2134_v3  ;;  %v1591_v40 = vadd.f32 %v1559_v30, %v1491_v59  ;;  %v3745_v16 = vadd.f32 %v3713_v38, %v3645_v2  ;;  %13942 = vst [vmem:[#allocation65_spill] sm:$0xff] %v10385_v61  ;;  %13943 = vst [vmem:[#allocation33_spill] sm:$0xff] %v10388_v11  ;;  %4368 = vmatprep.subr.mxu0 %v4218_v31  ;;  %v13945_v3 = vld [vmem:[#allocation59_spill] sm:$0xff]  ;;  %v13946_v59 = vld [vmem:[#allocation54_spill] sm:$0xff] }
 0x1cf   : > { %v891_v39 = vmul.f32 %v13935_v56, %v13944_v12  ;;  %v991_v30 = vmul.f32 %v13938_v27, %v13917_v13  ;;  %v3041_v22 = vadd.f32 %v3009_v21, %v2941_v8  ;;  %v3414_v7 = vmul.f32 %v10385_v61, %v13945_v3  ;;  %v13947_v2 = vld [vmem:[#allocation35_spill] sm:$0xff]  ;;  %4369 = vmatpush1.msra.mxu0 %v4217_v1  ;;  %v13950_v3 = vld [vmem:[#allocation29_spill] sm:$0xff] }
 0x1d0   : > { %v2302_v37 = vadd.f32 %v2270_v60, %v2234_v41  ;;  %v1630_v38 = vadd.f32 %v13946_v59, %v1591_v40  ;;  %v2506_v60 = vmul.f32 %v10388_v11, %v13947_v2  ;;  %v3845_v41 = vadd.f32 %v3813_v28, %v3745_v16  ;;  %v10400_v34 = vld [vmem:[%s7967_s22 + $0x169] sm:$0xff]  ;;  %v1767_v31 = vld [vmem:[%s7967_s22 + $0x121] sm:$0xff]  ;;  %v13951_v59 = vld [vmem:[#allocation37_spill] sm:$0xff] }
 0x1d1   : > { %13948 = vst [vmem:[#allocation51_spill] sm:$0xff] %v10400_v34  ;;  %v923_v45 = vadd.f32 %v891_v39, %v791_v35  ;;  %v13949_v13 = vld [vmem:[#allocation11_spill] sm:$0xff]  ;;  %v3109_v61 = vadd.f32 %v3077_v47, %v3041_v22  ;;  %v3514_v40 = vmul.f32 %v10400_v34, %v13950_v3  ;;  %v1159_v28 = vmul.f32 %v10219_v18, %v13897_v48  ;;  %v13956_v18 = vld [vmem:[#allocation24_spill] sm:$0xff] }
 0x1d2   : > { %v2370_v62 = vadd.f32 %v2338_v36, %v2302_v37  ;;  %v1091_v21 = vmul.f32 %v13941_v19, %v13949_v13  ;;  %v1867_v8 = vld [vmem:[%s7967_s22 + $0x122] sm:$0xff]  ;;  %3973 = vrot.lane.b32.xlu0 %v1630_v38, %s13869_s1  ;;  %v10414_v36 = vld [vmem:[%s8399_s23] ss:$0 sm:$0xff]  ;;  %v10418_v35 = vld [vmem:[%s7967_s22 + $0x16a] sm:$0xff]  ;;  %v1803_v38 = vmul.f32 %v13929_v44, %v1767_v31 }
 0x1d3   : > { %v13952_v12 = vld [vmem:[#allocation39_spill] sm:$0xff]  ;;  %13953 = vst [vmem:[#allocation63_spill] sm:$0xff] %v10414_v36  ;;  %v3884_v1 = vadd.f32 %v10414_v36, %v3845_v41  ;;  %13954 = vst [vmem:[#allocation16_spill] sm:$0xff] %v10418_v35  ;;  %v1023_v47 = vadd.f32 %v991_v30, %v923_v45  ;;  %v13955_v37 = vld [vmem:[#allocation62_spill] sm:$0xff]  ;;  %v3177_v19 = vadd.f32 %v3145_v43, %v3109_v61 }
 0x1d4   : > { %v2606_v11 = vmul.f32 %v13952_v12, %v13951_v59  ;;  %v2438_v16 = vadd.f32 %v2406_v58, %v2370_v62  ;;  %v1703_v39 = vmul.f32 %v13955_v37, %v13785_v26  ;;  %v1967_v22 = vld [vmem:[%s7967_s22 + $0x123] sm:$0xff]  ;;  %v3614_v12 = vmul.f32 %v10418_v35, %v13928_v54  ;;  %v10429_v41 = vld [vmem:[%s7967_s22 + $0x16b] sm:$0xff] }
 0x1d5   : > { %v1903_v48 = vmul.f32 %v13956_v18, %v1867_v8  ;;  %4097 = vrot.lane.b32.xlu1 %v3884_v1, %s13875_s26  ;;  %13957 = vst [vmem:[#allocation52_spill] sm:$0xff] %v10429_v41  ;;  %v13958_v58 = vld [vmem:[#allocation56_spill] sm:$0xff]  ;;  %v1123_v30 = vadd.f32 %v1091_v21, %v1023_v47  ;;  %v1259_v43 = vmul.f32 %v10230_v6, %v13461_v29  ;;  %v13960_v44 = vld [vmem:[#allocation42_spill] sm:$0xff]  ;;  %v13961_v54 = vld [vmem:[#allocation31_spill] sm:$0xff] }
 0x1d6   : > { %v2538_v62 = vadd.f32 %v2506_v60, %v2438_v16  ;;  %v2674_v45 = vmul.f32 %v13958_v58, %v13543_v63  ;;  %v3245_v61 = vadd.f32 %v3213_v32, %v3177_v19  ;;  %v3714_v37 = vmul.f32 %v10429_v41, %v8349_v55  ;;  %v10439_v18 = vld [vmem:[%s7967_s22 + $0x16c] sm:$0xff]  ;;  %v10446_v47 = vld [vmem:[%s7967_s22 + $0x138] sm:$0xff] }
 0x1d7   : > { %v1835_v31 = vadd.f32 %v1803_v38, %v1703_v39  ;;  %v2003_v8 = vmul.f32 %v13933_v25, %v1967_v22  ;;  %13959 = vst [vmem:[#allocation53_spill] sm:$0xff] %v10439_v18  ;;  %v2742_v60 = vmul.f32 %v13961_v54, %v13960_v44  ;;  %v1191_v16 = vadd.f32 %v1159_v28, %v1123_v30  ;;  %v13962_v26 = vld [vmem:[#allocation23_spill] sm:$0xff] }
 0x1d8   : > { %v2638_v1 = vadd.f32 %v2606_v11, %v2538_v62  ;;  %v1360_v21 = vmul.f32 %v10400_v34, %v13962_v26  ;;  %13963 = vst [vmem:[#allocation36_spill] sm:$0xff] %v10446_v47  ;;  %v3345_v6 = vadd.f32 %v3313_v14, %v3245_v61  ;;  %v3814_v19 = vmul.f32 %v10347_v33, %v10439_v18  ;;  %v13964_v39 = vld [vmem:[#allocation43_spill] sm:$0xff]  ;;  %v13965_v11 = vld [vmem:[#allocation38_spill] sm:$0xff]  ;;  %v13966_v34 = vld [vmem:[#allocation49_spill] sm:$0xff] }
 0x1d9   : > { %v1935_v32 = vadd.f32 %v1903_v48, %v1835_v31  ;;  %v2103_v22 = vmul.f32 %v13964_v39, %v8054_v42  ;;  %v2810_v62 = vmul.f32 %v13965_v11, %v13467_v50  ;;  %v1291_v25 = vadd.f32 %v1259_v43, %v1191_v16  ;;  %v13967_v31 = vld [vmem:[#allocation66_spill] sm:$0xff]  ;;  %v13968_v16 = vld [vmem:[#allocation19_spill] sm:$0xff] }
 0x1da   : > { %v2706_v38 = vadd.f32 %v2674_v45, %v2638_v1  ;;  %v1460_v28 = vmul.f32 %v10418_v35, %v13359_v5  ;;  %v3446_v30 = vadd.f32 %v3414_v7, %v3345_v6  ;;  %v2910_v26 = vmul.f32 %v13966_v34, %v13385_v24 }
 0x1db   : > { %v2035_v14 = vadd.f32 %v2003_v8, %v1935_v32  ;;  %v2203_v61 = vmul.f32 %v10446_v47, %v13443_v46  ;;  %v3010_v39 = vmul.f32 %v13967_v31, %v13387_v51  ;;  %v1392_v45 = vadd.f32 %v1360_v21, %v1291_v25  ;;  %v1768_v31 = vld [vmem:[%s7967_s22 + $0x129] sm:$0xff] }
 0x1dc   : > { %v2774_v48 = vadd.f32 %v2742_v60, %v2706_v38  ;;  %v1560_v1 = vmul.f32 %v10161_v57, %v10429_v41  ;;  %v3546_v43 = vadd.f32 %v3514_v40, %v3446_v30  ;;  %v3078_v18 = vmul.f32 %v13968_v16, %v13389_v9  ;;  %v13969_v40 = vld [vmem:[#allocation40_spill] sm:$0xff] }
 0x1dd   : > { %v2135_v6 = vadd.f32 %v2103_v22, %v2035_v14  ;;  %v2271_v7 = vmul.f32 %v13932_v0, %v13417_v15  ;;  %v3146_v8 = vmul.f32 %v10316_v53, %v13447_v4  ;;  %v3214_v25 = vmul.f32 %v10327_v23, %v13420_v17 }
 0x1de   : > { %v2842_v34 = vadd.f32 %v2810_v62, %v2774_v48  ;;  %v1492_v60 = vadd.f32 %v1460_v28, %v1392_v45  ;;  %v3646_v21 = vadd.f32 %v3614_v12, %v3546_v43  ;;  %v3314_v32 = vmul.f32 %v13969_v40, %v13394_v49  ;;  %v10481_v12 = vld [vmem:[%s7967_s22 + $0x170] sm:$0xff]  ;;  %v10484_v45 = vld [vmem:[%s7967_s22 + $0x13c] sm:$0xff] }
 0x1df   : > { %v2235_v38 = vadd.f32 %v2203_v61, %v2135_v6  ;;  %v2339_v22 = vmul.f32 %v13935_v56, %v13422_v10  ;;  %v2407_v62 = vmul.f32 %v13938_v27, %v8110_v20  ;;  %v792_v14 = vmul.f32 %v13958_v58, %v13395_v52  ;;  %13970 = vst [vmem:[#allocation45_spill] sm:$0xff] %v10481_v12  ;;  %v13972_v61 = vld [vmem:[#allocation9_spill] sm:$0xff]  ;;  %v13973_v43 = vld [vmem:[#allocation10_spill] sm:$0xff]  ;;  %v13974_v6 = vld [vmem:[#allocation59_spill] sm:$0xff] }
 0x1e0   : > { %v2942_v30 = vadd.f32 %v2910_v26, %v2842_v34  ;;  %v1592_v0 = vadd.f32 %v1560_v1, %v1492_v60  ;;  %v3746_v48 = vadd.f32 %v3714_v37, %v3646_v21  ;;  %13971 = vst [vmem:[#allocation58_spill] sm:$0xff] %v10484_v45  ;;  %v892_v56 = vmul.f32 %v13961_v54, %v13972_v61  ;;  %v13975_v34 = vld [vmem:[#allocation54_spill] sm:$0xff] }
 0x1e1   : > { %v2303_v28 = vadd.f32 %v2271_v7, %v2235_v38  ;;  %v992_v26 = vmul.f32 %v13965_v11, %v13973_v43  ;;  %v3415_v27 = vmul.f32 %v10481_v12, %v13974_v6  ;;  %v2507_v37 = vmul.f32 %v10484_v45, %v13947_v2  ;;  %v10496_v7 = vld [vmem:[%s7967_s22 + $0x171] sm:$0xff] }
 0x1e2   : > { %v3042_v1 = vadd.f32 %v3010_v39, %v2942_v30  ;;  %v1631_v60 = vadd.f32 %v13975_v34, %v1592_v0  ;;  %v3846_v21 = vadd.f32 %v3814_v19, %v3746_v48  ;;  %13976 = vst [vmem:[#allocation46_spill] sm:$0xff] %v10496_v7  ;;  %v924_v40 = vadd.f32 %v892_v56, %v792_v14  ;;  %v1868_v39 = vld [vmem:[%s7967_s22 + $0x12a] sm:$0xff]  ;;  %v13977_v0 = vld [vmem:[#allocation50_spill] sm:$0xff]  ;;  %v10511_v14 = vld [vmem:[%s7967_s22 + $0x172] sm:$0xff] }
 0x1e3   : > { %v2371_v38 = vadd.f32 %v2339_v22, %v2303_v28  ;;  %v1092_v47 = vmul.f32 %v13968_v16, %v13949_v13  ;;  %v3515_v12 = vmul.f32 %v10496_v7, %v13950_v3  ;;  %v2607_v34 = vmul.f32 %v13977_v0, %v13951_v59  ;;  %v13978_v19 = vld [vmem:[#allocation15_spill] sm:$0xff]  ;;  %13979 = vst [vmem:[#allocation28_spill] sm:$0xff] %v10511_v14  ;;  %v13980_v45 = vld [vmem:[#allocation21_spill] sm:$0xff]  ;;  %v13982_v13 = vld [vmem:[#allocation12_spill] sm:$0xff] }
 0x1e4   : > { %v3110_v30 = vadd.f32 %v3078_v18, %v3042_v1  ;;  %3975 = vrot.lane.b32.xlu0 %v1631_v60, %s13869_s1  ;;  %v1160_v48 = vmul.f32 %v10316_v53, %v13978_v19  ;;  %v3885_v22 = vadd.f32 %v10414_v36, %v3846_v21  ;;  %v1024_v56 = vadd.f32 %v992_v26, %v924_v40  ;;  %v13981_v18 = vld [vmem:[#allocation48_spill] sm:$0xff]  ;;  %v13983_v59 = vld [vmem:[#allocation22_spill] sm:$0xff]  ;;  %v13986_v53 = vld [vmem:[#allocation25_spill] sm:$0xff] }
 0x1e5   : > { %v2439_v28 = vadd.f32 %v2407_v62, %v2371_v38  ;;  %v1704_v1 = vmul.f32 %v13981_v18, %v13980_v45  ;;  %v1968_v16 = vld [vmem:[%s7967_s22 + $0x12b] sm:$0xff]  ;;  %v3615_v0 = vmul.f32 %v10511_v14, %v13982_v13  ;;  %v1804_v60 = vmul.f32 %v13983_v59, %v1768_v31  ;;  %v10522_v21 = vld [vmem:[%s7967_s22 + $0x173] sm:$0xff] }
 0x1e6   : > { %v3178_v3 = vadd.f32 %v3146_v8, %v3110_v30  ;;  %v13984_v2 = vld [vmem:[#allocation24_spill] sm:$0xff]  ;;  %4099 = vrot.lane.b32.xlu1 %v3885_v22, %s13875_s26  ;;  %v1124_v38 = vadd.f32 %v1092_v47, %v1024_v56  ;;  %v1260_v8 = vmul.f32 %v10327_v23, %v13461_v29  ;;  %v3715_v18 = vmul.f32 %v10522_v21, %v8349_v55  ;;  %v13988_v59 = vld [vmem:[#allocation17_spill] sm:$0xff]  ;;  %v13989_v13 = vld [vmem:[#allocation23_spill] sm:$0xff] }
 0x1e7   : > { %v1904_v6 = vmul.f32 %v13984_v2, %v1868_v39  ;;  %v2539_v62 = vadd.f32 %v2507_v37, %v2439_v28  ;;  %v13985_v40 = vld [vmem:[#allocation64_spill] sm:$0xff]  ;;  %v1836_v31 = vadd.f32 %v1804_v60, %v1704_v1  ;;  %v2004_v39 = vmul.f32 %v13986_v53, %v1968_v16  ;;  %v10539_v56 = vld [vmem:[%s7967_s22 + $0x140] sm:$0xff]  ;;  %v13991_v1 = vld [vmem:[#allocation33_spill] sm:$0xff] }
 0x1e8   : > { %v2675_v26 = vmul.f32 %v13985_v40, %v13543_v63  ;;  %v3246_v30 = vadd.f32 %v3214_v25, %v3178_v3  ;;  %v10532_v2 = vld [vmem:[%s7967_s22 + $0x174] sm:$0xff]  ;;  %v2743_v37 = vmul.f32 %v13988_v59, %v13960_v44  ;;  %v1192_v28 = vadd.f32 %v1160_v48, %v1124_v38  ;;  %13990 = vst [vmem:[#allocation41_spill] sm:$0xff] %v10539_v56 }
 0x1e9   : > { %13987 = vst [vmem:[#allocation61_spill] sm:$0xff] %v10532_v2  ;;  %v2639_v22 = vadd.f32 %v2607_v34, %v2539_v62  ;;  %v1361_v47 = vmul.f32 %v10496_v7, %v13989_v13  ;;  %v3815_v3 = vmul.f32 %v10347_v33, %v10532_v2  ;;  %v1936_v25 = vadd.f32 %v1904_v6, %v1836_v31  ;;  %v13992_v34 = vld [vmem:[#allocation26_spill] sm:$0xff]  ;;  %v13993_v7 = vld [vmem:[#allocation44_spill] sm:$0xff]  ;;  %v13994_v31 = vld [vmem:[#allocation65_spill] sm:$0xff] }
 0x1ea   : > { %v3346_v23 = vadd.f32 %v3314_v32, %v3246_v30  ;;  %v2104_v16 = vmul.f32 %v13991_v1, %v8054_v42  ;;  %v2811_v62 = vmul.f32 %v13992_v34, %v13467_v50  ;;  %v1292_v53 = vadd.f32 %v1260_v8, %v1192_v28  ;;  %v13995_v28 = vld [vmem:[#allocation51_spill] sm:$0xff] }
 0x1eb   : > { %v2707_v60 = vadd.f32 %v2675_v26, %v2639_v22  ;;  %v1461_v48 = vmul.f32 %v10511_v14, %v13359_v5  ;;  %v2911_v13 = vmul.f32 %v13993_v7, %v13385_v24  ;;  %v2036_v32 = vadd.f32 %v2004_v39, %v1936_v25 }
 0x1ec   : > { %v3447_v38 = vadd.f32 %v3415_v27, %v3346_v23  ;;  %v2204_v30 = vmul.f32 %v10539_v56, %v13443_v46  ;;  %v3011_v1 = vmul.f32 %v13994_v31, %v13387_v51  ;;  %v1393_v26 = vadd.f32 %v1361_v47, %v1292_v53  ;;  %v1769_v31 = vld [vmem:[%s7967_s22 + $0x139] sm:$0xff] }
 0x1ed   : > { %v2775_v6 = vadd.f32 %v2743_v37, %v2707_v60  ;;  %v1561_v22 = vmul.f32 %v10161_v57, %v10522_v21  ;;  %v3079_v2 = vmul.f32 %v13995_v28, %v13389_v9  ;;  %v2136_v23 = vadd.f32 %v2104_v16, %v2036_v32 }
 0x1ee   : > { %v3547_v8 = vadd.f32 %v3515_v12, %v3447_v38  ;;  %v2272_v27 = vmul.f32 %v13958_v58, %v13417_v15  ;;  %v3147_v39 = vmul.f32 %v10418_v35, %v13447_v4  ;;  %v3215_v53 = vmul.f32 %v10429_v41, %v13420_v17  ;;  %v13996_v12 = vld [vmem:[#allocation53_spill] sm:$0xff] }
 0x1ef   : > { %v2843_v7 = vadd.f32 %v2811_v62, %v2775_v6  ;;  %v1493_v37 = vadd.f32 %v1461_v48, %v1393_v26  ;;  %v3315_v25 = vmul.f32 %v13996_v12, %v13394_v49  ;;  %v2236_v60 = vadd.f32 %v2204_v30, %v2136_v23  ;;  %v10577_v26 = vld [vmem:[%s7967_s22 + $0x144] sm:$0xff] }
 0x1f0   : > { %v3647_v47 = vadd.f32 %v3615_v0, %v3547_v8  ;;  %v2340_v16 = vmul.f32 %v13961_v54, %v13422_v10  ;;  %v2408_v62 = vmul.f32 %v13965_v11, %v8110_v20  ;;  %v793_v32 = vmul.f32 %v13985_v40, %v13395_v52  ;;  %v10574_v0 = vld [vmem:[%s7967_s22 + $0x180] sm:$0xff]  ;;  %13998 = vst [vmem:[#allocation14_spill] sm:$0xff] %v10577_v26  ;;  %v14003_v12 = vld [vmem:[#allocation11_spill] sm:$0xff] }
 0x1f1   : > { %v2943_v38 = vadd.f32 %v2911_v13, %v2843_v7  ;;  %v1593_v58 = vadd.f32 %v1561_v22, %v1493_v37  ;;  %13997 = vst [vmem:[#allocation32_spill] sm:$0xff] %v10574_v0  ;;  %v2304_v48 = vadd.f32 %v2272_v27, %v2236_v60  ;;  %v893_v54 = vmul.f32 %v13988_v59, %v13972_v61  ;;  %v13999_v22 = vld [vmem:[#allocation59_spill] sm:$0xff]  ;;  %v14000_v8 = vld [vmem:[#allocation54_spill] sm:$0xff] }
 0x1f2   : > { %v3747_v6 = vadd.f32 %v3715_v18, %v3647_v47  ;;  %v993_v13 = vmul.f32 %v13992_v34, %v13973_v43  ;;  %v3416_v11 = vmul.f32 %v10574_v0, %v13999_v22  ;;  %v14001_v18 = vld [vmem:[#allocation35_spill] sm:$0xff]  ;;  %v1093_v56 = vmul.f32 %v13995_v28, %v14003_v12  ;;  %v14004_v43 = vld [vmem:[#allocation29_spill] sm:$0xff]  ;;  %v14009_v28 = vld [vmem:[#allocation12_spill] sm:$0xff] }
 0x1f3   : > { %v3043_v30 = vadd.f32 %v3011_v1, %v2943_v38  ;;  %v1632_v23 = vadd.f32 %v14000_v8, %v1593_v58  ;;  %v2508_v7 = vmul.f32 %v10577_v26, %v14001_v18  ;;  %v10589_v27 = vld [vmem:[%s7967_s22 + $0x181] sm:$0xff]  ;;  %v2372_v47 = vadd.f32 %v2340_v16, %v2304_v48  ;;  %v14005_v58 = vld [vmem:[#allocation37_spill] sm:$0xff] }
 0x1f4   : > { %v3847_v37 = vadd.f32 %v3815_v3, %v3747_v6  ;;  %14002 = vst [vmem:[#allocation60_spill] sm:$0xff] %v10589_v27  ;;  %v925_v60 = vadd.f32 %v893_v54, %v793_v32  ;;  %v1869_v1 = vld [vmem:[%s7967_s22 + $0x13a] sm:$0xff]  ;;  %v3516_v0 = vmul.f32 %v10589_v27, %v14004_v43  ;;  %v1161_v3 = vmul.f32 %v10418_v35, %v13978_v19  ;;  %v10604_v32 = vld [vmem:[%s7967_s22 + $0x182] sm:$0xff]  ;;  %v14011_v43 = vld [vmem:[#allocation24_spill] sm:$0xff] }
 0x1f5   : > { %v3111_v38 = vadd.f32 %v3079_v2, %v3043_v30  ;;  %v14006_v8 = vld [vmem:[#allocation66_spill] sm:$0xff]  ;;  %3977 = vrot.lane.b32.xlu0 %v1632_v23, %s13869_s1  ;;  %14007 = vst [vmem:[#allocation30_spill] sm:$0xff] %v10604_v32  ;;  %v2440_v6 = vadd.f32 %v2408_v62, %v2372_v47  ;;  %v14008_v2 = vld [vmem:[#allocation36_spill] sm:$0xff]  ;;  %v1905_v12 = vmul.f32 %v14011_v43, %v1869_v1  ;;  %v14013_v35 = vld [vmem:[#allocation25_spill] sm:$0xff] }
 0x1f6   : > { %v2608_v22 = vmul.f32 %v14006_v8, %v14005_v58  ;;  %v3886_v16 = vadd.f32 %v10414_v36, %v3847_v37  ;;  %v1025_v48 = vadd.f32 %v993_v13, %v925_v60  ;;  %v1705_v54 = vmul.f32 %v14008_v2, %v13980_v45  ;;  %v1969_v30 = vld [vmem:[%s7967_s22 + $0x13b] sm:$0xff]  ;;  %v10615_v37 = vld [vmem:[%s7967_s22 + $0x183] sm:$0xff] }
 0x1f7   : > { %v3179_v26 = vadd.f32 %v3147_v39, %v3111_v38  ;;  %v3616_v8 = vmul.f32 %v10604_v32, %v14009_v28  ;;  %v14010_v58 = vld [vmem:[#allocation22_spill] sm:$0xff]  ;;  %v2540_v62 = vadd.f32 %v2508_v7, %v2440_v6  ;;  %v14012_v13 = vld [vmem:[#allocation19_spill] sm:$0xff]  ;;  %v1261_v39 = vmul.f32 %v10429_v41, %v13461_v29 }
 0x1f8   : > { %v1805_v23 = vmul.f32 %v14010_v58, %v1769_v31  ;;  %4101 = vrot.lane.b32.xlu1 %v3886_v16, %s13875_s26  ;;  %v2676_v47 = vmul.f32 %v14012_v13, %v13543_v63  ;;  %v1125_v60 = vadd.f32 %v1093_v56, %v1025_v48  ;;  %v3716_v2 = vmul.f32 %v10615_v37, %v8349_v55  ;;  %v10625_v43 = vld [vmem:[%s7967_s22 + $0x184] sm:$0xff]  ;;  %v14015_v58 = vld [vmem:[#allocation57_spill] sm:$0xff]  ;;  %v10632_v48 = vld [vmem:[%s7967_s22 + $0x150] sm:$0xff] }
 0x1f9   : > { %v3247_v38 = vadd.f32 %v3215_v53, %v3179_v26  ;;  %v2005_v1 = vmul.f32 %v14013_v35, %v1969_v30  ;;  %14014 = vst [vmem:[#allocation47_spill] sm:$0xff] %v10625_v43  ;;  %v2640_v16 = vadd.f32 %v2608_v22, %v2540_v62  ;;  %v2744_v7 = vmul.f32 %v14015_v58, %v13960_v44  ;;  %v14016_v28 = vld [vmem:[#allocation23_spill] sm:$0xff]  ;;  %v14019_v22 = vld [vmem:[#allocation20_spill] sm:$0xff] }
 0x1fa   : > { %v1837_v31 = vadd.f32 %v1805_v23, %v1705_v54  ;;  %v1193_v6 = vadd.f32 %v1161_v3, %v1125_v60  ;;  %v1362_v56 = vmul.f32 %v10589_v27, %v14016_v28  ;;  %14017 = vst [vmem:[#allocation39_spill] sm:$0xff] %v10632_v48  ;;  %v3816_v53 = vmul.f32 %v10347_v33, %v10625_v43  ;;  %v14018_v54 = vld [vmem:[#allocation58_spill] sm:$0xff]  ;;  %v14020_v27 = vld [vmem:[#allocation40_spill] sm:$0xff] }
 0x1fb   : > { %v3347_v41 = vadd.f32 %v3315_v25, %v3247_v38  ;;  %v2105_v30 = vmul.f32 %v14018_v54, %v8054_v42  ;;  %v2708_v23 = vadd.f32 %v2676_v47, %v2640_v16  ;;  %v2812_v62 = vmul.f32 %v14019_v22, %v13467_v50 }
 0x1fc   : > { %v1937_v26 = vadd.f32 %v1905_v12, %v1837_v31  ;;  %v1293_v35 = vadd.f32 %v1261_v39, %v1193_v6  ;;  %v1462_v3 = vmul.f32 %v10604_v32, %v13359_v5  ;;  %v2912_v28 = vmul.f32 %v14020_v27, %v13385_v24  ;;  %v14021_v31 = vld [vmem:[#allocation45_spill] sm:$0xff]  ;;  %v14022_v6 = vld [vmem:[#allocation46_spill] sm:$0xff] }
 0x1fd   : > { %v3448_v60 = vadd.f32 %v3416_v11, %v3347_v41  ;;  %v2205_v38 = vmul.f32 %v10632_v48, %v13443_v46  ;;  %v2776_v12 = vadd.f32 %v2744_v7, %v2708_v23  ;;  %v3012_v54 = vmul.f32 %v14021_v31, %v13387_v51  ;;  %v1770_v31 = vld [vmem:[%s7967_s22 + $0x141] sm:$0xff] }
 0x1fe   : > { %v2037_v25 = vadd.f32 %v2005_v1, %v1937_v26  ;;  %v1394_v47 = vadd.f32 %v1362_v56, %v1293_v35  ;;  %v1562_v16 = vmul.f32 %v10161_v57, %v10615_v37  ;;  %v3080_v43 = vmul.f32 %v14022_v6, %v13389_v9 }
 0x1ff   : > { %v3548_v39 = vadd.f32 %v3516_v0, %v3448_v60  ;;  %v2273_v11 = vmul.f32 %v13985_v40, %v13417_v15  ;;  %v2844_v27 = vadd.f32 %v2812_v62, %v2776_v12  ;;  %v3148_v1 = vmul.f32 %v10511_v14, %v13447_v4  ;;  %v14023_v0 = vld [vmem:[#allocation61_spill] sm:$0xff] }
 0x200   : > { %v2137_v41 = vadd.f32 %v2105_v30, %v2037_v25  ;;  %v3216_v35 = vmul.f32 %v10522_v21, %v13420_v17  ;;  %v1494_v7 = vadd.f32 %v1462_v3, %v1394_v47  ;;  %v3316_v26 = vmul.f32 %v14023_v0, %v13394_v49  ;;  %v10670_v47 = vld [vmem:[%s7967_s22 + $0x154] sm:$0xff]  ;;  %v14030_v0 = vld [vmem:[#allocation11_spill] sm:$0xff] }
 0x201   : > { %v3648_v56 = vadd.f32 %v3616_v8, %v3548_v39  ;;  %v2341_v30 = vmul.f32 %v13988_v59, %v13422_v10  ;;  %v2944_v60 = vadd.f32 %v2912_v28, %v2844_v27  ;;  %v2409_v62 = vmul.f32 %v13992_v34, %v8110_v20  ;;  %v10667_v8 = vld [vmem:[%s7967_s22 + $0x188] sm:$0xff]  ;;  %14025 = vst [vmem:[#allocation56_spill] sm:$0xff] %v10670_v47 }
 0x202   : > { %v2237_v23 = vadd.f32 %v2205_v38, %v2137_v41  ;;  %v1594_v40 = vadd.f32 %v1562_v16, %v1494_v7  ;;  %v794_v25 = vmul.f32 %v14012_v13, %v13395_v52  ;;  %14024 = vst [vmem:[#allocation62_spill] sm:$0xff] %v10667_v8  ;;  %v894_v59 = vmul.f32 %v14015_v58, %v13972_v61  ;;  %v14026_v38 = vld [vmem:[#allocation10_spill] sm:$0xff]  ;;  %v14027_v39 = vld [vmem:[#allocation59_spill] sm:$0xff]  ;;  %v14033_v61 = vld [vmem:[#allocation65_spill] sm:$0xff] }
 0x203   : > { %v3748_v12 = vadd.f32 %v3716_v2, %v3648_v56  ;;  %v994_v28 = vmul.f32 %v14019_v22, %v14026_v38  ;;  %v3044_v16 = vadd.f32 %v3012_v54, %v2944_v60  ;;  %v3417_v34 = vmul.f32 %v10667_v8, %v14027_v39  ;;  %v14028_v41 = vld [vmem:[#allocation54_spill] sm:$0xff]  ;;  %v14031_v38 = vld [vmem:[#allocation29_spill] sm:$0xff] }
 0x204   : > { %v2305_v3 = vadd.f32 %v2273_v11, %v2237_v23  ;;  %v1633_v27 = vadd.f32 %v14028_v41, %v1594_v40  ;;  %v2509_v2 = vmul.f32 %v10670_v47, %v14001_v18  ;;  %v10682_v11 = vld [vmem:[%s7967_s22 + $0x189] sm:$0xff]  ;;  %v926_v23 = vadd.f32 %v894_v59, %v794_v25  ;;  %v14032_v40 = vld [vmem:[#allocation37_spill] sm:$0xff] }
 0x205   : > { %v3848_v7 = vadd.f32 %v3816_v53, %v3748_v12  ;;  %14029 = vst [vmem:[#allocation42_spill] sm:$0xff] %v10682_v11  ;;  %v1094_v48 = vmul.f32 %v14022_v6, %v14030_v0  ;;  %v1870_v54 = vld [vmem:[%s7967_s22 + $0x142] sm:$0xff]  ;;  %v3112_v60 = vadd.f32 %v3080_v43, %v3044_v16  ;;  %v3517_v8 = vmul.f32 %v10682_v11, %v14031_v38  ;;  %v10697_v25 = vld [vmem:[%s7967_s22 + $0x18a] sm:$0xff]  ;;  %v14035_v43 = vld [vmem:[#allocation41_spill] sm:$0xff] }
 0x206   : > { %v2373_v56 = vadd.f32 %v2341_v30, %v2305_v3  ;;  %v2609_v52 = vmul.f32 %v14033_v61, %v14032_v40  ;;  %3979 = vrot.lane.b32.xlu0 %v1633_v27, %s13869_s1  ;;  %v1162_v53 = vmul.f32 %v10511_v14, %v13978_v19  ;;  %14034 = vst [vmem:[#allocation31_spill] sm:$0xff] %v10697_v25  ;;  %v1970_v16 = vld [vmem:[%s7967_s22 + $0x143] sm:$0xff]  ;;  %v14036_v6 = vld [vmem:[#allocation12_spill] sm:$0xff]  ;;  %v14040_v14 = vld [vmem:[#allocation25_spill] sm:$0xff] }
 0x207   : > { %v3887_v30 = vadd.f32 %v10414_v36, %v3848_v7  ;;  %v1026_v3 = vadd.f32 %v994_v28, %v926_v23  ;;  %v1706_v59 = vmul.f32 %v14035_v43, %v13980_v45  ;;  %v3180_v47 = vadd.f32 %v3148_v1, %v3112_v60  ;;  %v14037_v40 = vld [vmem:[#allocation22_spill] sm:$0xff]  ;;  %v14038_v0 = vld [vmem:[#allocation24_spill] sm:$0xff]  ;;  %v14039_v28 = vld [vmem:[#allocation51_spill] sm:$0xff] }
 0x208   : > { %v2441_v12 = vadd.f32 %v2409_v62, %v2373_v56  ;;  %v3617_v61 = vmul.f32 %v10697_v25, %v14036_v6  ;;  %v1806_v27 = vmul.f32 %v14037_v40, %v1770_v31  ;;  %v1906_v18 = vmul.f32 %v14038_v0, %v1870_v54  ;;  %v10708_v7 = vld [vmem:[%s7967_s22 + $0x18b] sm:$0xff] }
 0x209   : > { %4103 = vrot.lane.b32.xlu1 %v3887_v30, %s13875_s26  ;;  %v2677_v56 = vmul.f32 %v14039_v28, %v13543_v63  ;;  %v1126_v23 = vadd.f32 %v1094_v48, %v1026_v3  ;;  %v1262_v1 = vmul.f32 %v10522_v21, %v13461_v29  ;;  %v3248_v60 = vadd.f32 %v3216_v35, %v3180_v47  ;;  %v10718_v0 = vld [vmem:[%s7967_s22 + $0x18c] sm:$0xff]  ;;  %v10725_v3 = vld [vmem:[%s7967_s22 + $0x158] sm:$0xff] }
 0x20a   : > { %v2541_v62 = vadd.f32 %v2509_v2, %v2441_v12  ;;  %v3717_v43 = vmul.f32 %v10708_v7, %v8349_v55  ;;  %v1838_v31 = vadd.f32 %v1806_v27, %v1706_v59  ;;  %v2006_v54 = vmul.f32 %v14040_v14, %v1970_v16  ;;  %14041 = vst [vmem:[#allocation43_spill] sm:$0xff] %v10718_v0  ;;  %v14042_v40 = vld [vmem:[#allocation16_spill] sm:$0xff]  ;;  %v14043_v45 = vld [vmem:[#allocation23_spill] sm:$0xff]  ;;  %v14045_v59 = vld [vmem:[#allocation14_spill] sm:$0xff] }
 0x20b   : > { %v2745_v2 = vmul.f32 %v14042_v40, %v13960_v44  ;;  %v1194_v12 = vadd.f32 %v1162_v53, %v1126_v23  ;;  %v1363_v48 = vmul.f32 %v10682_v11, %v14043_v45  ;;  %14044 = vst [vmem:[#allocation38_spill] sm:$0xff] %v10725_v3  ;;  %v3348_v28 = vadd.f32 %v3316_v26, %v3248_v60  ;;  %v14047_v11 = vld [vmem:[#allocation53_spill] sm:$0xff] }
 0x20c   : > { %v2641_v30 = vadd.f32 %v2609_v52, %v2541_v62  ;;  %v3817_v35 = vmul.f32 %v10347_v33, %v10718_v0  ;;  %v1938_v47 = vadd.f32 %v1906_v18, %v1838_v31  ;;  %v2106_v16 = vmul.f32 %v14045_v59, %v8054_v42  ;;  %v14046_v52 = vld [vmem:[#allocation52_spill] sm:$0xff] }
 0x20d   : > { %v2813_v62 = vmul.f32 %v14046_v52, %v13467_v50  ;;  %v1294_v14 = vadd.f32 %v1262_v1, %v1194_v12  ;;  %v1463_v53 = vmul.f32 %v10697_v25, %v13359_v5  ;;  %v3449_v23 = vadd.f32 %v3417_v34, %v3348_v28  ;;  %v14049_v34 = vld [vmem:[#allocation60_spill] sm:$0xff] }
 0x20e   : > { %v2709_v27 = vadd.f32 %v2677_v56, %v2641_v30  ;;  %v2913_v45 = vmul.f32 %v14047_v11, %v13385_v24  ;;  %v2038_v26 = vadd.f32 %v2006_v54, %v1938_v47  ;;  %v2206_v18 = vmul.f32 %v10725_v3, %v13443_v46  ;;  %v14048_v56 = vld [vmem:[#allocation32_spill] sm:$0xff] }
 0x20f   : > { %v3013_v31 = vmul.f32 %v14048_v56, %v13387_v51  ;;  %v1395_v30 = vadd.f32 %v1363_v48, %v1294_v14  ;;  %v1563_v1 = vmul.f32 %v10161_v57, %v10708_v7  ;;  %v3549_v12 = vadd.f32 %v3517_v8, %v3449_v23  ;;  %v14050_v57 = vld [vmem:[#allocation47_spill] sm:$0xff]  ;;  %v10757_v23 = vld [vmem:[%s7967_s22 + $0x199] sm:$0xff] }
 0x210   : > { %v2777_v60 = vadd.f32 %v2745_v2, %v2709_v27  ;;  %v3081_v28 = vmul.f32 %v14049_v34, %v13389_v9  ;;  %v2138_v11 = vadd.f32 %v2106_v16, %v2038_v26  ;;  %v2274_v54 = vmul.f32 %v14012_v13, %v13417_v15  ;;  %v10754_v27 = vld [vmem:[%s7967_s22 + $0x198] sm:$0xff] }
 0x211   : > { %v3149_v2 = vmul.f32 %v10604_v32, %v13447_v4  ;;  %v3217_v59 = vmul.f32 %v10615_v37, %v13420_v17  ;;  %v1495_v14 = vadd.f32 %v1463_v53, %v1395_v30  ;;  %v3649_v48 = vadd.f32 %v3617_v61, %v3549_v12  ;;  %14051 = vst [vmem:[#allocation49_spill] sm:$0xff] %v10754_v27  ;;  %v10770_v53 = vld [vmem:[%s7967_s22 + $0x19a] sm:$0xff]  ;;  %v10772_v30 = vpop.permute.xlu0 %3927 }
 0x212   : > { %v2845_v47 = vadd.f32 %v2813_v62, %v2777_v60  ;;  %v3317_v8 = vmul.f32 %v14050_v57, %v13394_v49  ;;  %v2238_v16 = vadd.f32 %v2206_v18, %v2138_v11  ;;  %v2342_v13 = vmul.f32 %v14015_v58, %v13422_v10  ;;  %14052 = vst [vmem:[#allocation50_spill] sm:$0xff] %v10772_v30  ;;  %v10781_v11 = vld [vmem:[%s7967_s22 + $0x169] sm:$0xff]  ;;  %v10785_v57 = vld [vmem:[%s7967_s22 + $0x15c] sm:$0xff] }
 0x213   : > { %v10763_v26 = vmul.f32 %v10754_v27, %v14027_v39  ;;  %v10767_v61 = vmul.f32 %v10757_v23, %v14031_v38  ;;  %v1595_v60 = vadd.f32 %v1563_v1, %v1495_v14  ;;  %v3749_v12 = vadd.f32 %v3717_v43, %v3649_v48  ;;  %14053 = vst [vmem:[#allocation48_spill] sm:$0xff] %v10781_v11  ;;  %v14055_v1 = vld [vmem:[#allocation8_spill] sm:$0xff]  ;;  %v14056_v14 = vld [vmem:[#allocation9_spill] sm:$0xff] }
 0x214   : > { %v2945_v62 = vadd.f32 %v2913_v45, %v2845_v47  ;;  %v10776_v18 = vmul.f32 %v10770_v53, %v14036_v6  ;;  %v2306_v45 = vadd.f32 %v2274_v54, %v2238_v16  ;;  %v2410_v58 = vmul.f32 %v14019_v22, %v8110_v20  ;;  %14054 = vst [vmem:[#allocation64_spill] sm:$0xff] %v10785_v57  ;;  %v10792_v16 = vld [vmem:[%s7967_s22 + $0x19b] sm:$0xff]  ;;  %v14058_v22 = vld [vmem:[#allocation35_spill] sm:$0xff] }
 0x215   : > { %v1634_v27 = vadd.f32 %v14028_v41, %v1595_v60  ;;  %v795_v43 = vmul.f32 %v10781_v11, %v14055_v1  ;;  %v895_v48 = vmul.f32 %v14042_v40, %v14056_v14  ;;  %v3849_v54 = vadd.f32 %v3817_v35, %v3749_v12  ;;  %14057 = vst [vmem:[#allocation17_spill] sm:$0xff] %v10792_v16  ;;  %v14060_v41 = vld [vmem:[#allocation10_spill] sm:$0xff]  ;;  %v14064_v14 = vld [vmem:[#allocation45_spill] sm:$0xff] }
 0x216   : > { %v3045_v47 = vadd.f32 %v3013_v31, %v2945_v62  ;;  %v2374_v3 = vadd.f32 %v2342_v13, %v2306_v45  ;;  %v2510_v56 = vmul.f32 %v10785_v57, %v14058_v22  ;;  %v10796_v31 = vpop.permute.xlu1 %3929  ;;  %v995_v62 = vmul.f32 %v14046_v52, %v14060_v41  ;;  %v10805_v1 = vld [vmem:[%s7967_s22 + $0x19c] sm:$0xff]  ;;  %v14062_v13 = vld [vmem:[#allocation11_spill] sm:$0xff]  ;;  %v1771_v45 = vld [vmem:[%s7967_s22 + $0x151] sm:$0xff] }
 0x217   : > { %14059 = vst [vmem:[#allocation33_spill] sm:$0xff] %v10796_v31  ;;  %v10802_v30 = vmul.f32 %v10792_v16, %v8349_v55  ;;  %14061 = vst [vmem:[#allocation26_spill] sm:$0xff] %v10805_v1  ;;  %3981 = vrot.lane.b32.xlu0 %v1634_v27, %s13869_s1  ;;  %v927_v35 = vadd.f32 %v895_v48, %v795_v43  ;;  %v1095_v12 = vmul.f32 %v14049_v34, %v14062_v13  ;;  %v1871_v57 = vld [vmem:[%s7967_s22 + $0x152] sm:$0xff]  ;;  %v14066_v48 = vld [vmem:[#allocation39_spill] sm:$0xff]  ;;  %v10824_v55 = vpop.permute.xlu0 %4055 }
 0x218   : > { %v3113_v60 = vadd.f32 %v3081_v28, %v3045_v47  ;;  %v3888_v31 = vadd.f32 %v10414_v36, %v3849_v54  ;;  %v10815_v28 = vmul.f32 %v10347_v33, %v10805_v1  ;;  %v2442_v47 = vadd.f32 %v2410_v58, %v2374_v3  ;;  %v14063_v41 = vld [vmem:[#allocation37_spill] sm:$0xff]  ;;  %14067 = vst [vmem:[#allocation44_spill] sm:$0xff] %v10824_v55  ;;  %v14068_v1 = vld [vmem:[#allocation46_spill] sm:$0xff] }
 0x219   : > { %v2610_v22 = vmul.f32 %v14064_v14, %v14063_v41  ;;  %v1027_v20 = vadd.f32 %v995_v62, %v927_v35  ;;  %v1163_v27 = vmul.f32 %v10604_v32, %v13978_v19  ;;  %v14065_v43 = vld [vmem:[#allocation21_spill] sm:$0xff]  ;;  %v2678_v3 = vmul.f32 %v14068_v1, %v13543_v63  ;;  %v14069_v58 = vld [vmem:[#allocation22_spill] sm:$0xff]  ;;  %v14071_v35 = vld [vmem:[#allocation28_spill] sm:$0xff] }
 0x21a   : > { %v3181_v52 = vadd.f32 %v3149_v2, %v3113_v60  ;;  %v1707_v34 = vmul.f32 %v14066_v48, %v14065_v43  ;;  %v1971_v13 = vld [vmem:[%s7967_s22 + $0x153] sm:$0xff]  ;;  %4105 = vrot.lane.b32.xlu1 %v3888_v31, %s13875_s26  ;;  %v2542_v54 = vadd.f32 %v2510_v56, %v2442_v47  ;;  %v1807_v14 = vmul.f32 %v14069_v58, %v1771_v45  ;;  %v10838_v43 = vpop.permute.xlu1 %4057 }
 0x21b   : > { %v14070_v2 = vld [vmem:[#allocation24_spill] sm:$0xff]  ;;  %v2746_v32 = vmul.f32 %v14071_v35, %v13960_v44  ;;  %v1127_v19 = vadd.f32 %v1095_v12, %v1027_v20  ;;  %v1263_v48 = vmul.f32 %v10615_v37, %v13461_v29  ;;  %v2814_v56 = vmul.f32 %v10522_v21, %v13467_v50  ;;  %v14072_v47 = vld [vmem:[#allocation25_spill] sm:$0xff]  ;;  %14073 = vst [vmem:[#allocation66_spill] sm:$0xff] %v10838_v43  ;;  %v10845_v12 = vld [vmem:[%s7967_s22 + $0x168] sm:$0xff]  ;;  %v10847_v35 = vpop.permute.xlu0 %3931 }
 0x21c   : > { %v1907_v62 = vmul.f32 %v14070_v2, %v1871_v57  ;;  %v3249_v60 = vadd.f32 %v3217_v59, %v3181_v52  ;;  %v2642_v55 = vadd.f32 %v2610_v22, %v2542_v54  ;;  %v1839_v31 = vadd.f32 %v1807_v14, %v1707_v34  ;;  %v14074_v57 = vld [vmem:[#allocation61_spill] sm:$0xff]  ;;  %v14075_v2 = vld [vmem:[#allocation23_spill] sm:$0xff]  ;;  %14076 = vst [vmem:[#allocation36_spill] sm:$0xff] %v10845_v12  ;;  %v14078_v21 = vld [vmem:[#allocation62_spill] sm:$0xff] }
 0x21d   : > { %v2007_v1 = vmul.f32 %v14072_v47, %v1971_v13  ;;  %v2914_v52 = vmul.f32 %v14074_v57, %v13385_v24  ;;  %v1195_v59 = vadd.f32 %v1163_v27, %v1127_v19  ;;  %v1364_v20 = vmul.f32 %v10757_v23, %v14075_v2  ;;  %14077 = vst [vmem:[#allocation19_spill] sm:$0xff] %v10847_v35  ;;  %v14079_v54 = vld [vmem:[#allocation56_spill] sm:$0xff]  ;;  %v14080_v19 = vld [vmem:[#allocation42_spill] sm:$0xff] }
 0x21e   : > { %v3349_v45 = vadd.f32 %v3317_v8, %v3249_v60  ;;  %v2710_v22 = vadd.f32 %v2678_v3, %v2642_v55  ;;  %v3014_v34 = vmul.f32 %v14078_v21, %v13387_v51  ;;  %v1939_v13 = vadd.f32 %v1907_v62, %v1839_v31  ;;  %v10862_v31 = vpop.permute.xlu1 %4059 }
 0x21f   : > { %v2107_v8 = vmul.f32 %v14079_v54, %v8054_v42  ;;  %v3082_v27 = vmul.f32 %v14080_v19, %v13389_v9  ;;  %v1295_v60 = vadd.f32 %v1263_v48, %v1195_v59  ;;  %v1464_v57 = vmul.f32 %v10770_v53, %v13359_v5  ;;  %14081 = vst [vmem:[#allocation57_spill] sm:$0xff] %v10862_v31  ;;  %v10870_v59 = vld [vmem:[%s7950_s25 + $0x8] ss:$0 sm:$0xff]  ;;  %s675_s25 = scalar_lea.vmem %s12739_s9, %s7942_s18 }
 0x220   : > { %v3450_v14 = vadd.f32 %v10763_v26, %v3349_v45  ;;  %v2778_v55 = vadd.f32 %v2746_v32, %v2710_v22  ;;  %v3150_v3 = vmul.f32 %v10697_v25, %v13447_v4  ;;  %v2039_v35 = vadd.f32 %v2007_v1, %v1939_v13  ;;  %v10879_v13 = vld [vmem:[%s7967_s22 + $0x1a0] sm:$0xff] }
 0x221   : > { %v2207_v62 = vmul.f32 %v10845_v12, %v13443_v46  ;;  %v10867_v45 = vmul.f32 %v10708_v7, %v13420_v17  ;;  %v1396_v48 = vadd.f32 %v1364_v20, %v1295_v60  ;;  %v1564_v32 = vmul.f32 %v10870_v59, %v10792_v16  ;;  %14082 = vst [vmem:[#allocation58_spill] sm:$0xff] %v10879_v13  ;;  %v10882_v54 = vld [vmem:[%s7967_s22 + $0x1a1] sm:$0xff] }
 0x222   : > { %v3550_v26 = vadd.f32 %v10767_v61, %v3450_v14  ;;  %v2846_v1 = vadd.f32 %v2814_v56, %v2778_v55  ;;  %v10876_v22 = vmul.f32 %v10718_v0, %v13394_v49  ;;  %v2139_v61 = vadd.f32 %v2107_v8, %v2039_v35  ;;  %v10896_v55 = vld [vmem:[%s7967_s22 + $0x1a2] sm:$0xff]  ;;  %v10898_v0 = vpop.permute.xlu0 %3933 }
 0x223   : > { %v2275_v14 = vmul.f32 %v10781_v11, %v13417_v15  ;;  %v10889_v60 = vmul.f32 %v10879_v13, %v14027_v39  ;;  %v10893_v56 = vmul.f32 %v10882_v54, %v14031_v38  ;;  %v1496_v31 = vadd.f32 %v1464_v57, %v1396_v48  ;;  %14083 = vst [vmem:[#allocation20_spill] sm:$0xff] %v10898_v0  ;;  %v10905_v8 = vld [vmem:[%s7967_s22 + $0x1a3] sm:$0xff]  ;;  %v14084_v11 = vld [vmem:[#allocation13_spill] sm:$0xff]  ;;  %v14086_v0 = vld [vmem:[#allocation52_spill] sm:$0xff] }
 0x224   : > { %v3650_v20 = vadd.f32 %v10776_v18, %v3550_v26  ;;  %v2946_v35 = vadd.f32 %v2914_v52, %v2846_v1  ;;  %v10902_v18 = vmul.f32 %v10896_v55, %v14036_v6  ;;  %v2239_v26 = vadd.f32 %v2207_v62, %v2139_v61  ;;  %v14085_v1 = vld [vmem:[#allocation34_spill] sm:$0xff]  ;;  %v10917_v62 = vld [vmem:[%s7967_s22 + $0x16c] sm:$0xff] }
 0x225   : > { %v2343_v13 = vmul.f32 %v14042_v40, %v13422_v10  ;;  %v10912_v12 = vmul.f32 %v10905_v8, %v14084_v11  ;;  %v1596_v52 = vadd.f32 %v1564_v32, %v1496_v31  ;;  %v2411_v6 = vmul.f32 %v14086_v0, %v14085_v1  ;;  %14087 = vst [vmem:[#allocation40_spill] sm:$0xff] %v10917_v62  ;;  %v10920_v61 = vld [vmem:[%s7967_s22 + $0x171] sm:$0xff]  ;;  %v10922_v40 = vpop.permute.xlu1 %4061  ;;  %v14091_v31 = vld [vmem:[#allocation35_spill] sm:$0xff]  ;;  %v1872_v1 = vld [vmem:[%s7967_s22 + $0x15a] sm:$0xff] }
 0x226   : > { %v3750_v38 = vadd.f32 %v10802_v30, %v3650_v20  ;;  %v3046_v57 = vadd.f32 %v3014_v34, %v2946_v35  ;;  %v2307_v48 = vadd.f32 %v2275_v14, %v2239_v26  ;;  %14088 = vst [vmem:[#allocation54_spill] sm:$0xff] %v10920_v61  ;;  %14089 = vst [vmem:[#allocation65_spill] sm:$0xff] %v10922_v40  ;;  %v10926_v20 = vld [vmem:[%s8104_s27] ss:$0 sm:$0xff]  ;;  %v13250_v32 = vmov 0.0   ;;  %v14092_v0 = vld [vmem:[#allocation8_spill] sm:$0xff] }
 0x227   : > { %14090 = vst [vmem:[#allocation41_spill] sm:$0xff] %v10926_v20  ;;  %v1635_v11 = vadd.f32 %v10926_v20, %v1596_v52  ;;  %v2511_v34 = vmul.f32 %v10917_v62, %v14091_v31  ;;  %4402 = vmatprep.mubr.f32.mxu0 %v13250_v32  ;;  %v796_v14 = vmul.f32 %v10920_v61, %v14092_v0  ;;  %v10935_v35 = vld [vmem:[%s7967_s22 + $0x172] sm:$0xff]  ;;  %v14097_v20 = vld [vmem:[#allocation10_spill] sm:$0xff]  ;;  %v14098_v43 = vmov 0.0  }
 0x228   : > { %v3850_v30 = vadd.f32 %v10815_v28, %v3750_v38  ;;  %14093 = vst [vmem:[#allocation51_spill] sm:$0xff] %v10935_v35  ;;  %v10938_v26 = vld [vmem:[%s7967_s22 + $0x173] sm:$0xff]  ;;  %v3114_v38 = vadd.f32 %v3082_v27, %v3046_v57  ;;  %v10941_v28 = vld [vmem:[%s7967_s22 + $0x1a4] sm:$0xff]  ;;  %v2375_v40 = vadd.f32 %v2343_v13, %v2307_v48  ;;  %5171 = vmatprep.subr.mxu0 %v14098_v43 }
 0x229   : > { %14094 = vst [vmem:[#allocation16_spill] sm:$0xff] %v10938_v26  ;;  %14095 = vst [vmem:[#allocation14_spill] sm:$0xff] %v10941_v28  ;;  %v14096_v52 = vld [vmem:[#allocation9_spill] sm:$0xff]  ;;  %v996_v62 = vmul.f32 %v10938_v26, %v14097_v20  ;;  %v10952_v0 = vmul.f32 %v10347_v33, %v10941_v28  ;;  %v14099_v57 = vld [vmem:[#allocation50_spill] sm:$0xff]  ;;  %3983 = vrot.lane.b32.xlu0 %v1635_v11, %s13869_s1  ;;  %v10961_v20 = vpop.permute.xlu0 %3935  ;;  %7165 = vmatprep.subr.mxu1 %v14098_v43 }
 0x22a   : > { %v896_v21 = vmul.f32 %v10935_v35, %v14096_v52  ;;  %v1772_v32 = vld [vmem:[%s7967_s22 + $0x159] sm:$0xff]  ;;  %v3889_v31 = vadd.f32 %v10414_v36, %v3850_v30  ;;  %v14100_v48 = vld [vmem:[#allocation32_spill] sm:$0xff]  ;;  %14101 = vst [vmem:[#allocation53_spill] sm:$0xff] %v10961_v20  ;;  %v3182_v26 = vadd.f32 %v3150_v3, %v3114_v38  ;;  %v2443_v39 = vadd.f32 %v2411_v6, %v2375_v40  ;;  %v14102_v36 = vld [vmem:[#allocation11_spill] sm:$0xff] }
 0x22b   : > { %v7677_v27 = vld [vmem:[%s7967_s22 + $0x32] sm:$0xff]  ;;  %v2611_v52 = vmul.f32 %v14100_v48, %v14063_v41  ;;  %v1096_v33 = vmul.f32 %v14080_v19, %v14102_v36  ;;  %v1972_v28 = vld [vmem:[%s7967_s22 + $0x15b] sm:$0xff]  ;;  %v14104_v48 = vld [vmem:[#allocation15_spill] sm:$0xff]  ;;  %v1808_v6 = vmul.f32 %v14069_v58, %v1772_v32  ;;  %v10977_v36 = vpop.permute.xlu1 %4063 }
 0x22c   : > { %v4152_v13 = vsel %vm4151_vm0, %v7677_v27, %v14099_v57  ;;  %v928_v30 = vadd.f32 %v896_v21, %v796_v14  ;;  %4107 = vrot.lane.b32.xlu1 %v3889_v31, %s13875_s26  ;;  %v14103_v27 = vld [vmem:[#allocation60_spill] sm:$0xff]  ;;  %v1164_v11 = vmul.f32 %v10697_v25, %v14104_v48  ;;  %v14105_v41 = vld [vmem:[#allocation21_spill] sm:$0xff]  ;;  %v14106_v20 = vld [vmem:[#allocation38_spill] sm:$0xff]  ;;  %v3250_v21 = vadd.f32 %v10867_v45, %v3182_v26 }
 0x22d   : > { %v2679_v57 = vmul.f32 %v14103_v27, %v13543_v63  ;;  %v1708_v3 = vmul.f32 %v14106_v20, %v14105_v41  ;;  %v2543_v40 = vadd.f32 %v2511_v34, %v2443_v39  ;;  %v14107_v38 = vld [vmem:[#allocation24_spill] sm:$0xff]  ;;  %14108 = vst [vmem:[#allocation45_spill] sm:$0xff] %v10977_v36  ;;  %v7678_v31 = vld [vmem:[%s7967_s22 + $0x3a] sm:$0xff]  ;;  %v2008_v41 = vmul.f32 %v14072_v47, %v1972_v28  ;;  %v10999_v28 = vpop.permute.xlu0 %3937  ;;  %v14127_v36 = vld [vmem:[#allocation35_spill] sm:$0xff] }
 0x22e   : > { %v1028_v14 = vadd.f32 %v996_v62, %v928_v30  ;;  %v1908_v19 = vmul.f32 %v14107_v38, %v1872_v1  ;;  %v14109_v43 = vld [vmem:[#allocation33_spill] sm:$0xff]  ;;  %v14110_v25 = vld [vmem:[#allocation30_spill] sm:$0xff]  ;;  %v3350_v32 = vadd.f32 %v10876_v22, %v3250_v21  ;;  %v1264_v1 = vmul.f32 %v10708_v7, %v13461_v29  ;;  %v10991_v62 = vld [vmem:[%s7967_s22 + $0x170] sm:$0xff]  ;;  %14114 = vst [vmem:[#allocation46_spill] sm:$0xff] %v10999_v28 }
 0x22f   : > { %v10982_v27 = vsel %vm4151_vm0, %v7678_v31, %v14109_v43  ;;  %v2747_v48 = vmul.f32 %v14110_v25, %v13960_v44  ;;  %v1840_v20 = vadd.f32 %v1808_v6, %v1708_v3  ;;  %v2643_v45 = vadd.f32 %v2611_v52, %v2543_v40  ;;  %14111 = vst [vmem:[#allocation39_spill] sm:$0xff] %v10991_v62  ;;  %v14112_v43 = vld [vmem:[#allocation47_spill] sm:$0xff]  ;;  %v14113_v25 = vld [vmem:[#allocation64_spill] sm:$0xff]  ;;  %v14115_v21 = vld [vmem:[#allocation49_spill] sm:$0xff] }
 0x230   : > { %v1128_v39 = vadd.f32 %v1096_v33, %v1028_v14  ;;  %v2815_v34 = vmul.f32 %v10615_v37, %v13467_v50  ;;  %v2915_v26 = vmul.f32 %v14112_v43, %v13385_v24  ;;  %v2108_v3 = vmul.f32 %v14113_v25, %v8054_v42 }
 0x231   : > { %v1940_v30 = vadd.f32 %v1908_v19, %v1840_v20  ;;  %v3451_v22 = vadd.f32 %v10889_v60, %v3350_v32  ;;  %v2711_v52 = vadd.f32 %v2679_v57, %v2643_v45  ;;  %v1365_v6 = vmul.f32 %v10882_v54, %v14075_v2  ;;  %v11011_v57 = vpop.permute.xlu1 %4065 }
 0x232   : > { %v1196_v33 = vadd.f32 %v1164_v11, %v1128_v39  ;;  %v3015_v40 = vmul.f32 %v14115_v21, %v13387_v51  ;;  %v2208_v19 = vmul.f32 %v10991_v62, %v13443_v46  ;;  %v1465_v60 = vmul.f32 %v10896_v55, %v13359_v5  ;;  %14116 = vst [vmem:[#allocation22_spill] sm:$0xff] %v11011_v57  ;;  %v14125_v57 = vld [vmem:[#allocation8_spill] sm:$0xff] }
 0x233   : > { %v2040_v37 = vadd.f32 %v2008_v41, %v1940_v30  ;;  %v3551_v14 = vadd.f32 %v10893_v56, %v3451_v22  ;;  %v2779_v31 = vadd.f32 %v2747_v48, %v2711_v52  ;;  %v3083_v11 = vmul.f32 %v10757_v23, %v13389_v9  ;;  %v14117_v30 = vld [vmem:[#allocation44_spill] sm:$0xff]  ;;  %v11028_v52 = vpop.permute.xlu0 %3939 }
 0x234   : > { %v1296_v20 = vadd.f32 %v1264_v1, %v1196_v33  ;;  %v3151_v32 = vmul.f32 %v10770_v53, %v13447_v4  ;;  %v2276_v45 = vmul.f32 %v10920_v61, %v13417_v15  ;;  %v1565_v1 = vmul.f32 %v10870_v59, %v10905_v8  ;;  %14118 = vst [vmem:[#allocation28_spill] sm:$0xff] %v11028_v52  ;;  %v14119_v33 = vld [vmem:[#allocation26_spill] sm:$0xff] }
 0x235   : > { %v2140_v41 = vadd.f32 %v2108_v3, %v2040_v37  ;;  %v3651_v56 = vadd.f32 %v10902_v18, %v3551_v14  ;;  %v2847_v48 = vadd.f32 %v2815_v34, %v2779_v31  ;;  %v3219_v43 = vmul.f32 %v10792_v16, %v13420_v17  ;;  %v11034_v37 = vld [vmem:[%s7967_s22 + $0x1b0] sm:$0xff]  ;;  %v14121_v31 = vld [vmem:[#allocation59_spill] sm:$0xff]  ;;  %v14135_v61 = vld [vmem:[#allocation62_spill] sm:$0xff] }
 0x236   : > { %v1397_v39 = vadd.f32 %v1365_v6, %v1296_v20  ;;  %v4185_v25 = vsel %vm4184_vm1, %v4152_v13, %v14117_v30  ;;  %v2344_v3 = vmul.f32 %v10935_v35, %v13422_v10  ;;  %v3319_v6 = vmul.f32 %v14119_v33, %v13394_v49  ;;  %14120 = vst [vmem:[#allocation25_spill] sm:$0xff] %v11034_v37  ;;  %v14122_v20 = vld [vmem:[#allocation34_spill] sm:$0xff] }
 0x237   : > { %v2240_v22 = vadd.f32 %v2208_v19, %v2140_v41  ;;  %v3751_v18 = vadd.f32 %v10912_v12, %v3651_v56  ;;  %v2947_v34 = vadd.f32 %v2915_v26, %v2847_v48  ;;  %v3420_v13 = vmul.f32 %v11034_v37, %v14121_v31  ;;  %v14123_v41 = vld [vmem:[#allocation16_spill] sm:$0xff]  ;;  %v11041_v52 = vld [vmem:[%s7967_s22 + $0x181] sm:$0xff]  ;;  %6973 = vmatmul.mubr.msk.f32.vlgmr.msra.gmra.mxu0 %vm4241_vm2, %v4185_v25 }
 0x238   : > { %v1497_v14 = vadd.f32 %v1465_v60, %v1397_v39  ;;  %v2412_v30 = vmul.f32 %v14123_v41, %v14122_v20  ;;  %v11045_v48 = vld [vmem:[%s7967_s22 + $0x174] sm:$0xff]  ;;  %v797_v60 = vmul.f32 %v11041_v52, %v14125_v57  ;;  %v11051_v39 = vld [vmem:[%s7967_s22 + $0x182] sm:$0xff] }
 0x239   : > { %v2308_v19 = vadd.f32 %v2276_v45, %v2240_v22  ;;  %v3851_v12 = vadd.f32 %v10952_v0, %v3751_v18  ;;  %v3047_v26 = vadd.f32 %v3015_v40, %v2947_v34  ;;  %14124 = vst [vmem:[#allocation61_spill] sm:$0xff] %v11045_v48  ;;  %v11054_v45 = vld [vmem:[%s7967_s22 + $0x183] sm:$0xff]  ;;  %v11056_v22 = vpop.permute.xlu1 %4067  ;;  %v2512_v0 = vmul.f32 %v11045_v48, %v14127_v36  ;;  %v14128_v40 = vld [vmem:[#allocation9_spill] sm:$0xff] }
 0x23a   : > { %v1597_v56 = vadd.f32 %v1565_v1, %v1497_v14  ;;  %14126 = vst [vmem:[#allocation23_spill] sm:$0xff] %v11056_v22  ;;  %v897_v1 = vmul.f32 %v11051_v39, %v14128_v40  ;;  %v14129_v18 = vld [vmem:[#allocation10_spill] sm:$0xff]  ;;  %v14130_v34 = vmov 0.0   ;;  %v14131_v14 = vld [vmem:[#allocation63_spill] sm:$0xff]  ;;  %v14134_v48 = vld [vmem:[#allocation37_spill] sm:$0xff]  ;;  %v11075_v40 = vpop.permute.xlu0 %3941 }
 0x23b   : > { %v2376_v28 = vadd.f32 %v2344_v3, %v2308_v19  ;;  %v997_v25 = vmul.f32 %v11054_v45, %v14129_v18  ;;  %4408 = vmatprep.mubr.f32.mxu0 %v14130_v34  ;;  %v3890_v37 = vadd.f32 %v14131_v14, %v3851_v12  ;;  %v3115_v33 = vadd.f32 %v3083_v11, %v3047_v26  ;;  %v14132_v41 = vld [vmem:[#allocation66_spill] sm:$0xff]  ;;  %v14133_v3 = vld [vmem:[#allocation41_spill] sm:$0xff]  ;;  %v14136_v31 = vld [vmem:[#allocation11_spill] sm:$0xff] }
 0x23c   : > { %v4186_v22 = vsel %vm4184_vm1, %v10982_v27, %v14132_v41  ;;  %v1636_v19 = vadd.f32 %v14133_v3, %v1597_v56  ;;  %v2612_v62 = vmul.f32 %v14135_v61, %v14134_v48  ;;  %v929_v21 = vadd.f32 %v897_v1, %v797_v60  ;;  %v1873_v18 = vld [vmem:[%s7967_s22 + $0x16a] sm:$0xff]  ;;  %14137 = vst [vmem:[#allocation56_spill] sm:$0xff] %v11075_v40  ;;  %v14138_v12 = vld [vmem:[#allocation42_spill] sm:$0xff]  ;;  %v14140_v56 = vld [vmem:[#allocation21_spill] sm:$0xff] }
 0x23d   : > { %v2444_v35 = vadd.f32 %v2412_v30, %v2376_v28  ;;  %v1097_v49 = vmul.f32 %v10757_v23, %v14136_v31  ;;  %4109 = vrot.lane.b32.xlu1 %v3890_v37, %s13875_s26  ;;  %v3183_v11 = vadd.f32 %v3151_v32, %v3115_v33  ;;  %v2680_v27 = vmul.f32 %v14138_v12, %v13543_v63  ;;  %v14139_v28 = vld [vmem:[#allocation15_spill] sm:$0xff]  ;;  %v14141_v60 = vld [vmem:[#allocation36_spill] sm:$0xff] }
 0x23e   : > { %3985 = vrot.lane.b32.xlu0 %v1636_v19, %s13869_s1  ;;  %v1165_v41 = vmul.f32 %v10770_v53, %v14139_v28  ;;  %v1973_v61 = vld [vmem:[%s7967_s22 + $0x16b] sm:$0xff]  ;;  %v1029_v26 = vadd.f32 %v997_v25, %v929_v21  ;;  %v1709_v1 = vmul.f32 %v14141_v60, %v14140_v56  ;;  %6974 = vmatmul.mubr.msk.f32.gmra.mxu0 %vm4241_vm2, %v4186_v22  ;;  %v11095_v21 = vpop.permute.xlu1 %4069  ;;  %v14146_v60 = vld [vmem:[#allocation29_spill] sm:$0xff] }
 0x23f   : > { %v2544_v30 = vadd.f32 %v2512_v0, %v2444_v35  ;;  %v14142_v14 = vld [vmem:[#allocation48_spill] sm:$0xff]  ;;  %v3251_v32 = vadd.f32 %v3219_v43, %v3183_v11  ;;  %v14143_v33 = vld [vmem:[#allocation31_spill] sm:$0xff]  ;;  %v1265_v19 = vmul.f32 %v10792_v16, %v13461_v29  ;;  %v1909_v35 = vmul.f32 %v14107_v38, %v1873_v18  ;;  %4414 = vmatprep.mubr.f32.mxu0 %v14130_v34  ;;  %v6649_v16 = vld [vmem:[%s7967_s22 + $0x180] sm:$0xff] }
 0x240   : > { %v1809_v40 = vmul.f32 %v14142_v14, %v14069_v58  ;;  %v2748_v37 = vmul.f32 %v14143_v33, %v13960_v44  ;;  %14144 = vst [vmem:[#allocation52_spill] sm:$0xff] %v11095_v21  ;;  %v11098_v0 = vld [vmem:[%s7967_s22 + $0x1b1] sm:$0xff]  ;;  %v1129_v12 = vadd.f32 %v1097_v49, %v1029_v26  ;;  %v2009_v43 = vmul.f32 %v14072_v47, %v1973_v61 }
 0x241   : > { %14145 = vst [vmem:[#allocation50_spill] sm:$0xff] %v11098_v0  ;;  %v2644_v25 = vadd.f32 %v2612_v62, %v2544_v30  ;;  %v3351_v11 = vadd.f32 %v3319_v6, %v3251_v32  ;;  %v3520_v14 = vmul.f32 %v11098_v0, %v14146_v60  ;;  %v2816_v33 = vmul.f32 %v10708_v7, %v13467_v50  ;;  %v11109_v21 = vld [vmem:[%s7967_s22 + $0x1b2] sm:$0xff]  ;;  %v11113_v6 = vpop.permute.xlu0 %3943  ;;  %v14151_v7 = vld [vmem:[#allocation43_spill] sm:$0xff] }
 0x242   : > { %v1841_v22 = vadd.f32 %v1809_v40, %v1709_v1  ;;  %v1366_v18 = vmul.f32 %v11098_v0, %v14075_v2  ;;  %14147 = vst [vmem:[#allocation32_spill] sm:$0xff] %v11109_v21  ;;  %v1197_v62 = vadd.f32 %v1165_v41, %v1129_v12  ;;  %v14148_v40 = vld [vmem:[#allocation40_spill] sm:$0xff]  ;;  %14149 = vst [vmem:[#allocation60_spill] sm:$0xff] %v11113_v6 }
 0x243   : > { %v2712_v29 = vadd.f32 %v2680_v27, %v2644_v25  ;;  %v2109_v61 = vmul.f32 %v14148_v40, %v8054_v42  ;;  %v3452_v30 = vadd.f32 %v3420_v13, %v3351_v11  ;;  %v14150_v26 = vld [vmem:[#allocation12_spill] sm:$0xff]  ;;  %v2916_v32 = vmul.f32 %v14151_v7, %v13385_v24  ;;  %v14152_v13 = vld [vmem:[#allocation13_spill] sm:$0xff]  ;;  %v14153_v40 = vld [vmem:[#allocation58_spill] sm:$0xff] }
 0x244   : > { %v1941_v49 = vadd.f32 %v1909_v35, %v1841_v22  ;;  %v3620_v1 = vmul.f32 %v11109_v21, %v14150_v26  ;;  %v1466_v0 = vmul.f32 %v11109_v21, %v13359_v5  ;;  %v11122_v27 = vld [vmem:[%s7967_s22 + $0x1b3] sm:$0xff]  ;;  %v1297_v35 = vadd.f32 %v1265_v19, %v1197_v62  ;;  %v11131_v21 = vpop.permute.xlu1 %4071 }
 0x245   : > { %v2780_v41 = vadd.f32 %v2748_v37, %v2712_v29  ;;  %v2209_v12 = vmul.f32 %v6649_v16, %v13443_v46  ;;  %v3552_v22 = vadd.f32 %v3520_v14, %v3452_v30  ;;  %v3720_v11 = vmul.f32 %v11122_v27, %v14152_v13  ;;  %14154 = vst [vmem:[#allocation38_spill] sm:$0xff] %v11131_v21  ;;  %v11134_v5 = vld [vmem:[%s7967_s22 + $0x1b4] sm:$0xff] }
 0x246   : > { %v2041_v25 = vadd.f32 %v2009_v43, %v1941_v49  ;;  %v3016_v6 = vmul.f32 %v14153_v40, %v13387_v51  ;;  %v1566_v7 = vmul.f32 %v10870_v59, %v11122_v27  ;;  %14155 = vst [vmem:[#allocation24_spill] sm:$0xff] %v11134_v5  ;;  %v1398_v37 = vadd.f32 %v1366_v18, %v1297_v35  ;;  %v6681_v43 = vld [vmem:[%s7967_s22 + $0x184] sm:$0xff]  ;;  %v11140_v62 = vld [vmem:[%s7972_s28 + $0x18] ss:$0 sm:$0xff]  ;;  %s14202_s28 = sshll.u32 %s7942_s18, 4 }
 0x247   : > { %v2848_v29 = vadd.f32 %v2816_v33, %v2780_v41  ;;  %v2277_v16 = vmul.f32 %v11041_v52, %v13417_v15  ;;  %v3652_v14 = vadd.f32 %v3620_v1, %v3552_v22  ;;  %v3820_v49 = vmul.f32 %v11140_v62, %v11134_v5  ;;  %v11150_v1 = vpop.permute.xlu0 %3945 }
 0x248   : > { %v2141_v19 = vadd.f32 %v2109_v61, %v2041_v25  ;;  %v3084_v30 = vmul.f32 %v10882_v54, %v13389_v9  ;;  %v3152_v33 = vmul.f32 %v10896_v55, %v13447_v4  ;;  %v1498_v61 = vadd.f32 %v1466_v0, %v1398_v37  ;;  %14156 = vst [vmem:[#allocation33_spill] sm:$0xff] %v11150_v1  ;;  %v7680_v0 = vld [vmem:[%s7967_s22 + $0x4a] sm:$0xff] }
 0x249   : > { %v2948_v18 = vadd.f32 %v2916_v32, %v2848_v29  ;;  %v2345_v52 = vmul.f32 %v11051_v39, %v13422_v10  ;;  %v3752_v35 = vadd.f32 %v3720_v11, %v3652_v14  ;;  %v3220_v25 = vmul.f32 %v10905_v8, %v13420_v17  ;;  %v11161_v29 = vld [vmem:[%s7967_s22 + $0x189] sm:$0xff] }
 0x24a   : > { %v2241_v41 = vadd.f32 %v2209_v12, %v2141_v19  ;;  %v2413_v22 = vmul.f32 %v11054_v45, %v14122_v20  ;;  %v2513_v21 = vmul.f32 %v6681_v43, %v14127_v36  ;;  %v1598_v5 = vadd.f32 %v1566_v7, %v1498_v61  ;;  %v14157_v12 = vld [vmem:[#allocation19_spill] sm:$0xff]  ;;  %v14158_v19 = vld [vmem:[#allocation57_spill] sm:$0xff]  ;;  %v11175_v43 = vpop.permute.xlu1 %4073 }
 0x24b   : > { %v3048_v40 = vadd.f32 %v3016_v6, %v2948_v18  ;;  %v4154_v39 = vsel %vm4151_vm0, %v7680_v0, %v14157_v12  ;;  %v11164_v11 = vld [vmem:[%s7967_s22 + $0x18a] sm:$0xff]  ;;  %v3852_v37 = vadd.f32 %v3820_v49, %v3752_v35  ;;  %v798_v45 = vmul.f32 %v11161_v29, %v14125_v57  ;;  %v14159_v6 = vld [vmem:[#allocation9_spill] sm:$0xff]  ;;  %14160 = vst [vmem:[#allocation30_spill] sm:$0xff] %v11175_v43  ;;  %v14161_v0 = vld [vmem:[#allocation10_spill] sm:$0xff] }
 0x24c   : > { %v2309_v32 = vadd.f32 %v2277_v16, %v2241_v41  ;;  %v4187_v14 = vsel %vm4184_vm1, %v4154_v39, %v14158_v19  ;;  %v898_v7 = vmul.f32 %v11164_v11, %v14159_v6  ;;  %v11173_v16 = vld [vmem:[%s7967_s22 + $0x18b] sm:$0xff]  ;;  %v1637_v61 = vadd.f32 %v14133_v3, %v1598_v5  ;;  %v11182_v35 = vld [vmem:[%s8399_s23] ss:$0 sm:$0xff]  ;;  %v11188_v6 = vld [vmem:[%s7967_s22 + $0x1b8] sm:$0xff]  ;;  %s680_s23 = scalar_lea.vmem %s12740_s10, %s14202_s28  ;;  %s683_s28 = scalar_lea.vmem %s12741_s11, %s7942_s18 }
 0x24d   : > { %v3116_v18 = vadd.f32 %v3084_v30, %v3048_v40  ;;  %v998_v49 = vmul.f32 %v11173_v16, %v14161_v0  ;;  %6975 = vmatmul.mubr.msk.f32.gmra.mxu0 %vm4241_vm2, %v4187_v14  ;;  %v3891_v57 = vadd.f32 %v11182_v35, %v3852_v37  ;;  %v14162_v12 = vld [vmem:[#allocation55_spill] sm:$0xff]  ;;  %v14163_v39 = vld [vmem:[#allocation14_spill] sm:$0xff]  ;;  %v1098_v5 = vmul.f32 %v10882_v54, %v14136_v31  ;;  %v14165_v14 = vld [vmem:[#allocation49_spill] sm:$0xff]  ;;  %v11198_v0 = vpop.permute.xlu0 %3947 }
 0x24e   : > { %v2377_v41 = vadd.f32 %v2345_v52, %v2309_v32  ;;  %v3320_v19 = vmul.f32 %v14163_v39, %v14162_v12  ;;  %v930_v43 = vadd.f32 %v898_v7, %v798_v45  ;;  %4420 = vmatprep.mubr.f32.mxu0 %v14130_v34  ;;  %v14164_v30 = vld [vmem:[#allocation59_spill] sm:$0xff]  ;;  %v2613_v37 = vmul.f32 %v14165_v14, %v14134_v48 }
 0x24f   : > { %v3184_v40 = vadd.f32 %v3152_v33, %v3116_v18  ;;  %v3421_v52 = vmul.f32 %v11188_v6, %v14164_v30  ;;  %3987 = vrot.lane.b32.xlu0 %v1637_v61, %s13869_s1  ;;  %14166 = vst [vmem:[#allocation47_spill] sm:$0xff] %v11198_v0  ;;  %4111 = vrot.lane.b32.xlu1 %v3891_v57, %s13875_s26  ;;  %v14167_v7 = vld [vmem:[#allocation39_spill] sm:$0xff]  ;;  %v14168_v61 = vld [vmem:[#allocation54_spill] sm:$0xff] }
 0x250   : > { %v2445_v32 = vadd.f32 %v2413_v22, %v2377_v41  ;;  %v2681_v31 = vmul.f32 %v10757_v23, %v13543_v63  ;;  %v1030_v45 = vadd.f32 %v998_v49, %v930_v43  ;;  %v1166_v33 = vmul.f32 %v10896_v55, %v14139_v28  ;;  %v11208_v41 = vld [vmem:[%s7967_s22 + $0x1b9] sm:$0xff]  ;;  %v14169_v57 = vld [vmem:[#allocation51_spill] sm:$0xff]  ;;  %v11220_v49 = vpop.permute.xlu1 %4075 }
 0x251   : > { %v1710_v22 = vmul.f32 %v14167_v7, %v14140_v56  ;;  %v3252_v18 = vadd.f32 %v3220_v25, %v3184_v40  ;;  %v1810_v0 = vmul.f32 %v14168_v61, %v14069_v58  ;;  %v1910_v1 = vmul.f32 %v14169_v57, %v14107_v38  ;;  %v14170_v56 = vld [vmem:[#allocation18_spill] sm:$0xff]  ;;  %14171 = vst [vmem:[#allocation64_spill] sm:$0xff] %v11220_v49  ;;  %v14172_v38 = vld [vmem:[#allocation16_spill] sm:$0xff]  ;;  %v14173_v57 = vld [vmem:[#allocation17_spill] sm:$0xff] }
 0x252   : > { %v2545_v14 = vadd.f32 %v2513_v21, %v2445_v32  ;;  %v3521_v23 = vmul.f32 %v11208_v41, %v14146_v60  ;;  %v2749_v28 = vmul.f32 %v10770_v53, %v13960_v44  ;;  %v1130_v43 = vadd.f32 %v1098_v5, %v1030_v45  ;;  %v11223_v40 = vld [vmem:[%s7967_s22 + $0x1ba] sm:$0xff]  ;;  %v14177_v49 = vld [vmem:[#allocation27_spill] sm:$0xff] }
 0x253   : > { %v1266_v25 = vmul.f32 %v10905_v8, %v14170_v56  ;;  %v3352_v21 = vadd.f32 %v3320_v19, %v3252_v18  ;;  %v1842_v32 = vadd.f32 %v1810_v0, %v1710_v22  ;;  %v2010_v7 = vmul.f32 %v14172_v38, %v14072_v47  ;;  %v6650_v56 = vld [vmem:[%s7967_s22 + $0x188] sm:$0xff]  ;;  %v11235_v18 = vld [vmem:[%s7967_s22 + $0x1bb] sm:$0xff] }
 0x254   : > { %v2645_v58 = vadd.f32 %v2613_v37, %v2545_v14  ;;  %v3621_v61 = vmul.f32 %v11223_v40, %v14150_v26  ;;  %v2817_v53 = vmul.f32 %v14173_v57, %v13467_v50  ;;  %v1198_v5 = vadd.f32 %v1166_v33, %v1130_v43  ;;  %v14174_v22 = vld [vmem:[#allocation61_spill] sm:$0xff]  ;;  %v11239_v14 = vpop.permute.xlu0 %3949  ;;  %v14176_v57 = vld [vmem:[#allocation26_spill] sm:$0xff] }
 0x255   : > { %v1367_v45 = vmul.f32 %v11208_v41, %v14075_v2  ;;  %v3453_v19 = vadd.f32 %v3421_v52, %v3352_v21  ;;  %v1942_v0 = vadd.f32 %v1910_v1, %v1842_v32  ;;  %v2110_v47 = vmul.f32 %v14174_v22, %v8054_v42  ;;  %14175 = vst [vmem:[#allocation44_spill] sm:$0xff] %v11239_v14  ;;  %v11248_v21 = vld [vmem:[%s7967_s22 + $0x1bc] sm:$0xff] }
 0x256   : > { %v2713_v37 = vadd.f32 %v2681_v31, %v2645_v58  ;;  %v3721_v38 = vmul.f32 %v11235_v18, %v14152_v13  ;;  %v2917_v33 = vmul.f32 %v14176_v57, %v13385_v24  ;;  %v1298_v43 = vadd.f32 %v1266_v25, %v1198_v5  ;;  %v14178_v32 = vld [vmem:[#allocation25_spill] sm:$0xff]  ;;  %v11257_v5 = vpop.permute.xlu1 %4077 }
 0x257   : > { %v1467_v2 = vmul.f32 %v11223_v40, %v14177_v49  ;;  %v3553_v52 = vadd.f32 %v3521_v23, %v3453_v19  ;;  %v2042_v1 = vadd.f32 %v2010_v7, %v1942_v0  ;;  %v2210_v58 = vmul.f32 %v6650_v56, %v13443_v46  ;;  %v14179_v7 = vld [vmem:[#allocation50_spill] sm:$0xff] }
 0x258   : > { %v2781_v31 = vadd.f32 %v2749_v28, %v2713_v37  ;;  %v3821_v42 = vmul.f32 %v11140_v62, %v11248_v21  ;;  %v3017_v22 = vmul.f32 %v14178_v32, %v13387_v51  ;;  %v1399_v14 = vadd.f32 %v1367_v45, %v1298_v43  ;;  %v11266_v43 = vpop.permute.xlu0 %3951 }
 0x259   : > { %v1567_v25 = vmul.f32 %v10870_v59, %v11235_v18  ;;  %v3653_v23 = vadd.f32 %v3621_v61, %v3553_v52  ;;  %v2142_v28 = vadd.f32 %v2110_v47, %v2042_v1  ;;  %v2278_v46 = vmul.f32 %v11161_v29, %v13417_v15  ;;  %v6682_v59 = vld [vmem:[%s7967_s22 + $0x18c] sm:$0xff] }
 0x25a   : > { %v2849_v49 = vadd.f32 %v2817_v53, %v2781_v31  ;;  %v3085_v56 = vmul.f32 %v14179_v7, %v13389_v9  ;;  %v1499_v19 = vadd.f32 %v1467_v2, %v1399_v14  ;;  %v2346_v45 = vmul.f32 %v11164_v11, %v13422_v10  ;;  %v14180_v61 = vld [vmem:[#allocation32_spill] sm:$0xff]  ;;  %v14182_v10 = vld [vmem:[#allocation65_spill] sm:$0xff] }
 0x25b   : > { %v3753_v37 = vadd.f32 %v3721_v38, %v3653_v23  ;;  %v2242_v57 = vadd.f32 %v2210_v58, %v2142_v28  ;;  %v3153_v53 = vmul.f32 %v14180_v61, %v13447_v4  ;;  %v2414_v15 = vmul.f32 %v11173_v16, %v14122_v20  ;;  %v7682_v29 = vld [vmem:[%s7967_s22 + $0x52] sm:$0xff]  ;;  %v7683_v20 = vld [vmem:[%s7967_s22 + $0x62] sm:$0xff] }
 0x25c   : > { %v2949_v0 = vadd.f32 %v2917_v33, %v2849_v49  ;;  %v1599_v47 = vadd.f32 %v1567_v25, %v1499_v19  ;;  %v14181_v14 = vld [vmem:[#allocation20_spill] sm:$0xff]  ;;  %v3221_v31 = vmul.f32 %v11122_v27, %v13420_v17  ;;  %v2514_v58 = vmul.f32 %v6682_v59, %v14127_v36  ;;  %v14183_v16 = vld [vmem:[#allocation53_spill] sm:$0xff]  ;;  %v6841_v23 = vld [vmem:[%s7967_s22 + $0x1c8] sm:$0xff] }
 0x25d   : > { %v4155_v38 = vsel %vm4151_vm0, %v7682_v29, %v14181_v14  ;;  %v3853_v33 = vadd.f32 %v3821_v42, %v3753_v37  ;;  %v2310_v52 = vadd.f32 %v2278_v46, %v2242_v57  ;;  %v4156_v32 = vsel %vm4151_vm0, %v7683_v20, %v14183_v16  ;;  %v11285_v42 = vpop.permute.xlu1 %4079  ;;  %v14184_v28 = vld [vmem:[#allocation45_spill] sm:$0xff]  ;;  %v7684_v36 = vld [vmem:[%s7967_s22 + $0x6a] sm:$0xff]  ;;  %v14185_v27 = vld [vmem:[#allocation46_spill] sm:$0xff] }
 0x25e   : > { %v3049_v2 = vadd.f32 %v3017_v22, %v2949_v0  ;;  %v4188_v11 = vsel %vm4184_vm1, %v4155_v38, %v14182_v10  ;;  %v1638_v1 = vadd.f32 %v14133_v3, %v1599_v47  ;;  %v4189_v3 = vsel %vm4184_vm1, %v4156_v32, %v14184_v28  ;;  %v14187_v0 = vld [vmem:[#allocation58_spill] sm:$0xff]  ;;  %v6873_v61 = vld [vmem:[%s7967_s22 + $0x1c9] sm:$0xff] }
 0x25f   : > { %6976 = vmatmul.mubr.msk.f32.gmra.mxu0 %vm4241_vm2, %v4188_v11  ;;  %v3892_v22 = vadd.f32 %v11182_v35, %v3853_v33  ;;  %v2378_v49 = vadd.f32 %v2346_v45, %v2310_v52  ;;  %v4157_v46 = vsel %vm4151_vm0, %v7684_v36, %v14185_v27  ;;  %v2614_v57 = vmul.f32 %v14187_v0, %v14134_v48  ;;  %v11301_v45 = vpop.permute.xlu0 %3953  ;;  %v6905_v29 = vld [vmem:[%s7967_s22 + $0x1ca] sm:$0xff]  ;;  %v14188_v38 = vld [vmem:[#allocation22_spill] sm:$0xff]  ;;  %v7687_v0 = vld [vmem:[%s7967_s22 + $0x92] sm:$0xff] }
 0x260   : > { %v3117_v25 = vadd.f32 %v3085_v56, %v3049_v2  ;;  %4426 = vmatprep.mubr.f32.mxu0 %v14130_v34  ;;  %3989 = vrot.lane.b32.xlu0 %v1638_v1, %s13869_s1  ;;  %v14186_v56 = vld [vmem:[#allocation24_spill] sm:$0xff]  ;;  %v3422_v59 = vmul.f32 %v6841_v23, %v14164_v30  ;;  %v7685_v48 = vld [vmem:[%s7967_s22 + $0x7a] sm:$0xff]  ;;  %v3522_v11 = vmul.f32 %v6873_v61, %v14146_v60  ;;  %s7215_s1 = smul.u32 192, %s7942_s18 }
 0x261   : > { %4113 = vrot.lane.b32.xlu1 %v3892_v22, %s13875_s26  ;;  %v3321_v19 = vmul.f32 %v14186_v56, %v14162_v12  ;;  %v2446_v37 = vadd.f32 %v2414_v15, %v2378_v49  ;;  %v4190_v15 = vsel %vm4184_vm1, %v4157_v46, %v14188_v38  ;;  %v14189_v33 = vld [vmem:[#allocation28_spill] sm:$0xff]  ;;  %v11315_v52 = vpop.permute.xlu1 %4081  ;;  %v2750_v1 = vmul.f32 %v10896_v55, %v13960_v44  ;;  %v14190_v22 = vld [vmem:[#allocation23_spill] sm:$0xff]  ;;  %v7688_v38 = vld [vmem:[%s7967_s22 + $0x9a] sm:$0xff] }
 0x262   : > { %v3185_v7 = vadd.f32 %v3153_v53, %v3117_v25  ;;  %v2682_v53 = vmul.f32 %v10882_v54, %v13543_v63  ;;  %v4158_v2 = vsel %vm4151_vm0, %v7685_v48, %v14189_v33  ;;  %v3622_v63 = vmul.f32 %v6905_v29, %v14150_v26  ;;  %v6937_v54 = vld [vmem:[%s7967_s22 + $0x1cb] sm:$0xff]  ;;  %v7686_v44 = vld [vmem:[%s7967_s22 + $0x82] sm:$0xff]  ;;  %s11407_s27 = scalar_lea.vmem %s12738_s8, %s7215_s1  ;;  %s5933_s1 = sand.u32 127, %s7784_s29 }
 0x263   : > { %6977 = vmatmul.mubr.msk.f32.gmra.mxu0 %vm4241_vm2, %v4189_v3  ;;  %v2546_v14 = vadd.f32 %v2514_v58, %v2446_v37  ;;  %v6969_v20 = vld [vmem:[%s7967_s22 + $0x1cc] sm:$0xff]  ;;  %v2818_v32 = vmul.f32 %v10905_v8, %v13467_v50  ;;  %v4191_v25 = vsel %vm4184_vm1, %v4158_v2, %v14190_v22  ;;  %v11329_v23 = vpop.permute.xlu0 %3955  ;;  %v3722_v3 = vmul.f32 %v6937_v54, %v14152_v13 }
 0x264   : > { %v3253_v47 = vadd.f32 %v3221_v31, %v3185_v7  ;;  %4432 = vmatprep.mubr.f32.mxu0 %v14130_v34  ;;  %v14191_v55 = vld [vmem:[#allocation56_spill] sm:$0xff]  ;;  %v2918_v27 = vmul.f32 %v14163_v39, %v13385_v24  ;;  %v3822_v50 = vmul.f32 %v11140_v62, %v6969_v20  ;;  %v3018_v56 = vmul.f32 %v11188_v6, %v13387_v51 }
 0x265   : > { %v2646_v31 = vadd.f32 %v2614_v57, %v2546_v14  ;;  %v4159_v49 = vsel %vm4151_vm0, %v7686_v44, %v14191_v55  ;;  %v11339_v8 = vpop.permute.xlu1 %4083  ;;  %v14193_v57 = vld [vmem:[#allocation60_spill] sm:$0xff]  ;;  %v3086_v61 = vmul.f32 %v11208_v41, %v13389_v9  ;;  %v3154_v29 = vmul.f32 %v11223_v40, %v13447_v4  ;;  %v14194_v14 = vld [vmem:[#allocation38_spill] sm:$0xff] }
 0x266   : > { %v3353_v10 = vadd.f32 %v3321_v19, %v3253_v47  ;;  %v14192_v19 = vld [vmem:[#allocation52_spill] sm:$0xff]  ;;  %v4160_v24 = vsel %vm4151_vm0, %v7687_v0, %v14193_v57  ;;  %v3222_v4 = vmul.f32 %v11235_v18, %v13420_v17  ;;  %v14197_v18 = vld [vmem:[#allocation47_spill] sm:$0xff] }
 0x267   : > { %6978 = vmatmul.mubr.msk.f32.gmra.mxu0 %vm4241_vm2, %v4190_v15  ;;  %v2714_v16 = vadd.f32 %v2682_v53, %v2646_v31  ;;  %v4192_v37 = vsel %vm4184_vm1, %v4159_v49, %v14192_v19  ;;  %v11351_v47 = vpop.permute.xlu0 %3957  ;;  %v4193_v53 = vsel %vm4184_vm1, %v4160_v24, %v14194_v14  ;;  %v14195_v15 = vld [vmem:[#allocation33_spill] sm:$0xff]  ;;  %v6842_v40 = vld [vmem:[%s7967_s22 + $0x1d0] sm:$0xff]  ;;  %v5056_v0 = vld [vmem:[%s11407_s27 + $0x68] sm:$0xff] }
 0x268   : > { %v3454_v58 = vadd.f32 %v3422_v59, %v3353_v10  ;;  %4438 = vmatprep.mubr.f32.mxu0 %v14130_v34  ;;  %v4161_v9 = vsel %vm4151_vm0, %v7688_v38, %v14195_v15  ;;  %v3322_v10 = vmul.f32 %v11248_v21, %v14162_v12  ;;  %v7689_v17 = vld [vmem:[%s7967_s22 + $0xaa] sm:$0xff]  ;;  %v3423_v20 = vmul.f32 %v6842_v40, %v14164_v30  ;;  %v6906_v12 = vld [vmem:[%s7967_s22 + $0x1d2] sm:$0xff] }
 0x269   : > { %v2782_v36 = vadd.f32 %v2750_v1, %v2714_v16  ;;  %v11362_v41 = vpop.permute.xlu1 %4085  ;;  %v4162_v54 = vsel %vm4151_vm0, %v7689_v17, %v14197_v18  ;;  %v14198_v22 = vld [vmem:[#allocation64_spill] sm:$0xff] }
 0x26a   : > { %v3554_v28 = vadd.f32 %v3522_v11, %v3454_v58  ;;  %v14196_v11 = vld [vmem:[#allocation30_spill] sm:$0xff]  ;;  %v6938_v44 = vld [vmem:[%s7967_s22 + $0x1d3] sm:$0xff] }
 0x26b   : > { %6979 = vmatmul.mubr.msk.f32.gmra.mxu0 %vm4241_vm2, %v4191_v25  ;;  %v2850_v7 = vadd.f32 %v2818_v32, %v2782_v36  ;;  %v4194_v31 = vsel %vm4184_vm1, %v4161_v9, %v14196_v11  ;;  %v11375_v1 = vpop.permute.xlu0 %3959  ;;  %v4195_v25 = vsel %vm4184_vm1, %v4162_v54, %v14198_v22  ;;  %v7690_v55 = vld [vmem:[%s7967_s22 + $0xb2] sm:$0xff]  ;;  %v7697_v11 = vld [vmem:[%s7967_s22 + $0x10a] sm:$0xff] }
 0x26c   : > { %v3654_v46 = vadd.f32 %v3622_v63, %v3554_v28  ;;  %4444 = vmatprep.mubr.f32.mxu0 %v14130_v34  ;;  %v6874_v63 = vld [vmem:[%s7967_s22 + $0x1d1] sm:$0xff]  ;;  %v5052_v22 = vld [vmem:[%s11407_s27 + $0x48] sm:$0xff] }
 0x26d   : > { %v2950_v59 = vadd.f32 %v2918_v27, %v2850_v7  ;;  %v11384_v21 = vpop.permute.xlu1 %4087  ;;  %v3523_v32 = vmul.f32 %v6874_v63, %v14146_v60  ;;  %v14199_v49 = vld [vmem:[#allocation44_spill] sm:$0xff] }
 0x26e   : > { %v3754_v39 = vadd.f32 %v3722_v3, %v3654_v46  ;;  %v4163_v28 = vsel %vm4151_vm0, %v7690_v55, %v14199_v49  ;;  %v3623_v3 = vmul.f32 %v6906_v12, %v14150_v26  ;;  %v6970_v27 = vld [vmem:[%s7967_s22 + $0x1d4] sm:$0xff]  ;;  %v7691_v26 = vld [vmem:[%s7967_s22 + $0xc2] sm:$0xff] }
 0x26f   : > { %6980 = vmatmul.mubr.msk.f32.gmra.mxu0 %vm4241_vm2, %v4192_v37  ;;  %v3050_v6 = vadd.f32 %v3018_v56, %v2950_v59  ;;  %v11395_v36 = vpop.permute.xlu0 %3961  ;;  %v4196_v46 = vsel %vm4184_vm1, %v4163_v28, %v11257_v5  ;;  %v4164_v7 = vsel %vm4151_vm0, %v7691_v26, %v11266_v43  ;;  %v5057_v19 = vld [vmem:[%s11407_s27 + $0x70] sm:$0xff]  ;;  %v3823_v37 = vmul.f32 %v11140_v62, %v6970_v27  ;;  %v5055_v59 = vld [vmem:[%s11407_s27 + $0x60] sm:$0xff] }
 0x270   : > { %v3854_v51 = vadd.f32 %v3822_v50, %v3754_v39  ;;  %4450 = vmatprep.mubr.f32.mxu0 %v14130_v34  ;;  %v3723_v50 = vmul.f32 %v6938_v44, %v14152_v13  ;;  %v5058_v13 = vld [vmem:[%s11407_s27 + $0x78] sm:$0xff]  ;;  %v4197_v43 = vsel %vm4184_vm1, %v4164_v7, %v11285_v42  ;;  %v7692_v39 = vld [vmem:[%s7967_s22 + $0xca] sm:$0xff]  ;;  %v7699_v12 = vld [vmem:[%s7967_s22 + $0x122] sm:$0xff] }
 0x271   : > { %v3118_v33 = vadd.f32 %v3086_v61, %v3050_v6  ;;  %v11412_v56 = vpop.permute.xlu1 %4089  ;;  %5172 = vmatpush1.msra.mxu0 %v5058_v13  ;;  %7189 = vmatpush1.msra.mxu1 %v5058_v13  ;;  %v4165_v62 = vsel %vm4151_vm0, %v7692_v39, %v11301_v45  ;;  %v7698_v18 = vld [vmem:[%s7967_s22 + $0x112] sm:$0xff] }
 0x272   : > { %v3893_v48 = vadd.f32 %v11182_v35, %v3854_v51  ;;  %5173 = vmatprep.subr.mxu0 %v14130_v34  ;;  %7166 = vmatprep.subr.mxu1 %v14130_v34  ;;  %v5054_v51 = vld [vmem:[%s11407_s27 + $0x58] sm:$0xff]  ;;  %v4198_v45 = vsel %vm4184_vm1, %v4165_v62, %v11315_v52  ;;  %v7694_v52 = vld [vmem:[%s7967_s22 + $0xe2] sm:$0xff]  ;;  %v5049_v62 = vld [vmem:[%s11407_s27 + $0x30] sm:$0xff] }
 0x273   : > { %6981 = vmatmul.mubr.msk.f32.gmra.mxu0 %vm4241_vm2, %v4193_v53  ;;  %v3186_v2 = vadd.f32 %v3154_v29, %v3118_v33  ;;  %v3964_v24 = vpop.permute.xlu0 %3963  ;;  %7190 = vmatpush1.msra.mxu1 %v5057_v19  ;;  %v7693_v29 = vld [vmem:[%s7967_s22 + $0xda] sm:$0xff]  ;;  %v5053_v53 = vld [vmem:[%s11407_s27 + $0x50] sm:$0xff] }
 0x274   : > { %4115 = vrot.lane.b32.xlu1 %v3893_v48, %s13875_s26  ;;  %4456 = vmatprep.mubr.f32.mxu0 %v14130_v34  ;;  %v4166_v14 = vsel %vm4151_vm0, %v7693_v29, %v11329_v23  ;;  %v4167_v23 = vsel %vm4151_vm0, %v7694_v52, %v11351_v47  ;;  %v7695_v48 = vld [vmem:[%s7967_s22 + $0xf2] sm:$0xff]  ;;  %v5048_v52 = vld [vmem:[%s11407_s27 + $0x28] sm:$0xff] }
 0x275   : > { %v3254_v58 = vadd.f32 %v3222_v4, %v3186_v2  ;;  %5174 = vmatpush1.msra.mxu0 %v5057_v19  ;;  %v4092_v42 = vpop.permute.xlu1 %4091  ;;  %7167 = vmatprep.subr.mxu1 %v14130_v34  ;;  %v4168_v47 = vsel %vm4151_vm0, %v7695_v48, %v11375_v1  ;;  %v7696_v4 = vld [vmem:[%s7967_s22 + $0xfa] sm:$0xff]  ;;  %v5045_v48 = vld [vmem:[%s11407_s27 + $0x10] sm:$0xff] }
 0x276   : > { %5175 = vmatprep.subr.mxu0 %v14130_v34  ;;  %7191 = vmatpush1.msra.mxu1 %v5056_v0  ;;  %v4169_v40 = vsel %vm4151_vm0, %v7696_v4, %v11395_v36  ;;  %v5051_v36 = vld [vmem:[%s11407_s27 + $0x40] sm:$0xff] }
 0x277   : > { %6982 = vmatmul.mubr.msk.f32.gmra.mxu0 %vm4241_vm2, %v4194_v31  ;;  %v3354_v16 = vadd.f32 %v3322_v10, %v3254_v58  ;;  %v3966_v38 = vpop.permute.xlu0 %3965  ;;  %7168 = vmatprep.subr.mxu1 %v14130_v34  ;;  %v4202_v10 = vsel %vm4184_vm1, %v4169_v40, %v11412_v56  ;;  %v4170_v31 = vsel %vm4151_vm0, %v7697_v11, %v3964_v24  ;;  %v7703_v56 = vld [vmem:[%s7967_s22 + $0x152] sm:$0xff]  ;;  %v5064_v11 = vld [vmem:[%s11407_s27 + $0xa8] sm:$0xff] }
 0x278   : > { %4462 = vmatprep.mubr.f32.mxu0 %v14130_v34  ;;  %5176 = vmatpush1.msra.mxu0 %v5056_v0  ;;  %v4203_v63 = vsel %vm4184_vm1, %v4170_v31, %v4092_v42  ;;  %v4171_v54 = vsel %vm4151_vm0, %v7698_v18, %v3966_v38  ;;  %v7704_v0 = vld [vmem:[%s7967_s22 + $0x15a] sm:$0xff]  ;;  %v7707_v38 = vld [vmem:[%s7967_s22 + $0x182] sm:$0xff]  ;;  %v5065_v40 = vld [vmem:[%s11407_s27 + $0xb0] sm:$0xff] }
 0x279   : > { %v3455_v30 = vadd.f32 %v3423_v20, %v3354_v16  ;;  %5177 = vmatprep.subr.mxu0 %v14130_v34  ;;  %v4094_v15 = vpop.permute.xlu1 %4093  ;;  %7192 = vmatpush1.msra.mxu1 %v5055_v59  ;;  %v5061_v18 = vld [vmem:[%s11407_s27 + $0x90] sm:$0xff] }
 0x27a   : > { %5178 = vmatpush1.msra.mxu0 %v5055_v59  ;;  %7169 = vmatprep.subr.mxu1 %v14130_v34  ;;  %v4204_v20 = vsel %vm4184_vm1, %v4171_v54, %v4094_v15  ;;  %v7705_v59 = vld [vmem:[%s7967_s22 + $0x16a] sm:$0xff]  ;;  %v5047_v15 = vld [vmem:[%s11407_s27 + $0x20] sm:$0xff] }
 0x27b   : > { %6983 = vmatmul.mubr.msk.f32.gmra.mxu0 %vm4241_vm2, %v4195_v25  ;;  %v3555_v60 = vadd.f32 %v3523_v32, %v3455_v30  ;;  %5179 = vmatprep.subr.mxu0 %v14130_v34  ;;  %v3968_v9 = vpop.permute.xlu0 %3967  ;;  %v7700_v25 = vld [vmem:[%s7967_s22 + $0x12a] sm:$0xff]  ;;  %v7701_v30 = vld [vmem:[%s7967_s22 + $0x13a] sm:$0xff] }
 0x27c   : > { %4468 = vmatprep.mubr.f32.mxu0 %v14130_v34  ;;  %5180 = vmatpush1.msra.mxu0 %v5054_v51  ;;  %v5060_v54 = vld [vmem:[%s11407_s27 + $0x88] sm:$0xff] }
 0x27d   : > { %v3655_v5 = vadd.f32 %v3623_v3, %v3555_v60  ;;  %5181 = vmatprep.subr.mxu0 %v14130_v34  ;;  %7193 = vmatpush1.msra.mxu1 %v5054_v51  ;;  %v4096_v33 = vpop.permute.xlu1 %4095 }
 0x27e   : > { %5182 = vmatpush1.msra.mxu0 %v5053_v53  ;;  %7170 = vmatprep.subr.mxu1 %v14130_v34 }
 0x27f   : > { %6984 = vmatmul.mubr.msk.f32.gmra.mxu0 %vm4241_vm2, %v4196_v46  ;;  %v3755_v57 = vadd.f32 %v3723_v50, %v3655_v5  ;;  %5183 = vmatprep.subr.mxu0 %v14130_v34  ;;  %v3970_v2 = vpop.permute.xlu0 %3969  ;;  %v7702_v50 = vld [vmem:[%s7967_s22 + $0x142] sm:$0xff] }
 0x280   : > { %4474 = vmatprep.mubr.f32.mxu0 %v14130_v34  ;;  %7194 = vmatpush1.msra.mxu1 %v5053_v53  ;;  %v4173_v44 = vsel %vm4151_vm0, %v7700_v25, %v3970_v2  ;;  %v7708_v2 = vld [vmem:[%s7967_s22 + $0x18a] sm:$0xff]  ;;  %v4229_v25 = vld [vmem:[%s667_s20] sm:$0x3]  ;;  %s5930_s20 = sadd.s32 %s7788_s30, %s5928_s0 }
 0x281   : > { %v3855_v61 = vadd.f32 %v3823_v37, %v3755_v57  ;;  %7171 = vmatprep.subr.mxu1 %v14130_v34  ;;  %v4098_v1 = vpop.permute.xlu1 %4097  ;;  %5184 = vmatpush1.msra.mxu0 %v5052_v22 }
 0x282   : > { %7195 = vmatpush1.msra.mxu1 %v5052_v22  ;;  %5185 = vmatprep.subr.mxu0 %v14130_v34  ;;  %v4206_v49 = vsel %vm4184_vm1, %v4173_v44, %v4098_v1  ;;  %v5063_v1 = vld [vmem:[%s11407_s27 + $0xa0] sm:$0xff] }
 0x283   : > { %6985 = vmatmul.mubr.msk.f32.gmra.mxu0 %vm4241_vm2, %v4197_v43  ;;  %v3894_v6 = vadd.f32 %v11182_v35, %v3855_v61  ;;  %v4199_v35 = vsel %vm4184_vm1, %v4166_v14, %v11339_v8  ;;  %v4200_v8 = vsel %vm4184_vm1, %v4167_v23, %v11362_v41  ;;  %v4201_v41 = vsel %vm4184_vm1, %v4168_v47, %v11384_v21  ;;  %v3972_v17 = vpop.permute.xlu0 %3971  ;;  %v5050_v43 = vld [vmem:[%s11407_s27 + $0x38] sm:$0xff]  ;;  %v5044_v47 = vld [vmem:[%s11407_s27 + $0x8] sm:$0xff] }
 0x284   : > { %4480 = vmatprep.mubr.f32.mxu0 %v14130_v34  ;;  %v4172_v21 = vsel %vm4151_vm0, %v7699_v12, %v3968_v9  ;;  %7172 = vmatprep.subr.mxu1 %v14130_v34  ;;  %v4174_v3 = vsel %vm4151_vm0, %v7701_v30, %v3972_v17  ;;  %v5046_v9 = vld [vmem:[%s11407_s27 + $0x18] sm:$0xff]  ;;  %v7710_v44 = vld [vmem:[%s7967_s22 + $0x1a2] sm:$0xff] }
 0x285   : > { %4117 = vrot.lane.b32.xlu1 %v3894_v6, %s13875_s26  ;;  %v4100_v58 = vpop.permute.xlu1 %4099  ;;  %v4205_v32 = vsel %vm4184_vm1, %v4172_v21, %v4096_v33  ;;  %5186 = vmatpush1.msra.mxu0 %v5051_v36  ;;  %v7706_v6 = vld [vmem:[%s7967_s22 + $0x172] sm:$0xff]  ;;  %v5043_v33 = vld [vmem:[%s11407_s27] sm:$0xff]  ;;  %s686_s26 = scalar_lea.vmem %s12742_s12, %s7942_s18 }
 0x286   : > { %7196 = vmatpush1.msra.mxu1 %v5051_v36  ;;  %5187 = vmatprep.subr.mxu0 %v14130_v34  ;;  %v4207_v60 = vsel %vm4184_vm1, %v4174_v3, %v4100_v58  ;;  %v5062_v17 = vld [vmem:[%s11407_s27 + $0x98] sm:$0xff]  ;;  %v5059_v58 = vld [vmem:[%s11407_s27 + $0x80] sm:$0xff]  ;;  %v14201_v36 = vld [vmem:[#allocation7_spill] sm:$0xff] }
 0x287   : > { %6986 = vmatmul.mubr.msk.f32.gmra.mxu0 %vm4241_vm2, %v4198_v45  ;;  %v3974_v16 = vpop.permute.xlu0 %3973  ;;  %7173 = vmatprep.subr.mxu1 %v14130_v34  ;;  %v7709_v12 = vld [vmem:[%s7967_s22 + $0x19a] sm:$0xff] }
 0x288   : > { %4486 = vmatprep.mubr.f32.mxu0 %v14130_v34  ;;  %v4175_v46 = vsel %vm4151_vm0, %v7702_v50, %v3974_v16  ;;  %5188 = vmatpush1.msra.mxu0 %v5050_v43 }
 0x289   : > { %v4102_v55 = vpop.permute.xlu1 %4101  ;;  %7197 = vmatpush1.msra.mxu1 %v5050_v43  ;;  %5189 = vmatprep.subr.mxu0 %v14130_v34 }
 0x28a   : > { %v4208_v7 = vsel %vm4184_vm1, %v4175_v46, %v4102_v55  ;;  %7174 = vmatprep.subr.mxu1 %v14130_v34  ;;  %5190 = vmatpush1.msra.mxu0 %v5049_v62 }
 0x28b   : > { %6987 = vmatmul.mubr.msk.f32.gmra.mxu0 %vm4241_vm2, %v4199_v35  ;;  %v3976_v28 = vpop.permute.xlu0 %3975  ;;  %7198 = vmatpush1.msra.mxu1 %v5049_v62 }
 0x28c   : > { %4492 = vmatprep.mubr.f32.mxu0 %v14130_v34  ;;  %v4176_v13 = vsel %vm4151_vm0, %v7703_v56, %v3976_v28  ;;  %5191 = vmatprep.subr.mxu0 %v14130_v34 }
 0x28d   : > { %v4104_v27 = vpop.permute.xlu1 %4103  ;;  %7175 = vmatprep.subr.mxu1 %v14130_v34  ;;  %5192 = vmatpush1.msra.mxu0 %v5048_v52 }
 0x28e   : > { %v4209_v5 = vsel %vm4184_vm1, %v4176_v13, %v4104_v27  ;;  %7199 = vmatpush1.msra.mxu1 %v5048_v52  ;;  %5193 = vmatprep.subr.mxu0 %v14130_v34  ;;  %v11605_v27 = vrot.slane %v4229_v25, %v14201_v36 }
 0x28f   : > { %6988 = vmatmul.mubr.msk.f32.gmra.mxu0 %vm4241_vm2, %v4200_v8  ;;  %v3978_v26 = vpop.permute.xlu0 %3977  ;;  %7176 = vmatprep.subr.mxu1 %v14130_v34 }
 0x290   : > { %4498 = vmatprep.mubr.f32.mxu0 %v14130_v34  ;;  %v4177_v57 = vsel %vm4151_vm0, %v7704_v0, %v3978_v26  ;;  %7200 = vmatpush1.msra.mxu1 %v5047_v15 }
 0x291   : > { %v4106_v19 = vpop.permute.xlu1 %4105  ;;  %5194 = vmatpush1.msra.mxu0 %v5047_v15  ;;  %7177 = vmatprep.subr.mxu1 %v14130_v34 }
 0x292   : > { %v4210_v39 = vsel %vm4184_vm1, %v4177_v57, %v4106_v19  ;;  %5195 = vmatprep.subr.mxu0 %v14130_v34  ;;  %7201 = vmatpush1.msra.mxu1 %v5046_v9 }
 0x293   : > { %6989 = vmatmul.mubr.msk.f32.gmra.mxu0 %vm4241_vm2, %v4201_v41  ;;  %v3980_v37 = vpop.permute.xlu0 %3979  ;;  %7178 = vmatprep.subr.mxu1 %v14130_v34  ;;  %v5066_v41 = vld [vmem:[%s11407_s27 + $0xb8] sm:$0xff] }
 0x294   : > { %4504 = vmatprep.mubr.f32.mxu0 %v14130_v34  ;;  %v4178_v61 = vsel %vm4151_vm0, %v7705_v59, %v3980_v37  ;;  %5196 = vmatpush1.msra.mxu0 %v5046_v9 }
 0x295   : > { %5197 = vmatprep.subr.mxu0 %v14130_v34  ;;  %7202 = vmatpush1.msra.mxu1 %v5045_v48 }
 0x296   : > { %5198 = vmatpush1.msra.mxu0 %v5045_v48  ;;  %7179 = vmatprep.subr.mxu1 %v14130_v34 }
 0x297   : > { %6990 = vmatmul.mubr.msk.f32.gmra.mxu0 %vm4241_vm2, %v4202_v10  ;;  %v3982_v42 = vpop.permute.xlu0 %3981  ;;  %5199 = vmatprep.subr.mxu0 %v14130_v34 }
 0x298   : > { %4510 = vmatprep.mubr.f32.mxu0 %v14130_v34  ;;  %v4179_v45 = vsel %vm4151_vm0, %v7706_v6, %v3982_v42  ;;  %5200 = vmatpush1.msra.mxu0 %v5044_v47 }
 0x299   : > { %7203 = vmatpush1.msra.mxu1 %v5044_v47  ;;  %5201 = vmatprep.subr.mxu0 %v14130_v34 }
 0x29a   : > { %7180 = vmatprep.subr.mxu1 %v14130_v34  ;;  %5202 = vmatpush1.msra.mxu0 %v5043_v33 }
 0x29b   : > { %6991 = vmatmul.mubr.msk.f32.gmra.mxu0 %vm4241_vm2, %v4203_v63  ;;  %v3984_v53 = vpop.permute.xlu0 %3983  ;;  %7204 = vmatpush1.msra.mxu1 %v5043_v33 }
 0x29c   : > { %4516 = vmatprep.mubr.f32.mxu0 %v14130_v34  ;;  %v4180_v35 = vsel %vm4151_vm0, %v7707_v38, %v3984_v53  ;;  %5219 = vmatprep.subr.mxu0 %v14130_v34 }
 0x29d   : > { %7181 = vmatprep.subr.mxu1 %v14130_v34  ;;  %5220 = vmatpush2.msra.mxu0 %v5066_v41 }
 0x29e   : > { %v4108_v24 = vpop.permute.xlu1 %4107  ;;  %7205 = vmatpush2.msra.mxu1 %v5066_v41  ;;  %5221 = vmatprep.subr.mxu0 %v14130_v34 }
 0x29f   : > { %6992 = vmatmul.mubr.msk.f32.gmra.mxu0 %vm4241_vm2, %v4204_v20  ;;  %v4211_v51 = vsel %vm4184_vm1, %v4178_v61, %v4108_v24  ;;  %7182 = vmatprep.subr.mxu1 %v14130_v34 }
 0x2a0   : > { %4522 = vmatprep.mubr.f32.mxu0 %v14130_v34  ;;  %5222 = vmatpush2.msra.mxu0 %v5065_v40 }
 0x2a1   : > { %7206 = vmatpush2.msra.mxu1 %v5065_v40  ;;  %5223 = vmatprep.subr.mxu0 %v14130_v34 }
 0x2a2   : > { %7183 = vmatprep.subr.mxu1 %v14130_v34  ;;  %5224 = vmatpush2.msra.mxu0 %v5064_v11 }
 0x2a3   : > { %6993 = vmatmul.mubr.msk.f32.gmra.mxu0 %vm4241_vm2, %v4205_v32  ;;  %7207 = vmatpush2.msra.mxu1 %v5064_v11 }
 0x2a4   : > { %4528 = vmatprep.mubr.f32.mxu0 %v14130_v34  ;;  %5225 = vmatprep.subr.mxu0 %v14130_v34 }
 0x2a5   : > { %7184 = vmatprep.subr.mxu1 %v14130_v34  ;;  %5226 = vmatpush2.msra.mxu0 %v5063_v1 }
 0x2a6   : > { %7208 = vmatpush2.msra.mxu1 %v5063_v1  ;;  %5227 = vmatprep.subr.mxu0 %v14130_v34 }
 0x2a7   : > { %6994 = vmatmul.mubr.msk.f32.gmra.mxu0 %vm4241_vm2, %v4206_v49  ;;  %7185 = vmatprep.subr.mxu1 %v14130_v34  ;;  %v14200_v49 = vld [vmem:[#allocation6_spill] sm:$0xff] }
 0x2a8   : > { %4534 = vmatprep.mubr.f32.mxu0 %v14130_v34  ;;  %5228 = vmatpush2.msra.mxu0 %v5062_v17  ;;  %v11601_v28 = vrot.slane %v4229_v25, %v14200_v49 }
 0x2a9   : > { %7209 = vmatpush2.msra.mxu1 %v5062_v17  ;;  %5229 = vmatprep.subr.mxu0 %v14130_v34 }
 0x2aa   : > { %7186 = vmatprep.subr.mxu1 %v14130_v34  ;;  %5230 = vmatpush2.msra.mxu0 %v5061_v18 }
 0x2ab   : > { %6995 = vmatmul.mubr.msk.f32.gmra.mxu0 %vm4241_vm2, %v4207_v60  ;;  %7210 = vmatpush2.msra.mxu1 %v5061_v18 }
 0x2ac   : > { %4540 = vmatprep.mubr.f32.mxu0 %v14130_v34  ;;  %5231 = vmatprep.subr.mxu0 %v14130_v34 }
 0x2ad   : > { %7187 = vmatprep.subr.mxu1 %v14130_v34  ;;  %5232 = vmatpush2.msra.mxu0 %v5060_v54 }
 0x2ae   : > { %7211 = vmatpush2.msra.mxu1 %v5060_v54  ;;  %5233 = vmatprep.subr.mxu0 %v14130_v34 }
 0x2af   : > { %6996 = vmatmul.mubr.msk.f32.gmra.mxu0 %vm4241_vm2, %v4208_v7  ;;  %v4110_v29 = vpop.permute.xlu1 %4109  ;;  %7188 = vmatprep.subr.mxu1 %v14130_v34 }
 0x2b0   : > { %4546 = vmatprep.mubr.f32.mxu0 %v14130_v34  ;;  %v4212_v14 = vsel %vm4184_vm1, %v4179_v45, %v4110_v29  ;;  %v3986_v4 = vpop.permute.xlu0 %3985  ;;  %5234 = vmatpush2.msra.mxu0 %v5059_v58 }
 0x2b1   : > { %v4181_v10 = vsel %vm4151_vm0, %v7708_v2, %v3986_v4  ;;  %7212 = vmatpush2.msra.mxu1 %v5059_v58  ;;  %7153 = vmatprep.subr.mxu0 %v14130_v34 }
 0x2b3   : > { %6997 = vmatmul.mubr.msk.f32.gmra.mxu0 %vm4241_vm2, %v4209_v5 }
 0x2b4   : > { %4552 = vmatprep.mubr.f32.mxu0 %v14130_v34 }
 0x2b7   : > { %6998 = vmatmul.mubr.msk.f32.gmra.mxu0 %vm4241_vm2, %v4210_v39 }
 0x2b8   : > { %4558 = vmatprep.mubr.f32.mxu0 %v14130_v34 }
 0x2bb   : > { %6999 = vmatmul.mubr.msk.f32.gmra.mxu0 %vm4241_vm2, %v4211_v51 }
 0x2bc   : > { %4564 = vmatprep.mubr.f32.mxu0 %v14130_v34 }
 0x2bf   : > { %7000 = vmatmul.mubr.msk.f32.gmra.mxu0 %vm4241_vm2, %v4212_v14 }
 0x2c0   : > { %4570 = vmatprep.mubr.f32.mxu0 %v14130_v34 }
 0x2c1   : > { %v4112_v23 = vpop.permute.xlu1 %4111  ;;  %v3988_v20 = vpop.permute.xlu0 %3987 }
 0x2c2   : > { %v4213_v8 = vsel %vm4184_vm1, %v4180_v35, %v4112_v23  ;;  %v4182_v21 = vsel %vm4151_vm0, %v7709_v12, %v3988_v20 }
 0x2c3   : > { %7001 = vmatmul.mubr.msk.f32.gmra.mxu0 %vm4241_vm2, %v4213_v8 }
 0x2c4   : > { %4576 = vmatprep.mubr.f32.mxu0 %v14130_v34 }
 0x2d2   : > { %v3990_v22 = vpop.permute.xlu0 %3989 }
 0x2d3   : > { %v4114_v31 = vpop.permute.xlu1 %4113  ;;  %v4183_v55 = vsel %vm4151_vm0, %v7710_v44, %v3990_v22 }
 0x2d4   : > { %v4214_v63 = vsel %vm4184_vm1, %v4181_v10, %v4114_v31 }
 0x2d5   : > { %7002 = vmatmul.mubr.msk.f32.gmra.mxu0 %vm4241_vm2, %v4214_v63 }
 0x2d6   : > { %4582 = vmatprep.mubr.f32.mxu0 %v14130_v34 }
 0x2e6   : > { %v4116_v16 = vpop.permute.xlu1 %4115 }
 0x2e7   : > { %v4215_v32 = vsel %vm4184_vm1, %v4182_v21, %v4116_v16 }
 0x2e8   : > { %7003 = vmatmul.mubr.msk.f32.gmra.mxu0 %vm4241_vm2, %v4215_v32 }
 0x2e9   : > { %4588 = vmatprep.mubr.f32.mxu0 %v14130_v34 }
 0x2f7   : > { %v4118_v30 = vpop.permute.xlu1 %4117  ;;  %v4404_v60 = vpop.f32.mrf.mxu0 }
 0x2f8   : > { %v4216_v3 = vsel %vm4184_vm1, %v4183_v55, %v4118_v30  ;;  %v4405_v50 = vadd.f32 %v4404_v60, %v11601_v28 }
 0x2f9   : > { %7004 = vmatmul.mubr.msk.f32.gmra.mxu0 %vm4241_vm2, %v4216_v3  ;;  %v4406_v46 = vpop.f32.mrf.mxu0 }
 0x2fa   : > { %v7005_v26 = vmul.f32 -1.442695, %v4405_v50  ;;  %v4407_v7 = vadd.f32 %v4406_v46, %v11605_v27 }
 0x2fc   : > { %7271 = vpow2.f32 %v7005_v26  ;;  %v7006_v56 = vmul.f32 -1.442695, %v4407_v7 }
 0x2fe   : > { %v4410_v13 = vpop.f32.mrf.mxu0  ;;  %7273 = vpow2.f32 %v7006_v56 }
 0x2ff   : > { %v4411_v19 = vadd.f32 %v4410_v13, %v11601_v28 }
 0x300   : > { %v4412_v5 = vpop.f32.mrf.mxu0 }
 0x301   : > { %v7007_v37 = vmul.f32 -1.442695, %v4411_v19  ;;  %v4413_v0 = vadd.f32 %v4412_v5, %v11605_v27 }
 0x303   : > { %7275 = vpow2.f32 %v7007_v37  ;;  %v7008_v57 = vmul.f32 -1.442695, %v4413_v0 }
 0x305   : > { %7277 = vpow2.f32 %v7008_v57 }
 0x309   : > { %v7272_v43 = vpop.eup %7271 }
 0x30a   : > { %v4787_v24 = vadd.f32 1.0, %v7272_v43 }
 0x30b   : > { %v7274_v62 = vpop.eup %7273 }
 0x30c   : > { %v4788_v61 = vadd.f32 1.0, %v7274_v62  ;;  %7279 = vrcp.f32 %v4787_v24 }
 0x30d   : > { %v4416_v39 = vpop.f32.mrf.mxu0 }
 0x30e   : > { %v11613_v59 = vadd.f32 %v4416_v39, %v11601_v28  ;;  %7281 = vrcp.f32 %v4788_v61 }
 0x30f   : > { %v4418_v42 = vpop.f32.mrf.mxu0 }
 0x310   : > { %v7009_v51 = vmul.f32 -1.442695, %v11613_v59  ;;  %v11617_v6 = vadd.f32 %v4418_v42, %v11605_v27  ;;  %v7276_v45 = vpop.eup %7275 }
 0x311   : > { %v4789_v29 = vadd.f32 1.0, %v7276_v45 }
 0x312   : > { %7283 = vpow2.f32 %v7009_v51  ;;  %v7010_v14 = vmul.f32 -1.442695, %v11617_v6  ;;  %v7278_v53 = vpop.eup %7277 }
 0x313   : > { %7285 = vrcp.f32 %v4789_v29  ;;  %v4790_v38 = vadd.f32 1.0, %v7278_v53 }
 0x314   : > { %7287 = vpow2.f32 %v7010_v14 }
 0x315   : > { %7289 = vrcp.f32 %v4790_v38 }
 0x319   : > { %v7280_v35 = vpop.eup %7279 }
 0x31a   : > { %v4979_v48 = vmul.f32 %v7280_v35, %v4405_v50 }
 0x31b   : > { %v7282_v52 = vpop.eup %7281 }
 0x31c   : > { %v4980_v8 = vmul.f32 %v7282_v52, %v4407_v7 }
 0x31e   : > { %7070 = vmatprep.mubr.msk.f32.mxu0 %vm5074_vm3, %v4980_v8 }
 0x31f   : > { %v4422_v23 = vpop.f32.mrf.mxu0  ;;  %v7284_v15 = vpop.eup %7283  ;;  %5236 = vmatmul.mubr.f32.vlgmr.msra.gmra.mxu0 %v4979_v48 }
 0x320   : > { %v11621_v9 = vadd.f32 %v4422_v23, %v11601_v28  ;;  %v4791_v47 = vadd.f32 1.0, %v7284_v15  ;;  %v7286_v41 = vpop.eup %7285 }
 0x321   : > { %v4424_v33 = vpop.f32.mrf.mxu0  ;;  %v7288_v2 = vpop.eup %7287  ;;  %v4981_v54 = vmul.f32 %v7286_v41, %v4411_v19 }
 0x322   : > { %v7011_v4 = vmul.f32 -1.442695, %v11621_v9  ;;  %v11625_v40 = vadd.f32 %v4424_v33, %v11605_v27  ;;  %v7290_v11 = vpop.eup %7289  ;;  %v4792_v31 = vadd.f32 1.0, %v7288_v2 }
 0x323   : > { %v4428_v10 = vpop.f32.mrf.mxu0  ;;  %v4982_v17 = vmul.f32 %v7290_v11, %v4413_v0 }
 0x324   : > { %7291 = vpow2.f32 %v7011_v4  ;;  %v7012_v1 = vmul.f32 -1.442695, %v11625_v40  ;;  %v11630_v63 = vadd.f32 %v4428_v10, %v11601_v28 }
 0x325   : > { %7293 = vrcp.f32 %v4791_v47  ;;  %v4430_v18 = vpop.f32.mrf.mxu0  ;;  %7071 = vmatprep.mubr.msk.f32.mxu0 %vm5074_vm3, %v4982_v17 }
 0x326   : > { %7295 = vrcp.f32 %v4792_v31  ;;  %v7013_v58 = vmul.f32 -1.442695, %v11630_v63  ;;  %v11634_v20 = vadd.f32 %v4430_v18, %v11605_v27  ;;  %5241 = vmatmul.mubr.f32.gmra.mxu0 %v4981_v54 }
 0x327   : > { %7297 = vpow2.f32 %v7012_v1  ;;  %v4434_v12 = vpop.f32.mrf.mxu0 }
 0x328   : > { %7299 = vpow2.f32 %v7013_v58  ;;  %v7014_v21 = vmul.f32 -1.442695, %v11634_v20  ;;  %v11639_v16 = vadd.f32 %v4434_v12, %v11601_v28 }
 0x329   : > { %v4436_v32 = vpop.f32.mrf.mxu0 }
 0x32a   : > { %7301 = vpow2.f32 %v7014_v21  ;;  %v7015_v22 = vmul.f32 -1.442695, %v11639_v16  ;;  %v11643_v25 = vadd.f32 %v4436_v32, %v11605_v27 }
 0x32b   : > { %v4440_v44 = vpop.f32.mrf.mxu0 }
 0x32c   : > { %7303 = vpow2.f32 %v7015_v22  ;;  %v7016_v55 = vmul.f32 -1.442695, %v11643_v25  ;;  %v11647_v30 = vadd.f32 %v4440_v44, %v11601_v28 }
 0x32d   : > { %v4442_v3 = vpop.f32.mrf.mxu0 }
 0x32e   : > { %7305 = vpow2.f32 %v7016_v55  ;;  %v7017_v36 = vmul.f32 -1.442695, %v11647_v30  ;;  %v11651_v60 = vadd.f32 %v4442_v3, %v11605_v27 }
 0x32f   : > { %v4446_v50 = vpop.f32.mrf.mxu0 }
 0x330   : > { %7307 = vpow2.f32 %v7017_v36  ;;  %v7018_v46 = vmul.f32 -1.442695, %v11651_v60  ;;  %v11655_v26 = vadd.f32 %v4446_v50, %v11601_v28 }
 0x331   : > { %v7292_v7 = vpop.eup %7291  ;;  %v4448_v56 = vpop.f32.mrf.mxu0 }
 0x332   : > { %v7294_v13 = vpop.eup %7293  ;;  %v4793_v19 = vadd.f32 1.0, %v7292_v7  ;;  %7309 = vpow2.f32 %v7018_v46  ;;  %v7019_v5 = vmul.f32 -1.442695, %v11655_v26  ;;  %v11659_v37 = vadd.f32 %v4448_v56, %v11605_v27 }
 0x333   : > { %v7296_v0 = vpop.eup %7295  ;;  %v4452_v57 = vpop.f32.mrf.mxu0  ;;  %v4983_v42 = vmul.f32 %v7294_v13, %v11613_v59 }
 0x334   : > { %v7298_v43 = vpop.eup %7297  ;;  %v4984_v24 = vmul.f32 %v7296_v0, %v11617_v6  ;;  %7311 = vrcp.f32 %v4793_v19  ;;  %v7020_v39 = vmul.f32 -1.442695, %v11659_v37  ;;  %v11664_v62 = vadd.f32 %v4452_v57, %v11601_v28 }
 0x335   : > { %v7300_v61 = vpop.eup %7299  ;;  %v4794_v51 = vadd.f32 1.0, %v7298_v43  ;;  %7313 = vpow2.f32 %v7019_v5  ;;  %v4454_v45 = vpop.f32.mrf.mxu0 }
 0x336   : > { %v4795_v29 = vadd.f32 1.0, %v7300_v61  ;;  %7315 = vpow2.f32 %v7020_v39  ;;  %v7021_v14 = vmul.f32 -1.442695, %v11664_v62  ;;  %v11669_v53 = vadd.f32 %v4454_v45, %v11605_v27  ;;  %7072 = vmatprep.mubr.msk.f32.mxu0 %vm5074_vm3, %v4984_v24 }
 0x337   : > { %v7302_v6 = vpop.eup %7301  ;;  %7317 = vrcp.f32 %v4794_v51  ;;  %v4458_v38 = vpop.f32.mrf.mxu0  ;;  %5246 = vmatmul.mubr.f32.gmra.mxu0 %v4983_v42 }
 0x338   : > { %7319 = vrcp.f32 %v4795_v29  ;;  %v4796_v35 = vadd.f32 1.0, %v7302_v6  ;;  %v7022_v59 = vmul.f32 -1.442695, %v11669_v53  ;;  %v11674_v52 = vadd.f32 %v4458_v38, %v11601_v28  ;;  %7157 = vmatprep.mubr.msk.f32.mxu0 %vm7806_vm4, %v14130_v34 }
 0x339   : > { %v7304_v23 = vpop.eup %7303  ;;  %7321 = vpow2.f32 %v7021_v14  ;;  %v4460_v15 = vpop.f32.mrf.mxu0 }
 0x33a   : > { %7323 = vrcp.f32 %v4796_v35  ;;  %v4797_v8 = vadd.f32 1.0, %v7304_v23  ;;  %v7023_v48 = vmul.f32 -1.442695, %v11674_v52  ;;  %v11678_v47 = vadd.f32 %v4460_v15, %v11605_v27 }
 0x33b   : > { %v7306_v33 = vpop.eup %7305  ;;  %7325 = vpow2.f32 %v7022_v59  ;;  %v4464_v41 = vpop.f32.mrf.mxu0 }
 0x33c   : > { %7327 = vrcp.f32 %v4797_v8  ;;  %v4798_v4 = vadd.f32 1.0, %v7306_v33  ;;  %v7024_v2 = vmul.f32 -1.442695, %v11678_v47  ;;  %v11682_v10 = vadd.f32 %v4464_v41, %v11601_v28 }
 0x33d   : > { %v7308_v11 = vpop.eup %7307  ;;  %7329 = vpow2.f32 %v7023_v48  ;;  %v4466_v31 = vpop.f32.mrf.mxu0 }
 0x33e   : > { %7331 = vrcp.f32 %v4798_v4  ;;  %v4799_v1 = vadd.f32 1.0, %v7308_v11  ;;  %v7025_v17 = vmul.f32 -1.442695, %v11682_v10  ;;  %v11686_v18 = vadd.f32 %v4466_v31, %v11605_v27 }
 0x33f   : > { %v7310_v54 = vpop.eup %7309  ;;  %7333 = vpow2.f32 %v7024_v2  ;;  %v4470_v58 = vpop.f32.mrf.mxu0 }
 0x340   : > { %7335 = vrcp.f32 %v4799_v1  ;;  %v4800_v12 = vadd.f32 1.0, %v7310_v54  ;;  %v7026_v21 = vmul.f32 -1.442695, %v11686_v18  ;;  %v11690_v32 = vadd.f32 %v4470_v58, %v11601_v28 }
 0x341   : > { %v7312_v22 = vpop.eup %7311  ;;  %7337 = vpow2.f32 %v7025_v17  ;;  %v4472_v44 = vpop.f32.mrf.mxu0 }
 0x342   : > { %v7314_v55 = vpop.eup %7313  ;;  %7339 = vrcp.f32 %v4800_v12  ;;  %v7027_v3 = vmul.f32 -1.442695, %v11690_v32  ;;  %v11694_v36 = vadd.f32 %v4472_v44, %v11605_v27  ;;  %v4985_v39 = vmul.f32 %v7312_v22, %v11621_v9 }
 0x343   : > { %v7316_v50 = vpop.eup %7315  ;;  %v4801_v46 = vadd.f32 1.0, %v7314_v55  ;;  %7341 = vpow2.f32 %v7026_v21  ;;  %v4476_v7 = vpop.f32.mrf.mxu0 }
 0x344   : > { %v7318_v56 = vpop.eup %7317  ;;  %v4802_v13 = vadd.f32 1.0, %v7316_v50  ;;  %7343 = vpow2.f32 %v7027_v3  ;;  %v7028_v19 = vmul.f32 -1.442695, %v11694_v36  ;;  %v11698_v5 = vadd.f32 %v4476_v7, %v11601_v28 }
 0x345   : > { %v7320_v0 = vpop.eup %7319  ;;  %7345 = vrcp.f32 %v4801_v46  ;;  %v4478_v57 = vpop.f32.mrf.mxu0  ;;  %v4986_v43 = vmul.f32 %v7318_v56, %v11625_v40 }
 0x346   : > { %v7322_v24 = vpop.eup %7321  ;;  %7347 = vrcp.f32 %v4802_v13  ;;  %v7029_v61 = vmul.f32 -1.442695, %v11698_v5  ;;  %v11704_v42 = vadd.f32 %v4478_v57, %v11605_v27  ;;  %v4987_v15 = vmul.f32 %v7320_v0, %v11630_v63 }
 0x347   : > { %v7324_v51 = vpop.eup %7323  ;;  %v4803_v45 = vadd.f32 1.0, %v7322_v24  ;;  %7349 = vpow2.f32 %v7028_v19  ;;  %7073 = vmatprep.mubr.msk.f32.mxu1 %vm5074_vm3, %v4986_v43  ;;  %v4482_v29 = vpop.f32.mrf.mxu0 }
 0x348   : > { %v7326_v14 = vpop.eup %7325  ;;  %v4988_v6 = vmul.f32 %v7324_v51, %v11634_v20  ;;  %7351 = vpow2.f32 %v7029_v61  ;;  %v7030_v40 = vmul.f32 -1.442695, %v11704_v42  ;;  %v11710_v9 = vadd.f32 %v4482_v29, %v11601_v28  ;;  %5251 = vmatmul.mubr.f32.vlgmr.msra.gmra.mxu1 %v4985_v39 }
 0x349   : > { %v7328_v38 = vpop.eup %7327  ;;  %7353 = vrcp.f32 %v4803_v45  ;;  %v4804_v35 = vadd.f32 1.0, %v7326_v14  ;;  %v4484_v59 = vpop.f32.mrf.mxu0 }
 0x34a   : > { %v7330_v23 = vpop.eup %7329  ;;  %7355 = vpow2.f32 %v7030_v40  ;;  %v7031_v8 = vmul.f32 -1.442695, %v11710_v9  ;;  %v11715_v48 = vadd.f32 %v4484_v59, %v11605_v27  ;;  %7074 = vmatprep.mubr.msk.f32.mxu1 %vm5074_vm3, %v4988_v6  ;;  %v4989_v58 = vmul.f32 %v7328_v38, %v11639_v16 }
 0x34b   : > { %v7332_v20 = vpop.eup %7331  ;;  %7357 = vrcp.f32 %v4804_v35  ;;  %v4805_v33 = vadd.f32 1.0, %v7330_v23  ;;  %v4488_v41 = vpop.f32.mrf.mxu0 }
 0x34c   : > { %v7334_v4 = vpop.eup %7333  ;;  %v4990_v2 = vmul.f32 %v7332_v20, %v11643_v25  ;;  %7359 = vpow2.f32 %v7031_v8  ;;  %v7032_v11 = vmul.f32 -1.442695, %v11715_v48  ;;  %v11721_v63 = vadd.f32 %v4488_v41, %v11601_v28  ;;  %5256 = vmatmul.mubr.f32.gmra.mxu1 %v4987_v15 }
 0x34d   : > { %v7336_v31 = vpop.eup %7335  ;;  %7361 = vrcp.f32 %v4805_v33  ;;  %v4806_v1 = vadd.f32 1.0, %v7334_v4  ;;  %v4490_v17 = vpop.f32.mrf.mxu0 }
 0x34e   : > { %v7338_v54 = vpop.eup %7337  ;;  %7363 = vpow2.f32 %v7032_v11  ;;  %v7033_v12 = vmul.f32 -1.442695, %v11721_v63  ;;  %v11726_v21 = vadd.f32 %v4490_v17, %v11605_v27  ;;  %7075 = vmatprep.mubr.msk.f32.mxu1 %vm5074_vm3, %v4990_v2  ;;  %v4991_v7 = vmul.f32 %v7336_v31, %v11647_v30 }
 0x34f   : > { %v7340_v25 = vpop.eup %7339  ;;  %7365 = vrcp.f32 %v4806_v1  ;;  %v4807_v22 = vadd.f32 1.0, %v7338_v54  ;;  %v4494_v44 = vpop.f32.mrf.mxu0 }
 0x350   : > { %v7342_v55 = vpop.eup %7341  ;;  %v4992_v3 = vmul.f32 %v7340_v25, %v11651_v60  ;;  %7367 = vpow2.f32 %v7033_v12  ;;  %v7034_v50 = vmul.f32 -1.442695, %v11726_v21  ;;  %v11732_v16 = vadd.f32 %v4494_v44, %v11601_v28  ;;  %5261 = vmatmul.mubr.f32.gmra.mxu1 %v4989_v58 }
 0x351   : > { %v7344_v46 = vpop.eup %7343  ;;  %7369 = vrcp.f32 %v4807_v22  ;;  %v4808_v56 = vadd.f32 1.0, %v7342_v55  ;;  %v4496_v13 = vpop.f32.mrf.mxu0 }
 0x352   : > { %v7346_v19 = vpop.eup %7345  ;;  %v4809_v0 = vadd.f32 1.0, %v7344_v46  ;;  %7371 = vpow2.f32 %v7034_v50  ;;  %v7035_v57 = vmul.f32 -1.442695, %v11732_v16  ;;  %v11737_v60 = vadd.f32 %v4496_v13, %v11605_v27  ;;  %7076 = vmatprep.mubr.msk.f32.mxu1 %vm5074_vm3, %v4992_v3 }
 0x353   : > { %v7348_v43 = vpop.eup %7347  ;;  %7373 = vrcp.f32 %v4808_v56  ;;  %v4500_v24 = vpop.f32.mrf.mxu0  ;;  %v4993_v29 = vmul.f32 %v7346_v19, %v11655_v26 }
 0x354   : > { %v7350_v39 = vpop.eup %7349  ;;  %v4994_v61 = vmul.f32 %v7348_v43, %v11659_v37  ;;  %7375 = vrcp.f32 %v4809_v0  ;;  %v7036_v30 = vmul.f32 -1.442695, %v11737_v60  ;;  %v11743_v51 = vadd.f32 %v4500_v24, %v11601_v28  ;;  %5266 = vmatmul.mubr.f32.gmra.mxu1 %v4991_v7 }
 0x355   : > { %v7352_v45 = vpop.eup %7351  ;;  %v4810_v14 = vadd.f32 1.0, %v7350_v39  ;;  %7377 = vpow2.f32 %v7035_v57  ;;  %v4502_v6 = vpop.f32.mrf.mxu0 }
 0x356   : > { %v7354_v40 = vpop.eup %7353  ;;  %v4811_v38 = vadd.f32 1.0, %v7352_v45  ;;  %7379 = vpow2.f32 %v7036_v30  ;;  %v7037_v35 = vmul.f32 -1.442695, %v11743_v51  ;;  %v11748_v37 = vadd.f32 %v4502_v6, %v11605_v27  ;;  %7077 = vmatprep.mubr.msk.f32.mxu1 %vm5074_vm3, %v4994_v61 }
 0x357   : > { %v7356_v59 = vpop.eup %7355  ;;  %7381 = vrcp.f32 %v4810_v14  ;;  %v4506_v23 = vpop.f32.mrf.mxu0  ;;  %v4995_v41 = vmul.f32 %v7354_v40, %v11664_v62 }
 0x358   : > { %v7358_v15 = vpop.eup %7357  ;;  %7383 = vrcp.f32 %v4811_v38  ;;  %v4812_v8 = vadd.f32 1.0, %v7356_v59  ;;  %v7038_v26 = vmul.f32 -1.442695, %v11748_v37  ;;  %v11753_v20 = vadd.f32 %v4506_v23, %v11601_v28  ;;  %5271 = vmatmul.mubr.f32.gmra.mxu1 %v4993_v29 }
 0x359   : > { %v7360_v33 = vpop.eup %7359  ;;  %v4996_v4 = vmul.f32 %v7358_v15, %v11669_v53  ;;  %7385 = vpow2.f32 %v7037_v35  ;;  %v4508_v2 = vpop.f32.mrf.mxu0 }
 0x35a   : > { %v7362_v11 = vpop.eup %7361  ;;  %7387 = vrcp.f32 %v4812_v8  ;;  %v4813_v31 = vadd.f32 1.0, %v7360_v33  ;;  %v7039_v1 = vmul.f32 -1.442695, %v11753_v20  ;;  %v11759_v17 = vadd.f32 %v4508_v2, %v11605_v27 }
 0x35b   : > { %v7364_v54 = vpop.eup %7363  ;;  %7389 = vpow2.f32 %v7038_v26  ;;  %7078 = vmatprep.mubr.msk.f32.mxu1 %vm5074_vm3, %v4996_v4  ;;  %v4512_v58 = vpop.f32.mrf.mxu0  ;;  %v4997_v44 = vmul.f32 %v7362_v11, %v11674_v52 }
 0x35c   : > { %v7366_v12 = vpop.eup %7365  ;;  %7391 = vrcp.f32 %v4813_v31  ;;  %v4814_v62 = vadd.f32 1.0, %v7364_v54  ;;  %v7040_v53 = vmul.f32 -1.442695, %v11759_v17  ;;  %v11764_v25 = vadd.f32 %v4512_v58, %v11601_v28  ;;  %5276 = vmatmul.mubr.f32.gmra.mxu1 %v4995_v41 }
 0x35d   : > { %v7368_v22 = vpop.eup %7367  ;;  %v4998_v55 = vmul.f32 %v7366_v12, %v11678_v47  ;;  %7393 = vpow2.f32 %v7039_v1  ;;  %v4514_v3 = vpop.f32.mrf.mxu0 }
 0x35e   : > { %v7370_v50 = vpop.eup %7369  ;;  %7395 = vrcp.f32 %v4814_v62  ;;  %v4815_v46 = vadd.f32 1.0, %v7368_v22  ;;  %v7041_v7 = vmul.f32 -1.442695, %v11764_v25  ;;  %v11770_v56 = vadd.f32 %v4514_v3, %v11605_v27 }
 0x35f   : > { %v7372_v13 = vpop.eup %7371  ;;  %7397 = vpow2.f32 %v7040_v53  ;;  %7079 = vmatprep.mubr.msk.f32.mxu1 %vm5074_vm3, %v4998_v55  ;;  %v4518_v19 = vpop.f32.mrf.mxu0  ;;  %v4999_v30 = vmul.f32 %v7370_v50, %v11682_v10 }
 0x360   : > { %v7374_v0 = vpop.eup %7373  ;;  %7399 = vrcp.f32 %v4815_v46  ;;  %v4816_v52 = vadd.f32 1.0, %v7372_v13  ;;  %v7042_v47 = vmul.f32 -1.442695, %v11770_v56  ;;  %v11775_v57 = vadd.f32 %v4518_v19, %v11601_v28  ;;  %5281 = vmatmul.mubr.f32.gmra.mxu1 %v4997_v44 }
 0x361   : > { %v7376_v43 = vpop.eup %7375  ;;  %v5000_v24 = vmul.f32 %v7374_v0, %v11686_v18  ;;  %7401 = vpow2.f32 %v7041_v7  ;;  %v4520_v39 = vpop.f32.mrf.mxu0 }
 0x362   : > { %v7378_v61 = vpop.eup %7377  ;;  %7403 = vrcp.f32 %v4816_v52  ;;  %v7043_v45 = vmul.f32 -1.442695, %v11775_v57  ;;  %v11781_v29 = vadd.f32 %v4520_v39, %v11605_v27  ;;  %v5001_v26 = vmul.f32 %v7376_v43, %v11690_v32 }
 0x363   : > { %v7380_v14 = vpop.eup %7379  ;;  %v4817_v6 = vadd.f32 1.0, %v7378_v61  ;;  %7405 = vpow2.f32 %v7042_v47  ;;  %7080 = vmatprep.mubr.msk.f32.mxu1 %vm5074_vm3, %v5000_v24  ;;  %v4524_v40 = vpop.f32.mrf.mxu0 }
 0x364   : > { %v7382_v38 = vpop.eup %7381  ;;  %v4818_v35 = vadd.f32 1.0, %v7380_v14  ;;  %7407 = vpow2.f32 %v7043_v45  ;;  %v7044_v18 = vmul.f32 -1.442695, %v11781_v29  ;;  %v11786_v59 = vadd.f32 %v4524_v40, %v11601_v28  ;;  %5286 = vmatmul.mubr.f32.gmra.mxu1 %v4999_v30 }
 0x365   : > { %v7384_v10 = vpop.eup %7383  ;;  %v5002_v23 = vmul.f32 %v7382_v38, %v11694_v36  ;;  %7409 = vrcp.f32 %v4817_v6  ;;  %v4526_v15 = vpop.f32.mrf.mxu0 }
 0x366   : > { %v7386_v8 = vpop.eup %7385  ;;  %7411 = vrcp.f32 %v4818_v35  ;;  %v7045_v33 = vmul.f32 -1.442695, %v11786_v59  ;;  %v11792_v41 = vadd.f32 %v4526_v15, %v11605_v27  ;;  %v5003_v53 = vmul.f32 %v7384_v10, %v11698_v5 }
 0x367   : > { %v7388_v4 = vpop.eup %7387  ;;  %v4819_v2 = vadd.f32 1.0, %v7386_v8  ;;  %7413 = vpow2.f32 %v7044_v18  ;;  %7081 = vmatprep.mubr.msk.f32.mxu1 %vm5074_vm3, %v5002_v23  ;;  %v4530_v11 = vpop.f32.mrf.mxu0 }
 0x368   : > { %v7390_v31 = vpop.eup %7389  ;;  %v5004_v36 = vmul.f32 %v7388_v4, %v11704_v42  ;;  %7415 = vpow2.f32 %v7045_v33  ;;  %v7046_v1 = vmul.f32 -1.442695, %v11792_v41  ;;  %v11798_v32 = vadd.f32 %v4530_v11, %v11601_v28  ;;  %5291 = vmatmul.mubr.f32.gmra.mxu1 %v5001_v26 }
 0x369   : > { %v7392_v54 = vpop.eup %7391  ;;  %7417 = vrcp.f32 %v4819_v2  ;;  %v4820_v58 = vadd.f32 1.0, %v7390_v31  ;;  %v4532_v12 = vpop.f32.mrf.mxu0 }
 0x36a   : > { %v7394_v62 = vpop.eup %7393  ;;  %7419 = vpow2.f32 %v7046_v1  ;;  %v7047_v22 = vmul.f32 -1.442695, %v11798_v32  ;;  %v11803_v44 = vadd.f32 %v4532_v12, %v11605_v27  ;;  %7082 = vmatprep.mubr.msk.f32.mxu1 %vm5074_vm3, %v5004_v36  ;;  %v5005_v47 = vmul.f32 %v7392_v54, %v11710_v9 }
 0x36b   : > { %v7396_v42 = vpop.eup %7395  ;;  %7421 = vrcp.f32 %v4820_v58  ;;  %v4821_v55 = vadd.f32 1.0, %v7394_v62  ;;  %v4536_v3 = vpop.f32.mrf.mxu0 }
 0x36c   : > { %v7398_v50 = vpop.eup %7397  ;;  %v5006_v46 = vmul.f32 %v7396_v42, %v11715_v48  ;;  %7423 = vpow2.f32 %v7047_v22  ;;  %v7048_v7 = vmul.f32 -1.442695, %v11803_v44  ;;  %v11809_v5 = vadd.f32 %v4536_v3, %v11601_v28  ;;  %5296 = vmatmul.mubr.f32.gmra.mxu1 %v5003_v53 }
 0x36d   : > { %v7400_v13 = vpop.eup %7399  ;;  %7425 = vrcp.f32 %v4821_v55  ;;  %v4822_v19 = vadd.f32 1.0, %v7398_v50  ;;  %v4538_v0 = vpop.f32.mrf.mxu0 }
 0x36e   : > { %v7402_v52 = vpop.eup %7401  ;;  %7427 = vpow2.f32 %v7048_v7  ;;  %v7049_v43 = vmul.f32 -1.442695, %v11809_v5  ;;  %v11814_v24 = vadd.f32 %v4538_v0, %v11605_v27  ;;  %7083 = vmatprep.mubr.msk.f32.mxu1 %vm5074_vm3, %v5006_v46  ;;  %v5007_v40 = vmul.f32 %v7400_v13, %v11721_v63 }
 0x36f   : > { %v7404_v48 = vpop.eup %7403  ;;  %7429 = vrcp.f32 %v4822_v19  ;;  %v4823_v39 = vadd.f32 1.0, %v7402_v52  ;;  %v4542_v61 = vpop.f32.mrf.mxu0 }
 0x370   : > { %v7406_v30 = vpop.eup %7405  ;;  %v5008_v45 = vmul.f32 %v7404_v48, %v11726_v21  ;;  %7431 = vpow2.f32 %v7049_v43  ;;  %v7050_v14 = vmul.f32 -1.442695, %v11814_v24  ;;  %v11820_v9 = vadd.f32 %v4542_v61, %v11601_v28  ;;  %5301 = vmatmul.mubr.f32.gmra.mxu1 %v5005_v47 }
 0x371   : > { %v7408_v6 = vpop.eup %7407  ;;  %7433 = vrcp.f32 %v4823_v39  ;;  %v4824_v38 = vadd.f32 1.0, %v7406_v30  ;;  %v4544_v35 = vpop.f32.mrf.mxu0 }
 0x372   : > { %v7410_v18 = vpop.eup %7409  ;;  %v4825_v10 = vadd.f32 1.0, %v7408_v6  ;;  %7435 = vpow2.f32 %v7050_v14  ;;  %v7051_v23 = vmul.f32 -1.442695, %v11820_v9  ;;  %v11825_v21 = vadd.f32 %v4544_v35, %v11605_v27  ;;  %7084 = vmatprep.mubr.msk.f32.mxu1 %vm5074_vm3, %v5008_v45 }
 0x373   : > { %v7412_v15 = vpop.eup %7411  ;;  %7437 = vrcp.f32 %v4824_v38  ;;  %v4548_v8 = vpop.f32.mrf.mxu0  ;;  %v5009_v11 = vmul.f32 %v7410_v18, %v11732_v16 }
 0x374   : > { %v7414_v26 = vpop.eup %7413  ;;  %v5010_v33 = vmul.f32 %v7412_v15, %v11737_v60  ;;  %7439 = vrcp.f32 %v4825_v10  ;;  %v7052_v63 = vmul.f32 -1.442695, %v11825_v21  ;;  %v11831_v4 = vadd.f32 %v4548_v8, %v11601_v28  ;;  %5306 = vmatmul.mubr.f32.gmra.mxu1 %v5007_v40 }
 0x375   : > { %v7416_v2 = vpop.eup %7415  ;;  %v4826_v31 = vadd.f32 1.0, %v7414_v26  ;;  %7441 = vpow2.f32 %v7051_v23  ;;  %v4550_v36 = vpop.f32.mrf.mxu0 }
 0x376   : > { %v7418_v1 = vpop.eup %7417  ;;  %v4827_v54 = vadd.f32 1.0, %v7416_v2  ;;  %7443 = vpow2.f32 %v7052_v63  ;;  %v7053_v58 = vmul.f32 -1.442695, %v11831_v4  ;;  %v11836_v60 = vadd.f32 %v4550_v36, %v11605_v27  ;;  %7085 = vmatprep.mubr.msk.f32.mxu1 %vm5074_vm3, %v5010_v33 }
 0x377   : > { %v7420_v12 = vpop.eup %7419  ;;  %7445 = vrcp.f32 %v4826_v31  ;;  %v4554_v62 = vpop.f32.mrf.mxu0  ;;  %v5011_v3 = vmul.f32 %v7418_v1, %v11743_v51 }
 0x378   : > { %v7422_v53 = vpop.eup %7421  ;;  %7447 = vrcp.f32 %v4827_v54  ;;  %v4828_v22 = vadd.f32 1.0, %v7420_v12  ;;  %v7054_v16 = vmul.f32 -1.442695, %v11836_v60  ;;  %v11841_v42 = vadd.f32 %v4554_v62, %v11601_v28  ;;  %5311 = vmatmul.mubr.f32.gmra.mxu1 %v5009_v11 }
 0x379   : > { %v7424_v55 = vpop.eup %7423  ;;  %v5012_v50 = vmul.f32 %v7422_v53, %v11748_v37  ;;  %7449 = vpow2.f32 %v7053_v58  ;;  %v4556_v46 = vpop.f32.mrf.mxu0 }
 0x37a   : > { %v7426_v7 = vpop.eup %7425  ;;  %7451 = vrcp.f32 %v4828_v22  ;;  %v4829_v13 = vadd.f32 1.0, %v7424_v55  ;;  %v7055_v19 = vmul.f32 -1.442695, %v11841_v42  ;;  %v11847_v0 = vadd.f32 %v4556_v46, %v11605_v27 }
 0x37b   : > { %v7428_v52 = vpop.eup %7427  ;;  %7453 = vpow2.f32 %v7054_v16  ;;  %7086 = vmatprep.mubr.msk.f32.mxu1 %vm5074_vm3, %v5012_v50  ;;  %v4560_v47 = vpop.f32.mrf.mxu0  ;;  %v5013_v61 = vmul.f32 %v7426_v7, %v11753_v20 }
 0x37c   : > { %v7430_v43 = vpop.eup %7429  ;;  %7455 = vrcp.f32 %v4829_v13  ;;  %v4830_v51 = vadd.f32 1.0, %v7428_v52  ;;  %v7056_v37 = vmul.f32 -1.442695, %v11847_v0  ;;  %v11852_v48 = vadd.f32 %v4560_v47, %v11601_v28  ;;  %5316 = vmatmul.mubr.f32.gmra.mxu1 %v5011_v3 }
 0x37d   : > { %v7432_v39 = vpop.eup %7431  ;;  %v5014_v30 = vmul.f32 %v7430_v43, %v11759_v17  ;;  %7457 = vpow2.f32 %v7055_v19  ;;  %v4562_v45 = vpop.f32.mrf.mxu0 }
 0x37e   : > { %v7434_v14 = vpop.eup %7433  ;;  %7459 = vrcp.f32 %v4830_v51  ;;  %v4831_v6 = vadd.f32 1.0, %v7432_v39  ;;  %v7057_v40 = vmul.f32 -1.442695, %v11852_v48  ;;  %v11858_v38 = vadd.f32 %v4562_v45, %v11605_v27 }
 0x37f   : > { %v7436_v35 = vpop.eup %7435  ;;  %7461 = vpow2.f32 %v7056_v37  ;;  %7087 = vmatprep.mubr.msk.f32.mxu1 %vm5074_vm3, %v5014_v30  ;;  %v4566_v18 = vpop.f32.mrf.mxu0  ;;  %v5015_v63 = vmul.f32 %v7434_v14, %v11764_v25 }
 0x380   : > { %v7438_v10 = vpop.eup %7437  ;;  %7463 = vrcp.f32 %v4831_v6  ;;  %v4832_v20 = vadd.f32 1.0, %v7436_v35  ;;  %v7058_v17 = vmul.f32 -1.442695, %v11858_v38  ;;  %v11863_v23 = vadd.f32 %v4566_v18, %v11601_v28  ;;  %5321 = vmatmul.mubr.f32.gmra.mxu1 %v5013_v61 }
 0x381   : > { %v7440_v15 = vpop.eup %7439  ;;  %v5016_v8 = vmul.f32 %v7438_v10, %v11770_v56  ;;  %7465 = vpow2.f32 %v7057_v40  ;;  %v4568_v26 = vpop.f32.mrf.mxu0 }
 0x382   : > { %v7442_v33 = vpop.eup %7441  ;;  %7467 = vrcp.f32 %v4832_v20  ;;  %v7059_v2 = vmul.f32 -1.442695, %v11863_v23  ;;  %v11869_v11 = vadd.f32 %v4568_v26, %v11605_v27  ;;  %v5017_v53 = vmul.f32 %v7440_v15, %v11775_v57 }
 0x383   : > { %v7444_v31 = vpop.eup %7443  ;;  %v4833_v36 = vadd.f32 1.0, %v7442_v33  ;;  %7469 = vpow2.f32 %v7058_v17  ;;  %7088 = vmatprep.mubr.msk.f32.mxu1 %vm5074_vm3, %v5016_v8  ;;  %v4572_v12 = vpop.f32.mrf.mxu0 }
 0x384   : > { %v7446_v1 = vpop.eup %7445  ;;  %v4834_v54 = vadd.f32 1.0, %v7444_v31  ;;  %7471 = vpow2.f32 %v7059_v2  ;;  %v7060_v56 = vmul.f32 -1.442695, %v11869_v11  ;;  %5326 = vmatmul.mubr.f32.gmra.mxu1 %v5015_v63  ;;  %v11876_v22 = vadd.f32 %v4572_v12, %v11601_v28 }
 0x385   : > { %v7448_v58 = vpop.eup %7447  ;;  %v5018_v25 = vmul.f32 %v7446_v1, %v11781_v29  ;;  %7473 = vrcp.f32 %v4833_v36  ;;  %v4574_v3 = vpop.f32.mrf.mxu0 }
 0x386   : > { %v7450_v62 = vpop.eup %7449  ;;  %7475 = vrcp.f32 %v4834_v54  ;;  %v7061_v29 = vmul.f32 -1.442695, %v11876_v22  ;;  %v11882_v7 = vadd.f32 %v4574_v3, %v11605_v27  ;;  %v5019_v52 = vmul.f32 %v7448_v58, %v11786_v59 }
 0x387   : > { %v7452_v16 = vpop.eup %7451  ;;  %v4835_v55 = vadd.f32 1.0, %v7450_v62  ;;  %7477 = vpow2.f32 %v7060_v56  ;;  %7089 = vmatprep.mubr.msk.f32.mxu1 %vm5074_vm3, %v5018_v25 }
 0x388   : > { %v7454_v50 = vpop.eup %7453  ;;  %v5020_v46 = vmul.f32 %v7452_v16, %v11792_v41  ;;  %5331 = vmatmul.mubr.f32.gmra.mxu1 %v5017_v53  ;;  %v7062_v47 = vmul.f32 -1.442695, %v11882_v7 }
 0x389   : > { %v7456_v57 = vpop.eup %7455  ;;  %7479 = vrcp.f32 %v4835_v55  ;;  %v4836_v13 = vadd.f32 1.0, %v7454_v50 }
 0x38a   : > { %v7458_v19 = vpop.eup %7457  ;;  %7481 = vpow2.f32 %v7061_v29  ;;  %7090 = vmatprep.mubr.msk.f32.mxu1 %vm5074_vm3, %v5020_v46  ;;  %v5021_v45 = vmul.f32 %v7456_v57, %v11798_v32 }
 0x38b   : > { %v7460_v43 = vpop.eup %7459  ;;  %7483 = vrcp.f32 %v4836_v13  ;;  %v4837_v41 = vadd.f32 1.0, %v7458_v19 }
 0x38c   : > { %v7462_v51 = vpop.eup %7461  ;;  %v5022_v37 = vmul.f32 %v7460_v43, %v11803_v44  ;;  %7485 = vpow2.f32 %v7062_v47  ;;  %5336 = vmatmul.mubr.f32.gmra.mxu1 %v5019_v52 }
 0x38d   : > { %v7464_v39 = vpop.eup %7463  ;;  %v4838_v61 = vadd.f32 1.0, %v7462_v51  ;;  %7487 = vrcp.f32 %v4837_v41 }
 0x38e   : > { %v7466_v30 = vpop.eup %7465  ;;  %7091 = vmatprep.mubr.msk.f32.mxu1 %vm5074_vm3, %v5022_v37  ;;  %v5023_v10 = vmul.f32 %v7464_v39, %v11809_v5 }
 0x38f   : > { %v7468_v59 = vpop.eup %7467  ;;  %7489 = vrcp.f32 %v4838_v61  ;;  %v4839_v14 = vadd.f32 1.0, %v7466_v30 }
 0x390   : > { %v7470_v6 = vpop.eup %7469  ;;  %v5024_v40 = vmul.f32 %v7468_v59, %v11814_v24  ;;  %5341 = vmatmul.mubr.f32.gmra.mxu1 %v5021_v45 }
 0x391   : > { %v7472_v35 = vpop.eup %7471  ;;  %v4840_v18 = vadd.f32 1.0, %v7470_v6  ;;  %7491 = vrcp.f32 %v4839_v14 }
 0x392   : > { %v7474_v44 = vpop.eup %7473  ;;  %v4841_v20 = vadd.f32 1.0, %v7472_v35  ;;  %7092 = vmatprep.mubr.msk.f32.mxu1 %vm5074_vm3, %v5024_v40 }
 0x393   : > { %v7476_v32 = vpop.eup %7475  ;;  %7493 = vrcp.f32 %v4840_v18  ;;  %v5025_v24 = vmul.f32 %v7474_v44, %v11820_v9 }
 0x394   : > { %v7478_v17 = vpop.eup %7477  ;;  %v5026_v15 = vmul.f32 %v7476_v32, %v11825_v21  ;;  %5346 = vmatmul.mubr.f32.gmra.mxu1 %v5023_v10  ;;  %7495 = vrcp.f32 %v4841_v20 }
 0x395   : > { %v4842_v8 = vadd.f32 1.0, %v7478_v17  ;;  %v4578_v33 = vpop.f32.mrf.mxu0 }
 0x396   : > { %v7480_v26 = vpop.eup %7479  ;;  %7093 = vmatprep.mubr.msk.f32.mxu1 %vm5074_vm3, %v5026_v15  ;;  %v11897_v5 = vadd.f32 %v4578_v33, %v11601_v28 }
 0x397   : > { %v7482_v63 = vpop.eup %7481  ;;  %7497 = vrcp.f32 %v4842_v8  ;;  %v4580_v36 = vpop.f32.mrf.mxu0  ;;  %v5027_v56 = vmul.f32 %v7480_v26, %v11831_v4 }
 0x398   : > { %v7484_v2 = vpop.eup %7483  ;;  %v4843_v31 = vadd.f32 1.0, %v7482_v63  ;;  %5351 = vmatmul.mubr.f32.gmra.mxu1 %v5025_v24  ;;  %v7063_v54 = vmul.f32 -1.442695, %v11897_v5  ;;  %v4581_v9 = vadd.f32 %v4580_v36, %v11605_v27 }
 0x399   : > { %v7486_v1 = vpop.eup %7485  ;;  %v5028_v21 = vmul.f32 %v7484_v2, %v11836_v60 }
 0x39a   : > { %7499 = vrcp.f32 %v4843_v31  ;;  %v4844_v58 = vadd.f32 1.0, %v7486_v1  ;;  %v7488_v25 = vpop.eup %7487  ;;  %v7064_v12 = vmul.f32 -1.442695, %v4581_v9 }
 0x39b   : > { %7501 = vpow2.f32 %v7063_v54  ;;  %7094 = vmatprep.mubr.msk.f32.mxu1 %vm5074_vm3, %v5028_v21  ;;  %v5029_v60 = vmul.f32 %v7488_v25, %v11841_v42 }
 0x39c   : > { %v7490_v62 = vpop.eup %7489  ;;  %7503 = vrcp.f32 %v4844_v58  ;;  %5356 = vmatmul.mubr.f32.gmra.mxu1 %v5027_v56 }
 0x39d   : > { %v5030_v53 = vmul.f32 %v7490_v62, %v11847_v0  ;;  %7505 = vpow2.f32 %v7064_v12 }
 0x39e   : > { %v7492_v16 = vpop.eup %7491 }
 0x39f   : > { %7095 = vmatprep.mubr.msk.f32.mxu1 %vm5074_vm3, %v5030_v53  ;;  %v5031_v3 = vmul.f32 %v7492_v16, %v11852_v48 }
 0x3a0   : > { %v7494_v55 = vpop.eup %7493  ;;  %5361 = vmatmul.mubr.f32.gmra.mxu1 %v5029_v60 }
 0x3a1   : > { %v5032_v4 = vmul.f32 %v7494_v55, %v11858_v38  ;;  %v7496_v50 = vpop.eup %7495 }
 0x3a2   : > { %v5033_v0 = vmul.f32 %v7496_v50, %v11863_v23 }
 0x3a3   : > { %7096 = vmatprep.mubr.msk.f32.mxu1 %vm5074_vm3, %v5032_v4 }
 0x3a4   : > { %v7498_v46 = vpop.eup %7497  ;;  %5366 = vmatmul.mubr.f32.gmra.mxu1 %v5031_v3 }
 0x3a5   : > { %v5034_v29 = vmul.f32 %v7498_v46, %v11869_v11 }
 0x3a7   : > { %v7500_v57 = vpop.eup %7499  ;;  %7097 = vmatprep.mubr.msk.f32.mxu1 %vm5074_vm3, %v5034_v29 }
 0x3a8   : > { %v7502_v42 = vpop.eup %7501  ;;  %v4584_v13 = vpop.f32.mrf.mxu0  ;;  %5371 = vmatmul.mubr.f32.gmra.mxu1 %v5033_v0  ;;  %v5035_v41 = vmul.f32 %v7500_v57, %v11876_v22 }
 0x3a9   : > { %v7504_v19 = vpop.eup %7503  ;;  %v4845_v52 = vadd.f32 1.0, %v7502_v42  ;;  %v4585_v38 = vadd.f32 %v4584_v13, %v11601_v28 }
 0x3aa   : > { %v7506_v48 = vpop.eup %7505  ;;  %v5036_v47 = vmul.f32 %v7504_v19, %v11882_v7  ;;  %v4586_v43 = vpop.f32.mrf.mxu0 }
 0x3ab   : > { %v4846_v51 = vadd.f32 1.0, %v7506_v48  ;;  %v7065_v11 = vmul.f32 -1.442695, %v4585_v38  ;;  %v4587_v23 = vadd.f32 %v4586_v43, %v11605_v27  ;;  %7507 = vrcp.f32 %v4845_v52 }
 0x3ac   : > { %7098 = vmatprep.mubr.msk.f32.mxu1 %vm5074_vm3, %v5036_v47 }
 0x3ad   : > { %7509 = vrcp.f32 %v4846_v51  ;;  %v7066_v37 = vmul.f32 -1.442695, %v4587_v23  ;;  %5376 = vmatmul.mubr.f32.gmra.mxu1 %v5035_v41 }
 0x3ae   : > { %7511 = vpow2.f32 %v7065_v11 }
 0x3af   : > { %7513 = vpow2.f32 %v7066_v37 }
 0x3b8   : > { %v7508_v39 = vpop.eup %7507 }
 0x3b9   : > { %v4590_v30 = vpop.f32.mrf.mxu0  ;;  %v5037_v14 = vmul.f32 %v7508_v39, %v11897_v5 }
 0x3ba   : > { %v7510_v61 = vpop.eup %7509  ;;  %v4591_v59 = vadd.f32 %v4590_v30, %v11601_v28 }
 0x3bb   : > { %v7512_v45 = vpop.eup %7511  ;;  %v5038_v7 = vmul.f32 %v7510_v61, %v4581_v9  ;;  %v4592_v40 = vpop.f32.mrf.mxu0 }
 0x3bc   : > { %v7514_v22 = vpop.eup %7513  ;;  %v4847_v6 = vadd.f32 1.0, %v7512_v45  ;;  %v7067_v18 = vmul.f32 -1.442695, %v4591_v59  ;;  %v4593_v44 = vadd.f32 %v4592_v40, %v11605_v27 }
 0x3bd   : > { %v4848_v35 = vadd.f32 1.0, %v7514_v22  ;;  %7099 = vmatprep.mubr.msk.f32.mxu1 %vm5074_vm3, %v5038_v7 }
 0x3be   : > { %7515 = vrcp.f32 %v4847_v6  ;;  %5381 = vmatmul.mubr.f32.gmra.mxu1 %v5037_v14  ;;  %v7068_v10 = vmul.f32 -1.442695, %v4593_v44  ;;  %v11960_v14 = vld [vmem:[%s675_s25] ss:$0 sm:$0xff] }
 0x3bf   : > { %7517 = vrcp.f32 %v4848_v35 }
 0x3c0   : > { %7519 = vpow2.f32 %v7067_v18  ;;  %v5692_v18 = vld [vmem:[%s680_s23 + $0x8] sm:$0xff] }
 0x3c1   : > { %7521 = vpow2.f32 %v7068_v10  ;;  %7154 = vmatpush3.msra.mxu0 %v5692_v18 }
 0x3c2   : > { %7155 = vmatprep.subr.mxu0 %v14130_v34 }
 0x3cb   : > { %v7516_v20 = vpop.eup %7515 }
 0x3cc   : > { %v7518_v32 = vpop.eup %7517  ;;  %v5039_v8 = vmul.f32 %v7516_v20, %v4585_v38  ;;  %v5691_v20 = vld [vmem:[%s680_s23] sm:$0xff]  ;;  %s689_s23 = scalar_lea.vmem %s12743_s13, %s7942_s18 }
 0x3cd   : > { %v7520_v28 = vpop.eup %7519  ;;  %v5040_v17 = vmul.f32 %v7518_v32, %v4587_v23  ;;  %7156 = vmatpush3.msra.mxu0 %v5691_v20 }
 0x3ce   : > { %v7522_v15 = vpop.eup %7521  ;;  %v4849_v26 = vadd.f32 1.0, %v7520_v28  ;;  %7160 = vmatprep.subr.mxu0 %v14130_v34 }
 0x3cf   : > { %v4850_v24 = vadd.f32 1.0, %v7522_v15  ;;  %7100 = vmatprep.mubr.msk.f32.mxu1 %vm5074_vm3, %v5040_v17 }
 0x3d0   : > { %7523 = vrcp.f32 %v4849_v26  ;;  %5386 = vmatmul.mubr.f32.gmra.mxu1 %v5039_v8 }
 0x3d1   : > { %7525 = vrcp.f32 %v4850_v24 }
 0x3dd   : > { %v7524_v27 = vpop.eup %7523 }
 0x3de   : > { %v7526_v33 = vpop.eup %7525  ;;  %v5041_v5 = vmul.f32 %v7524_v27, %v4591_v59 }
 0x3df   : > { %v5042_v63 = vmul.f32 %v7526_v33, %v4593_v44  ;;  %v5237_v2 = vpop.f32.mrf.mxu0 }
 0x3e0   : > { %v11963_v40 = vadd.f32 %v11960_v14, %v5237_v2 }
 0x3e1   : > { %7101 = vmatprep.mubr.msk.f32.mxu1 %vm5074_vm3, %v5042_v63  ;;  %v5239_v31 = vpop.f32.mrf.mxu0 }
 0x3e2   : > { %5391 = vmatmul.mubr.f32.gmra.mxu1 %v5041_v5  ;;  %v7102_v32 = vmul.f32 -1.442695, %v11963_v40 }
 0x3e4   : > { %7527 = vpow2.f32 %v7102_v32 }
 0x3e6   : > { %v5242_v36 = vpop.f32.mrf.mxu0 }
 0x3e7   : > { %v11973_v44 = vadd.f32 %v11960_v14, %v5242_v36 }
 0x3e8   : > { %v5244_v1 = vpop.f32.mrf.mxu0 }
 0x3e9   : > { %v7103_v15 = vmul.f32 -1.442695, %v11973_v44 }
 0x3eb   : > { %7529 = vpow2.f32 %v7103_v15 }
 0x3f7   : > { %v5247_v21 = vpop.f32.mrf.mxu0 }
 0x3f8   : > { %v11982_v17 = vadd.f32 %v11960_v14, %v5247_v21 }
 0x3f9   : > { %v5249_v54 = vpop.f32.mrf.mxu0 }
 0x3fa   : > { %v7104_v27 = vmul.f32 -1.442695, %v11982_v17 }
 0x3fc   : > { %7531 = vpow2.f32 %v7104_v27 }
 0x408   : > { %v5252_v9 = vpop.f32.mrf.mxu1 }
 0x409   : > { %v11987_v26 = vadd.f32 %v11960_v14, %v5252_v9 }
 0x40a   : > { %v5254_v56 = vpop.f32.mrf.mxu1 }
 0x40b   : > { %v7105_v5 = vmul.f32 -1.442695, %v11987_v26 }
 0x40c   : > { %v5257_v58 = vpop.f32.mrf.mxu1 }
 0x40d   : > { %v11993_v33 = vadd.f32 %v11960_v14, %v5257_v58  ;;  %7533 = vpow2.f32 %v7105_v5 }
 0x40e   : > { %v5259_v25 = vpop.f32.mrf.mxu1 }
 0x40f   : > { %v7106_v36 = vmul.f32 -1.442695, %v11993_v33 }
 0x410   : > { %v5262_v12 = vpop.f32.mrf.mxu1 }
 0x411   : > { %v11997_v2 = vadd.f32 %v11960_v14, %v5262_v12  ;;  %7535 = vpow2.f32 %v7106_v36 }
 0x412   : > { %v5264_v62 = vpop.f32.mrf.mxu1 }
 0x413   : > { %v7107_v54 = vmul.f32 -1.442695, %v11997_v2 }
 0x414   : > { %v11924_v53 = vpop.f32.mrf.mxu1 }
 0x415   : > { %v12004_v1 = vadd.f32 %v11960_v14, %v11924_v53  ;;  %7537 = vpow2.f32 %v7107_v54  ;;  %v7528_v53 = vpop.eup %7527 }
 0x416   : > { %v5269_v60 = vpop.f32.mrf.mxu1 }
 0x417   : > { %v7108_v58 = vmul.f32 -1.442695, %v12004_v1 }
 0x418   : > { %v11926_v16 = vpop.f32.mrf.mxu1 }
 0x419   : > { %v12011_v56 = vadd.f32 %v11960_v14, %v11926_v16  ;;  %7539 = vpow2.f32 %v7108_v58 }
 0x41a   : > { %v5274_v55 = vpop.f32.mrf.mxu1 }
 0x41b   : > { %v7109_v60 = vmul.f32 -1.442695, %v12011_v56 }
 0x41c   : > { %v11928_v4 = vpop.f32.mrf.mxu1 }
 0x41d   : > { %v12016_v12 = vadd.f32 %v11960_v14, %v11928_v4  ;;  %v5492_v4 = vadd.f32 1.0, %v7528_v53  ;;  %7541 = vpow2.f32 %v7109_v60 }
 0x41e   : > { %v5279_v3 = vpop.f32.mrf.mxu1 }
 0x41f   : > { %v7530_v3 = vpop.eup %7529 }
 0x420   : > { %v11930_v50 = vpop.f32.mrf.mxu1 }
 0x421   : > { %v12023_v55 = vadd.f32 %v11960_v14, %v11930_v50  ;;  %v7532_v50 = vpop.eup %7531 }
 0x422   : > { %v5284_v46 = vpop.f32.mrf.mxu1 }
 0x423   : > { %v7110_v46 = vmul.f32 -1.442695, %v12016_v12 }
 0x424   : > { %v11932_v29 = vpop.f32.mrf.mxu1 }
 0x425   : > { %7543 = vpow2.f32 %v7110_v46 }
 0x426   : > { %v5289_v0 = vpop.f32.mrf.mxu1  ;;  %7545 = vrcp.f32 %v5492_v4 }
 0x427   : > { %v12028_v0 = vadd.f32 %v11960_v14, %v11932_v29 }
 0x428   : > { %v11934_v57 = vpop.f32.mrf.mxu1 }
 0x429   : > { %v7112_v29 = vmul.f32 -1.442695, %v12028_v0 }
 0x42a   : > { %v5294_v42 = vpop.f32.mrf.mxu1 }
 0x42b   : > { %v12032_v42 = vadd.f32 %v11960_v14, %v11934_v57 }
 0x42c   : > { %v11936_v13 = vpop.f32.mrf.mxu1 }
 0x42d   : > { %v7113_v57 = vmul.f32 -1.442695, %v12032_v42 }
 0x42e   : > { %v5299_v19 = vpop.f32.mrf.mxu1 }
 0x42f   : > { %v7111_v19 = vmul.f32 -1.442695, %v12023_v55 }
 0x430   : > { %v11938_v52 = vpop.f32.mrf.mxu1 }
 0x431   : > { %7547 = vpow2.f32 %v7111_v19 }
 0x432   : > { %v5304_v38 = vpop.f32.mrf.mxu1 }
 0x434   : > { %v11940_v48 = vpop.f32.mrf.mxu1 }
 0x436   : > { %v5309_v47 = vpop.f32.mrf.mxu1 }
 0x437   : > { %v5493_v47 = vadd.f32 1.0, %v7530_v3 }
 0x438   : > { %v11942_v43 = vpop.f32.mrf.mxu1 }
 0x439   : > { %7549 = vrcp.f32 %v5493_v47 }
 0x43a   : > { %v5314_v41 = vpop.f32.mrf.mxu1  ;;  %7551 = vpow2.f32 %v7112_v29 }
 0x43b   : > { %v12039_v41 = vadd.f32 %v11960_v14, %v11936_v13  ;;  %v12050_v13 = vadd.f32 %v11960_v14, %v11940_v48  ;;  %7553 = vpow2.f32 %v7113_v57 }
 0x43c   : > { %v11944_v51 = vpop.f32.mrf.mxu1 }
 0x43d   : > { %v7116_v15 = vmul.f32 -1.442695, %v12050_v13  ;;  %v12060_v48 = vadd.f32 %v11960_v14, %v11944_v51 }
 0x43e   : > { %v5319_v11 = vpop.f32.mrf.mxu1 }
 0x43f   : > { %v7118_v54 = vmul.f32 -1.442695, %v12060_v48 }
 0x440   : > { %v11946_v23 = vpop.f32.mrf.mxu1 }
 0x441   : > { %v12065_v5 = vadd.f32 %v11960_v14, %v11946_v23 }
 0x442   : > { %v5324_v37 = vpop.f32.mrf.mxu1 }
 0x443   : > { %v7534_v37 = vpop.eup %7533  ;;  %v7119_v58 = vmul.f32 -1.442695, %v12065_v5 }
 0x444   : > { %v11948_v39 = vpop.f32.mrf.mxu1  ;;  %v5495_v18 = vadd.f32 1.0, %v7534_v37 }
 0x446   : > { %v5329_v61 = vpop.f32.mrf.mxu1 }
 0x447   : > { %v12045_v61 = vadd.f32 %v11960_v14, %v11938_v52  ;;  %v12055_v52 = vadd.f32 %v11960_v14, %v11942_v43 }
 0x448   : > { %v11950_v30 = vpop.f32.mrf.mxu1 }
 0x449   : > { %v7115_v20 = vmul.f32 -1.442695, %v12045_v61 }
 0x44a   : > { %v5334_v45 = vpop.f32.mrf.mxu1 }
 0x44b   : > { %v5494_v45 = vadd.f32 1.0, %v7532_v50 }
 0x44c   : > { %v11952_v7 = vpop.f32.mrf.mxu1 }
 0x44d   : > { %7555 = vrcp.f32 %v5494_v45 }
 0x44e   : > { %v5339_v59 = vpop.f32.mrf.mxu1 }
 0x44f   : > { %v7536_v59 = vpop.eup %7535 }
 0x450   : > { %v11958_v22 = vpop.f32.mrf.mxu1  ;;  %v5496_v32 = vadd.f32 1.0, %v7536_v59 }
 0x452   : > { %v5344_v6 = vpop.f32.mrf.mxu1 }
 0x453   : > { %v7114_v6 = vmul.f32 -1.442695, %v12039_v41 }
 0x454   : > { %v11965_v35 = vpop.f32.mrf.mxu1 }
 0x455   : > { %7557 = vpow2.f32 %v7114_v6  ;;  %v12092_v59 = vadd.f32 %v11960_v14, %v11965_v35 }
 0x456   : > { %v5349_v10 = vpop.f32.mrf.mxu1  ;;  %7559 = vrcp.f32 %v5495_v18 }
 0x457   : > { %v7538_v10 = vpop.eup %7537  ;;  %7561 = vpow2.f32 %v7115_v20 }
 0x458   : > { %v11979_v28 = vpop.f32.mrf.mxu1  ;;  %v5497_v27 = vadd.f32 1.0, %v7538_v10  ;;  %7563 = vrcp.f32 %v5496_v32 }
 0x459   : > { %7565 = vpow2.f32 %v7116_v15  ;;  %v12100_v32 = vadd.f32 %v11960_v14, %v11979_v28 }
 0x45a   : > { %v5354_v8 = vpop.f32.mrf.mxu1  ;;  %7567 = vrcp.f32 %v5497_v27 }
 0x45b   : > { %v7540_v8 = vpop.eup %7539 }
 0x45c   : > { %v11989_v24 = vpop.f32.mrf.mxu1  ;;  %v7542_v43 = vpop.eup %7541  ;;  %v5498_v36 = vadd.f32 1.0, %v7540_v8 }
 0x45d   : > { %v7544_v51 = vpop.eup %7543  ;;  %v5499_v53 = vadd.f32 1.0, %v7542_v43  ;;  %v12111_v43 = vadd.f32 %v11960_v14, %v11989_v24 }
 0x45e   : > { %v5359_v63 = vpop.f32.mrf.mxu1  ;;  %v7546_v23 = vpop.eup %7545  ;;  %v5500_v4 = vadd.f32 1.0, %v7544_v51 }
 0x45f   : > { %v7117_v63 = vmul.f32 -1.442695, %v12055_v52  ;;  %v7548_v60 = vpop.eup %7547  ;;  %v12103_v8 = vmul.f32 %v7546_v23, %v11963_v40 }
 0x460   : > { %v11999_v31 = vpop.f32.mrf.mxu1  ;;  %v7550_v46 = vpop.eup %7549  ;;  %v5501_v29 = vadd.f32 1.0, %v7548_v60 }
 0x461   : > { %7569 = vpow2.f32 %v7117_v63  ;;  %v7552_v19 = vpop.eup %7551  ;;  %v12095_v18 = vmul.f32 %v7550_v46, %v11973_v44  ;;  %v7124_v63 = vmul.f32 -1.442695, %v12092_v59  ;;  %v5620_v24 = vsel %vm4151_vm0, %v12103_v8, 0.0 }
 0x462   : > { %v5364_v21 = vpop.f32.mrf.mxu1  ;;  %7571 = vrcp.f32 %v5498_v36  ;;  %v7554_v47 = vpop.eup %7553  ;;  %v5502_v45 = vadd.f32 1.0, %v7552_v19 }
 0x463   : > { %v12069_v21 = vadd.f32 %v11960_v14, %v11948_v39  ;;  %v12080_v39 = vadd.f32 %v11960_v14, %v11952_v7  ;;  %7573 = vpow2.f32 %v7118_v54  ;;  %v7556_v37 = vpop.eup %7555  ;;  %v5503_v10 = vadd.f32 1.0, %v7554_v47 }
 0x464   : > { %v12007_v9 = vpop.f32.mrf.mxu1  ;;  %7575 = vpow2.f32 %v7119_v58  ;;  %v7558_v57 = vpop.eup %7557  ;;  %v12106_v44 = vmul.f32 %v7556_v37, %v11982_v17  ;;  %v5621_v28 = vsel %vm4151_vm0, %v12095_v18, 0.0  ;;  %v7125_v17 = vmul.f32 -1.442695, %v12100_v32 }
 0x465   : > { %7577 = vrcp.f32 %v5499_v53  ;;  %v7122_v7 = vmul.f32 -1.442695, %v12080_v39  ;;  %v7560_v6 = vpop.eup %7559  ;;  %v5504_v35 = vadd.f32 1.0, %v7558_v57  ;;  %v12121_v58 = vadd.f32 %v11960_v14, %v11999_v31 }
 0x466   : > { %v5369_v25 = vpop.f32.mrf.mxu1  ;;  %v7562_v20 = vpop.eup %7561  ;;  %v12116_v51 = vmul.f32 %v7560_v6, %v11987_v26  ;;  %v12127_v53 = vadd.f32 %v11960_v14, %v12007_v9  ;;  %v5623_v26 = vsel %vm4151_vm0, %v12106_v44, 0.0  ;;  %v7126_v31 = vmul.f32 -1.442695, %v12111_v43 }
 0x467   : > { %v12075_v25 = vadd.f32 %v11960_v14, %v11950_v30  ;;  %v7564_v15 = vpop.eup %7563  ;;  %v5505_v40 = vadd.f32 1.0, %v7562_v20  ;;  %v7127_v47 = vmul.f32 -1.442695, %v12121_v58 }
 0x468   : > { %v12018_v62 = vpop.f32.mrf.mxu1  ;;  %v7566_v27 = vpop.eup %7565  ;;  %v5625_v9 = vsel %vm4151_vm0, %v12116_v51, 0.0 }
 0x469   : > { %v7121_v30 = vmul.f32 -1.442695, %v12075_v25  ;;  %v7568_v36 = vpop.eup %7567  ;;  %v5506_v23 = vadd.f32 1.0, %v7566_v27 }
 0x46a   : > { %v5374_v16 = vpop.f32.mrf.mxu1  ;;  %v12136_v19 = vmul.f32 %v7568_v36, %v11997_v2  ;;  %v7128_v2 = vmul.f32 -1.442695, %v12127_v53 }
 0x46b   : > { %v7120_v16 = vmul.f32 -1.442695, %v12069_v21 }
 0x46d   : > { %v12035_v38 = vpop.f32.mrf.mxu1  ;;  %7579 = vpow2.f32 %v7120_v16  ;;  %v12132_v16 = vmul.f32 %v7564_v15, %v11993_v33  ;;  %v12143_v33 = vadd.f32 %v11960_v14, %v12018_v62 }
 0x46e   : > { %7581 = vrcp.f32 %v5500_v4  ;;  %v7570_v54 = vpop.eup %7569  ;;  %v5622_v4 = vadd.f32 %v5621_v28, %v5620_v24 }
 0x46f   : > { %v5379_v11 = vpop.f32.mrf.mxu1  ;;  %7583 = vpow2.f32 %v7121_v30  ;;  %v7572_v60 = vpop.eup %7571  ;;  %v5507_v30 = vadd.f32 1.0, %v7570_v54 }
 0x470   : > { %v12087_v11 = vadd.f32 %v11960_v14, %v11958_v22  ;;  %7585 = vrcp.f32 %v5501_v29  ;;  %v7574_v46 = vpop.eup %7573  ;;  %v5624_v37 = vadd.f32 %v5623_v26, %v5622_v4 }
 0x471   : > { %7587 = vpow2.f32 %v7122_v7  ;;  %v12146_v7 = vmul.f32 %v7572_v60, %v12004_v1  ;;  %v5508_v6 = vadd.f32 1.0, %v7574_v46 }
 0x472   : > { %v7123_v22 = vmul.f32 -1.442695, %v12087_v11  ;;  %7589 = vrcp.f32 %v5502_v45  ;;  %v5627_v45 = vsel %vm4151_vm0, %v12132_v16, 0.0  ;;  %v5626_v20 = vadd.f32 %v5625_v9, %v5624_v37 }
 0x473   : > { %7591 = vrcp.f32 %v5503_v10  ;;  %v12153_v10 = vadd.f32 %v11960_v14, %v12035_v38 }
 0x474   : > { %7593 = vpow2.f32 %v7123_v22  ;;  %v5629_v22 = vsel %vm4151_vm0, %v12136_v19, 0.0  ;;  %v5628_v28 = vadd.f32 %v5627_v45, %v5626_v20 }
 0x475   : > { %7595 = vrcp.f32 %v5504_v35 }
 0x476   : > { %7597 = vpow2.f32 %v7124_v63  ;;  %v7129_v63 = vmul.f32 -1.442695, %v12143_v33  ;;  %v5630_v26 = vadd.f32 %v5629_v22, %v5628_v28 }
 0x477   : > { %7599 = vrcp.f32 %v5505_v40  ;;  %v5631_v40 = vsel %vm4151_vm0, %v12146_v7, 0.0 }
 0x478   : > { %7601 = vpow2.f32 %v7125_v17  ;;  %v5632_v9 = vadd.f32 %v5631_v40, %v5630_v26 }
 0x479   : > { %7603 = vrcp.f32 %v5506_v23 }
 0x47a   : > { %7605 = vpow2.f32 %v7126_v31 }
 0x47e   : > { %v12082_v3 = vpop.f32.mrf.mxu1 }
 0x47f   : > { %v12163_v36 = vadd.f32 %v11960_v14, %v12082_v3 }
 0x480   : > { %v5384_v50 = vpop.f32.mrf.mxu1 }
 0x481   : > { %v7576_v50 = vpop.eup %7575  ;;  %7607 = vrcp.f32 %v5507_v30 }
 0x482   : > { %v7578_v29 = vpop.eup %7577  ;;  %v5509_v1 = vadd.f32 1.0, %v7576_v50  ;;  %7609 = vpow2.f32 %v7127_v47 }
 0x483   : > { %v7580_v57 = vpop.eup %7579  ;;  %v12158_v27 = vmul.f32 %v7578_v29, %v12011_v56  ;;  %7611 = vpow2.f32 %v7128_v2  ;;  %v7130_v56 = vmul.f32 -1.442695, %v12153_v10 }
 0x484   : > { %v7582_v62 = vpop.eup %7581  ;;  %v5510_v54 = vadd.f32 1.0, %v7580_v57  ;;  %7613 = vrcp.f32 %v5508_v6 }
 0x485   : > { %v7584_v35 = vpop.eup %7583  ;;  %v12168_v23 = vmul.f32 %v7582_v62, %v12016_v12  ;;  %7615 = vrcp.f32 %v5509_v1  ;;  %v5633_v4 = vsel %vm4151_vm0, %v12158_v27, 0.0  ;;  %v7131_v12 = vmul.f32 -1.442695, %v12163_v36 }
 0x486   : > { %v7586_v38 = vpop.eup %7585  ;;  %v5511_v31 = vadd.f32 1.0, %v7584_v35  ;;  %7617 = vpow2.f32 %v7129_v63 }
 0x487   : > { %v7588_v24 = vpop.eup %7587  ;;  %v12177_v30 = vmul.f32 %v7586_v38, %v12023_v55  ;;  %7619 = vrcp.f32 %v5510_v54  ;;  %v5635_v37 = vsel %vm4151_vm0, %v12168_v23, 0.0  ;;  %v5634_v55 = vadd.f32 %v5633_v4, %v5632_v9 }
 0x488   : > { %v7590_v3 = vpop.eup %7589  ;;  %v5512_v47 = vadd.f32 1.0, %v7588_v24  ;;  %7621 = vpow2.f32 %v7130_v56 }
 0x489   : > { %v7592_v46 = vpop.eup %7591  ;;  %v12183_v2 = vmul.f32 %v7590_v3, %v12028_v0  ;;  %7623 = vrcp.f32 %v5511_v31  ;;  %v5637_v62 = vsel %vm4151_vm0, %v12177_v30, 0.0 }
 0x48a   : > { %v7594_v50 = vpop.eup %7593  ;;  %v12189_v20 = vmul.f32 %v7592_v46, %v12032_v42  ;;  %7625 = vpow2.f32 %v7131_v12 }
 0x48b   : > { %v7596_v29 = vpop.eup %7595  ;;  %v5513_v22 = vadd.f32 1.0, %v7594_v50  ;;  %7627 = vrcp.f32 %v5512_v47  ;;  %v5639_v35 = vsel %vm4151_vm0, %v12183_v2, 0.0 }
 0x48c   : > { %v7598_v45 = vpop.eup %7597  ;;  %v12194_v63 = vmul.f32 %v7596_v29, %v12039_v41  ;;  %v5641_v42 = vsel %vm4151_vm0, %v12189_v20, 0.0 }
 0x48d   : > { %v7600_v6 = vpop.eup %7599  ;;  %v5514_v38 = vadd.f32 1.0, %v7598_v45 }
 0x48e   : > { %v7602_v1 = vpop.eup %7601  ;;  %v5643_v41 = vsel %vm4151_vm0, %v12194_v63, 0.0 }
 0x48f   : > { %v7604_v0 = vpop.eup %7603  ;;  %v5515_v24 = vadd.f32 1.0, %v7602_v1 }
 0x490   : > { %v5387_v15 = vpop.f32.mrf.mxu1  ;;  %v7606_v28 = vpop.eup %7605  ;;  %v12204_v31 = vmul.f32 %v7604_v0, %v12050_v13 }
 0x491   : > { %v12172_v60 = vadd.f32 %v11960_v14, %v5387_v15  ;;  %v5636_v15 = vadd.f32 %v5635_v37, %v5634_v55  ;;  %v7608_v54 = vpop.eup %7607  ;;  %v5516_v46 = vadd.f32 1.0, %v7606_v28 }
 0x492   : > { %v5389_v17 = vpop.f32.mrf.mxu1  ;;  %v7610_v56 = vpop.eup %7609  ;;  %v12207_v50 = vmul.f32 %v7608_v54, %v12055_v52  ;;  %v5647_v13 = vsel %vm4151_vm0, %v12204_v31, 0.0 }
 0x493   : > { %v7132_v57 = vmul.f32 -1.442695, %v12172_v60  ;;  %v5638_v40 = vadd.f32 %v5637_v62, %v5636_v15  ;;  %v12199_v17 = vmul.f32 %v7600_v6, %v12045_v61  ;;  %v7612_v26 = vpop.eup %7611  ;;  %v5517_v47 = vadd.f32 1.0, %v7610_v56 }
 0x494   : > { %v7614_v4 = vpop.eup %7613  ;;  %v5649_v1 = vsel %vm4151_vm0, %v12207_v50, 0.0 }
 0x495   : > { %7629 = vpow2.f32 %v7132_v57  ;;  %v5640_v3 = vadd.f32 %v5639_v35, %v5638_v40  ;;  %v7616_v61 = vpop.eup %7615  ;;  %v5645_v9 = vsel %vm4151_vm0, %v12199_v17, 0.0  ;;  %v5518_v57 = vadd.f32 1.0, %v7612_v26 }
 0x496   : > { %7631 = vrcp.f32 %v5513_v22  ;;  %v7618_v29 = vpop.eup %7617  ;;  %v12214_v6 = vmul.f32 %v7614_v4, %v12060_v48  ;;  %v12222_v35 = vmul.f32 %v7616_v61, %v12065_v5 }
 0x497   : > { %7633 = vrcp.f32 %v5514_v38  ;;  %v5642_v12 = vadd.f32 %v5641_v42, %v5640_v3  ;;  %v7620_v55 = vpop.eup %7619  ;;  %v5519_v38 = vadd.f32 1.0, %v7618_v29 }
 0x498   : > { %7635 = vrcp.f32 %v5515_v24  ;;  %v7622_v62 = vpop.eup %7621  ;;  %v12228_v42 = vmul.f32 %v7620_v55, %v12069_v21  ;;  %v5653_v5 = vsel %vm4151_vm0, %v12222_v35, 0.0 }
 0x499   : > { %v5644_v37 = vadd.f32 %v5643_v41, %v5642_v12  ;;  %7637 = vrcp.f32 %v5516_v46  ;;  %v7624_v0 = vpop.eup %7623  ;;  %v5520_v24 = vadd.f32 1.0, %v7622_v62 }
 0x49a   : > { %7639 = vrcp.f32 %v5517_v47  ;;  %v7626_v48 = vpop.eup %7625  ;;  %v12233_v26 = vmul.f32 %v7624_v0, %v12075_v25  ;;  %v5655_v12 = vsel %vm4151_vm0, %v12228_v42, 0.0 }
 0x49b   : > { %v5646_v22 = vadd.f32 %v5645_v9, %v5644_v37  ;;  %7641 = vrcp.f32 %v5518_v57  ;;  %v7628_v54 = vpop.eup %7627  ;;  %v5521_v41 = vadd.f32 1.0, %v7626_v48 }
 0x49c   : > { %v12238_v21 = vmul.f32 %v7628_v54, %v12080_v39  ;;  %v5657_v29 = vsel %vm4151_vm0, %v12233_v26, 0.0 }
 0x49d   : > { %v5648_v40 = vadd.f32 %v5647_v13, %v5646_v22 }
 0x49f   : > { %v5650_v3 = vadd.f32 %v5649_v1, %v5648_v40 }
 0x4a2   : > { %v5392_v45 = vpop.f32.mrf.mxu1  ;;  %v7630_v56 = vpop.eup %7629 }
 0x4a3   : > { %v12217_v52 = vadd.f32 %v11960_v14, %v5392_v45  ;;  %v5651_v14 = vsel %vm4151_vm0, %v12214_v6, 0.0  ;;  %v7632_v46 = vpop.eup %7631  ;;  %v5522_v61 = vadd.f32 1.0, %v7630_v56  ;;  %v5659_v45 = vsel %vm4151_vm0, %v12238_v21, 0.0 }
 0x4a4   : > { %v5394_v15 = vpop.f32.mrf.mxu1  ;;  %v5652_v4 = vadd.f32 %v5651_v14, %v5650_v3  ;;  %v7634_v9 = vpop.eup %7633  ;;  %v12243_v25 = vmul.f32 %v7632_v46, %v12087_v11 }
 0x4a5   : > { %v7133_v28 = vmul.f32 -1.442695, %v12217_v52  ;;  %v7636_v37 = vpop.eup %7635  ;;  %v12248_v55 = vmul.f32 %v7634_v9, %v12092_v59 }
 0x4a6   : > { %v5654_v47 = vadd.f32 %v5653_v5, %v5652_v4  ;;  %v7638_v39 = vpop.eup %7637  ;;  %v5661_v62 = vsel %vm4151_vm0, %v12243_v25, 0.0  ;;  %v12253_v22 = vmul.f32 %v7636_v37, %v12100_v32 }
 0x4a7   : > { %7643 = vpow2.f32 %v7133_v28  ;;  %v7640_v11 = vpop.eup %7639  ;;  %v5663_v0 = vsel %vm4151_vm0, %v12248_v55, 0.0 }
 0x4a8   : > { %7645 = vrcp.f32 %v5519_v38  ;;  %v5656_v57 = vadd.f32 %v5655_v12, %v5654_v47  ;;  %v7642_v15 = vpop.eup %7641  ;;  %v12258_v38 = vmul.f32 %v7638_v39, %v12111_v43  ;;  %v5665_v48 = vsel %vm4151_vm0, %v12253_v22, 0.0 }
 0x4a9   : > { %7647 = vrcp.f32 %v5520_v24  ;;  %v12263_v40 = vmul.f32 %v7640_v11, %v12121_v58  ;;  %v12268_v56 = vmul.f32 %v7642_v15, %v12127_v53 }
 0x4aa   : > { %7649 = vrcp.f32 %v5521_v41  ;;  %v5658_v13 = vadd.f32 %v5657_v29, %v5656_v57  ;;  %v5667_v24 = vsel %vm4151_vm0, %v12258_v38, 0.0 }
 0x4ab   : > { %7651 = vrcp.f32 %v5522_v61  ;;  %v5669_v5 = vsel %vm4151_vm0, %v12263_v40, 0.0  ;;  %v5671_v4 = vsel %vm4151_vm0, %v12268_v56, 0.0 }
 0x4ac   : > { %v5660_v1 = vadd.f32 %v5659_v45, %v5658_v13 }
 0x4ae   : > { %v5662_v28 = vadd.f32 %v5661_v62, %v5660_v1 }
 0x4b0   : > { %v5664_v14 = vadd.f32 %v5663_v0, %v5662_v28 }
 0x4b2   : > { %v5666_v3 = vadd.f32 %v5665_v48, %v5664_v14  ;;  %v5693_v14 = vld [vmem:[%s683_s28] sm:$0x1] }
 0x4b4   : > { %v7644_v59 = vpop.eup %7643  ;;  %v5668_v46 = vadd.f32 %v5667_v24, %v5666_v3 }
 0x4b5   : > { %v5523_v54 = vadd.f32 1.0, %v7644_v59  ;;  %v7646_v32 = vpop.eup %7645 }
 0x4b6   : > { %v7648_v43 = vpop.eup %7647  ;;  %v12273_v41 = vmul.f32 %v7646_v32, %v12143_v33  ;;  %v5670_v53 = vadd.f32 %v5669_v5, %v5668_v46 }
 0x4b7   : > { %7653 = vrcp.f32 %v5523_v54  ;;  %v7650_v58 = vpop.eup %7649  ;;  %v12278_v12 = vmul.f32 %v7648_v43, %v12153_v10 }
 0x4b8   : > { %v7652_v61 = vpop.eup %7651  ;;  %v5673_v9 = vsel %vm4151_vm0, %v12273_v41, 0.0  ;;  %v12283_v47 = vmul.f32 %v7650_v58, %v12163_v36  ;;  %v5672_v29 = vadd.f32 %v5671_v4, %v5670_v53 }
 0x4b9   : > { %v5675_v33 = vsel %vm4151_vm0, %v12278_v12, 0.0  ;;  %v12288_v37 = vmul.f32 %v7652_v61, %v12172_v60  ;;  %v5775_v61 = vld [vmem:[%s689_s23] sm:$0x1] }
 0x4ba   : > { %v5674_v57 = vadd.f32 %v5673_v9, %v5672_v29  ;;  %v5677_v10 = vsel %vm4151_vm0, %v12283_v47, 0.0 }
 0x4bb   : > { %v5679_v39 = vsel %vm4151_vm0, %v12288_v37, 0.0 }
 0x4bc   : > { %v5676_v45 = vadd.f32 %v5675_v33, %v5674_v57 }
 0x4be   : > { %v5678_v62 = vadd.f32 %v5677_v10, %v5676_v45 }
 0x4c0   : > { %v5680_v11 = vadd.f32 %v5679_v39, %v5678_v62 }
 0x4c4   : > { %v7654_v13 = vpop.eup %7653 }
 0x4c5   : > { %v12295_v36 = vmul.f32 %v7654_v13, %v12217_v52  ;;  %v5774_v52 = vld [vmem:[%s686_s26] sm:$0x1]  ;;  %s7139_s26 = sshll.u32 %s5930_s20, 7 }
 0x4c6   : > { %s5934_s25 = sadd.s32 %s7139_s26, %s5933_s1 }
 0x4c7   : > { %v5681_v60 = vsel %vm4151_vm0, %v12295_v36, 0.0  ;;  %s5935_s28 = sld [smem:[#allocation2 + %s5934_s25]] }
 0x4c8   : > { %v5682_v1 = vadd.f32 %v5681_v60, %v5680_v11 }
 0x4ca   : > { %v5683_v15 = vrot.slane %v5682_v1, 4 }
 0x4cc   : > { %v5684_v0 = vadd.f32 %v5683_v15, %v5682_v1 }
 0x4cd   : > { %v12318_v13 = vstv %s5935_s28 }
 0x4ce   : > { %v5685_v59 = vrot.slane %v5684_v0, 2 }
 0x4d0   : > { %v5686_v28 = vadd.f32 %v5685_v59, %v5684_v0 }
 0x4d2   : > { %v5687_v48 = vrot.slane %v5686_v28, 1 }
 0x4d4   : > { %v5688_v54 = vadd.f32 %v5687_v48, %v5686_v28 }
 0x4d6   : > { %v5690_v32 = vmul.f32 0.00390625, %v5688_v54  ;;  %v7715_v54 = vld [vmem:[%s7967_s22 + $0x62] sm:$0xff] }
 0x4d8   : > { %7158 = vmatmul.mubr.msk.f32.vlgmr.msra.gmra.mxu0 %vm4151_vm0, %v5690_v32  ;;  %v7716_v32 = vld [vmem:[%s7967_s22 + $0x6a] sm:$0xff] }
 0x4d9   : > { %7162 = vmatprep.mubr.msk.f32.mxu0 %vm7806_vm4, %v14130_v34  ;;  %7161 = vmatpush3.msk.msra.mxu0 %vm5780_vm5, %v5774_v52  ;;  %v7717_v52 = vld [vmem:[%s7967_s22 + $0x7a] sm:$0xff] }
 0x598   : > { %v5763_v24 = vpop.f32.mrf.mxu0 }
 0x599   : > { %v5764_v43 = vadd.f32 %v5763_v24, %v5693_v14  ;;  %v7718_v24 = vld [vmem:[%s7967_s22 + $0x82] sm:$0xff] }
 0x59a   : > { %v7159_v3 = vpop.f32.mrf.mxu0 }
 0x59b   : > { %v7135_v5 = vmul.f32 -1.442695, %v5764_v43  ;;  %v7719_v3 = vld [vmem:[%s7967_s22 + $0x92] sm:$0xff] }
 0x59d   : > { %7655 = vpow2.f32 %v7135_v5 }
 0x5aa   : > { %v7656_v34 = vpop.eup %7655 }
 0x5ab   : > { %v5770_v58 = vadd.f32 1.0, %v7656_v34  ;;  %v7720_v34 = vld [vmem:[%s7967_s22 + $0x9a] sm:$0xff] }
 0x5ad   : > { %7657 = vrcp.f32 %v5770_v58 }
 0x5ba   : > { %v7658_v46 = vpop.eup %7657 }
 0x5bb   : > { %v5773_v4 = vmul.f32 %v7658_v46, %v5764_v43  ;;  %v7721_v46 = vld [vmem:[%s7967_s22 + $0xaa] sm:$0xff] }
 0x5bd   : > { %7163 = vmatmul.mubr.msk.f32.vlgmr.msra.gmra.mxu0 %vm5776_vm6, %v5773_v4 }
 0x67d   : > { %v5850_v53 = vpop.f32.mrf.mxu0 }
 0x67e   : > { %v5851_v9 = vadd.f32 %v5850_v53, %v5775_v61  ;;  %v7722_v61 = vld [vmem:[%s7967_s22 + $0xb2] sm:$0xff] }
 0x67f   : > { %v7164_v29 = vpop.f32.mrf.mxu0 }
 0x680   : > { %v7138_v33 = vmul.f32 -1.442695, %v5851_v9  ;;  %v7723_v9 = vld [vmem:[%s7967_s22 + $0xc2] sm:$0xff] }
 0x682   : > { %7659 = vpow2.f32 %v7138_v33  ;;  %v7724_v33 = vld [vmem:[%s7967_s22 + $0xca] sm:$0xff] }
 0x68f   : > { %v7660_v57 = vpop.eup %7659 }
 0x690   : > { %v5857_v10 = vadd.f32 1.0, %v7660_v57 }
 0x692   : > { %7661 = vrcp.f32 %v5857_v10  ;;  %v7725_v10 = vld [vmem:[%s7967_s22 + $0xda] sm:$0xff] }
 0x69f   : > { %v7662_v45 = vpop.eup %7661 }
 0x6a0   : > { %v5863_v39 = vrot.slane %v7662_v45, %v14200_v49 }
 0x6a2   : > { %v5864_v62 = vmul.f32 %v5863_v39, %v12103_v8  ;;  %v5865_v11 = vmul.f32 %v5863_v39, %v12095_v18  ;;  %v5866_v60 = vmul.f32 %v5863_v39, %v12106_v44  ;;  %v5867_v1 = vmul.f32 %v5863_v39, %v12116_v51 }
 0x6a3   : > { %v5868_v15 = vmul.f32 %v5863_v39, %v12132_v16  ;;  %v5869_v0 = vmul.f32 %v5863_v39, %v12136_v19  ;;  %v5870_v59 = vmul.f32 %v5863_v39, %v12146_v7  ;;  %v5871_v28 = vmul.f32 %v5863_v39, %v12158_v27 }
 0x6a4   : > { %v5872_v49 = vmul.f32 %v5863_v39, %v12168_v23  ;;  %v5873_v48 = vmul.f32 %v5863_v39, %v12177_v30  ;;  %v5874_v8 = vmul.f32 %v5863_v39, %v12183_v2  ;;  %v5875_v18 = vmul.f32 %v5863_v39, %v12189_v20 }
 0x6a5   : > { %v5876_v44 = vmul.f32 %v5863_v39, %v12194_v63  ;;  %v5877_v51 = vmul.f32 %v5863_v39, %v12199_v17  ;;  %v5878_v16 = vmul.f32 %v5863_v39, %v12204_v31  ;;  %v5879_v19 = vmul.f32 %v5863_v39, %v12207_v50 }
 0x6a6   : > { %v5880_v7 = vmul.f32 %v5863_v39, %v12214_v6  ;;  %v5881_v27 = vmul.f32 %v5863_v39, %v12222_v35  ;;  %v5882_v23 = vmul.f32 %v5863_v39, %v12228_v42  ;;  %v5883_v30 = vmul.f32 %v5863_v39, %v12233_v26 }
 0x6a7   : > { %v5884_v2 = vmul.f32 %v5863_v39, %v12238_v21  ;;  %v5885_v20 = vmul.f32 %v5863_v39, %v12243_v25  ;;  %v5886_v63 = vmul.f32 %v5863_v39, %v12248_v55  ;;  %v5887_v17 = vmul.f32 %v5863_v39, %v12253_v22  ;;  %v7711_v55 = vld [vmem:[%s7967_s22 + $0x32] sm:$0xff] }
 0x6a8   : > { %v5888_v31 = vmul.f32 %v5863_v39, %v12258_v38  ;;  %v5889_v50 = vmul.f32 %v5863_v39, %v12263_v40  ;;  %v5890_v6 = vmul.f32 %v5863_v39, %v12268_v56  ;;  %v5891_v35 = vmul.f32 %v5863_v39, %v12273_v41  ;;  %v7712_v38 = vld [vmem:[%s7967_s22 + $0x3a] sm:$0xff]  ;;  %v7713_v56 = vld [vmem:[%s7967_s22 + $0x4a] sm:$0xff] }
 0x6a9   : > { %v5892_v42 = vmul.f32 %v5863_v39, %v12278_v12  ;;  %v5893_v26 = vmul.f32 %v5863_v39, %v12283_v47  ;;  %v12351_v21 = vmul.f32 %v5863_v39, %v12288_v37  ;;  %v12354_v25 = vmul.f32 %v5863_v39, %v12295_v36  ;;  %v7714_v12 = vld [vmem:[%s7967_s22 + $0x52] sm:$0xff]  ;;  %v7726_v39 = vld [vmem:[%s7967_s22 + $0xe2] sm:$0xff] }
 0x6aa   : > { %v12357_v22 = vadd.f32 %v7711_v55, %v5864_v62  ;;  %v5897_v40 = vadd.f32 %v7712_v38, %v5865_v11  ;;  %v5898_v41 = vadd.f32 %v7713_v56, %v5866_v60  ;;  %v5899_v47 = vadd.f32 %v7714_v12, %v5867_v1  ;;  %v7727_v11 = vld [vmem:[%s7967_s22 + $0xf2] sm:$0xff]  ;;  %v7728_v1 = vld [vmem:[%s7967_s22 + $0xfa] sm:$0xff] }
 0x6ab   : > { %v5900_v37 = vadd.f32 %v7715_v54, %v5868_v15  ;;  %v5901_v36 = vadd.f32 %v7716_v32, %v5869_v0  ;;  %v5902_v14 = vadd.f32 %v7717_v52, %v5870_v59  ;;  %v5903_v43 = vadd.f32 %v7718_v24, %v5871_v28  ;;  %v7729_v0 = vld [vmem:[%s7967_s22 + $0x10a] sm:$0xff]  ;;  %v7730_v28 = vld [vmem:[%s7967_s22 + $0x112] sm:$0xff]  ;;  %v7736_v38 = vld [vmem:[%s7967_s22 + $0x15a] sm:$0xff] }
 0x6ac   : > { %v5904_v5 = vadd.f32 %v7719_v3, %v5872_v49  ;;  %v5905_v58 = vadd.f32 %v7720_v34, %v5873_v48  ;;  %v5906_v4 = vadd.f32 %v7721_v46, %v5874_v8  ;;  %v5907_v53 = vadd.f32 %v7722_v61, %v5875_v18  ;;  %v7731_v48 = vld [vmem:[%s7967_s22 + $0x122] sm:$0xff]  ;;  %v7732_v18 = vld [vmem:[%s7967_s22 + $0x12a] sm:$0xff]  ;;  %v7735_v55 = vld [vmem:[%s7967_s22 + $0x152] sm:$0xff] }
 0x6ad   : > { %v5908_v29 = vadd.f32 %v7723_v9, %v5876_v44  ;;  %v5909_v57 = vadd.f32 %v7724_v33, %v5877_v51  ;;  %v5910_v45 = vadd.f32 %v7725_v10, %v5878_v16  ;;  %v5911_v62 = vadd.f32 %v7726_v39, %v5879_v19  ;;  %v7733_v51 = vld [vmem:[%s7967_s22 + $0x13a] sm:$0xff]  ;;  %v7734_v19 = vld [vmem:[%s7967_s22 + $0x142] sm:$0xff]  ;;  %v7738_v54 = vld [vmem:[%s7967_s22 + $0x172] sm:$0xff] }
 0x6ae   : > { %v5912_v60 = vadd.f32 %v7727_v11, %v5880_v7  ;;  %v5913_v15 = vadd.f32 %v7728_v1, %v5881_v27  ;;  %v5914_v59 = vadd.f32 %v7729_v0, %v5882_v23  ;;  %v5915_v49 = vadd.f32 %v7730_v28, %v5883_v30  ;;  %v7737_v23 = vld [vmem:[%s7967_s22 + $0x16a] sm:$0xff]  ;;  %v7739_v32 = vld [vmem:[%s7967_s22 + $0x182] sm:$0xff]  ;;  %v7741_v3 = vld [vmem:[%s7967_s22 + $0x19a] sm:$0xff] }
 0x6af   : > { %v5916_v8 = vadd.f32 %v7731_v48, %v5884_v2  ;;  %v5917_v44 = vadd.f32 %v7732_v18, %v5885_v20  ;;  %v5918_v16 = vadd.f32 %v7733_v51, %v5886_v63  ;;  %v5919_v7 = vadd.f32 %v7734_v19, %v5887_v17  ;;  %v7740_v2 = vld [vmem:[%s7967_s22 + $0x18a] sm:$0xff]  ;;  %v7742_v34 = vld [vmem:[%s7967_s22 + $0x1a2] sm:$0xff] }
 0x6b0   : > { %v5920_v27 = vadd.f32 %v7735_v55, %v5888_v31  ;;  %v5921_v56 = vadd.f32 %v7736_v38, %v5889_v50  ;;  %v5922_v12 = vadd.f32 %v7737_v23, %v5890_v6  ;;  %v5923_v30 = vadd.f32 %v7738_v54, %v5891_v35 }
 0x6b1   : > { %v5924_v52 = vadd.f32 %v7739_v32, %v5892_v42  ;;  %v5925_v24 = vadd.f32 %v7740_v2, %v5893_v26  ;;  %v5926_v20 = vadd.f32 %v7741_v3, %v12351_v21  ;;  %v5927_v63 = vadd.f32 %v7742_v34, %v12354_v25 }
 0x6b2   : > { %v12394_v17 = vmul.f32 %v12318_v13, %v12357_v22  ;;  %v12397_v31 = vmul.f32 %v12318_v13, %v5897_v40  ;;  %v12400_v50 = vmul.f32 %v12318_v13, %v5898_v41  ;;  %v12403_v6 = vmul.f32 %v12318_v13, %v5899_v47 }
 0x6b3   : > { %v12406_v35 = vmul.f32 %v12318_v13, %v5900_v37  ;;  %v12409_v42 = vmul.f32 %v12318_v13, %v5901_v36  ;;  %v12412_v26 = vmul.f32 %v12318_v13, %v5902_v14  ;;  %v12415_v21 = vmul.f32 %v12318_v13, %v5903_v43 }
 0x6b4   : > { %v12418_v25 = vmul.f32 %v12318_v13, %v5904_v5  ;;  %v12421_v22 = vmul.f32 %v12318_v13, %v5905_v58  ;;  %v12424_v40 = vmul.f32 %v12318_v13, %v5906_v4  ;;  %v12427_v41 = vmul.f32 %v12318_v13, %v5907_v53 }
 0x6b5   : > { %v12430_v47 = vmul.f32 %v12318_v13, %v5908_v29  ;;  %v12433_v37 = vmul.f32 %v12318_v13, %v5909_v57  ;;  %v12436_v36 = vmul.f32 %v12318_v13, %v5910_v45  ;;  %v12439_v14 = vmul.f32 %v12318_v13, %v5911_v62  ;;  %5972 = sbr.rel (%p7140_p3) target bundleno = 1738 (0x6ca), region = 84 }
 0x6b6   : > { %v12442_v43 = vmul.f32 %v12318_v13, %v5912_v60  ;;  %v12445_v5 = vmul.f32 %v12318_v13, %v5913_v15  ;;  %v12448_v58 = vmul.f32 %v12318_v13, %v5914_v59  ;;  %v12451_v46 = vmul.f32 %v12318_v13, %v5915_v49 }
 0x6b7   : > { %v12454_v4 = vmul.f32 %v12318_v13, %v5916_v8  ;;  %v12457_v61 = vmul.f32 %v12318_v13, %v5917_v44  ;;  %v12460_v53 = vmul.f32 %v12318_v13, %v5918_v16  ;;  %v12463_v9 = vmul.f32 %v12318_v13, %v5919_v7 }
 0x6b8   : > { %v12466_v29 = vmul.f32 %v12318_v13, %v5920_v27  ;;  %v12469_v33 = vmul.f32 %v12318_v13, %v5921_v56  ;;  %v12472_v57 = vmul.f32 %v12318_v13, %v5922_v12  ;;  %v12475_v10 = vmul.f32 %v12318_v13, %v5923_v30 }
 0x6b9   : > { %v12478_v45 = vmul.f32 %v12318_v13, %v5924_v52  ;;  %v12481_v39 = vmul.f32 %v12318_v13, %v5925_v24  ;;  %v12484_v62 = vmul.f32 %v12318_v13, %v5926_v20  ;;  %v12487_v11 = vmul.f32 %v12318_v13, %v5927_v63 }
 0x6ba   : > { %5973 = vst.msk [vmem:[%s7989_s21] sm:$0xff] %vm4151_vm0, %v12394_v17  ;;  %5974 = vst.msk [vmem:[%s7989_s21 + $0x8] sm:$0xff] %vm4151_vm0, %v12397_v31 }
 0x6bb   : > { %5975 = vst.msk [vmem:[%s7989_s21 + $0x10] sm:$0xff] %vm4151_vm0, %v12400_v50  ;;  %5976 = vst.msk [vmem:[%s7989_s21 + $0x18] sm:$0xff] %vm4151_vm0, %v12403_v6 }
 0x6bc   : > { %5977 = vst.msk [vmem:[%s7989_s21 + $0x20] sm:$0xff] %vm4151_vm0, %v12406_v35  ;;  %5978 = vst.msk [vmem:[%s7989_s21 + $0x28] sm:$0xff] %vm4151_vm0, %v12409_v42 }
 0x6bd   : > { %5979 = vst.msk [vmem:[%s7989_s21 + $0x30] sm:$0xff] %vm4151_vm0, %v12412_v26  ;;  %5980 = vst.msk [vmem:[%s7989_s21 + $0x38] sm:$0xff] %vm4151_vm0, %v12415_v21 }
 0x6be   : > { %5981 = vst.msk [vmem:[%s7989_s21 + $0x40] sm:$0xff] %vm4151_vm0, %v12418_v25  ;;  %5982 = vst.msk [vmem:[%s7989_s21 + $0x48] sm:$0xff] %vm4151_vm0, %v12421_v22 }
 0x6bf   : > { %5983 = vst.msk [vmem:[%s7989_s21 + $0x50] sm:$0xff] %vm4151_vm0, %v12424_v40  ;;  %5984 = vst.msk [vmem:[%s7989_s21 + $0x58] sm:$0xff] %vm4151_vm0, %v12427_v41 }
 0x6c0   : > { %5985 = vst.msk [vmem:[%s7989_s21 + $0x60] sm:$0xff] %vm4151_vm0, %v12430_v47  ;;  %5986 = vst.msk [vmem:[%s7989_s21 + $0x68] sm:$0xff] %vm4151_vm0, %v12433_v37 }
 0x6c1   : > { %5987 = vst.msk [vmem:[%s7989_s21 + $0x70] sm:$0xff] %vm4151_vm0, %v12436_v36  ;;  %5988 = vst.msk [vmem:[%s7989_s21 + $0x78] sm:$0xff] %vm4151_vm0, %v12439_v14 }
 0x6c2   : > { %5989 = vst.msk [vmem:[%s7989_s21 + $0x80] sm:$0xff] %vm4151_vm0, %v12442_v43  ;;  %5990 = vst.msk [vmem:[%s7989_s21 + $0x88] sm:$0xff] %vm4151_vm0, %v12445_v5 }
 0x6c3   : > { %5991 = vst.msk [vmem:[%s7989_s21 + $0x90] sm:$0xff] %vm4151_vm0, %v12448_v58  ;;  %5992 = vst.msk [vmem:[%s7989_s21 + $0x98] sm:$0xff] %vm4151_vm0, %v12451_v46 }
 0x6c4   : > { %5993 = vst.msk [vmem:[%s7989_s21 + $0xa0] sm:$0xff] %vm4151_vm0, %v12454_v4  ;;  %5994 = vst.msk [vmem:[%s7989_s21 + $0xa8] sm:$0xff] %vm4151_vm0, %v12457_v61 }
 0x6c5   : > { %5995 = vst.msk [vmem:[%s7989_s21 + $0xb0] sm:$0xff] %vm4151_vm0, %v12460_v53  ;;  %5996 = vst.msk [vmem:[%s7989_s21 + $0xb8] sm:$0xff] %vm4151_vm0, %v12463_v9 }
 0x6c6   : > { %5997 = vst.msk [vmem:[%s7989_s21 + $0xc0] sm:$0xff] %vm4151_vm0, %v12466_v29  ;;  %5998 = vst.msk [vmem:[%s7989_s21 + $0xc8] sm:$0xff] %vm4151_vm0, %v12469_v33 }
 0x6c7   : > { %5999 = vst.msk [vmem:[%s7989_s21 + $0xd0] sm:$0xff] %vm4151_vm0, %v12472_v57  ;;  %6000 = vst.msk [vmem:[%s7989_s21 + $0xd8] sm:$0xff] %vm4151_vm0, %v12475_v10 }
 0x6c8   : > { %6001 = vst.msk [vmem:[%s7989_s21 + $0xe0] sm:$0xff] %vm4151_vm0, %v12478_v45  ;;  %6002 = vst.msk [vmem:[%s7989_s21 + $0xe8] sm:$0xff] %vm4151_vm0, %v12481_v39 }
 0x6c9   : > { %6003 = vst.msk [vmem:[%s7989_s21 + $0xf0] sm:$0xff] %vm4151_vm0, %v12484_v62  ;;  %6004 = vst.msk [vmem:[%s7989_s21 + $0xf8] sm:$0xff] %vm4151_vm0, %v12487_v11 }
 0x6ca PF: > { %p7141_p5 = scmp.le.s32.totalorder %s7784_s29, 0 }
 0x6cc   : > { %6008 = sbr.rel (%p7141_p5) target bundleno = 1764 (0x6e4), region = 88 }
 0x6d1   : > { %v6009_v13 = vld [vmem:[%s7989_s21] sm:$0xff]  ;;  %v6010_v60 = vld [vmem:[%s7989_s21 + $0x8] sm:$0xff]  ;;  %v6011_v1 = vld [vmem:[%s7989_s21 + $0x10] sm:$0xff] }
 0x6d2   : > { %v6041_v15 = vadd.f32 %v6009_v13, %v12394_v17  ;;  %v6042_v0 = vadd.f32 %v6010_v60, %v12397_v31  ;;  %v6043_v59 = vadd.f32 %v6011_v1, %v12400_v50  ;;  %v6012_v28 = vld [vmem:[%s7989_s21 + $0x18] sm:$0xff]  ;;  %v6013_v49 = vld [vmem:[%s7989_s21 + $0x20] sm:$0xff]  ;;  %v6014_v48 = vld [vmem:[%s7989_s21 + $0x28] sm:$0xff] }
 0x6d3   : > { %v6044_v8 = vadd.f32 %v6012_v28, %v12403_v6  ;;  %v6045_v18 = vadd.f32 %v6013_v49, %v12406_v35  ;;  %v6046_v44 = vadd.f32 %v6014_v48, %v12409_v42  ;;  %v6015_v51 = vld [vmem:[%s7989_s21 + $0x30] sm:$0xff]  ;;  %v6016_v16 = vld [vmem:[%s7989_s21 + $0x38] sm:$0xff]  ;;  %v6017_v19 = vld [vmem:[%s7989_s21 + $0x40] sm:$0xff] }
 0x6d4   : > { %6073 = vst.msk [vmem:[%s7989_s21] sm:$0xff] %vm4151_vm0, %v6041_v15  ;;  %6074 = vst.msk [vmem:[%s7989_s21 + $0x8] sm:$0xff] %vm4151_vm0, %v6042_v0  ;;  %v6047_v7 = vadd.f32 %v6015_v51, %v12412_v26  ;;  %v6048_v55 = vadd.f32 %v6016_v16, %v12415_v21  ;;  %v6049_v27 = vadd.f32 %v6017_v19, %v12418_v25  ;;  %v6018_v38 = vld [vmem:[%s7989_s21 + $0x48] sm:$0xff]  ;;  %v6019_v56 = vld [vmem:[%s7989_s21 + $0x50] sm:$0xff] }
 0x6d5   : > { %6075 = vst.msk [vmem:[%s7989_s21 + $0x10] sm:$0xff] %vm4151_vm0, %v6043_v59  ;;  %v6020_v23 = vld [vmem:[%s7989_s21 + $0x58] sm:$0xff]  ;;  %6076 = vst.msk [vmem:[%s7989_s21 + $0x18] sm:$0xff] %vm4151_vm0, %v6044_v8  ;;  %v6050_v12 = vadd.f32 %v6018_v38, %v12421_v22  ;;  %v6051_v54 = vadd.f32 %v6019_v56, %v12424_v40  ;;  %v6021_v32 = vld [vmem:[%s7989_s21 + $0x60] sm:$0xff] }
 0x6d6   : > { %6077 = vst.msk [vmem:[%s7989_s21 + $0x20] sm:$0xff] %vm4151_vm0, %v6045_v18  ;;  %6078 = vst.msk [vmem:[%s7989_s21 + $0x28] sm:$0xff] %vm4151_vm0, %v6046_v44  ;;  %v6052_v30 = vadd.f32 %v6020_v23, %v12427_v41  ;;  %v6022_v52 = vld [vmem:[%s7989_s21 + $0x68] sm:$0xff]  ;;  %v6023_v2 = vld [vmem:[%s7989_s21 + $0x70] sm:$0xff]  ;;  %v6053_v24 = vadd.f32 %v6021_v32, %v12430_v47 }
 0x6d7   : > { %6079 = vst.msk [vmem:[%s7989_s21 + $0x30] sm:$0xff] %vm4151_vm0, %v6047_v7  ;;  %6080 = vst.msk [vmem:[%s7989_s21 + $0x38] sm:$0xff] %vm4151_vm0, %v6048_v55  ;;  %v6054_v3 = vadd.f32 %v6022_v52, %v12433_v37  ;;  %v6055_v20 = vadd.f32 %v6023_v2, %v12436_v36  ;;  %v6024_v34 = vld [vmem:[%s7989_s21 + $0x78] sm:$0xff]  ;;  %v6025_v63 = vld [vmem:[%s7989_s21 + $0x80] sm:$0xff] }
 0x6d8   : > { %6081 = vst.msk [vmem:[%s7989_s21 + $0x40] sm:$0xff] %vm4151_vm0, %v6049_v27  ;;  %v6026_v17 = vld [vmem:[%s7989_s21 + $0x88] sm:$0xff]  ;;  %6082 = vst.msk [vmem:[%s7989_s21 + $0x48] sm:$0xff] %vm4151_vm0, %v6050_v12  ;;  %v6056_v31 = vadd.f32 %v6024_v34, %v12439_v14  ;;  %v6057_v50 = vadd.f32 %v6025_v63, %v12442_v43  ;;  %v6027_v35 = vld [vmem:[%s7989_s21 + $0x90] sm:$0xff] }
 0x6d9   : > { %6083 = vst.msk [vmem:[%s7989_s21 + $0x50] sm:$0xff] %vm4151_vm0, %v6051_v54  ;;  %6084 = vst.msk [vmem:[%s7989_s21 + $0x58] sm:$0xff] %vm4151_vm0, %v6052_v30  ;;  %v6058_v6 = vadd.f32 %v6026_v17, %v12445_v5  ;;  %v6028_v42 = vld [vmem:[%s7989_s21 + $0x98] sm:$0xff]  ;;  %v6029_v26 = vld [vmem:[%s7989_s21 + $0xa0] sm:$0xff]  ;;  %v6059_v21 = vadd.f32 %v6027_v35, %v12448_v58 }
 0x6da   : > { %6085 = vst.msk [vmem:[%s7989_s21 + $0x60] sm:$0xff] %vm4151_vm0, %v6053_v24  ;;  %6086 = vst.msk [vmem:[%s7989_s21 + $0x68] sm:$0xff] %vm4151_vm0, %v6054_v3  ;;  %v6060_v25 = vadd.f32 %v6028_v42, %v12451_v46  ;;  %v6061_v22 = vadd.f32 %v6029_v26, %v12454_v4  ;;  %v6030_v40 = vld [vmem:[%s7989_s21 + $0xa8] sm:$0xff]  ;;  %v6031_v41 = vld [vmem:[%s7989_s21 + $0xb0] sm:$0xff] }
 0x6db   : > { %6087 = vst.msk [vmem:[%s7989_s21 + $0x70] sm:$0xff] %vm4151_vm0, %v6055_v20  ;;  %v6032_v47 = vld [vmem:[%s7989_s21 + $0xb8] sm:$0xff]  ;;  %6088 = vst.msk [vmem:[%s7989_s21 + $0x78] sm:$0xff] %vm4151_vm0, %v6056_v31  ;;  %v6062_v37 = vadd.f32 %v6030_v40, %v12457_v61  ;;  %v6063_v36 = vadd.f32 %v6031_v41, %v12460_v53  ;;  %v6033_v43 = vld [vmem:[%s7989_s21 + $0xc0] sm:$0xff] }
 0x6dc   : > { %6089 = vst.msk [vmem:[%s7989_s21 + $0x80] sm:$0xff] %vm4151_vm0, %v6057_v50  ;;  %6090 = vst.msk [vmem:[%s7989_s21 + $0x88] sm:$0xff] %vm4151_vm0, %v6058_v6  ;;  %v6064_v14 = vadd.f32 %v6032_v47, %v12463_v9  ;;  %v6034_v5 = vld [vmem:[%s7989_s21 + $0xc8] sm:$0xff]  ;;  %v6035_v58 = vld [vmem:[%s7989_s21 + $0xd0] sm:$0xff]  ;;  %v6065_v46 = vadd.f32 %v6033_v43, %v12466_v29 }
 0x6dd   : > { %6091 = vst.msk [vmem:[%s7989_s21 + $0x90] sm:$0xff] %vm4151_vm0, %v6059_v21  ;;  %6092 = vst.msk [vmem:[%s7989_s21 + $0x98] sm:$0xff] %vm4151_vm0, %v6060_v25  ;;  %v6066_v4 = vadd.f32 %v6034_v5, %v12469_v33  ;;  %v6067_v61 = vadd.f32 %v6035_v58, %v12472_v57  ;;  %v6036_v53 = vld [vmem:[%s7989_s21 + $0xd8] sm:$0xff]  ;;  %v6037_v9 = vld [vmem:[%s7989_s21 + $0xe0] sm:$0xff] }
 0x6de   : > { %6093 = vst.msk [vmem:[%s7989_s21 + $0xa0] sm:$0xff] %vm4151_vm0, %v6061_v22  ;;  %v6038_v13 = vld [vmem:[%s7989_s21 + $0xe8] sm:$0xff]  ;;  %6094 = vst.msk [vmem:[%s7989_s21 + $0xa8] sm:$0xff] %vm4151_vm0, %v6062_v37  ;;  %v6068_v29 = vadd.f32 %v6036_v53, %v12475_v10  ;;  %v6069_v33 = vadd.f32 %v6037_v9, %v12478_v45  ;;  %v6039_v60 = vld [vmem:[%s7989_s21 + $0xf0] sm:$0xff] }
 0x6df   : > { %6095 = vst.msk [vmem:[%s7989_s21 + $0xb0] sm:$0xff] %vm4151_vm0, %v6063_v36  ;;  %6096 = vst.msk [vmem:[%s7989_s21 + $0xb8] sm:$0xff] %vm4151_vm0, %v6064_v14  ;;  %v6070_v57 = vadd.f32 %v6038_v13, %v12481_v39  ;;  %v6040_v1 = vld [vmem:[%s7989_s21 + $0xf8] sm:$0xff]  ;;  %v6071_v15 = vadd.f32 %v6039_v60, %v12484_v62 }
 0x6e0   : > { %6097 = vst.msk [vmem:[%s7989_s21 + $0xc0] sm:$0xff] %vm4151_vm0, %v6065_v46  ;;  %6098 = vst.msk [vmem:[%s7989_s21 + $0xc8] sm:$0xff] %vm4151_vm0, %v6066_v4  ;;  %v6072_v0 = vadd.f32 %v6040_v1, %v12487_v11 }
 0x6e1   : > { %6099 = vst.msk [vmem:[%s7989_s21 + $0xd0] sm:$0xff] %vm4151_vm0, %v6067_v61  ;;  %6100 = vst.msk [vmem:[%s7989_s21 + $0xd8] sm:$0xff] %vm4151_vm0, %v6068_v29 }
 0x6e2   : > { %6101 = vst.msk [vmem:[%s7989_s21 + $0xe0] sm:$0xff] %vm4151_vm0, %v6069_v33  ;;  %6102 = vst.msk [vmem:[%s7989_s21 + $0xe8] sm:$0xff] %vm4151_vm0, %v6070_v57 }
 0x6e3   : > { %6103 = vst.msk [vmem:[%s7989_s21 + $0xf0] sm:$0xff] %vm4151_vm0, %v6071_v15  ;;  %6104 = vst.msk [vmem:[%s7989_s21 + $0xf8] sm:$0xff] %vm4151_vm0, %v6072_v0 }
 0x6e4 PF: > { %s25_s17 = sadd.s32 1, %s7800_s17   ;;  %s14203_s18 = sld [smem:[#allocation5_spill]] }
 0x6e5   : > { %p22_p6 = scmp.ge.s32.totalorder %s25_s17, 8   ;;  %s14204_s29 = smov %s7792_s15 }
 0x6e6   : > { %s14205_s30 = smov %s7796_s16  ;;  %s14206_s15 = smov %s14209_s19 }
 0x6e7   :  { %24 = sbr.rel (!%p22_p6) target bundleno = 6 (0x6), region = 159 }
 0x6ea   : > { %s14207_s16 = smov %s14203_s18 }
 0x6ec   :  { %6126 = vsyncpa [#allocation3], 1 }
 0x6ed   :  { %6128 = vsyncpa [#allocation3 + $0x1], 1 }

</bundles_post_ra>
